<compile_context>
chip_gen: v7x
topology: tpu7x:2x2x1
jax: 0.10.0
libtpu: 0.0.40
codegen_flags: <defaults>
</compile_context>

<pallas_src>
import functools

import jax
import jax.numpy as jnp
from jax.experimental import pallas as pl
from jax.experimental.pallas import tpu as pltpu


def _round_up(v, m):
    return ((v + m - 1) // m) * m


def _num_tensorcores():
    """Best-effort TensorCore count (2 on v7x, else 1); safe fallback = 1."""
    try:
        kind = jax.devices()[0].device_kind.lower()
        if "v7" in kind:
            return 2
    except Exception:
        pass
    return 1


def _make_fused_conv_kernel(C, n_layers, Wp, base, win, tot, n_img, n_buf):
    """Kernel applying the shared 3x3 conv `n_layers` times on `n_img` images.

    Layout (per image): lane-dense, zero-padded, flattened slab (C, TOT); lane
    (base + y_p*Wp + x_p) holds the value at padded spatial coord (y_p, x_p).
    Tap (dy, dx) is a window read at lane offset base + (dy-1)*Wp + (dx-1);
    the dx = +/-1 taps are derived from the dx = 0 window by a circular lane
    roll (wrapped lanes land on halo/junk positions that are masked/discarded).
    """
    row_off = [base + (dy - 1) * Wp for dy in range(3)]
    tail = tot - base - win
    del n_buf  # implied by len(bufs)

    def kernel(w_ref, mask_ref, x_ref, o_ref, *bufs):
        # w_ref   : (C, 9*C) VMEM; w_ref[co, t*C+ci] = weight[co, ci, dy, dx]
        # mask_ref: (1, win) VMEM; exact 1.0 at interior lanes, else 0.0
        # x_ref   : (n_img, C, TOT) VMEM padded/flattened input (zero margins)
        # o_ref   : (n_img, C, win) VMEM output window
        # bufs    : up to two (C, TOT) VMEM ping-pong scratch buffers

        # Hoisted once, shared across layers and images.
        wc = [[w_ref[:, pl.ds(t * C + ci, 1)] for ci in range(C)]
              for t in range(9)]                              # each (C, 1)
        mask = mask_ref[...]                                  # (1, win)

        # Only the thin read margins of the scratch buffers need zeroing; the
        # [base, base+win) window is fully rewritten every layer.
        for buf in bufs:
            buf[:, pl.ds(0, base)] = jnp.zeros((C, base), jnp.float32)
            buf[:, pl.ds(base + win, tail)] = jnp.zeros((C, tail), jnp.float32)

        for b in range(n_img):
            x_img = x_ref.at[b]                               # (C, TOT) view
            for layer in range(n_layers):
                src = x_img if layer == 0 else bufs[(layer - 1) % 2]
                acc = jnp.zeros((C, win), jnp.float32)
                for ci in range(C):
                    for dy in range(3):
                        # dx = 0 (middle column) window for this (ci, dy).
                        w0 = src[pl.ds(ci, 1), pl.ds(row_off[dy], win)]
                        wm = pltpu.roll(w0, shift=1, axis=1)        # dx = -1
                        wp = pltpu.roll(w0, shift=win - 1, axis=1)  # dx = +1
                        t0 = dy * 3
                        # (1, win) * (C, 1) -> (C, win): all C_out at once.
                        acc = (acc
                               + wm * wc[t0 + 0][ci]
                               + w0 * wc[t0 + 1][ci]
                               + wp * wc[t0 + 2][ci])
                if layer == n_layers - 1:
                    # Final layer: store straight to the output; halo / junk
                    # lanes hold garbage but the wrapper discards them.
                    o_ref[b, :, :] = acc
                else:
                    # Re-zero halo/junk lanes so they act as the next layer's
                    # zero padding (mask is exact 0/1 -> plain multiply).
                    bufs[layer % 2][:, pl.ds(base, win)] = acc * mask

    return kernel


@functools.partial(jax.jit, static_argnames=("n_layers", "num_cores"))
def _model_forward_impl(x_nchw, weight_oihw, n_layers, num_cores):
    B, C, H, W = x_nchw.shape
    Hp, Wp = H + 2, W + 2
    L = Hp * Wp                                    # flattened padded image size
    BASE = 128                                     # lane offset of the image
    WIN = _round_up(L, 128)                        # accumulator window width
    TOT = _round_up(BASE + (Wp + 1) + WIN, 128)    # slab width incl. margins

    # One image per TensorCore on dual-TC chips; otherwise a single grid step
    # processing the whole batch (no per-step overhead on v5e/v6e).
    G = num_cores if (num_cores > 1 and B % num_cores == 0) else 1
    Bt = B // G
    n_buf = min(n_layers - 1, 2)

    # One-time layout plumbing (fused by XLA inside this jit): zero-pad
    # spatially, flatten, embed at lane offset BASE -> lane-dense slab with
    # zero margins that double as the conv's zero padding.
    xp = jnp.pad(x_nchw, ((0, 0), (0, 0), (1, 1), (1, 1)))        # (B,C,Hp,Wp)
    xf = jnp.pad(xp.reshape(B, C, L),
                 ((0, 0), (0, 0), (BASE, TOT - BASE - L)))        # (B,C,TOT)

    # (C_out, C_in, 3, 3) -> (C_out, 9*C_in) weight columns, lane = t*C + ci
    # with t = dy*3 + dx.
    wcols = jnp.transpose(weight_oihw, (0, 2, 3, 1)).reshape(C, 9 * C)

    # Interior mask over the window (flat padded index j): exact 1.0 inside
    # the unpadded image, 0.0 on halo / junk lanes.
    j = jnp.arange(WIN)
    yp = j // Wp
    xq = j - yp * Wp
    mask = ((yp >= 1) & (yp <= H) & (xq >= 1) & (xq <= W)
            ).astype(jnp.float32)[None, :]                        # (1, WIN)

    kernel = _make_fused_conv_kernel(C, n_layers, Wp, BASE, WIN, TOT, Bt, n_buf)

    out = pl.pallas_call(
        kernel,
        out_shape=jax.ShapeDtypeStruct((B, C, WIN), jnp.float32),
        grid_spec=pltpu.PrefetchScalarGridSpec(
            num_scalar_prefetch=0,
            grid=(G,),
            in_specs=[
                pl.BlockSpec((C, 9 * C), lambda g: (0, 0)),       # weight cols
                pl.BlockSpec((1, WIN), lambda g: (0, 0)),         # mask
                pl.BlockSpec((Bt, C, TOT), lambda g: (g, 0, 0)),  # images
            ],
            out_specs=pl.BlockSpec((Bt, C, WIN), lambda g: (g, 0, 0)),
            scratch_shapes=[pltpu.VMEM((C, TOT), jnp.float32)] * n_buf,
        ),
        compiler_params=pltpu.CompilerParams(
            dimension_semantics=("parallel",)),    # 2 TCs on v7x, no-op else
    )(wcols, mask, xf)

    # Drop halo / junk lanes -> (B, C, H, W) NCHW.
    of = out[:, :, :L].reshape(B, C, Hp, Wp)
    return of[:, :, 1:H + 1, 1:W + 1]


def model_forward(x_nchw, weight_oihw, n_layers=3):
    """Applies the shared 3x3 conv (bias=False, padding=1) `n_layers` times."""
    assert n_layers >= 1
    return _model_forward_impl(x_nchw, weight_oihw, n_layers=n_layers,
                               num_cores=_num_tensorcores())


if __name__ == "__main__":
    # Small shapes consistent with the module: batch=2, channels=4, 16x16
    # spatial, N=3 repeated applications of the shared conv.
    B, C, H, W = 2, 4, 16, 16
    N_LAYERS = 3

    key = jax.random.PRNGKey(0)
    kx, kw = jax.random.split(key)
    x = jax.random.normal(kx, (B, C, H, W), dtype=jnp.float32)
    # Deterministic synthetic weight (stands in for Conv2d's kaiming init).
    fan_in = C * 3 * 3
    bound = 1.0 / (fan_in ** 0.5)
    weight = jax.random.uniform(kw, (C, C, 3, 3), dtype=jnp.float32,
                                minval=-bound, maxval=bound)

    out = model_forward(x, weight, n_layers=N_LAYERS)
    out = jax.block_until_ready(out)
    assert out.shape == (B, C, H, W), out.shape

    # Cross-check against XLA's conv (forced f32 precision).
    ref = x
    for _ in range(N_LAYERS):
        ref = jax.lax.conv_general_dilated(
            ref, weight, window_strides=(1, 1), padding=((1, 1), (1, 1)),
            dimension_numbers=("NCHW", "OIHW", "NCHW"),
            precision=jax.lax.Precision.HIGHEST)
    ref = jax.block_until_ready(ref)
    max_err = float(jnp.max(jnp.abs(out - ref)))
    assert jnp.allclose(out, ref, atol=2e-3, rtol=2e-3), max_err

    print("KERNEL_OK")
</pallas_src>

<mosaic_0001>
module attributes {stable_mosaic.version = 11 : i64} {
  func.func @kernel(%arg0: i32, %arg1: memref<4x36xf32, #tpu.memory_space<vmem>>, %arg2: memref<1x384xf32, #tpu.memory_space<vmem>>, %arg3: memref<2x4x640xf32, #tpu.memory_space<vmem>>, %arg4: memref<2x4x384xf32, #tpu.memory_space<vmem>>, %arg5: memref<4x640xf32, #tpu.memory_space<vmem>>, %arg6: memref<4x640xf32, #tpu.memory_space<vmem>>) attributes {dimension_semantics = [#tpu.dimension_semantics<parallel>], iteration_bounds = array<i64: 1>, scalar_prefetch = 0 : i64, scratch_operands = 2 : i64, tpu.core_type = #tpu.core_type<tc>, window_params = [{pipeline_mode = #tpu.pipeline_mode<synchronous>, transform_indices = @transform_0, window_bounds = array<i64: 4, 36>}, {pipeline_mode = #tpu.pipeline_mode<synchronous>, transform_indices = @transform_1, window_bounds = array<i64: 1, 384>}, {transform_indices = @transform_2, window_bounds = array<i64: 2, 4, 640>}, {transform_indices = @transform_3, window_bounds = array<i64: 2, 4, 384>}]} {
    %c0 = arith.constant 0 : index
    %c0_0 = arith.constant 0 : index
    %0 = vector.load %arg1[%c0, %c0_0] : memref<4x36xf32, #tpu.memory_space<vmem>>, vector<4x1xf32>
    %c0_1 = arith.constant 0 : index
    %c1 = arith.constant 1 : index
    %1 = vector.load %arg1[%c0_1, %c1] : memref<4x36xf32, #tpu.memory_space<vmem>>, vector<4x1xf32>
    %c0_2 = arith.constant 0 : index
    %c2 = arith.constant 2 : index
    %2 = vector.load %arg1[%c0_2, %c2] : memref<4x36xf32, #tpu.memory_space<vmem>>, vector<4x1xf32>
    %c0_3 = arith.constant 0 : index
    %c3 = arith.constant 3 : index
    %3 = vector.load %arg1[%c0_3, %c3] : memref<4x36xf32, #tpu.memory_space<vmem>>, vector<4x1xf32>
    %c0_4 = arith.constant 0 : index
    %c4 = arith.constant 4 : index
    %4 = vector.load %arg1[%c0_4, %c4] : memref<4x36xf32, #tpu.memory_space<vmem>>, vector<4x1xf32>
    %c0_5 = arith.constant 0 : index
    %c5 = arith.constant 5 : index
    %5 = vector.load %arg1[%c0_5, %c5] : memref<4x36xf32, #tpu.memory_space<vmem>>, vector<4x1xf32>
    %c0_6 = arith.constant 0 : index
    %c6 = arith.constant 6 : index
    %6 = vector.load %arg1[%c0_6, %c6] : memref<4x36xf32, #tpu.memory_space<vmem>>, vector<4x1xf32>
    %c0_7 = arith.constant 0 : index
    %c7 = arith.constant 7 : index
    %7 = vector.load %arg1[%c0_7, %c7] : memref<4x36xf32, #tpu.memory_space<vmem>>, vector<4x1xf32>
    %c0_8 = arith.constant 0 : index
    %c8 = arith.constant 8 : index
    %8 = vector.load %arg1[%c0_8, %c8] : memref<4x36xf32, #tpu.memory_space<vmem>>, vector<4x1xf32>
    %c0_9 = arith.constant 0 : index
    %c9 = arith.constant 9 : index
    %9 = vector.load %arg1[%c0_9, %c9] : memref<4x36xf32, #tpu.memory_space<vmem>>, vector<4x1xf32>
    %c0_10 = arith.constant 0 : index
    %c10 = arith.constant 10 : index
    %10 = vector.load %arg1[%c0_10, %c10] : memref<4x36xf32, #tpu.memory_space<vmem>>, vector<4x1xf32>
    %c0_11 = arith.constant 0 : index
    %c11 = arith.constant 11 : index
    %11 = vector.load %arg1[%c0_11, %c11] : memref<4x36xf32, #tpu.memory_space<vmem>>, vector<4x1xf32>
    %c0_12 = arith.constant 0 : index
    %c12 = arith.constant 12 : index
    %12 = vector.load %arg1[%c0_12, %c12] : memref<4x36xf32, #tpu.memory_space<vmem>>, vector<4x1xf32>
    %c0_13 = arith.constant 0 : index
    %c13 = arith.constant 13 : index
    %13 = vector.load %arg1[%c0_13, %c13] : memref<4x36xf32, #tpu.memory_space<vmem>>, vector<4x1xf32>
    %c0_14 = arith.constant 0 : index
    %c14 = arith.constant 14 : index
    %14 = vector.load %arg1[%c0_14, %c14] : memref<4x36xf32, #tpu.memory_space<vmem>>, vector<4x1xf32>
    %c0_15 = arith.constant 0 : index
    %c15 = arith.constant 15 : index
    %15 = vector.load %arg1[%c0_15, %c15] : memref<4x36xf32, #tpu.memory_space<vmem>>, vector<4x1xf32>
    %c0_16 = arith.constant 0 : index
    %c16 = arith.constant 16 : index
    %16 = vector.load %arg1[%c0_16, %c16] : memref<4x36xf32, #tpu.memory_space<vmem>>, vector<4x1xf32>
    %c0_17 = arith.constant 0 : index
    %c17 = arith.constant 17 : index
    %17 = vector.load %arg1[%c0_17, %c17] : memref<4x36xf32, #tpu.memory_space<vmem>>, vector<4x1xf32>
    %c0_18 = arith.constant 0 : index
    %c18 = arith.constant 18 : index
    %18 = vector.load %arg1[%c0_18, %c18] : memref<4x36xf32, #tpu.memory_space<vmem>>, vector<4x1xf32>
    %c0_19 = arith.constant 0 : index
    %c19 = arith.constant 19 : index
    %19 = vector.load %arg1[%c0_19, %c19] : memref<4x36xf32, #tpu.memory_space<vmem>>, vector<4x1xf32>
    %c0_20 = arith.constant 0 : index
    %c20 = arith.constant 20 : index
    %20 = vector.load %arg1[%c0_20, %c20] : memref<4x36xf32, #tpu.memory_space<vmem>>, vector<4x1xf32>
    %c0_21 = arith.constant 0 : index
    %c21 = arith.constant 21 : index
    %21 = vector.load %arg1[%c0_21, %c21] : memref<4x36xf32, #tpu.memory_space<vmem>>, vector<4x1xf32>
    %c0_22 = arith.constant 0 : index
    %c22 = arith.constant 22 : index
    %22 = vector.load %arg1[%c0_22, %c22] : memref<4x36xf32, #tpu.memory_space<vmem>>, vector<4x1xf32>
    %c0_23 = arith.constant 0 : index
    %c23 = arith.constant 23 : index
    %23 = vector.load %arg1[%c0_23, %c23] : memref<4x36xf32, #tpu.memory_space<vmem>>, vector<4x1xf32>
    %c0_24 = arith.constant 0 : index
    %c24 = arith.constant 24 : index
    %24 = vector.load %arg1[%c0_24, %c24] : memref<4x36xf32, #tpu.memory_space<vmem>>, vector<4x1xf32>
    %c0_25 = arith.constant 0 : index
    %c25 = arith.constant 25 : index
    %25 = vector.load %arg1[%c0_25, %c25] : memref<4x36xf32, #tpu.memory_space<vmem>>, vector<4x1xf32>
    %c0_26 = arith.constant 0 : index
    %c26 = arith.constant 26 : index
    %26 = vector.load %arg1[%c0_26, %c26] : memref<4x36xf32, #tpu.memory_space<vmem>>, vector<4x1xf32>
    %c0_27 = arith.constant 0 : index
    %c27 = arith.constant 27 : index
    %27 = vector.load %arg1[%c0_27, %c27] : memref<4x36xf32, #tpu.memory_space<vmem>>, vector<4x1xf32>
    %c0_28 = arith.constant 0 : index
    %c28 = arith.constant 28 : index
    %28 = vector.load %arg1[%c0_28, %c28] : memref<4x36xf32, #tpu.memory_space<vmem>>, vector<4x1xf32>
    %c0_29 = arith.constant 0 : index
    %c29 = arith.constant 29 : index
    %29 = vector.load %arg1[%c0_29, %c29] : memref<4x36xf32, #tpu.memory_space<vmem>>, vector<4x1xf32>
    %c0_30 = arith.constant 0 : index
    %c30 = arith.constant 30 : index
    %30 = vector.load %arg1[%c0_30, %c30] : memref<4x36xf32, #tpu.memory_space<vmem>>, vector<4x1xf32>
    %c0_31 = arith.constant 0 : index
    %c31 = arith.constant 31 : index
    %31 = vector.load %arg1[%c0_31, %c31] : memref<4x36xf32, #tpu.memory_space<vmem>>, vector<4x1xf32>
    %c0_32 = arith.constant 0 : index
    %c32 = arith.constant 32 : index
    %32 = vector.load %arg1[%c0_32, %c32] : memref<4x36xf32, #tpu.memory_space<vmem>>, vector<4x1xf32>
    %c0_33 = arith.constant 0 : index
    %c33 = arith.constant 33 : index
    %33 = vector.load %arg1[%c0_33, %c33] : memref<4x36xf32, #tpu.memory_space<vmem>>, vector<4x1xf32>
    %c0_34 = arith.constant 0 : index
    %c34 = arith.constant 34 : index
    %34 = vector.load %arg1[%c0_34, %c34] : memref<4x36xf32, #tpu.memory_space<vmem>>, vector<4x1xf32>
    %c0_35 = arith.constant 0 : index
    %c35 = arith.constant 35 : index
    %35 = vector.load %arg1[%c0_35, %c35] : memref<4x36xf32, #tpu.memory_space<vmem>>, vector<4x1xf32>
    %c0_36 = arith.constant 0 : index
    %c0_37 = arith.constant 0 : index
    %36 = vector.load %arg2[%c0_36, %c0_37] : memref<1x384xf32, #tpu.memory_space<vmem>>, vector<1x384xf32>
    %cst = arith.constant 0.000000e+00 : f32
    %37 = vector.broadcast %cst : f32 to vector<4x128xf32>
    %c0_38 = arith.constant 0 : index
    %c0_39 = arith.constant 0 : index
    %38 = vector.load %arg5[%c0_38, %c0_39] : memref<4x640xf32, #tpu.memory_space<vmem>>, vector<4x128xf32>
    tpu.vector_store %arg5[%c0_38, %c0_39], %37 {strides = array<i32>} : memref<4x640xf32, #tpu.memory_space<vmem>>, vector<4x128xf32>,
    %cst_40 = arith.constant 0.000000e+00 : f32
    %39 = vector.broadcast %cst_40 : f32 to vector<4x128xf32>
    %c0_41 = arith.constant 0 : index
    %c512 = arith.constant 512 : index
    %40 = vector.load %arg5[%c0_41, %c512] : memref<4x640xf32, #tpu.memory_space<vmem>>, vector<4x128xf32>
    tpu.vector_store %arg5[%c0_41, %c512], %39 {strides = array<i32>} : memref<4x640xf32, #tpu.memory_space<vmem>>, vector<4x128xf32>,
    %cst_42 = arith.constant 0.000000e+00 : f32
    %41 = vector.broadcast %cst_42 : f32 to vector<4x128xf32>
    %c0_43 = arith.constant 0 : index
    %c0_44 = arith.constant 0 : index
    %42 = vector.load %arg6[%c0_43, %c0_44] : memref<4x640xf32, #tpu.memory_space<vmem>>, vector<4x128xf32>
    tpu.vector_store %arg6[%c0_43, %c0_44], %41 {strides = array<i32>} : memref<4x640xf32, #tpu.memory_space<vmem>>, vector<4x128xf32>,
    %cst_45 = arith.constant 0.000000e+00 : f32
    %43 = vector.broadcast %cst_45 : f32 to vector<4x128xf32>
    %c0_46 = arith.constant 0 : index
    %c512_47 = arith.constant 512 : index
    %44 = vector.load %arg6[%c0_46, %c512_47] : memref<4x640xf32, #tpu.memory_space<vmem>>, vector<4x128xf32>
    tpu.vector_store %arg6[%c0_46, %c512_47], %43 {strides = array<i32>} : memref<4x640xf32, #tpu.memory_space<vmem>>, vector<4x128xf32>,
    %cst_48 = arith.constant 0.000000e+00 : f32
    %45 = vector.broadcast %cst_48 : f32 to vector<4x384xf32>
    %c0_i32 = arith.constant 0 : i32
    %c0_i32_49 = arith.constant 0 : i32
    %c0_i32_50 = arith.constant 0 : i32
    %46 = tpu.memref_slice %arg3[%c0_i32, %c0_i32_49, %c0_i32_50] : memref<2x4x640xf32, #tpu.memory_space<vmem>> -> memref<1x4x640xf32, #tpu.memory_space<vmem>>
    %47 = tpu.memref_squeeze %46 : memref<1x4x640xf32, #tpu.memory_space<vmem>> -> memref<4x640xf32, #tpu.memory_space<vmem>>
    %c0_51 = arith.constant 0 : index
    %c110 = arith.constant 110 : index
    %48 = vector.load %47[%c0_51, %c110] : memref<4x640xf32, #tpu.memory_space<vmem>>, vector<1x384xf32>
    %c1_i32 = arith.constant 1 : i32
    %49 = tpu.dynamic_rotate %48 by %c1_i32 dim 1 : vector<1x384xf32>, i32 -> vector<1x384xf32>
    %c383_i32 = arith.constant 383 : i32
    %50 = tpu.dynamic_rotate %48 by %c383_i32 dim 1 : vector<1x384xf32>, i32 -> vector<1x384xf32>
    %51 = vector.broadcast %49 : vector<1x384xf32> to vector<4x384xf32>
    %52 = vector.broadcast %0 : vector<4x1xf32> to vector<4x384xf32>
    %53 = arith.mulf %51, %52 : vector<4x384xf32>
    %54 = arith.addf %45, %53 : vector<4x384xf32>
    %55 = vector.broadcast %48 : vector<1x384xf32> to vector<4x384xf32>
    %56 = vector.broadcast %4 : vector<4x1xf32> to vector<4x384xf32>
    %57 = arith.mulf %55, %56 : vector<4x384xf32>
    %58 = arith.addf %54, %57 : vector<4x384xf32>
    %59 = vector.broadcast %50 : vector<1x384xf32> to vector<4x384xf32>
    %60 = vector.broadcast %8 : vector<4x1xf32> to vector<4x384xf32>
    %61 = arith.mulf %59, %60 : vector<4x384xf32>
    %62 = arith.addf %58, %61 : vector<4x384xf32>
    %c0_i32_52 = arith.constant 0 : i32
    %c0_i32_53 = arith.constant 0 : i32
    %c0_i32_54 = arith.constant 0 : i32
    %63 = tpu.memref_slice %arg3[%c0_i32_52, %c0_i32_53, %c0_i32_54] : memref<2x4x640xf32, #tpu.memory_space<vmem>> -> memref<1x4x640xf32, #tpu.memory_space<vmem>>
    %64 = tpu.memref_squeeze %63 : memref<1x4x640xf32, #tpu.memory_space<vmem>> -> memref<4x640xf32, #tpu.memory_space<vmem>>
    %c0_55 = arith.constant 0 : index
    %c128 = arith.constant 128 : index
    %65 = vector.load %64[%c0_55, %c128] : memref<4x640xf32, #tpu.memory_space<vmem>>, vector<1x384xf32>
    %c1_i32_56 = arith.constant 1 : i32
    %66 = tpu.dynamic_rotate %65 by %c1_i32_56 dim 1 : vector<1x384xf32>, i32 -> vector<1x384xf32>
    %c383_i32_57 = arith.constant 383 : i32
    %67 = tpu.dynamic_rotate %65 by %c383_i32_57 dim 1 : vector<1x384xf32>, i32 -> vector<1x384xf32>
    %68 = vector.broadcast %66 : vector<1x384xf32> to vector<4x384xf32>
    %69 = vector.broadcast %12 : vector<4x1xf32> to vector<4x384xf32>
    %70 = arith.mulf %68, %69 : vector<4x384xf32>
    %71 = arith.addf %62, %70 : vector<4x384xf32>
    %72 = vector.broadcast %65 : vector<1x384xf32> to vector<4x384xf32>
    %73 = vector.broadcast %16 : vector<4x1xf32> to vector<4x384xf32>
    %74 = arith.mulf %72, %73 : vector<4x384xf32>
    %75 = arith.addf %71, %74 : vector<4x384xf32>
    %76 = vector.broadcast %67 : vector<1x384xf32> to vector<4x384xf32>
    %77 = vector.broadcast %20 : vector<4x1xf32> to vector<4x384xf32>
    %78 = arith.mulf %76, %77 : vector<4x384xf32>
    %79 = arith.addf %75, %78 : vector<4x384xf32>
    %c0_i32_58 = arith.constant 0 : i32
    %c0_i32_59 = arith.constant 0 : i32
    %c0_i32_60 = arith.constant 0 : i32
    %80 = tpu.memref_slice %arg3[%c0_i32_58, %c0_i32_59, %c0_i32_60] : memref<2x4x640xf32, #tpu.memory_space<vmem>> -> memref<1x4x640xf32, #tpu.memory_space<vmem>>
    %81 = tpu.memref_squeeze %80 : memref<1x4x640xf32, #tpu.memory_space<vmem>> -> memref<4x640xf32, #tpu.memory_space<vmem>>
    %c0_61 = arith.constant 0 : index
    %c146 = arith.constant 146 : index
    %82 = vector.load %81[%c0_61, %c146] : memref<4x640xf32, #tpu.memory_space<vmem>>, vector<1x384xf32>
    %c1_i32_62 = arith.constant 1 : i32
    %83 = tpu.dynamic_rotate %82 by %c1_i32_62 dim 1 : vector<1x384xf32>, i32 -> vector<1x384xf32>
    %c383_i32_63 = arith.constant 383 : i32
    %84 = tpu.dynamic_rotate %82 by %c383_i32_63 dim 1 : vector<1x384xf32>, i32 -> vector<1x384xf32>
    %85 = vector.broadcast %83 : vector<1x384xf32> to vector<4x384xf32>
    %86 = vector.broadcast %24 : vector<4x1xf32> to vector<4x384xf32>
    %87 = arith.mulf %85, %86 : vector<4x384xf32>
    %88 = arith.addf %79, %87 : vector<4x384xf32>
    %89 = vector.broadcast %82 : vector<1x384xf32> to vector<4x384xf32>
    %90 = vector.broadcast %28 : vector<4x1xf32> to vector<4x384xf32>
    %91 = arith.mulf %89, %90 : vector<4x384xf32>
    %92 = arith.addf %88, %91 : vector<4x384xf32>
    %93 = vector.broadcast %84 : vector<1x384xf32> to vector<4x384xf32>
    %94 = vector.broadcast %32 : vector<4x1xf32> to vector<4x384xf32>
    %95 = arith.mulf %93, %94 : vector<4x384xf32>
    %96 = arith.addf %92, %95 : vector<4x384xf32>
    %c0_i32_64 = arith.constant 0 : i32
    %c0_i32_65 = arith.constant 0 : i32
    %c0_i32_66 = arith.constant 0 : i32
    %97 = tpu.memref_slice %arg3[%c0_i32_64, %c0_i32_65, %c0_i32_66] : memref<2x4x640xf32, #tpu.memory_space<vmem>> -> memref<1x4x640xf32, #tpu.memory_space<vmem>>
    %98 = tpu.memref_squeeze %97 : memref<1x4x640xf32, #tpu.memory_space<vmem>> -> memref<4x640xf32, #tpu.memory_space<vmem>>
    %c1_67 = arith.constant 1 : index
    %c110_68 = arith.constant 110 : index
    %99 = vector.load %98[%c1_67, %c110_68] : memref<4x640xf32, #tpu.memory_space<vmem>>, vector<1x384xf32>
    %c1_i32_69 = arith.constant 1 : i32
    %100 = tpu.dynamic_rotate %99 by %c1_i32_69 dim 1 : vector<1x384xf32>, i32 -> vector<1x384xf32>
    %c383_i32_70 = arith.constant 383 : i32
    %101 = tpu.dynamic_rotate %99 by %c383_i32_70 dim 1 : vector<1x384xf32>, i32 -> vector<1x384xf32>
    %102 = vector.broadcast %100 : vector<1x384xf32> to vector<4x384xf32>
    %103 = vector.broadcast %1 : vector<4x1xf32> to vector<4x384xf32>
    %104 = arith.mulf %102, %103 : vector<4x384xf32>
    %105 = arith.addf %96, %104 : vector<4x384xf32>
    %106 = vector.broadcast %99 : vector<1x384xf32> to vector<4x384xf32>
    %107 = vector.broadcast %5 : vector<4x1xf32> to vector<4x384xf32>
    %108 = arith.mulf %106, %107 : vector<4x384xf32>
    %109 = arith.addf %105, %108 : vector<4x384xf32>
    %110 = vector.broadcast %101 : vector<1x384xf32> to vector<4x384xf32>
    %111 = vector.broadcast %9 : vector<4x1xf32> to vector<4x384xf32>
    %112 = arith.mulf %110, %111 : vector<4x384xf32>
    %113 = arith.addf %109, %112 : vector<4x384xf32>
    %c0_i32_71 = arith.constant 0 : i32
    %c0_i32_72 = arith.constant 0 : i32
    %c0_i32_73 = arith.constant 0 : i32
    %114 = tpu.memref_slice %arg3[%c0_i32_71, %c0_i32_72, %c0_i32_73] : memref<2x4x640xf32, #tpu.memory_space<vmem>> -> memref<1x4x640xf32, #tpu.memory_space<vmem>>
    %115 = tpu.memref_squeeze %114 : memref<1x4x640xf32, #tpu.memory_space<vmem>> -> memref<4x640xf32, #tpu.memory_space<vmem>>
    %c1_74 = arith.constant 1 : index
    %c128_75 = arith.constant 128 : index
    %116 = vector.load %115[%c1_74, %c128_75] : memref<4x640xf32, #tpu.memory_space<vmem>>, vector<1x384xf32>
    %c1_i32_76 = arith.constant 1 : i32
    %117 = tpu.dynamic_rotate %116 by %c1_i32_76 dim 1 : vector<1x384xf32>, i32 -> vector<1x384xf32>
    %c383_i32_77 = arith.constant 383 : i32
    %118 = tpu.dynamic_rotate %116 by %c383_i32_77 dim 1 : vector<1x384xf32>, i32 -> vector<1x384xf32>
    %119 = vector.broadcast %117 : vector<1x384xf32> to vector<4x384xf32>
    %120 = vector.broadcast %13 : vector<4x1xf32> to vector<4x384xf32>
    %121 = arith.mulf %119, %120 : vector<4x384xf32>
    %122 = arith.addf %113, %121 : vector<4x384xf32>
    %123 = vector.broadcast %116 : vector<1x384xf32> to vector<4x384xf32>
    %124 = vector.broadcast %17 : vector<4x1xf32> to vector<4x384xf32>
    %125 = arith.mulf %123, %124 : vector<4x384xf32>
    %126 = arith.addf %122, %125 : vector<4x384xf32>
    %127 = vector.broadcast %118 : vector<1x384xf32> to vector<4x384xf32>
    %128 = vector.broadcast %21 : vector<4x1xf32> to vector<4x384xf32>
    %129 = arith.mulf %127, %128 : vector<4x384xf32>
    %130 = arith.addf %126, %129 : vector<4x384xf32>
    %c0_i32_78 = arith.constant 0 : i32
    %c0_i32_79 = arith.constant 0 : i32
    %c0_i32_80 = arith.constant 0 : i32
    %131 = tpu.memref_slice %arg3[%c0_i32_78, %c0_i32_79, %c0_i32_80] : memref<2x4x640xf32, #tpu.memory_space<vmem>> -> memref<1x4x640xf32, #tpu.memory_space<vmem>>
    %132 = tpu.memref_squeeze %131 : memref<1x4x640xf32, #tpu.memory_space<vmem>> -> memref<4x640xf32, #tpu.memory_space<vmem>>
    %c1_81 = arith.constant 1 : index
    %c146_82 = arith.constant 146 : index
    %133 = vector.load %132[%c1_81, %c146_82] : memref<4x640xf32, #tpu.memory_space<vmem>>, vector<1x384xf32>
    %c1_i32_83 = arith.constant 1 : i32
    %134 = tpu.dynamic_rotate %133 by %c1_i32_83 dim 1 : vector<1x384xf32>, i32 -> vector<1x384xf32>
    %c383_i32_84 = arith.constant 383 : i32
    %135 = tpu.dynamic_rotate %133 by %c383_i32_84 dim 1 : vector<1x384xf32>, i32 -> vector<1x384xf32>
    %136 = vector.broadcast %134 : vector<1x384xf32> to vector<4x384xf32>
    %137 = vector.broadcast %25 : vector<4x1xf32> to vector<4x384xf32>
    %138 = arith.mulf %136, %137 : vector<4x384xf32>
    %139 = arith.addf %130, %138 : vector<4x384xf32>
    %140 = vector.broadcast %133 : vector<1x384xf32> to vector<4x384xf32>
    %141 = vector.broadcast %29 : vector<4x1xf32> to vector<4x384xf32>
    %142 = arith.mulf %140, %141 : vector<4x384xf32>
    %143 = arith.addf %139, %142 : vector<4x384xf32>
    %144 = vector.broadcast %135 : vector<1x384xf32> to vector<4x384xf32>
    %145 = vector.broadcast %33 : vector<4x1xf32> to vector<4x384xf32>
    %146 = arith.mulf %144, %145 : vector<4x384xf32>
    %147 = arith.addf %143, %146 : vector<4x384xf32>
    %c0_i32_85 = arith.constant 0 : i32
    %c0_i32_86 = arith.constant 0 : i32
    %c0_i32_87 = arith.constant 0 : i32
    %148 = tpu.memref_slice %arg3[%c0_i32_85, %c0_i32_86, %c0_i32_87] : memref<2x4x640xf32, #tpu.memory_space<vmem>> -> memref<1x4x640xf32, #tpu.memory_space<vmem>>
    %149 = tpu.memref_squeeze %148 : memref<1x4x640xf32, #tpu.memory_space<vmem>> -> memref<4x640xf32, #tpu.memory_space<vmem>>
    %c2_88 = arith.constant 2 : index
    %c110_89 = arith.constant 110 : index
    %150 = vector.load %149[%c2_88, %c110_89] : memref<4x640xf32, #tpu.memory_space<vmem>>, vector<1x384xf32>
    %c1_i32_90 = arith.constant 1 : i32
    %151 = tpu.dynamic_rotate %150 by %c1_i32_90 dim 1 : vector<1x384xf32>, i32 -> vector<1x384xf32>
    %c383_i32_91 = arith.constant 383 : i32
    %152 = tpu.dynamic_rotate %150 by %c383_i32_91 dim 1 : vector<1x384xf32>, i32 -> vector<1x384xf32>
    %153 = vector.broadcast %151 : vector<1x384xf32> to vector<4x384xf32>
    %154 = vector.broadcast %2 : vector<4x1xf32> to vector<4x384xf32>
    %155 = arith.mulf %153, %154 : vector<4x384xf32>
    %156 = arith.addf %147, %155 : vector<4x384xf32>
    %157 = vector.broadcast %150 : vector<1x384xf32> to vector<4x384xf32>
    %158 = vector.broadcast %6 : vector<4x1xf32> to vector<4x384xf32>
    %159 = arith.mulf %157, %158 : vector<4x384xf32>
    %160 = arith.addf %156, %159 : vector<4x384xf32>
    %161 = vector.broadcast %152 : vector<1x384xf32> to vector<4x384xf32>
    %162 = vector.broadcast %10 : vector<4x1xf32> to vector<4x384xf32>
    %163 = arith.mulf %161, %162 : vector<4x384xf32>
    %164 = arith.addf %160, %163 : vector<4x384xf32>
    %c0_i32_92 = arith.constant 0 : i32
    %c0_i32_93 = arith.constant 0 : i32
    %c0_i32_94 = arith.constant 0 : i32
    %165 = tpu.memref_slice %arg3[%c0_i32_92, %c0_i32_93, %c0_i32_94] : memref<2x4x640xf32, #tpu.memory_space<vmem>> -> memref<1x4x640xf32, #tpu.memory_space<vmem>>
    %166 = tpu.memref_squeeze %165 : memref<1x4x640xf32, #tpu.memory_space<vmem>> -> memref<4x640xf32, #tpu.memory_space<vmem>>
    %c2_95 = arith.constant 2 : index
    %c128_96 = arith.constant 128 : index
    %167 = vector.load %166[%c2_95, %c128_96] : memref<4x640xf32, #tpu.memory_space<vmem>>, vector<1x384xf32>
    %c1_i32_97 = arith.constant 1 : i32
    %168 = tpu.dynamic_rotate %167 by %c1_i32_97 dim 1 : vector<1x384xf32>, i32 -> vector<1x384xf32>
    %c383_i32_98 = arith.constant 383 : i32
    %169 = tpu.dynamic_rotate %167 by %c383_i32_98 dim 1 : vector<1x384xf32>, i32 -> vector<1x384xf32>
    %170 = vector.broadcast %168 : vector<1x384xf32> to vector<4x384xf32>
    %171 = vector.broadcast %14 : vector<4x1xf32> to vector<4x384xf32>
    %172 = arith.mulf %170, %171 : vector<4x384xf32>
    %173 = arith.addf %164, %172 : vector<4x384xf32>
    %174 = vector.broadcast %167 : vector<1x384xf32> to vector<4x384xf32>
    %175 = vector.broadcast %18 : vector<4x1xf32> to vector<4x384xf32>
    %176 = arith.mulf %174, %175 : vector<4x384xf32>
    %177 = arith.addf %173, %176 : vector<4x384xf32>
    %178 = vector.broadcast %169 : vector<1x384xf32> to vector<4x384xf32>
    %179 = vector.broadcast %22 : vector<4x1xf32> to vector<4x384xf32>
    %180 = arith.mulf %178, %179 : vector<4x384xf32>
    %181 = arith.addf %177, %180 : vector<4x384xf32>
    %c0_i32_99 = arith.constant 0 : i32
    %c0_i32_100 = arith.constant 0 : i32
    %c0_i32_101 = arith.constant 0 : i32
    %182 = tpu.memref_slice %arg3[%c0_i32_99, %c0_i32_100, %c0_i32_101] : memref<2x4x640xf32, #tpu.memory_space<vmem>> -> memref<1x4x640xf32, #tpu.memory_space<vmem>>
    %183 = tpu.memref_squeeze %182 : memref<1x4x640xf32, #tpu.memory_space<vmem>> -> memref<4x640xf32, #tpu.memory_space<vmem>>
    %c2_102 = arith.constant 2 : index
    %c146_103 = arith.constant 146 : index
    %184 = vector.load %183[%c2_102, %c146_103] : memref<4x640xf32, #tpu.memory_space<vmem>>, vector<1x384xf32>
    %c1_i32_104 = arith.constant 1 : i32
    %185 = tpu.dynamic_rotate %184 by %c1_i32_104 dim 1 : vector<1x384xf32>, i32 -> vector<1x384xf32>
    %c383_i32_105 = arith.constant 383 : i32
    %186 = tpu.dynamic_rotate %184 by %c383_i32_105 dim 1 : vector<1x384xf32>, i32 -> vector<1x384xf32>
    %187 = vector.broadcast %185 : vector<1x384xf32> to vector<4x384xf32>
    %188 = vector.broadcast %26 : vector<4x1xf32> to vector<4x384xf32>
    %189 = arith.mulf %187, %188 : vector<4x384xf32>
    %190 = arith.addf %181, %189 : vector<4x384xf32>
    %191 = vector.broadcast %184 : vector<1x384xf32> to vector<4x384xf32>
    %192 = vector.broadcast %30 : vector<4x1xf32> to vector<4x384xf32>
    %193 = arith.mulf %191, %192 : vector<4x384xf32>
    %194 = arith.addf %190, %193 : vector<4x384xf32>
    %195 = vector.broadcast %186 : vector<1x384xf32> to vector<4x384xf32>
    %196 = vector.broadcast %34 : vector<4x1xf32> to vector<4x384xf32>
    %197 = arith.mulf %195, %196 : vector<4x384xf32>
    %198 = arith.addf %194, %197 : vector<4x384xf32>
    %c0_i32_106 = arith.constant 0 : i32
    %c0_i32_107 = arith.constant 0 : i32
    %c0_i32_108 = arith.constant 0 : i32
    %199 = tpu.memref_slice %arg3[%c0_i32_106, %c0_i32_107, %c0_i32_108] : memref<2x4x640xf32, #tpu.memory_space<vmem>> -> memref<1x4x640xf32, #tpu.memory_space<vmem>>
    %200 = tpu.memref_squeeze %199 : memref<1x4x640xf32, #tpu.memory_space<vmem>> -> memref<4x640xf32, #tpu.memory_space<vmem>>
    %c3_109 = arith.constant 3 : index
    %c110_110 = arith.constant 110 : index
    %201 = vector.load %200[%c3_109, %c110_110] : memref<4x640xf32, #tpu.memory_space<vmem>>, vector<1x384xf32>
    %c1_i32_111 = arith.constant 1 : i32
    %202 = tpu.dynamic_rotate %201 by %c1_i32_111 dim 1 : vector<1x384xf32>, i32 -> vector<1x384xf32>
    %c383_i32_112 = arith.constant 383 : i32
    %203 = tpu.dynamic_rotate %201 by %c383_i32_112 dim 1 : vector<1x384xf32>, i32 -> vector<1x384xf32>
    %204 = vector.broadcast %202 : vector<1x384xf32> to vector<4x384xf32>
    %205 = vector.broadcast %3 : vector<4x1xf32> to vector<4x384xf32>
    %206 = arith.mulf %204, %205 : vector<4x384xf32>
    %207 = arith.addf %198, %206 : vector<4x384xf32>
    %208 = vector.broadcast %201 : vector<1x384xf32> to vector<4x384xf32>
    %209 = vector.broadcast %7 : vector<4x1xf32> to vector<4x384xf32>
    %210 = arith.mulf %208, %209 : vector<4x384xf32>
    %211 = arith.addf %207, %210 : vector<4x384xf32>
    %212 = vector.broadcast %203 : vector<1x384xf32> to vector<4x384xf32>
    %213 = vector.broadcast %11 : vector<4x1xf32> to vector<4x384xf32>
    %214 = arith.mulf %212, %213 : vector<4x384xf32>
    %215 = arith.addf %211, %214 : vector<4x384xf32>
    %c0_i32_113 = arith.constant 0 : i32
    %c0_i32_114 = arith.constant 0 : i32
    %c0_i32_115 = arith.constant 0 : i32
    %216 = tpu.memref_slice %arg3[%c0_i32_113, %c0_i32_114, %c0_i32_115] : memref<2x4x640xf32, #tpu.memory_space<vmem>> -> memref<1x4x640xf32, #tpu.memory_space<vmem>>
    %217 = tpu.memref_squeeze %216 : memref<1x4x640xf32, #tpu.memory_space<vmem>> -> memref<4x640xf32, #tpu.memory_space<vmem>>
    %c3_116 = arith.constant 3 : index
    %c128_117 = arith.constant 128 : index
    %218 = vector.load %217[%c3_116, %c128_117] : memref<4x640xf32, #tpu.memory_space<vmem>>, vector<1x384xf32>
    %c1_i32_118 = arith.constant 1 : i32
    %219 = tpu.dynamic_rotate %218 by %c1_i32_118 dim 1 : vector<1x384xf32>, i32 -> vector<1x384xf32>
    %c383_i32_119 = arith.constant 383 : i32
    %220 = tpu.dynamic_rotate %218 by %c383_i32_119 dim 1 : vector<1x384xf32>, i32 -> vector<1x384xf32>
    %221 = vector.broadcast %219 : vector<1x384xf32> to vector<4x384xf32>
    %222 = vector.broadcast %15 : vector<4x1xf32> to vector<4x384xf32>
    %223 = arith.mulf %221, %222 : vector<4x384xf32>
    %224 = arith.addf %215, %223 : vector<4x384xf32>
    %225 = vector.broadcast %218 : vector<1x384xf32> to vector<4x384xf32>
    %226 = vector.broadcast %19 : vector<4x1xf32> to vector<4x384xf32>
    %227 = arith.mulf %225, %226 : vector<4x384xf32>
    %228 = arith.addf %224, %227 : vector<4x384xf32>
    %229 = vector.broadcast %220 : vector<1x384xf32> to vector<4x384xf32>
    %230 = vector.broadcast %23 : vector<4x1xf32> to vector<4x384xf32>
    %231 = arith.mulf %229, %230 : vector<4x384xf32>
    %232 = arith.addf %228, %231 : vector<4x384xf32>
    %c0_i32_120 = arith.constant 0 : i32
    %c0_i32_121 = arith.constant 0 : i32
    %c0_i32_122 = arith.constant 0 : i32
    %233 = tpu.memref_slice %arg3[%c0_i32_120, %c0_i32_121, %c0_i32_122] : memref<2x4x640xf32, #tpu.memory_space<vmem>> -> memref<1x4x640xf32, #tpu.memory_space<vmem>>
    %234 = tpu.memref_squeeze %233 : memref<1x4x640xf32, #tpu.memory_space<vmem>> -> memref<4x640xf32, #tpu.memory_space<vmem>>
    %c3_123 = arith.constant 3 : index
    %c146_124 = arith.constant 146 : index
    %235 = vector.load %234[%c3_123, %c146_124] : memref<4x640xf32, #tpu.memory_space<vmem>>, vector<1x384xf32>
    %c1_i32_125 = arith.constant 1 : i32
    %236 = tpu.dynamic_rotate %235 by %c1_i32_125 dim 1 : vector<1x384xf32>, i32 -> vector<1x384xf32>
    %c383_i32_126 = arith.constant 383 : i32
    %237 = tpu.dynamic_rotate %235 by %c383_i32_126 dim 1 : vector<1x384xf32>, i32 -> vector<1x384xf32>
    %238 = vector.broadcast %236 : vector<1x384xf32> to vector<4x384xf32>
    %239 = vector.broadcast %27 : vector<4x1xf32> to vector<4x384xf32>
    %240 = arith.mulf %238, %239 : vector<4x384xf32>
    %241 = arith.addf %232, %240 : vector<4x384xf32>
    %242 = vector.broadcast %235 : vector<1x384xf32> to vector<4x384xf32>
    %243 = vector.broadcast %31 : vector<4x1xf32> to vector<4x384xf32>
    %244 = arith.mulf %242, %243 : vector<4x384xf32>
    %245 = arith.addf %241, %244 : vector<4x384xf32>
    %246 = vector.broadcast %237 : vector<1x384xf32> to vector<4x384xf32>
    %247 = vector.broadcast %35 : vector<4x1xf32> to vector<4x384xf32>
    %248 = arith.mulf %246, %247 : vector<4x384xf32>
    %249 = arith.addf %245, %248 : vector<4x384xf32>
    %250 = vector.broadcast %36 : vector<1x384xf32> to vector<4x384xf32>
    %251 = arith.mulf %249, %250 : vector<4x384xf32>
    %c0_127 = arith.constant 0 : index
    %c128_128 = arith.constant 128 : index
    %252 = vector.load %arg5[%c0_127, %c128_128] : memref<4x640xf32, #tpu.memory_space<vmem>>, vector<4x384xf32>
    tpu.vector_store %arg5[%c0_127, %c128_128], %251 {strides = array<i32>} : memref<4x640xf32, #tpu.memory_space<vmem>>, vector<4x384xf32>,
    %cst_129 = arith.constant 0.000000e+00 : f32
    %253 = vector.broadcast %cst_129 : f32 to vector<4x384xf32>
    %c0_130 = arith.constant 0 : index
    %c110_131 = arith.constant 110 : index
    %254 = vector.load %arg5[%c0_130, %c110_131] : memref<4x640xf32, #tpu.memory_space<vmem>>, vector<1x384xf32>
    %c1_i32_132 = arith.constant 1 : i32
    %255 = tpu.dynamic_rotate %254 by %c1_i32_132 dim 1 : vector<1x384xf32>, i32 -> vector<1x384xf32>
    %c383_i32_133 = arith.constant 383 : i32
    %256 = tpu.dynamic_rotate %254 by %c383_i32_133 dim 1 : vector<1x384xf32>, i32 -> vector<1x384xf32>
    %257 = vector.broadcast %255 : vector<1x384xf32> to vector<4x384xf32>
    %258 = vector.broadcast %0 : vector<4x1xf32> to vector<4x384xf32>
    %259 = arith.mulf %257, %258 : vector<4x384xf32>
    %260 = arith.addf %253, %259 : vector<4x384xf32>
    %261 = vector.broadcast %254 : vector<1x384xf32> to vector<4x384xf32>
    %262 = vector.broadcast %4 : vector<4x1xf32> to vector<4x384xf32>
    %263 = arith.mulf %261, %262 : vector<4x384xf32>
    %264 = arith.addf %260, %263 : vector<4x384xf32>
    %265 = vector.broadcast %256 : vector<1x384xf32> to vector<4x384xf32>
    %266 = vector.broadcast %8 : vector<4x1xf32> to vector<4x384xf32>
    %267 = arith.mulf %265, %266 : vector<4x384xf32>
    %268 = arith.addf %264, %267 : vector<4x384xf32>
    %c0_134 = arith.constant 0 : index
    %c128_135 = arith.constant 128 : index
    %269 = vector.load %arg5[%c0_134, %c128_135] : memref<4x640xf32, #tpu.memory_space<vmem>>, vector<1x384xf32>
    %c1_i32_136 = arith.constant 1 : i32
    %270 = tpu.dynamic_rotate %269 by %c1_i32_136 dim 1 : vector<1x384xf32>, i32 -> vector<1x384xf32>
    %c383_i32_137 = arith.constant 383 : i32
    %271 = tpu.dynamic_rotate %269 by %c383_i32_137 dim 1 : vector<1x384xf32>, i32 -> vector<1x384xf32>
    %272 = vector.broadcast %270 : vector<1x384xf32> to vector<4x384xf32>
    %273 = vector.broadcast %12 : vector<4x1xf32> to vector<4x384xf32>
    %274 = arith.mulf %272, %273 : vector<4x384xf32>
    %275 = arith.addf %268, %274 : vector<4x384xf32>
    %276 = vector.broadcast %269 : vector<1x384xf32> to vector<4x384xf32>
    %277 = vector.broadcast %16 : vector<4x1xf32> to vector<4x384xf32>
    %278 = arith.mulf %276, %277 : vector<4x384xf32>
    %279 = arith.addf %275, %278 : vector<4x384xf32>
    %280 = vector.broadcast %271 : vector<1x384xf32> to vector<4x384xf32>
    %281 = vector.broadcast %20 : vector<4x1xf32> to vector<4x384xf32>
    %282 = arith.mulf %280, %281 : vector<4x384xf32>
    %283 = arith.addf %279, %282 : vector<4x384xf32>
    %c0_138 = arith.constant 0 : index
    %c146_139 = arith.constant 146 : index
    %284 = vector.load %arg5[%c0_138, %c146_139] : memref<4x640xf32, #tpu.memory_space<vmem>>, vector<1x384xf32>
    %c1_i32_140 = arith.constant 1 : i32
    %285 = tpu.dynamic_rotate %284 by %c1_i32_140 dim 1 : vector<1x384xf32>, i32 -> vector<1x384xf32>
    %c383_i32_141 = arith.constant 383 : i32
    %286 = tpu.dynamic_rotate %284 by %c383_i32_141 dim 1 : vector<1x384xf32>, i32 -> vector<1x384xf32>
    %287 = vector.broadcast %285 : vector<1x384xf32> to vector<4x384xf32>
    %288 = vector.broadcast %24 : vector<4x1xf32> to vector<4x384xf32>
    %289 = arith.mulf %287, %288 : vector<4x384xf32>
    %290 = arith.addf %283, %289 : vector<4x384xf32>
    %291 = vector.broadcast %284 : vector<1x384xf32> to vector<4x384xf32>
    %292 = vector.broadcast %28 : vector<4x1xf32> to vector<4x384xf32>
    %293 = arith.mulf %291, %292 : vector<4x384xf32>
    %294 = arith.addf %290, %293 : vector<4x384xf32>
    %295 = vector.broadcast %286 : vector<1x384xf32> to vector<4x384xf32>
    %296 = vector.broadcast %32 : vector<4x1xf32> to vector<4x384xf32>
    %297 = arith.mulf %295, %296 : vector<4x384xf32>
    %298 = arith.addf %294, %297 : vector<4x384xf32>
    %c1_142 = arith.constant 1 : index
    %c110_143 = arith.constant 110 : index
    %299 = vector.load %arg5[%c1_142, %c110_143] : memref<4x640xf32, #tpu.memory_space<vmem>>, vector<1x384xf32>
    %c1_i32_144 = arith.constant 1 : i32
    %300 = tpu.dynamic_rotate %299 by %c1_i32_144 dim 1 : vector<1x384xf32>, i32 -> vector<1x384xf32>
    %c383_i32_145 = arith.constant 383 : i32
    %301 = tpu.dynamic_rotate %299 by %c383_i32_145 dim 1 : vector<1x384xf32>, i32 -> vector<1x384xf32>
    %302 = vector.broadcast %300 : vector<1x384xf32> to vector<4x384xf32>
    %303 = vector.broadcast %1 : vector<4x1xf32> to vector<4x384xf32>
    %304 = arith.mulf %302, %303 : vector<4x384xf32>
    %305 = arith.addf %298, %304 : vector<4x384xf32>
    %306 = vector.broadcast %299 : vector<1x384xf32> to vector<4x384xf32>
    %307 = vector.broadcast %5 : vector<4x1xf32> to vector<4x384xf32>
    %308 = arith.mulf %306, %307 : vector<4x384xf32>
    %309 = arith.addf %305, %308 : vector<4x384xf32>
    %310 = vector.broadcast %301 : vector<1x384xf32> to vector<4x384xf32>
    %311 = vector.broadcast %9 : vector<4x1xf32> to vector<4x384xf32>
    %312 = arith.mulf %310, %311 : vector<4x384xf32>
    %313 = arith.addf %309, %312 : vector<4x384xf32>
    %c1_146 = arith.constant 1 : index
    %c128_147 = arith.constant 128 : index
    %314 = vector.load %arg5[%c1_146, %c128_147] : memref<4x640xf32, #tpu.memory_space<vmem>>, vector<1x384xf32>
    %c1_i32_148 = arith.constant 1 : i32
    %315 = tpu.dynamic_rotate %314 by %c1_i32_148 dim 1 : vector<1x384xf32>, i32 -> vector<1x384xf32>
    %c383_i32_149 = arith.constant 383 : i32
    %316 = tpu.dynamic_rotate %314 by %c383_i32_149 dim 1 : vector<1x384xf32>, i32 -> vector<1x384xf32>
    %317 = vector.broadcast %315 : vector<1x384xf32> to vector<4x384xf32>
    %318 = vector.broadcast %13 : vector<4x1xf32> to vector<4x384xf32>
    %319 = arith.mulf %317, %318 : vector<4x384xf32>
    %320 = arith.addf %313, %319 : vector<4x384xf32>
    %321 = vector.broadcast %314 : vector<1x384xf32> to vector<4x384xf32>
    %322 = vector.broadcast %17 : vector<4x1xf32> to vector<4x384xf32>
    %323 = arith.mulf %321, %322 : vector<4x384xf32>
    %324 = arith.addf %320, %323 : vector<4x384xf32>
    %325 = vector.broadcast %316 : vector<1x384xf32> to vector<4x384xf32>
    %326 = vector.broadcast %21 : vector<4x1xf32> to vector<4x384xf32>
    %327 = arith.mulf %325, %326 : vector<4x384xf32>
    %328 = arith.addf %324, %327 : vector<4x384xf32>
    %c1_150 = arith.constant 1 : index
    %c146_151 = arith.constant 146 : index
    %329 = vector.load %arg5[%c1_150, %c146_151] : memref<4x640xf32, #tpu.memory_space<vmem>>, vector<1x384xf32>
    %c1_i32_152 = arith.constant 1 : i32
    %330 = tpu.dynamic_rotate %329 by %c1_i32_152 dim 1 : vector<1x384xf32>, i32 -> vector<1x384xf32>
    %c383_i32_153 = arith.constant 383 : i32
    %331 = tpu.dynamic_rotate %329 by %c383_i32_153 dim 1 : vector<1x384xf32>, i32 -> vector<1x384xf32>
    %332 = vector.broadcast %330 : vector<1x384xf32> to vector<4x384xf32>
    %333 = vector.broadcast %25 : vector<4x1xf32> to vector<4x384xf32>
    %334 = arith.mulf %332, %333 : vector<4x384xf32>
    %335 = arith.addf %328, %334 : vector<4x384xf32>
    %336 = vector.broadcast %329 : vector<1x384xf32> to vector<4x384xf32>
    %337 = vector.broadcast %29 : vector<4x1xf32> to vector<4x384xf32>
    %338 = arith.mulf %336, %337 : vector<4x384xf32>
    %339 = arith.addf %335, %338 : vector<4x384xf32>
    %340 = vector.broadcast %331 : vector<1x384xf32> to vector<4x384xf32>
    %341 = vector.broadcast %33 : vector<4x1xf32> to vector<4x384xf32>
    %342 = arith.mulf %340, %341 : vector<4x384xf32>
    %343 = arith.addf %339, %342 : vector<4x384xf32>
    %c2_154 = arith.constant 2 : index
    %c110_155 = arith.constant 110 : index
    %344 = vector.load %arg5[%c2_154, %c110_155] : memref<4x640xf32, #tpu.memory_space<vmem>>, vector<1x384xf32>
    %c1_i32_156 = arith.constant 1 : i32
    %345 = tpu.dynamic_rotate %344 by %c1_i32_156 dim 1 : vector<1x384xf32>, i32 -> vector<1x384xf32>
    %c383_i32_157 = arith.constant 383 : i32
    %346 = tpu.dynamic_rotate %344 by %c383_i32_157 dim 1 : vector<1x384xf32>, i32 -> vector<1x384xf32>
    %347 = vector.broadcast %345 : vector<1x384xf32> to vector<4x384xf32>
    %348 = vector.broadcast %2 : vector<4x1xf32> to vector<4x384xf32>
    %349 = arith.mulf %347, %348 : vector<4x384xf32>
    %350 = arith.addf %343, %349 : vector<4x384xf32>
    %351 = vector.broadcast %344 : vector<1x384xf32> to vector<4x384xf32>
    %352 = vector.broadcast %6 : vector<4x1xf32> to vector<4x384xf32>
    %353 = arith.mulf %351, %352 : vector<4x384xf32>
    %354 = arith.addf %350, %353 : vector<4x384xf32>
    %355 = vector.broadcast %346 : vector<1x384xf32> to vector<4x384xf32>
    %356 = vector.broadcast %10 : vector<4x1xf32> to vector<4x384xf32>
    %357 = arith.mulf %355, %356 : vector<4x384xf32>
    %358 = arith.addf %354, %357 : vector<4x384xf32>
    %c2_158 = arith.constant 2 : index
    %c128_159 = arith.constant 128 : index
    %359 = vector.load %arg5[%c2_158, %c128_159] : memref<4x640xf32, #tpu.memory_space<vmem>>, vector<1x384xf32>
    %c1_i32_160 = arith.constant 1 : i32
    %360 = tpu.dynamic_rotate %359 by %c1_i32_160 dim 1 : vector<1x384xf32>, i32 -> vector<1x384xf32>
    %c383_i32_161 = arith.constant 383 : i32
    %361 = tpu.dynamic_rotate %359 by %c383_i32_161 dim 1 : vector<1x384xf32>, i32 -> vector<1x384xf32>
    %362 = vector.broadcast %360 : vector<1x384xf32> to vector<4x384xf32>
    %363 = vector.broadcast %14 : vector<4x1xf32> to vector<4x384xf32>
    %364 = arith.mulf %362, %363 : vector<4x384xf32>
    %365 = arith.addf %358, %364 : vector<4x384xf32>
    %366 = vector.broadcast %359 : vector<1x384xf32> to vector<4x384xf32>
    %367 = vector.broadcast %18 : vector<4x1xf32> to vector<4x384xf32>
    %368 = arith.mulf %366, %367 : vector<4x384xf32>
    %369 = arith.addf %365, %368 : vector<4x384xf32>
    %370 = vector.broadcast %361 : vector<1x384xf32> to vector<4x384xf32>
    %371 = vector.broadcast %22 : vector<4x1xf32> to vector<4x384xf32>
    %372 = arith.mulf %370, %371 : vector<4x384xf32>
    %373 = arith.addf %369, %372 : vector<4x384xf32>
    %c2_162 = arith.constant 2 : index
    %c146_163 = arith.constant 146 : index
    %374 = vector.load %arg5[%c2_162, %c146_163] : memref<4x640xf32, #tpu.memory_space<vmem>>, vector<1x384xf32>
    %c1_i32_164 = arith.constant 1 : i32
    %375 = tpu.dynamic_rotate %374 by %c1_i32_164 dim 1 : vector<1x384xf32>, i32 -> vector<1x384xf32>
    %c383_i32_165 = arith.constant 383 : i32
    %376 = tpu.dynamic_rotate %374 by %c383_i32_165 dim 1 : vector<1x384xf32>, i32 -> vector<1x384xf32>
    %377 = vector.broadcast %375 : vector<1x384xf32> to vector<4x384xf32>
    %378 = vector.broadcast %26 : vector<4x1xf32> to vector<4x384xf32>
    %379 = arith.mulf %377, %378 : vector<4x384xf32>
    %380 = arith.addf %373, %379 : vector<4x384xf32>
    %381 = vector.broadcast %374 : vector<1x384xf32> to vector<4x384xf32>
    %382 = vector.broadcast %30 : vector<4x1xf32> to vector<4x384xf32>
    %383 = arith.mulf %381, %382 : vector<4x384xf32>
    %384 = arith.addf %380, %383 : vector<4x384xf32>
    %385 = vector.broadcast %376 : vector<1x384xf32> to vector<4x384xf32>
    %386 = vector.broadcast %34 : vector<4x1xf32> to vector<4x384xf32>
    %387 = arith.mulf %385, %386 : vector<4x384xf32>
    %388 = arith.addf %384, %387 : vector<4x384xf32>
    %c3_166 = arith.constant 3 : index
    %c110_167 = arith.constant 110 : index
    %389 = vector.load %arg5[%c3_166, %c110_167] : memref<4x640xf32, #tpu.memory_space<vmem>>, vector<1x384xf32>
    %c1_i32_168 = arith.constant 1 : i32
    %390 = tpu.dynamic_rotate %389 by %c1_i32_168 dim 1 : vector<1x384xf32>, i32 -> vector<1x384xf32>
    %c383_i32_169 = arith.constant 383 : i32
    %391 = tpu.dynamic_rotate %389 by %c383_i32_169 dim 1 : vector<1x384xf32>, i32 -> vector<1x384xf32>
    %392 = vector.broadcast %390 : vector<1x384xf32> to vector<4x384xf32>
    %393 = vector.broadcast %3 : vector<4x1xf32> to vector<4x384xf32>
    %394 = arith.mulf %392, %393 : vector<4x384xf32>
    %395 = arith.addf %388, %394 : vector<4x384xf32>
    %396 = vector.broadcast %389 : vector<1x384xf32> to vector<4x384xf32>
    %397 = vector.broadcast %7 : vector<4x1xf32> to vector<4x384xf32>
    %398 = arith.mulf %396, %397 : vector<4x384xf32>
    %399 = arith.addf %395, %398 : vector<4x384xf32>
    %400 = vector.broadcast %391 : vector<1x384xf32> to vector<4x384xf32>
    %401 = vector.broadcast %11 : vector<4x1xf32> to vector<4x384xf32>
    %402 = arith.mulf %400, %401 : vector<4x384xf32>
    %403 = arith.addf %399, %402 : vector<4x384xf32>
    %c3_170 = arith.constant 3 : index
    %c128_171 = arith.constant 128 : index
    %404 = vector.load %arg5[%c3_170, %c128_171] : memref<4x640xf32, #tpu.memory_space<vmem>>, vector<1x384xf32>
    %c1_i32_172 = arith.constant 1 : i32
    %405 = tpu.dynamic_rotate %404 by %c1_i32_172 dim 1 : vector<1x384xf32>, i32 -> vector<1x384xf32>
    %c383_i32_173 = arith.constant 383 : i32
    %406 = tpu.dynamic_rotate %404 by %c383_i32_173 dim 1 : vector<1x384xf32>, i32 -> vector<1x384xf32>
    %407 = vector.broadcast %405 : vector<1x384xf32> to vector<4x384xf32>
    %408 = vector.broadcast %15 : vector<4x1xf32> to vector<4x384xf32>
    %409 = arith.mulf %407, %408 : vector<4x384xf32>
    %410 = arith.addf %403, %409 : vector<4x384xf32>
    %411 = vector.broadcast %404 : vector<1x384xf32> to vector<4x384xf32>
    %412 = vector.broadcast %19 : vector<4x1xf32> to vector<4x384xf32>
    %413 = arith.mulf %411, %412 : vector<4x384xf32>
    %414 = arith.addf %410, %413 : vector<4x384xf32>
    %415 = vector.broadcast %406 : vector<1x384xf32> to vector<4x384xf32>
    %416 = vector.broadcast %23 : vector<4x1xf32> to vector<4x384xf32>
    %417 = arith.mulf %415, %416 : vector<4x384xf32>
    %418 = arith.addf %414, %417 : vector<4x384xf32>
    %c3_174 = arith.constant 3 : index
    %c146_175 = arith.constant 146 : index
    %419 = vector.load %arg5[%c3_174, %c146_175] : memref<4x640xf32, #tpu.memory_space<vmem>>, vector<1x384xf32>
    %c1_i32_176 = arith.constant 1 : i32
    %420 = tpu.dynamic_rotate %419 by %c1_i32_176 dim 1 : vector<1x384xf32>, i32 -> vector<1x384xf32>
    %c383_i32_177 = arith.constant 383 : i32
    %421 = tpu.dynamic_rotate %419 by %c383_i32_177 dim 1 : vector<1x384xf32>, i32 -> vector<1x384xf32>
    %422 = vector.broadcast %420 : vector<1x384xf32> to vector<4x384xf32>
    %423 = vector.broadcast %27 : vector<4x1xf32> to vector<4x384xf32>
    %424 = arith.mulf %422, %423 : vector<4x384xf32>
    %425 = arith.addf %418, %424 : vector<4x384xf32>
    %426 = vector.broadcast %419 : vector<1x384xf32> to vector<4x384xf32>
    %427 = vector.broadcast %31 : vector<4x1xf32> to vector<4x384xf32>
    %428 = arith.mulf %426, %427 : vector<4x384xf32>
    %429 = arith.addf %425, %428 : vector<4x384xf32>
    %430 = vector.broadcast %421 : vector<1x384xf32> to vector<4x384xf32>
    %431 = vector.broadcast %35 : vector<4x1xf32> to vector<4x384xf32>
    %432 = arith.mulf %430, %431 : vector<4x384xf32>
    %433 = arith.addf %429, %432 : vector<4x384xf32>
    %434 = vector.broadcast %36 : vector<1x384xf32> to vector<4x384xf32>
    %435 = arith.mulf %433, %434 : vector<4x384xf32>
    %c0_178 = arith.constant 0 : index
    %c128_179 = arith.constant 128 : index
    %436 = vector.load %arg6[%c0_178, %c128_179] : memref<4x640xf32, #tpu.memory_space<vmem>>, vector<4x384xf32>
    tpu.vector_store %arg6[%c0_178, %c128_179], %435 {strides = array<i32>} : memref<4x640xf32, #tpu.memory_space<vmem>>, vector<4x384xf32>,
    %cst_180 = arith.constant 0.000000e+00 : f32
    %437 = vector.broadcast %cst_180 : f32 to vector<4x384xf32>
    %c0_181 = arith.constant 0 : index
    %c110_182 = arith.constant 110 : index
    %438 = vector.load %arg6[%c0_181, %c110_182] : memref<4x640xf32, #tpu.memory_space<vmem>>, vector<1x384xf32>
    %c1_i32_183 = arith.constant 1 : i32
    %439 = tpu.dynamic_rotate %438 by %c1_i32_183 dim 1 : vector<1x384xf32>, i32 -> vector<1x384xf32>
    %c383_i32_184 = arith.constant 383 : i32
    %440 = tpu.dynamic_rotate %438 by %c383_i32_184 dim 1 : vector<1x384xf32>, i32 -> vector<1x384xf32>
    %441 = vector.broadcast %439 : vector<1x384xf32> to vector<4x384xf32>
    %442 = vector.broadcast %0 : vector<4x1xf32> to vector<4x384xf32>
    %443 = arith.mulf %441, %442 : vector<4x384xf32>
    %444 = arith.addf %437, %443 : vector<4x384xf32>
    %445 = vector.broadcast %438 : vector<1x384xf32> to vector<4x384xf32>
    %446 = vector.broadcast %4 : vector<4x1xf32> to vector<4x384xf32>
    %447 = arith.mulf %445, %446 : vector<4x384xf32>
    %448 = arith.addf %444, %447 : vector<4x384xf32>
    %449 = vector.broadcast %440 : vector<1x384xf32> to vector<4x384xf32>
    %450 = vector.broadcast %8 : vector<4x1xf32> to vector<4x384xf32>
    %451 = arith.mulf %449, %450 : vector<4x384xf32>
    %452 = arith.addf %448, %451 : vector<4x384xf32>
    %c0_185 = arith.constant 0 : index
    %c128_186 = arith.constant 128 : index
    %453 = vector.load %arg6[%c0_185, %c128_186] : memref<4x640xf32, #tpu.memory_space<vmem>>, vector<1x384xf32>
    %c1_i32_187 = arith.constant 1 : i32
    %454 = tpu.dynamic_rotate %453 by %c1_i32_187 dim 1 : vector<1x384xf32>, i32 -> vector<1x384xf32>
    %c383_i32_188 = arith.constant 383 : i32
    %455 = tpu.dynamic_rotate %453 by %c383_i32_188 dim 1 : vector<1x384xf32>, i32 -> vector<1x384xf32>
    %456 = vector.broadcast %454 : vector<1x384xf32> to vector<4x384xf32>
    %457 = vector.broadcast %12 : vector<4x1xf32> to vector<4x384xf32>
    %458 = arith.mulf %456, %457 : vector<4x384xf32>
    %459 = arith.addf %452, %458 : vector<4x384xf32>
    %460 = vector.broadcast %453 : vector<1x384xf32> to vector<4x384xf32>
    %461 = vector.broadcast %16 : vector<4x1xf32> to vector<4x384xf32>
    %462 = arith.mulf %460, %461 : vector<4x384xf32>
    %463 = arith.addf %459, %462 : vector<4x384xf32>
    %464 = vector.broadcast %455 : vector<1x384xf32> to vector<4x384xf32>
    %465 = vector.broadcast %20 : vector<4x1xf32> to vector<4x384xf32>
    %466 = arith.mulf %464, %465 : vector<4x384xf32>
    %467 = arith.addf %463, %466 : vector<4x384xf32>
    %c0_189 = arith.constant 0 : index
    %c146_190 = arith.constant 146 : index
    %468 = vector.load %arg6[%c0_189, %c146_190] : memref<4x640xf32, #tpu.memory_space<vmem>>, vector<1x384xf32>
    %c1_i32_191 = arith.constant 1 : i32
    %469 = tpu.dynamic_rotate %468 by %c1_i32_191 dim 1 : vector<1x384xf32>, i32 -> vector<1x384xf32>
    %c383_i32_192 = arith.constant 383 : i32
    %470 = tpu.dynamic_rotate %468 by %c383_i32_192 dim 1 : vector<1x384xf32>, i32 -> vector<1x384xf32>
    %471 = vector.broadcast %469 : vector<1x384xf32> to vector<4x384xf32>
    %472 = vector.broadcast %24 : vector<4x1xf32> to vector<4x384xf32>
    %473 = arith.mulf %471, %472 : vector<4x384xf32>
    %474 = arith.addf %467, %473 : vector<4x384xf32>
    %475 = vector.broadcast %468 : vector<1x384xf32> to vector<4x384xf32>
    %476 = vector.broadcast %28 : vector<4x1xf32> to vector<4x384xf32>
    %477 = arith.mulf %475, %476 : vector<4x384xf32>
    %478 = arith.addf %474, %477 : vector<4x384xf32>
    %479 = vector.broadcast %470 : vector<1x384xf32> to vector<4x384xf32>
    %480 = vector.broadcast %32 : vector<4x1xf32> to vector<4x384xf32>
    %481 = arith.mulf %479, %480 : vector<4x384xf32>
    %482 = arith.addf %478, %481 : vector<4x384xf32>
    %c1_193 = arith.constant 1 : index
    %c110_194 = arith.constant 110 : index
    %483 = vector.load %arg6[%c1_193, %c110_194] : memref<4x640xf32, #tpu.memory_space<vmem>>, vector<1x384xf32>
    %c1_i32_195 = arith.constant 1 : i32
    %484 = tpu.dynamic_rotate %483 by %c1_i32_195 dim 1 : vector<1x384xf32>, i32 -> vector<1x384xf32>
    %c383_i32_196 = arith.constant 383 : i32
    %485 = tpu.dynamic_rotate %483 by %c383_i32_196 dim 1 : vector<1x384xf32>, i32 -> vector<1x384xf32>
    %486 = vector.broadcast %484 : vector<1x384xf32> to vector<4x384xf32>
    %487 = vector.broadcast %1 : vector<4x1xf32> to vector<4x384xf32>
    %488 = arith.mulf %486, %487 : vector<4x384xf32>
    %489 = arith.addf %482, %488 : vector<4x384xf32>
    %490 = vector.broadcast %483 : vector<1x384xf32> to vector<4x384xf32>
    %491 = vector.broadcast %5 : vector<4x1xf32> to vector<4x384xf32>
    %492 = arith.mulf %490, %491 : vector<4x384xf32>
    %493 = arith.addf %489, %492 : vector<4x384xf32>
    %494 = vector.broadcast %485 : vector<1x384xf32> to vector<4x384xf32>
    %495 = vector.broadcast %9 : vector<4x1xf32> to vector<4x384xf32>
    %496 = arith.mulf %494, %495 : vector<4x384xf32>
    %497 = arith.addf %493, %496 : vector<4x384xf32>
    %c1_197 = arith.constant 1 : index
    %c128_198 = arith.constant 128 : index
    %498 = vector.load %arg6[%c1_197, %c128_198] : memref<4x640xf32, #tpu.memory_space<vmem>>, vector<1x384xf32>
    %c1_i32_199 = arith.constant 1 : i32
    %499 = tpu.dynamic_rotate %498 by %c1_i32_199 dim 1 : vector<1x384xf32>, i32 -> vector<1x384xf32>
    %c383_i32_200 = arith.constant 383 : i32
    %500 = tpu.dynamic_rotate %498 by %c383_i32_200 dim 1 : vector<1x384xf32>, i32 -> vector<1x384xf32>
    %501 = vector.broadcast %499 : vector<1x384xf32> to vector<4x384xf32>
    %502 = vector.broadcast %13 : vector<4x1xf32> to vector<4x384xf32>
    %503 = arith.mulf %501, %502 : vector<4x384xf32>
    %504 = arith.addf %497, %503 : vector<4x384xf32>
    %505 = vector.broadcast %498 : vector<1x384xf32> to vector<4x384xf32>
    %506 = vector.broadcast %17 : vector<4x1xf32> to vector<4x384xf32>
    %507 = arith.mulf %505, %506 : vector<4x384xf32>
    %508 = arith.addf %504, %507 : vector<4x384xf32>
    %509 = vector.broadcast %500 : vector<1x384xf32> to vector<4x384xf32>
    %510 = vector.broadcast %21 : vector<4x1xf32> to vector<4x384xf32>
    %511 = arith.mulf %509, %510 : vector<4x384xf32>
    %512 = arith.addf %508, %511 : vector<4x384xf32>
    %c1_201 = arith.constant 1 : index
    %c146_202 = arith.constant 146 : index
    %513 = vector.load %arg6[%c1_201, %c146_202] : memref<4x640xf32, #tpu.memory_space<vmem>>, vector<1x384xf32>
    %c1_i32_203 = arith.constant 1 : i32
    %514 = tpu.dynamic_rotate %513 by %c1_i32_203 dim 1 : vector<1x384xf32>, i32 -> vector<1x384xf32>
    %c383_i32_204 = arith.constant 383 : i32
    %515 = tpu.dynamic_rotate %513 by %c383_i32_204 dim 1 : vector<1x384xf32>, i32 -> vector<1x384xf32>
    %516 = vector.broadcast %514 : vector<1x384xf32> to vector<4x384xf32>
    %517 = vector.broadcast %25 : vector<4x1xf32> to vector<4x384xf32>
    %518 = arith.mulf %516, %517 : vector<4x384xf32>
    %519 = arith.addf %512, %518 : vector<4x384xf32>
    %520 = vector.broadcast %513 : vector<1x384xf32> to vector<4x384xf32>
    %521 = vector.broadcast %29 : vector<4x1xf32> to vector<4x384xf32>
    %522 = arith.mulf %520, %521 : vector<4x384xf32>
    %523 = arith.addf %519, %522 : vector<4x384xf32>
    %524 = vector.broadcast %515 : vector<1x384xf32> to vector<4x384xf32>
    %525 = vector.broadcast %33 : vector<4x1xf32> to vector<4x384xf32>
    %526 = arith.mulf %524, %525 : vector<4x384xf32>
    %527 = arith.addf %523, %526 : vector<4x384xf32>
    %c2_205 = arith.constant 2 : index
    %c110_206 = arith.constant 110 : index
    %528 = vector.load %arg6[%c2_205, %c110_206] : memref<4x640xf32, #tpu.memory_space<vmem>>, vector<1x384xf32>
    %c1_i32_207 = arith.constant 1 : i32
    %529 = tpu.dynamic_rotate %528 by %c1_i32_207 dim 1 : vector<1x384xf32>, i32 -> vector<1x384xf32>
    %c383_i32_208 = arith.constant 383 : i32
    %530 = tpu.dynamic_rotate %528 by %c383_i32_208 dim 1 : vector<1x384xf32>, i32 -> vector<1x384xf32>
    %531 = vector.broadcast %529 : vector<1x384xf32> to vector<4x384xf32>
    %532 = vector.broadcast %2 : vector<4x1xf32> to vector<4x384xf32>
    %533 = arith.mulf %531, %532 : vector<4x384xf32>
    %534 = arith.addf %527, %533 : vector<4x384xf32>
    %535 = vector.broadcast %528 : vector<1x384xf32> to vector<4x384xf32>
    %536 = vector.broadcast %6 : vector<4x1xf32> to vector<4x384xf32>
    %537 = arith.mulf %535, %536 : vector<4x384xf32>
    %538 = arith.addf %534, %537 : vector<4x384xf32>
    %539 = vector.broadcast %530 : vector<1x384xf32> to vector<4x384xf32>
    %540 = vector.broadcast %10 : vector<4x1xf32> to vector<4x384xf32>
    %541 = arith.mulf %539, %540 : vector<4x384xf32>
    %542 = arith.addf %538, %541 : vector<4x384xf32>
    %c2_209 = arith.constant 2 : index
    %c128_210 = arith.constant 128 : index
    %543 = vector.load %arg6[%c2_209, %c128_210] : memref<4x640xf32, #tpu.memory_space<vmem>>, vector<1x384xf32>
    %c1_i32_211 = arith.constant 1 : i32
    %544 = tpu.dynamic_rotate %543 by %c1_i32_211 dim 1 : vector<1x384xf32>, i32 -> vector<1x384xf32>
    %c383_i32_212 = arith.constant 383 : i32
    %545 = tpu.dynamic_rotate %543 by %c383_i32_212 dim 1 : vector<1x384xf32>, i32 -> vector<1x384xf32>
    %546 = vector.broadcast %544 : vector<1x384xf32> to vector<4x384xf32>
    %547 = vector.broadcast %14 : vector<4x1xf32> to vector<4x384xf32>
    %548 = arith.mulf %546, %547 : vector<4x384xf32>
    %549 = arith.addf %542, %548 : vector<4x384xf32>
    %550 = vector.broadcast %543 : vector<1x384xf32> to vector<4x384xf32>
    %551 = vector.broadcast %18 : vector<4x1xf32> to vector<4x384xf32>
    %552 = arith.mulf %550, %551 : vector<4x384xf32>
    %553 = arith.addf %549, %552 : vector<4x384xf32>
    %554 = vector.broadcast %545 : vector<1x384xf32> to vector<4x384xf32>
    %555 = vector.broadcast %22 : vector<4x1xf32> to vector<4x384xf32>
    %556 = arith.mulf %554, %555 : vector<4x384xf32>
    %557 = arith.addf %553, %556 : vector<4x384xf32>
    %c2_213 = arith.constant 2 : index
    %c146_214 = arith.constant 146 : index
    %558 = vector.load %arg6[%c2_213, %c146_214] : memref<4x640xf32, #tpu.memory_space<vmem>>, vector<1x384xf32>
    %c1_i32_215 = arith.constant 1 : i32
    %559 = tpu.dynamic_rotate %558 by %c1_i32_215 dim 1 : vector<1x384xf32>, i32 -> vector<1x384xf32>
    %c383_i32_216 = arith.constant 383 : i32
    %560 = tpu.dynamic_rotate %558 by %c383_i32_216 dim 1 : vector<1x384xf32>, i32 -> vector<1x384xf32>
    %561 = vector.broadcast %559 : vector<1x384xf32> to vector<4x384xf32>
    %562 = vector.broadcast %26 : vector<4x1xf32> to vector<4x384xf32>
    %563 = arith.mulf %561, %562 : vector<4x384xf32>
    %564 = arith.addf %557, %563 : vector<4x384xf32>
    %565 = vector.broadcast %558 : vector<1x384xf32> to vector<4x384xf32>
    %566 = vector.broadcast %30 : vector<4x1xf32> to vector<4x384xf32>
    %567 = arith.mulf %565, %566 : vector<4x384xf32>
    %568 = arith.addf %564, %567 : vector<4x384xf32>
    %569 = vector.broadcast %560 : vector<1x384xf32> to vector<4x384xf32>
    %570 = vector.broadcast %34 : vector<4x1xf32> to vector<4x384xf32>
    %571 = arith.mulf %569, %570 : vector<4x384xf32>
    %572 = arith.addf %568, %571 : vector<4x384xf32>
    %c3_217 = arith.constant 3 : index
    %c110_218 = arith.constant 110 : index
    %573 = vector.load %arg6[%c3_217, %c110_218] : memref<4x640xf32, #tpu.memory_space<vmem>>, vector<1x384xf32>
    %c1_i32_219 = arith.constant 1 : i32
    %574 = tpu.dynamic_rotate %573 by %c1_i32_219 dim 1 : vector<1x384xf32>, i32 -> vector<1x384xf32>
    %c383_i32_220 = arith.constant 383 : i32
    %575 = tpu.dynamic_rotate %573 by %c383_i32_220 dim 1 : vector<1x384xf32>, i32 -> vector<1x384xf32>
    %576 = vector.broadcast %574 : vector<1x384xf32> to vector<4x384xf32>
    %577 = vector.broadcast %3 : vector<4x1xf32> to vector<4x384xf32>
    %578 = arith.mulf %576, %577 : vector<4x384xf32>
    %579 = arith.addf %572, %578 : vector<4x384xf32>
    %580 = vector.broadcast %573 : vector<1x384xf32> to vector<4x384xf32>
    %581 = vector.broadcast %7 : vector<4x1xf32> to vector<4x384xf32>
    %582 = arith.mulf %580, %581 : vector<4x384xf32>
    %583 = arith.addf %579, %582 : vector<4x384xf32>
    %584 = vector.broadcast %575 : vector<1x384xf32> to vector<4x384xf32>
    %585 = vector.broadcast %11 : vector<4x1xf32> to vector<4x384xf32>
    %586 = arith.mulf %584, %585 : vector<4x384xf32>
    %587 = arith.addf %583, %586 : vector<4x384xf32>
    %c3_221 = arith.constant 3 : index
    %c128_222 = arith.constant 128 : index
    %588 = vector.load %arg6[%c3_221, %c128_222] : memref<4x640xf32, #tpu.memory_space<vmem>>, vector<1x384xf32>
    %c1_i32_223 = arith.constant 1 : i32
    %589 = tpu.dynamic_rotate %588 by %c1_i32_223 dim 1 : vector<1x384xf32>, i32 -> vector<1x384xf32>
    %c383_i32_224 = arith.constant 383 : i32
    %590 = tpu.dynamic_rotate %588 by %c383_i32_224 dim 1 : vector<1x384xf32>, i32 -> vector<1x384xf32>
    %591 = vector.broadcast %589 : vector<1x384xf32> to vector<4x384xf32>
    %592 = vector.broadcast %15 : vector<4x1xf32> to vector<4x384xf32>
    %593 = arith.mulf %591, %592 : vector<4x384xf32>
    %594 = arith.addf %587, %593 : vector<4x384xf32>
    %595 = vector.broadcast %588 : vector<1x384xf32> to vector<4x384xf32>
    %596 = vector.broadcast %19 : vector<4x1xf32> to vector<4x384xf32>
    %597 = arith.mulf %595, %596 : vector<4x384xf32>
    %598 = arith.addf %594, %597 : vector<4x384xf32>
    %599 = vector.broadcast %590 : vector<1x384xf32> to vector<4x384xf32>
    %600 = vector.broadcast %23 : vector<4x1xf32> to vector<4x384xf32>
    %601 = arith.mulf %599, %600 : vector<4x384xf32>
    %602 = arith.addf %598, %601 : vector<4x384xf32>
    %c3_225 = arith.constant 3 : index
    %c146_226 = arith.constant 146 : index
    %603 = vector.load %arg6[%c3_225, %c146_226] : memref<4x640xf32, #tpu.memory_space<vmem>>, vector<1x384xf32>
    %c1_i32_227 = arith.constant 1 : i32
    %604 = tpu.dynamic_rotate %603 by %c1_i32_227 dim 1 : vector<1x384xf32>, i32 -> vector<1x384xf32>
    %c383_i32_228 = arith.constant 383 : i32
    %605 = tpu.dynamic_rotate %603 by %c383_i32_228 dim 1 : vector<1x384xf32>, i32 -> vector<1x384xf32>
    %606 = vector.broadcast %604 : vector<1x384xf32> to vector<4x384xf32>
    %607 = vector.broadcast %27 : vector<4x1xf32> to vector<4x384xf32>
    %608 = arith.mulf %606, %607 : vector<4x384xf32>
    %609 = arith.addf %602, %608 : vector<4x384xf32>
    %610 = vector.broadcast %603 : vector<1x384xf32> to vector<4x384xf32>
    %611 = vector.broadcast %31 : vector<4x1xf32> to vector<4x384xf32>
    %612 = arith.mulf %610, %611 : vector<4x384xf32>
    %613 = arith.addf %609, %612 : vector<4x384xf32>
    %614 = vector.broadcast %605 : vector<1x384xf32> to vector<4x384xf32>
    %615 = vector.broadcast %35 : vector<4x1xf32> to vector<4x384xf32>
    %616 = arith.mulf %614, %615 : vector<4x384xf32>
    %617 = arith.addf %613, %616 : vector<4x384xf32>
    %c0_229 = arith.constant 0 : index
    %c0_230 = arith.constant 0 : index
    %c0_231 = arith.constant 0 : index
    %618 = vector.load %arg4[%c0_229, %c0_230, %c0_231] : memref<2x4x384xf32, #tpu.memory_space<vmem>>, vector<1x4x384xf32>
    %619 = vector.shape_cast %618 : vector<1x4x384xf32> to vector<4x384xf32>
    %620 = vector.shape_cast %617 : vector<4x384xf32> to vector<1x4x384xf32>
    tpu.vector_store %arg4[%c0_229, %c0_230, %c0_231], %620 {strides = array<i32>} : memref<2x4x384xf32, #tpu.memory_space<vmem>>, vector<1x4x384xf32>,
    %cst_232 = arith.constant 0.000000e+00 : f32
    %621 = vector.broadcast %cst_232 : f32 to vector<4x384xf32>
    %c1_i32_233 = arith.constant 1 : i32
    %c0_i32_234 = arith.constant 0 : i32
    %c0_i32_235 = arith.constant 0 : i32
    %622 = tpu.memref_slice %arg3[%c1_i32_233, %c0_i32_234, %c0_i32_235] : memref<2x4x640xf32, #tpu.memory_space<vmem>> -> memref<1x4x640xf32, #tpu.memory_space<vmem>>
    %623 = tpu.memref_squeeze %622 : memref<1x4x640xf32, #tpu.memory_space<vmem>> -> memref<4x640xf32, #tpu.memory_space<vmem>>
    %c0_236 = arith.constant 0 : index
    %c110_237 = arith.constant 110 : index
    %624 = vector.load %623[%c0_236, %c110_237] : memref<4x640xf32, #tpu.memory_space<vmem>>, vector<1x384xf32>
    %c1_i32_238 = arith.constant 1 : i32
    %625 = tpu.dynamic_rotate %624 by %c1_i32_238 dim 1 : vector<1x384xf32>, i32 -> vector<1x384xf32>
    %c383_i32_239 = arith.constant 383 : i32
    %626 = tpu.dynamic_rotate %624 by %c383_i32_239 dim 1 : vector<1x384xf32>, i32 -> vector<1x384xf32>
    %627 = vector.broadcast %625 : vector<1x384xf32> to vector<4x384xf32>
    %628 = vector.broadcast %0 : vector<4x1xf32> to vector<4x384xf32>
    %629 = arith.mulf %627, %628 : vector<4x384xf32>
    %630 = arith.addf %621, %629 : vector<4x384xf32>
    %631 = vector.broadcast %624 : vector<1x384xf32> to vector<4x384xf32>
    %632 = vector.broadcast %4 : vector<4x1xf32> to vector<4x384xf32>
    %633 = arith.mulf %631, %632 : vector<4x384xf32>
    %634 = arith.addf %630, %633 : vector<4x384xf32>
    %635 = vector.broadcast %626 : vector<1x384xf32> to vector<4x384xf32>
    %636 = vector.broadcast %8 : vector<4x1xf32> to vector<4x384xf32>
    %637 = arith.mulf %635, %636 : vector<4x384xf32>
    %638 = arith.addf %634, %637 : vector<4x384xf32>
    %c1_i32_240 = arith.constant 1 : i32
    %c0_i32_241 = arith.constant 0 : i32
    %c0_i32_242 = arith.constant 0 : i32
    %639 = tpu.memref_slice %arg3[%c1_i32_240, %c0_i32_241, %c0_i32_242] : memref<2x4x640xf32, #tpu.memory_space<vmem>> -> memref<1x4x640xf32, #tpu.memory_space<vmem>>
    %640 = tpu.memref_squeeze %639 : memref<1x4x640xf32, #tpu.memory_space<vmem>> -> memref<4x640xf32, #tpu.memory_space<vmem>>
    %c0_243 = arith.constant 0 : index
    %c128_244 = arith.constant 128 : index
    %641 = vector.load %640[%c0_243, %c128_244] : memref<4x640xf32, #tpu.memory_space<vmem>>, vector<1x384xf32>
    %c1_i32_245 = arith.constant 1 : i32
    %642 = tpu.dynamic_rotate %641 by %c1_i32_245 dim 1 : vector<1x384xf32>, i32 -> vector<1x384xf32>
    %c383_i32_246 = arith.constant 383 : i32
    %643 = tpu.dynamic_rotate %641 by %c383_i32_246 dim 1 : vector<1x384xf32>, i32 -> vector<1x384xf32>
    %644 = vector.broadcast %642 : vector<1x384xf32> to vector<4x384xf32>
    %645 = vector.broadcast %12 : vector<4x1xf32> to vector<4x384xf32>
    %646 = arith.mulf %644, %645 : vector<4x384xf32>
    %647 = arith.addf %638, %646 : vector<4x384xf32>
    %648 = vector.broadcast %641 : vector<1x384xf32> to vector<4x384xf32>
    %649 = vector.broadcast %16 : vector<4x1xf32> to vector<4x384xf32>
    %650 = arith.mulf %648, %649 : vector<4x384xf32>
    %651 = arith.addf %647, %650 : vector<4x384xf32>
    %652 = vector.broadcast %643 : vector<1x384xf32> to vector<4x384xf32>
    %653 = vector.broadcast %20 : vector<4x1xf32> to vector<4x384xf32>
    %654 = arith.mulf %652, %653 : vector<4x384xf32>
    %655 = arith.addf %651, %654 : vector<4x384xf32>
    %c1_i32_247 = arith.constant 1 : i32
    %c0_i32_248 = arith.constant 0 : i32
    %c0_i32_249 = arith.constant 0 : i32
    %656 = tpu.memref_slice %arg3[%c1_i32_247, %c0_i32_248, %c0_i32_249] : memref<2x4x640xf32, #tpu.memory_space<vmem>> -> memref<1x4x640xf32, #tpu.memory_space<vmem>>
    %657 = tpu.memref_squeeze %656 : memref<1x4x640xf32, #tpu.memory_space<vmem>> -> memref<4x640xf32, #tpu.memory_space<vmem>>
    %c0_250 = arith.constant 0 : index
    %c146_251 = arith.constant 146 : index
    %658 = vector.load %657[%c0_250, %c146_251] : memref<4x640xf32, #tpu.memory_space<vmem>>, vector<1x384xf32>
    %c1_i32_252 = arith.constant 1 : i32
    %659 = tpu.dynamic_rotate %658 by %c1_i32_252 dim 1 : vector<1x384xf32>, i32 -> vector<1x384xf32>
    %c383_i32_253 = arith.constant 383 : i32
    %660 = tpu.dynamic_rotate %658 by %c383_i32_253 dim 1 : vector<1x384xf32>, i32 -> vector<1x384xf32>
    %661 = vector.broadcast %659 : vector<1x384xf32> to vector<4x384xf32>
    %662 = vector.broadcast %24 : vector<4x1xf32> to vector<4x384xf32>
    %663 = arith.mulf %661, %662 : vector<4x384xf32>
    %664 = arith.addf %655, %663 : vector<4x384xf32>
    %665 = vector.broadcast %658 : vector<1x384xf32> to vector<4x384xf32>
    %666 = vector.broadcast %28 : vector<4x1xf32> to vector<4x384xf32>
    %667 = arith.mulf %665, %666 : vector<4x384xf32>
    %668 = arith.addf %664, %667 : vector<4x384xf32>
    %669 = vector.broadcast %660 : vector<1x384xf32> to vector<4x384xf32>
    %670 = vector.broadcast %32 : vector<4x1xf32> to vector<4x384xf32>
    %671 = arith.mulf %669, %670 : vector<4x384xf32>
    %672 = arith.addf %668, %671 : vector<4x384xf32>
    %c1_i32_254 = arith.constant 1 : i32
    %c0_i32_255 = arith.constant 0 : i32
    %c0_i32_256 = arith.constant 0 : i32
    %673 = tpu.memref_slice %arg3[%c1_i32_254, %c0_i32_255, %c0_i32_256] : memref<2x4x640xf32, #tpu.memory_space<vmem>> -> memref<1x4x640xf32, #tpu.memory_space<vmem>>
    %674 = tpu.memref_squeeze %673 : memref<1x4x640xf32, #tpu.memory_space<vmem>> -> memref<4x640xf32, #tpu.memory_space<vmem>>
    %c1_257 = arith.constant 1 : index
    %c110_258 = arith.constant 110 : index
    %675 = vector.load %674[%c1_257, %c110_258] : memref<4x640xf32, #tpu.memory_space<vmem>>, vector<1x384xf32>
    %c1_i32_259 = arith.constant 1 : i32
    %676 = tpu.dynamic_rotate %675 by %c1_i32_259 dim 1 : vector<1x384xf32>, i32 -> vector<1x384xf32>
    %c383_i32_260 = arith.constant 383 : i32
    %677 = tpu.dynamic_rotate %675 by %c383_i32_260 dim 1 : vector<1x384xf32>, i32 -> vector<1x384xf32>
    %678 = vector.broadcast %676 : vector<1x384xf32> to vector<4x384xf32>
    %679 = vector.broadcast %1 : vector<4x1xf32> to vector<4x384xf32>
    %680 = arith.mulf %678, %679 : vector<4x384xf32>
    %681 = arith.addf %672, %680 : vector<4x384xf32>
    %682 = vector.broadcast %675 : vector<1x384xf32> to vector<4x384xf32>
    %683 = vector.broadcast %5 : vector<4x1xf32> to vector<4x384xf32>
    %684 = arith.mulf %682, %683 : vector<4x384xf32>
    %685 = arith.addf %681, %684 : vector<4x384xf32>
    %686 = vector.broadcast %677 : vector<1x384xf32> to vector<4x384xf32>
    %687 = vector.broadcast %9 : vector<4x1xf32> to vector<4x384xf32>
    %688 = arith.mulf %686, %687 : vector<4x384xf32>
    %689 = arith.addf %685, %688 : vector<4x384xf32>
    %c1_i32_261 = arith.constant 1 : i32
    %c0_i32_262 = arith.constant 0 : i32
    %c0_i32_263 = arith.constant 0 : i32
    %690 = tpu.memref_slice %arg3[%c1_i32_261, %c0_i32_262, %c0_i32_263] : memref<2x4x640xf32, #tpu.memory_space<vmem>> -> memref<1x4x640xf32, #tpu.memory_space<vmem>>
    %691 = tpu.memref_squeeze %690 : memref<1x4x640xf32, #tpu.memory_space<vmem>> -> memref<4x640xf32, #tpu.memory_space<vmem>>
    %c1_264 = arith.constant 1 : index
    %c128_265 = arith.constant 128 : index
    %692 = vector.load %691[%c1_264, %c128_265] : memref<4x640xf32, #tpu.memory_space<vmem>>, vector<1x384xf32>
    %c1_i32_266 = arith.constant 1 : i32
    %693 = tpu.dynamic_rotate %692 by %c1_i32_266 dim 1 : vector<1x384xf32>, i32 -> vector<1x384xf32>
    %c383_i32_267 = arith.constant 383 : i32
    %694 = tpu.dynamic_rotate %692 by %c383_i32_267 dim 1 : vector<1x384xf32>, i32 -> vector<1x384xf32>
    %695 = vector.broadcast %693 : vector<1x384xf32> to vector<4x384xf32>
    %696 = vector.broadcast %13 : vector<4x1xf32> to vector<4x384xf32>
    %697 = arith.mulf %695, %696 : vector<4x384xf32>
    %698 = arith.addf %689, %697 : vector<4x384xf32>
    %699 = vector.broadcast %692 : vector<1x384xf32> to vector<4x384xf32>
    %700 = vector.broadcast %17 : vector<4x1xf32> to vector<4x384xf32>
    %701 = arith.mulf %699, %700 : vector<4x384xf32>
    %702 = arith.addf %698, %701 : vector<4x384xf32>
    %703 = vector.broadcast %694 : vector<1x384xf32> to vector<4x384xf32>
    %704 = vector.broadcast %21 : vector<4x1xf32> to vector<4x384xf32>
    %705 = arith.mulf %703, %704 : vector<4x384xf32>
    %706 = arith.addf %702, %705 : vector<4x384xf32>
    %c1_i32_268 = arith.constant 1 : i32
    %c0_i32_269 = arith.constant 0 : i32
    %c0_i32_270 = arith.constant 0 : i32
    %707 = tpu.memref_slice %arg3[%c1_i32_268, %c0_i32_269, %c0_i32_270] : memref<2x4x640xf32, #tpu.memory_space<vmem>> -> memref<1x4x640xf32, #tpu.memory_space<vmem>>
    %708 = tpu.memref_squeeze %707 : memref<1x4x640xf32, #tpu.memory_space<vmem>> -> memref<4x640xf32, #tpu.memory_space<vmem>>
    %c1_271 = arith.constant 1 : index
    %c146_272 = arith.constant 146 : index
    %709 = vector.load %708[%c1_271, %c146_272] : memref<4x640xf32, #tpu.memory_space<vmem>>, vector<1x384xf32>
    %c1_i32_273 = arith.constant 1 : i32
    %710 = tpu.dynamic_rotate %709 by %c1_i32_273 dim 1 : vector<1x384xf32>, i32 -> vector<1x384xf32>
    %c383_i32_274 = arith.constant 383 : i32
    %711 = tpu.dynamic_rotate %709 by %c383_i32_274 dim 1 : vector<1x384xf32>, i32 -> vector<1x384xf32>
    %712 = vector.broadcast %710 : vector<1x384xf32> to vector<4x384xf32>
    %713 = vector.broadcast %25 : vector<4x1xf32> to vector<4x384xf32>
    %714 = arith.mulf %712, %713 : vector<4x384xf32>
    %715 = arith.addf %706, %714 : vector<4x384xf32>
    %716 = vector.broadcast %709 : vector<1x384xf32> to vector<4x384xf32>
    %717 = vector.broadcast %29 : vector<4x1xf32> to vector<4x384xf32>
    %718 = arith.mulf %716, %717 : vector<4x384xf32>
    %719 = arith.addf %715, %718 : vector<4x384xf32>
    %720 = vector.broadcast %711 : vector<1x384xf32> to vector<4x384xf32>
    %721 = vector.broadcast %33 : vector<4x1xf32> to vector<4x384xf32>
    %722 = arith.mulf %720, %721 : vector<4x384xf32>
    %723 = arith.addf %719, %722 : vector<4x384xf32>
    %c1_i32_275 = arith.constant 1 : i32
    %c0_i32_276 = arith.constant 0 : i32
    %c0_i32_277 = arith.constant 0 : i32
    %724 = tpu.memref_slice %arg3[%c1_i32_275, %c0_i32_276, %c0_i32_277] : memref<2x4x640xf32, #tpu.memory_space<vmem>> -> memref<1x4x640xf32, #tpu.memory_space<vmem>>
    %725 = tpu.memref_squeeze %724 : memref<1x4x640xf32, #tpu.memory_space<vmem>> -> memref<4x640xf32, #tpu.memory_space<vmem>>
    %c2_278 = arith.constant 2 : index
    %c110_279 = arith.constant 110 : index
    %726 = vector.load %725[%c2_278, %c110_279] : memref<4x640xf32, #tpu.memory_space<vmem>>, vector<1x384xf32>
    %c1_i32_280 = arith.constant 1 : i32
    %727 = tpu.dynamic_rotate %726 by %c1_i32_280 dim 1 : vector<1x384xf32>, i32 -> vector<1x384xf32>
    %c383_i32_281 = arith.constant 383 : i32
    %728 = tpu.dynamic_rotate %726 by %c383_i32_281 dim 1 : vector<1x384xf32>, i32 -> vector<1x384xf32>
    %729 = vector.broadcast %727 : vector<1x384xf32> to vector<4x384xf32>
    %730 = vector.broadcast %2 : vector<4x1xf32> to vector<4x384xf32>
    %731 = arith.mulf %729, %730 : vector<4x384xf32>
    %732 = arith.addf %723, %731 : vector<4x384xf32>
    %733 = vector.broadcast %726 : vector<1x384xf32> to vector<4x384xf32>
    %734 = vector.broadcast %6 : vector<4x1xf32> to vector<4x384xf32>
    %735 = arith.mulf %733, %734 : vector<4x384xf32>
    %736 = arith.addf %732, %735 : vector<4x384xf32>
    %737 = vector.broadcast %728 : vector<1x384xf32> to vector<4x384xf32>
    %738 = vector.broadcast %10 : vector<4x1xf32> to vector<4x384xf32>
    %739 = arith.mulf %737, %738 : vector<4x384xf32>
    %740 = arith.addf %736, %739 : vector<4x384xf32>
    %c1_i32_282 = arith.constant 1 : i32
    %c0_i32_283 = arith.constant 0 : i32
    %c0_i32_284 = arith.constant 0 : i32
    %741 = tpu.memref_slice %arg3[%c1_i32_282, %c0_i32_283, %c0_i32_284] : memref<2x4x640xf32, #tpu.memory_space<vmem>> -> memref<1x4x640xf32, #tpu.memory_space<vmem>>
    %742 = tpu.memref_squeeze %741 : memref<1x4x640xf32, #tpu.memory_space<vmem>> -> memref<4x640xf32, #tpu.memory_space<vmem>>
    %c2_285 = arith.constant 2 : index
    %c128_286 = arith.constant 128 : index
    %743 = vector.load %742[%c2_285, %c128_286] : memref<4x640xf32, #tpu.memory_space<vmem>>, vector<1x384xf32>
    %c1_i32_287 = arith.constant 1 : i32
    %744 = tpu.dynamic_rotate %743 by %c1_i32_287 dim 1 : vector<1x384xf32>, i32 -> vector<1x384xf32>
    %c383_i32_288 = arith.constant 383 : i32
    %745 = tpu.dynamic_rotate %743 by %c383_i32_288 dim 1 : vector<1x384xf32>, i32 -> vector<1x384xf32>
    %746 = vector.broadcast %744 : vector<1x384xf32> to vector<4x384xf32>
    %747 = vector.broadcast %14 : vector<4x1xf32> to vector<4x384xf32>
    %748 = arith.mulf %746, %747 : vector<4x384xf32>
    %749 = arith.addf %740, %748 : vector<4x384xf32>
    %750 = vector.broadcast %743 : vector<1x384xf32> to vector<4x384xf32>
    %751 = vector.broadcast %18 : vector<4x1xf32> to vector<4x384xf32>
    %752 = arith.mulf %750, %751 : vector<4x384xf32>
    %753 = arith.addf %749, %752 : vector<4x384xf32>
    %754 = vector.broadcast %745 : vector<1x384xf32> to vector<4x384xf32>
    %755 = vector.broadcast %22 : vector<4x1xf32> to vector<4x384xf32>
    %756 = arith.mulf %754, %755 : vector<4x384xf32>
    %757 = arith.addf %753, %756 : vector<4x384xf32>
    %c1_i32_289 = arith.constant 1 : i32
    %c0_i32_290 = arith.constant 0 : i32
    %c0_i32_291 = arith.constant 0 : i32
    %758 = tpu.memref_slice %arg3[%c1_i32_289, %c0_i32_290, %c0_i32_291] : memref<2x4x640xf32, #tpu.memory_space<vmem>> -> memref<1x4x640xf32, #tpu.memory_space<vmem>>
    %759 = tpu.memref_squeeze %758 : memref<1x4x640xf32, #tpu.memory_space<vmem>> -> memref<4x640xf32, #tpu.memory_space<vmem>>
    %c2_292 = arith.constant 2 : index
    %c146_293 = arith.constant 146 : index
    %760 = vector.load %759[%c2_292, %c146_293] : memref<4x640xf32, #tpu.memory_space<vmem>>, vector<1x384xf32>
    %c1_i32_294 = arith.constant 1 : i32
    %761 = tpu.dynamic_rotate %760 by %c1_i32_294 dim 1 : vector<1x384xf32>, i32 -> vector<1x384xf32>
    %c383_i32_295 = arith.constant 383 : i32
    %762 = tpu.dynamic_rotate %760 by %c383_i32_295 dim 1 : vector<1x384xf32>, i32 -> vector<1x384xf32>
    %763 = vector.broadcast %761 : vector<1x384xf32> to vector<4x384xf32>
    %764 = vector.broadcast %26 : vector<4x1xf32> to vector<4x384xf32>
    %765 = arith.mulf %763, %764 : vector<4x384xf32>
    %766 = arith.addf %757, %765 : vector<4x384xf32>
    %767 = vector.broadcast %760 : vector<1x384xf32> to vector<4x384xf32>
    %768 = vector.broadcast %30 : vector<4x1xf32> to vector<4x384xf32>
    %769 = arith.mulf %767, %768 : vector<4x384xf32>
    %770 = arith.addf %766, %769 : vector<4x384xf32>
    %771 = vector.broadcast %762 : vector<1x384xf32> to vector<4x384xf32>
    %772 = vector.broadcast %34 : vector<4x1xf32> to vector<4x384xf32>
    %773 = arith.mulf %771, %772 : vector<4x384xf32>
    %774 = arith.addf %770, %773 : vector<4x384xf32>
    %c1_i32_296 = arith.constant 1 : i32
    %c0_i32_297 = arith.constant 0 : i32
    %c0_i32_298 = arith.constant 0 : i32
    %775 = tpu.memref_slice %arg3[%c1_i32_296, %c0_i32_297, %c0_i32_298] : memref<2x4x640xf32, #tpu.memory_space<vmem>> -> memref<1x4x640xf32, #tpu.memory_space<vmem>>
    %776 = tpu.memref_squeeze %775 : memref<1x4x640xf32, #tpu.memory_space<vmem>> -> memref<4x640xf32, #tpu.memory_space<vmem>>
    %c3_299 = arith.constant 3 : index
    %c110_300 = arith.constant 110 : index
    %777 = vector.load %776[%c3_299, %c110_300] : memref<4x640xf32, #tpu.memory_space<vmem>>, vector<1x384xf32>
    %c1_i32_301 = arith.constant 1 : i32
    %778 = tpu.dynamic_rotate %777 by %c1_i32_301 dim 1 : vector<1x384xf32>, i32 -> vector<1x384xf32>
    %c383_i32_302 = arith.constant 383 : i32
    %779 = tpu.dynamic_rotate %777 by %c383_i32_302 dim 1 : vector<1x384xf32>, i32 -> vector<1x384xf32>
    %780 = vector.broadcast %778 : vector<1x384xf32> to vector<4x384xf32>
    %781 = vector.broadcast %3 : vector<4x1xf32> to vector<4x384xf32>
    %782 = arith.mulf %780, %781 : vector<4x384xf32>
    %783 = arith.addf %774, %782 : vector<4x384xf32>
    %784 = vector.broadcast %777 : vector<1x384xf32> to vector<4x384xf32>
    %785 = vector.broadcast %7 : vector<4x1xf32> to vector<4x384xf32>
    %786 = arith.mulf %784, %785 : vector<4x384xf32>
    %787 = arith.addf %783, %786 : vector<4x384xf32>
    %788 = vector.broadcast %779 : vector<1x384xf32> to vector<4x384xf32>
    %789 = vector.broadcast %11 : vector<4x1xf32> to vector<4x384xf32>
    %790 = arith.mulf %788, %789 : vector<4x384xf32>
    %791 = arith.addf %787, %790 : vector<4x384xf32>
    %c1_i32_303 = arith.constant 1 : i32
    %c0_i32_304 = arith.constant 0 : i32
    %c0_i32_305 = arith.constant 0 : i32
    %792 = tpu.memref_slice %arg3[%c1_i32_303, %c0_i32_304, %c0_i32_305] : memref<2x4x640xf32, #tpu.memory_space<vmem>> -> memref<1x4x640xf32, #tpu.memory_space<vmem>>
    %793 = tpu.memref_squeeze %792 : memref<1x4x640xf32, #tpu.memory_space<vmem>> -> memref<4x640xf32, #tpu.memory_space<vmem>>
    %c3_306 = arith.constant 3 : index
    %c128_307 = arith.constant 128 : index
    %794 = vector.load %793[%c3_306, %c128_307] : memref<4x640xf32, #tpu.memory_space<vmem>>, vector<1x384xf32>
    %c1_i32_308 = arith.constant 1 : i32
    %795 = tpu.dynamic_rotate %794 by %c1_i32_308 dim 1 : vector<1x384xf32>, i32 -> vector<1x384xf32>
    %c383_i32_309 = arith.constant 383 : i32
    %796 = tpu.dynamic_rotate %794 by %c383_i32_309 dim 1 : vector<1x384xf32>, i32 -> vector<1x384xf32>
    %797 = vector.broadcast %795 : vector<1x384xf32> to vector<4x384xf32>
    %798 = vector.broadcast %15 : vector<4x1xf32> to vector<4x384xf32>
    %799 = arith.mulf %797, %798 : vector<4x384xf32>
    %800 = arith.addf %791, %799 : vector<4x384xf32>
    %801 = vector.broadcast %794 : vector<1x384xf32> to vector<4x384xf32>
    %802 = vector.broadcast %19 : vector<4x1xf32> to vector<4x384xf32>
    %803 = arith.mulf %801, %802 : vector<4x384xf32>
    %804 = arith.addf %800, %803 : vector<4x384xf32>
    %805 = vector.broadcast %796 : vector<1x384xf32> to vector<4x384xf32>
    %806 = vector.broadcast %23 : vector<4x1xf32> to vector<4x384xf32>
    %807 = arith.mulf %805, %806 : vector<4x384xf32>
    %808 = arith.addf %804, %807 : vector<4x384xf32>
    %c1_i32_310 = arith.constant 1 : i32
    %c0_i32_311 = arith.constant 0 : i32
    %c0_i32_312 = arith.constant 0 : i32
    %809 = tpu.memref_slice %arg3[%c1_i32_310, %c0_i32_311, %c0_i32_312] : memref<2x4x640xf32, #tpu.memory_space<vmem>> -> memref<1x4x640xf32, #tpu.memory_space<vmem>>
    %810 = tpu.memref_squeeze %809 : memref<1x4x640xf32, #tpu.memory_space<vmem>> -> memref<4x640xf32, #tpu.memory_space<vmem>>
    %c3_313 = arith.constant 3 : index
    %c146_314 = arith.constant 146 : index
    %811 = vector.load %810[%c3_313, %c146_314] : memref<4x640xf32, #tpu.memory_space<vmem>>, vector<1x384xf32>
    %c1_i32_315 = arith.constant 1 : i32
    %812 = tpu.dynamic_rotate %811 by %c1_i32_315 dim 1 : vector<1x384xf32>, i32 -> vector<1x384xf32>
    %c383_i32_316 = arith.constant 383 : i32
    %813 = tpu.dynamic_rotate %811 by %c383_i32_316 dim 1 : vector<1x384xf32>, i32 -> vector<1x384xf32>
    %814 = vector.broadcast %812 : vector<1x384xf32> to vector<4x384xf32>
    %815 = vector.broadcast %27 : vector<4x1xf32> to vector<4x384xf32>
    %816 = arith.mulf %814, %815 : vector<4x384xf32>
    %817 = arith.addf %808, %816 : vector<4x384xf32>
    %818 = vector.broadcast %811 : vector<1x384xf32> to vector<4x384xf32>
    %819 = vector.broadcast %31 : vector<4x1xf32> to vector<4x384xf32>
    %820 = arith.mulf %818, %819 : vector<4x384xf32>
    %821 = arith.addf %817, %820 : vector<4x384xf32>
    %822 = vector.broadcast %813 : vector<1x384xf32> to vector<4x384xf32>
    %823 = vector.broadcast %35 : vector<4x1xf32> to vector<4x384xf32>
    %824 = arith.mulf %822, %823 : vector<4x384xf32>
    %825 = arith.addf %821, %824 : vector<4x384xf32>
    %826 = vector.broadcast %36 : vector<1x384xf32> to vector<4x384xf32>
    %827 = arith.mulf %825, %826 : vector<4x384xf32>
    %c0_317 = arith.constant 0 : index
    %c128_318 = arith.constant 128 : index
    %828 = vector.load %arg5[%c0_317, %c128_318] : memref<4x640xf32, #tpu.memory_space<vmem>>, vector<4x384xf32>
    tpu.vector_store %arg5[%c0_317, %c128_318], %827 {strides = array<i32>} : memref<4x640xf32, #tpu.memory_space<vmem>>, vector<4x384xf32>,
    %cst_319 = arith.constant 0.000000e+00 : f32
    %829 = vector.broadcast %cst_319 : f32 to vector<4x384xf32>
    %c0_320 = arith.constant 0 : index
    %c110_321 = arith.constant 110 : index
    %830 = vector.load %arg5[%c0_320, %c110_321] : memref<4x640xf32, #tpu.memory_space<vmem>>, vector<1x384xf32>
    %c1_i32_322 = arith.constant 1 : i32
    %831 = tpu.dynamic_rotate %830 by %c1_i32_322 dim 1 : vector<1x384xf32>, i32 -> vector<1x384xf32>
    %c383_i32_323 = arith.constant 383 : i32
    %832 = tpu.dynamic_rotate %830 by %c383_i32_323 dim 1 : vector<1x384xf32>, i32 -> vector<1x384xf32>
    %833 = vector.broadcast %831 : vector<1x384xf32> to vector<4x384xf32>
    %834 = vector.broadcast %0 : vector<4x1xf32> to vector<4x384xf32>
    %835 = arith.mulf %833, %834 : vector<4x384xf32>
    %836 = arith.addf %829, %835 : vector<4x384xf32>
    %837 = vector.broadcast %830 : vector<1x384xf32> to vector<4x384xf32>
    %838 = vector.broadcast %4 : vector<4x1xf32> to vector<4x384xf32>
    %839 = arith.mulf %837, %838 : vector<4x384xf32>
    %840 = arith.addf %836, %839 : vector<4x384xf32>
    %841 = vector.broadcast %832 : vector<1x384xf32> to vector<4x384xf32>
    %842 = vector.broadcast %8 : vector<4x1xf32> to vector<4x384xf32>
    %843 = arith.mulf %841, %842 : vector<4x384xf32>
    %844 = arith.addf %840, %843 : vector<4x384xf32>
    %c0_324 = arith.constant 0 : index
    %c128_325 = arith.constant 128 : index
    %845 = vector.load %arg5[%c0_324, %c128_325] : memref<4x640xf32, #tpu.memory_space<vmem>>, vector<1x384xf32>
    %c1_i32_326 = arith.constant 1 : i32
    %846 = tpu.dynamic_rotate %845 by %c1_i32_326 dim 1 : vector<1x384xf32>, i32 -> vector<1x384xf32>
    %c383_i32_327 = arith.constant 383 : i32
    %847 = tpu.dynamic_rotate %845 by %c383_i32_327 dim 1 : vector<1x384xf32>, i32 -> vector<1x384xf32>
    %848 = vector.broadcast %846 : vector<1x384xf32> to vector<4x384xf32>
    %849 = vector.broadcast %12 : vector<4x1xf32> to vector<4x384xf32>
    %850 = arith.mulf %848, %849 : vector<4x384xf32>
    %851 = arith.addf %844, %850 : vector<4x384xf32>
    %852 = vector.broadcast %845 : vector<1x384xf32> to vector<4x384xf32>
    %853 = vector.broadcast %16 : vector<4x1xf32> to vector<4x384xf32>
    %854 = arith.mulf %852, %853 : vector<4x384xf32>
    %855 = arith.addf %851, %854 : vector<4x384xf32>
    %856 = vector.broadcast %847 : vector<1x384xf32> to vector<4x384xf32>
    %857 = vector.broadcast %20 : vector<4x1xf32> to vector<4x384xf32>
    %858 = arith.mulf %856, %857 : vector<4x384xf32>
    %859 = arith.addf %855, %858 : vector<4x384xf32>
    %c0_328 = arith.constant 0 : index
    %c146_329 = arith.constant 146 : index
    %860 = vector.load %arg5[%c0_328, %c146_329] : memref<4x640xf32, #tpu.memory_space<vmem>>, vector<1x384xf32>
    %c1_i32_330 = arith.constant 1 : i32
    %861 = tpu.dynamic_rotate %860 by %c1_i32_330 dim 1 : vector<1x384xf32>, i32 -> vector<1x384xf32>
    %c383_i32_331 = arith.constant 383 : i32
    %862 = tpu.dynamic_rotate %860 by %c383_i32_331 dim 1 : vector<1x384xf32>, i32 -> vector<1x384xf32>
    %863 = vector.broadcast %861 : vector<1x384xf32> to vector<4x384xf32>
    %864 = vector.broadcast %24 : vector<4x1xf32> to vector<4x384xf32>
    %865 = arith.mulf %863, %864 : vector<4x384xf32>
    %866 = arith.addf %859, %865 : vector<4x384xf32>
    %867 = vector.broadcast %860 : vector<1x384xf32> to vector<4x384xf32>
    %868 = vector.broadcast %28 : vector<4x1xf32> to vector<4x384xf32>
    %869 = arith.mulf %867, %868 : vector<4x384xf32>
    %870 = arith.addf %866, %869 : vector<4x384xf32>
    %871 = vector.broadcast %862 : vector<1x384xf32> to vector<4x384xf32>
    %872 = vector.broadcast %32 : vector<4x1xf32> to vector<4x384xf32>
    %873 = arith.mulf %871, %872 : vector<4x384xf32>
    %874 = arith.addf %870, %873 : vector<4x384xf32>
    %c1_332 = arith.constant 1 : index
    %c110_333 = arith.constant 110 : index
    %875 = vector.load %arg5[%c1_332, %c110_333] : memref<4x640xf32, #tpu.memory_space<vmem>>, vector<1x384xf32>
    %c1_i32_334 = arith.constant 1 : i32
    %876 = tpu.dynamic_rotate %875 by %c1_i32_334 dim 1 : vector<1x384xf32>, i32 -> vector<1x384xf32>
    %c383_i32_335 = arith.constant 383 : i32
    %877 = tpu.dynamic_rotate %875 by %c383_i32_335 dim 1 : vector<1x384xf32>, i32 -> vector<1x384xf32>
    %878 = vector.broadcast %876 : vector<1x384xf32> to vector<4x384xf32>
    %879 = vector.broadcast %1 : vector<4x1xf32> to vector<4x384xf32>
    %880 = arith.mulf %878, %879 : vector<4x384xf32>
    %881 = arith.addf %874, %880 : vector<4x384xf32>
    %882 = vector.broadcast %875 : vector<1x384xf32> to vector<4x384xf32>
    %883 = vector.broadcast %5 : vector<4x1xf32> to vector<4x384xf32>
    %884 = arith.mulf %882, %883 : vector<4x384xf32>
    %885 = arith.addf %881, %884 : vector<4x384xf32>
    %886 = vector.broadcast %877 : vector<1x384xf32> to vector<4x384xf32>
    %887 = vector.broadcast %9 : vector<4x1xf32> to vector<4x384xf32>
    %888 = arith.mulf %886, %887 : vector<4x384xf32>
    %889 = arith.addf %885, %888 : vector<4x384xf32>
    %c1_336 = arith.constant 1 : index
    %c128_337 = arith.constant 128 : index
    %890 = vector.load %arg5[%c1_336, %c128_337] : memref<4x640xf32, #tpu.memory_space<vmem>>, vector<1x384xf32>
    %c1_i32_338 = arith.constant 1 : i32
    %891 = tpu.dynamic_rotate %890 by %c1_i32_338 dim 1 : vector<1x384xf32>, i32 -> vector<1x384xf32>
    %c383_i32_339 = arith.constant 383 : i32
    %892 = tpu.dynamic_rotate %890 by %c383_i32_339 dim 1 : vector<1x384xf32>, i32 -> vector<1x384xf32>
    %893 = vector.broadcast %891 : vector<1x384xf32> to vector<4x384xf32>
    %894 = vector.broadcast %13 : vector<4x1xf32> to vector<4x384xf32>
    %895 = arith.mulf %893, %894 : vector<4x384xf32>
    %896 = arith.addf %889, %895 : vector<4x384xf32>
    %897 = vector.broadcast %890 : vector<1x384xf32> to vector<4x384xf32>
    %898 = vector.broadcast %17 : vector<4x1xf32> to vector<4x384xf32>
    %899 = arith.mulf %897, %898 : vector<4x384xf32>
    %900 = arith.addf %896, %899 : vector<4x384xf32>
    %901 = vector.broadcast %892 : vector<1x384xf32> to vector<4x384xf32>
    %902 = vector.broadcast %21 : vector<4x1xf32> to vector<4x384xf32>
    %903 = arith.mulf %901, %902 : vector<4x384xf32>
    %904 = arith.addf %900, %903 : vector<4x384xf32>
    %c1_340 = arith.constant 1 : index
    %c146_341 = arith.constant 146 : index
    %905 = vector.load %arg5[%c1_340, %c146_341] : memref<4x640xf32, #tpu.memory_space<vmem>>, vector<1x384xf32>
    %c1_i32_342 = arith.constant 1 : i32
    %906 = tpu.dynamic_rotate %905 by %c1_i32_342 dim 1 : vector<1x384xf32>, i32 -> vector<1x384xf32>
    %c383_i32_343 = arith.constant 383 : i32
    %907 = tpu.dynamic_rotate %905 by %c383_i32_343 dim 1 : vector<1x384xf32>, i32 -> vector<1x384xf32>
    %908 = vector.broadcast %906 : vector<1x384xf32> to vector<4x384xf32>
    %909 = vector.broadcast %25 : vector<4x1xf32> to vector<4x384xf32>
    %910 = arith.mulf %908, %909 : vector<4x384xf32>
    %911 = arith.addf %904, %910 : vector<4x384xf32>
    %912 = vector.broadcast %905 : vector<1x384xf32> to vector<4x384xf32>
    %913 = vector.broadcast %29 : vector<4x1xf32> to vector<4x384xf32>
    %914 = arith.mulf %912, %913 : vector<4x384xf32>
    %915 = arith.addf %911, %914 : vector<4x384xf32>
    %916 = vector.broadcast %907 : vector<1x384xf32> to vector<4x384xf32>
    %917 = vector.broadcast %33 : vector<4x1xf32> to vector<4x384xf32>
    %918 = arith.mulf %916, %917 : vector<4x384xf32>
    %919 = arith.addf %915, %918 : vector<4x384xf32>
    %c2_344 = arith.constant 2 : index
    %c110_345 = arith.constant 110 : index
    %920 = vector.load %arg5[%c2_344, %c110_345] : memref<4x640xf32, #tpu.memory_space<vmem>>, vector<1x384xf32>
    %c1_i32_346 = arith.constant 1 : i32
    %921 = tpu.dynamic_rotate %920 by %c1_i32_346 dim 1 : vector<1x384xf32>, i32 -> vector<1x384xf32>
    %c383_i32_347 = arith.constant 383 : i32
    %922 = tpu.dynamic_rotate %920 by %c383_i32_347 dim 1 : vector<1x384xf32>, i32 -> vector<1x384xf32>
    %923 = vector.broadcast %921 : vector<1x384xf32> to vector<4x384xf32>
    %924 = vector.broadcast %2 : vector<4x1xf32> to vector<4x384xf32>
    %925 = arith.mulf %923, %924 : vector<4x384xf32>
    %926 = arith.addf %919, %925 : vector<4x384xf32>
    %927 = vector.broadcast %920 : vector<1x384xf32> to vector<4x384xf32>
    %928 = vector.broadcast %6 : vector<4x1xf32> to vector<4x384xf32>
    %929 = arith.mulf %927, %928 : vector<4x384xf32>
    %930 = arith.addf %926, %929 : vector<4x384xf32>
    %931 = vector.broadcast %922 : vector<1x384xf32> to vector<4x384xf32>
    %932 = vector.broadcast %10 : vector<4x1xf32> to vector<4x384xf32>
    %933 = arith.mulf %931, %932 : vector<4x384xf32>
    %934 = arith.addf %930, %933 : vector<4x384xf32>
    %c2_348 = arith.constant 2 : index
    %c128_349 = arith.constant 128 : index
    %935 = vector.load %arg5[%c2_348, %c128_349] : memref<4x640xf32, #tpu.memory_space<vmem>>, vector<1x384xf32>
    %c1_i32_350 = arith.constant 1 : i32
    %936 = tpu.dynamic_rotate %935 by %c1_i32_350 dim 1 : vector<1x384xf32>, i32 -> vector<1x384xf32>
    %c383_i32_351 = arith.constant 383 : i32
    %937 = tpu.dynamic_rotate %935 by %c383_i32_351 dim 1 : vector<1x384xf32>, i32 -> vector<1x384xf32>
    %938 = vector.broadcast %936 : vector<1x384xf32> to vector<4x384xf32>
    %939 = vector.broadcast %14 : vector<4x1xf32> to vector<4x384xf32>
    %940 = arith.mulf %938, %939 : vector<4x384xf32>
    %941 = arith.addf %934, %940 : vector<4x384xf32>
    %942 = vector.broadcast %935 : vector<1x384xf32> to vector<4x384xf32>
    %943 = vector.broadcast %18 : vector<4x1xf32> to vector<4x384xf32>
    %944 = arith.mulf %942, %943 : vector<4x384xf32>
    %945 = arith.addf %941, %944 : vector<4x384xf32>
    %946 = vector.broadcast %937 : vector<1x384xf32> to vector<4x384xf32>
    %947 = vector.broadcast %22 : vector<4x1xf32> to vector<4x384xf32>
    %948 = arith.mulf %946, %947 : vector<4x384xf32>
    %949 = arith.addf %945, %948 : vector<4x384xf32>
    %c2_352 = arith.constant 2 : index
    %c146_353 = arith.constant 146 : index
    %950 = vector.load %arg5[%c2_352, %c146_353] : memref<4x640xf32, #tpu.memory_space<vmem>>, vector<1x384xf32>
    %c1_i32_354 = arith.constant 1 : i32
    %951 = tpu.dynamic_rotate %950 by %c1_i32_354 dim 1 : vector<1x384xf32>, i32 -> vector<1x384xf32>
    %c383_i32_355 = arith.constant 383 : i32
    %952 = tpu.dynamic_rotate %950 by %c383_i32_355 dim 1 : vector<1x384xf32>, i32 -> vector<1x384xf32>
    %953 = vector.broadcast %951 : vector<1x384xf32> to vector<4x384xf32>
    %954 = vector.broadcast %26 : vector<4x1xf32> to vector<4x384xf32>
    %955 = arith.mulf %953, %954 : vector<4x384xf32>
    %956 = arith.addf %949, %955 : vector<4x384xf32>
    %957 = vector.broadcast %950 : vector<1x384xf32> to vector<4x384xf32>
    %958 = vector.broadcast %30 : vector<4x1xf32> to vector<4x384xf32>
    %959 = arith.mulf %957, %958 : vector<4x384xf32>
    %960 = arith.addf %956, %959 : vector<4x384xf32>
    %961 = vector.broadcast %952 : vector<1x384xf32> to vector<4x384xf32>
    %962 = vector.broadcast %34 : vector<4x1xf32> to vector<4x384xf32>
    %963 = arith.mulf %961, %962 : vector<4x384xf32>
    %964 = arith.addf %960, %963 : vector<4x384xf32>
    %c3_356 = arith.constant 3 : index
    %c110_357 = arith.constant 110 : index
    %965 = vector.load %arg5[%c3_356, %c110_357] : memref<4x640xf32, #tpu.memory_space<vmem>>, vector<1x384xf32>
    %c1_i32_358 = arith.constant 1 : i32
    %966 = tpu.dynamic_rotate %965 by %c1_i32_358 dim 1 : vector<1x384xf32>, i32 -> vector<1x384xf32>
    %c383_i32_359 = arith.constant 383 : i32
    %967 = tpu.dynamic_rotate %965 by %c383_i32_359 dim 1 : vector<1x384xf32>, i32 -> vector<1x384xf32>
    %968 = vector.broadcast %966 : vector<1x384xf32> to vector<4x384xf32>
    %969 = vector.broadcast %3 : vector<4x1xf32> to vector<4x384xf32>
    %970 = arith.mulf %968, %969 : vector<4x384xf32>
    %971 = arith.addf %964, %970 : vector<4x384xf32>
    %972 = vector.broadcast %965 : vector<1x384xf32> to vector<4x384xf32>
    %973 = vector.broadcast %7 : vector<4x1xf32> to vector<4x384xf32>
    %974 = arith.mulf %972, %973 : vector<4x384xf32>
    %975 = arith.addf %971, %974 : vector<4x384xf32>
    %976 = vector.broadcast %967 : vector<1x384xf32> to vector<4x384xf32>
    %977 = vector.broadcast %11 : vector<4x1xf32> to vector<4x384xf32>
    %978 = arith.mulf %976, %977 : vector<4x384xf32>
    %979 = arith.addf %975, %978 : vector<4x384xf32>
    %c3_360 = arith.constant 3 : index
    %c128_361 = arith.constant 128 : index
    %980 = vector.load %arg5[%c3_360, %c128_361] : memref<4x640xf32, #tpu.memory_space<vmem>>, vector<1x384xf32>
    %c1_i32_362 = arith.constant 1 : i32
    %981 = tpu.dynamic_rotate %980 by %c1_i32_362 dim 1 : vector<1x384xf32>, i32 -> vector<1x384xf32>
    %c383_i32_363 = arith.constant 383 : i32
    %982 = tpu.dynamic_rotate %980 by %c383_i32_363 dim 1 : vector<1x384xf32>, i32 -> vector<1x384xf32>
    %983 = vector.broadcast %981 : vector<1x384xf32> to vector<4x384xf32>
    %984 = vector.broadcast %15 : vector<4x1xf32> to vector<4x384xf32>
    %985 = arith.mulf %983, %984 : vector<4x384xf32>
    %986 = arith.addf %979, %985 : vector<4x384xf32>
    %987 = vector.broadcast %980 : vector<1x384xf32> to vector<4x384xf32>
    %988 = vector.broadcast %19 : vector<4x1xf32> to vector<4x384xf32>
    %989 = arith.mulf %987, %988 : vector<4x384xf32>
    %990 = arith.addf %986, %989 : vector<4x384xf32>
    %991 = vector.broadcast %982 : vector<1x384xf32> to vector<4x384xf32>
    %992 = vector.broadcast %23 : vector<4x1xf32> to vector<4x384xf32>
    %993 = arith.mulf %991, %992 : vector<4x384xf32>
    %994 = arith.addf %990, %993 : vector<4x384xf32>
    %c3_364 = arith.constant 3 : index
    %c146_365 = arith.constant 146 : index
    %995 = vector.load %arg5[%c3_364, %c146_365] : memref<4x640xf32, #tpu.memory_space<vmem>>, vector<1x384xf32>
    %c1_i32_366 = arith.constant 1 : i32
    %996 = tpu.dynamic_rotate %995 by %c1_i32_366 dim 1 : vector<1x384xf32>, i32 -> vector<1x384xf32>
    %c383_i32_367 = arith.constant 383 : i32
    %997 = tpu.dynamic_rotate %995 by %c383_i32_367 dim 1 : vector<1x384xf32>, i32 -> vector<1x384xf32>
    %998 = vector.broadcast %996 : vector<1x384xf32> to vector<4x384xf32>
    %999 = vector.broadcast %27 : vector<4x1xf32> to vector<4x384xf32>
    %1000 = arith.mulf %998, %999 : vector<4x384xf32>
    %1001 = arith.addf %994, %1000 : vector<4x384xf32>
    %1002 = vector.broadcast %995 : vector<1x384xf32> to vector<4x384xf32>
    %1003 = vector.broadcast %31 : vector<4x1xf32> to vector<4x384xf32>
    %1004 = arith.mulf %1002, %1003 : vector<4x384xf32>
    %1005 = arith.addf %1001, %1004 : vector<4x384xf32>
    %1006 = vector.broadcast %997 : vector<1x384xf32> to vector<4x384xf32>
    %1007 = vector.broadcast %35 : vector<4x1xf32> to vector<4x384xf32>
    %1008 = arith.mulf %1006, %1007 : vector<4x384xf32>
    %1009 = arith.addf %1005, %1008 : vector<4x384xf32>
    %1010 = vector.broadcast %36 : vector<1x384xf32> to vector<4x384xf32>
    %1011 = arith.mulf %1009, %1010 : vector<4x384xf32>
    %c0_368 = arith.constant 0 : index
    %c128_369 = arith.constant 128 : index
    %1012 = vector.load %arg6[%c0_368, %c128_369] : memref<4x640xf32, #tpu.memory_space<vmem>>, vector<4x384xf32>
    tpu.vector_store %arg6[%c0_368, %c128_369], %1011 {strides = array<i32>} : memref<4x640xf32, #tpu.memory_space<vmem>>, vector<4x384xf32>,
    %cst_370 = arith.constant 0.000000e+00 : f32
    %1013 = vector.broadcast %cst_370 : f32 to vector<4x384xf32>
    %c0_371 = arith.constant 0 : index
    %c110_372 = arith.constant 110 : index
    %1014 = vector.load %arg6[%c0_371, %c110_372] : memref<4x640xf32, #tpu.memory_space<vmem>>, vector<1x384xf32>
    %c1_i32_373 = arith.constant 1 : i32
    %1015 = tpu.dynamic_rotate %1014 by %c1_i32_373 dim 1 : vector<1x384xf32>, i32 -> vector<1x384xf32>
    %c383_i32_374 = arith.constant 383 : i32
    %1016 = tpu.dynamic_rotate %1014 by %c383_i32_374 dim 1 : vector<1x384xf32>, i32 -> vector<1x384xf32>
    %1017 = vector.broadcast %1015 : vector<1x384xf32> to vector<4x384xf32>
    %1018 = vector.broadcast %0 : vector<4x1xf32> to vector<4x384xf32>
    %1019 = arith.mulf %1017, %1018 : vector<4x384xf32>
    %1020 = arith.addf %1013, %1019 : vector<4x384xf32>
    %1021 = vector.broadcast %1014 : vector<1x384xf32> to vector<4x384xf32>
    %1022 = vector.broadcast %4 : vector<4x1xf32> to vector<4x384xf32>
    %1023 = arith.mulf %1021, %1022 : vector<4x384xf32>
    %1024 = arith.addf %1020, %1023 : vector<4x384xf32>
    %1025 = vector.broadcast %1016 : vector<1x384xf32> to vector<4x384xf32>
    %1026 = vector.broadcast %8 : vector<4x1xf32> to vector<4x384xf32>
    %1027 = arith.mulf %1025, %1026 : vector<4x384xf32>
    %1028 = arith.addf %1024, %1027 : vector<4x384xf32>
    %c0_375 = arith.constant 0 : index
    %c128_376 = arith.constant 128 : index
    %1029 = vector.load %arg6[%c0_375, %c128_376] : memref<4x640xf32, #tpu.memory_space<vmem>>, vector<1x384xf32>
    %c1_i32_377 = arith.constant 1 : i32
    %1030 = tpu.dynamic_rotate %1029 by %c1_i32_377 dim 1 : vector<1x384xf32>, i32 -> vector<1x384xf32>
    %c383_i32_378 = arith.constant 383 : i32
    %1031 = tpu.dynamic_rotate %1029 by %c383_i32_378 dim 1 : vector<1x384xf32>, i32 -> vector<1x384xf32>
    %1032 = vector.broadcast %1030 : vector<1x384xf32> to vector<4x384xf32>
    %1033 = vector.broadcast %12 : vector<4x1xf32> to vector<4x384xf32>
    %1034 = arith.mulf %1032, %1033 : vector<4x384xf32>
    %1035 = arith.addf %1028, %1034 : vector<4x384xf32>
    %1036 = vector.broadcast %1029 : vector<1x384xf32> to vector<4x384xf32>
    %1037 = vector.broadcast %16 : vector<4x1xf32> to vector<4x384xf32>
    %1038 = arith.mulf %1036, %1037 : vector<4x384xf32>
    %1039 = arith.addf %1035, %1038 : vector<4x384xf32>
    %1040 = vector.broadcast %1031 : vector<1x384xf32> to vector<4x384xf32>
    %1041 = vector.broadcast %20 : vector<4x1xf32> to vector<4x384xf32>
    %1042 = arith.mulf %1040, %1041 : vector<4x384xf32>
    %1043 = arith.addf %1039, %1042 : vector<4x384xf32>
    %c0_379 = arith.constant 0 : index
    %c146_380 = arith.constant 146 : index
    %1044 = vector.load %arg6[%c0_379, %c146_380] : memref<4x640xf32, #tpu.memory_space<vmem>>, vector<1x384xf32>
    %c1_i32_381 = arith.constant 1 : i32
    %1045 = tpu.dynamic_rotate %1044 by %c1_i32_381 dim 1 : vector<1x384xf32>, i32 -> vector<1x384xf32>
    %c383_i32_382 = arith.constant 383 : i32
    %1046 = tpu.dynamic_rotate %1044 by %c383_i32_382 dim 1 : vector<1x384xf32>, i32 -> vector<1x384xf32>
    %1047 = vector.broadcast %1045 : vector<1x384xf32> to vector<4x384xf32>
    %1048 = vector.broadcast %24 : vector<4x1xf32> to vector<4x384xf32>
    %1049 = arith.mulf %1047, %1048 : vector<4x384xf32>
    %1050 = arith.addf %1043, %1049 : vector<4x384xf32>
    %1051 = vector.broadcast %1044 : vector<1x384xf32> to vector<4x384xf32>
    %1052 = vector.broadcast %28 : vector<4x1xf32> to vector<4x384xf32>
    %1053 = arith.mulf %1051, %1052 : vector<4x384xf32>
    %1054 = arith.addf %1050, %1053 : vector<4x384xf32>
    %1055 = vector.broadcast %1046 : vector<1x384xf32> to vector<4x384xf32>
    %1056 = vector.broadcast %32 : vector<4x1xf32> to vector<4x384xf32>
    %1057 = arith.mulf %1055, %1056 : vector<4x384xf32>
    %1058 = arith.addf %1054, %1057 : vector<4x384xf32>
    %c1_383 = arith.constant 1 : index
    %c110_384 = arith.constant 110 : index
    %1059 = vector.load %arg6[%c1_383, %c110_384] : memref<4x640xf32, #tpu.memory_space<vmem>>, vector<1x384xf32>
    %c1_i32_385 = arith.constant 1 : i32
    %1060 = tpu.dynamic_rotate %1059 by %c1_i32_385 dim 1 : vector<1x384xf32>, i32 -> vector<1x384xf32>
    %c383_i32_386 = arith.constant 383 : i32
    %1061 = tpu.dynamic_rotate %1059 by %c383_i32_386 dim 1 : vector<1x384xf32>, i32 -> vector<1x384xf32>
    %1062 = vector.broadcast %1060 : vector<1x384xf32> to vector<4x384xf32>
    %1063 = vector.broadcast %1 : vector<4x1xf32> to vector<4x384xf32>
    %1064 = arith.mulf %1062, %1063 : vector<4x384xf32>
    %1065 = arith.addf %1058, %1064 : vector<4x384xf32>
    %1066 = vector.broadcast %1059 : vector<1x384xf32> to vector<4x384xf32>
    %1067 = vector.broadcast %5 : vector<4x1xf32> to vector<4x384xf32>
    %1068 = arith.mulf %1066, %1067 : vector<4x384xf32>
    %1069 = arith.addf %1065, %1068 : vector<4x384xf32>
    %1070 = vector.broadcast %1061 : vector<1x384xf32> to vector<4x384xf32>
    %1071 = vector.broadcast %9 : vector<4x1xf32> to vector<4x384xf32>
    %1072 = arith.mulf %1070, %1071 : vector<4x384xf32>
    %1073 = arith.addf %1069, %1072 : vector<4x384xf32>
    %c1_387 = arith.constant 1 : index
    %c128_388 = arith.constant 128 : index
    %1074 = vector.load %arg6[%c1_387, %c128_388] : memref<4x640xf32, #tpu.memory_space<vmem>>, vector<1x384xf32>
    %c1_i32_389 = arith.constant 1 : i32
    %1075 = tpu.dynamic_rotate %1074 by %c1_i32_389 dim 1 : vector<1x384xf32>, i32 -> vector<1x384xf32>
    %c383_i32_390 = arith.constant 383 : i32
    %1076 = tpu.dynamic_rotate %1074 by %c383_i32_390 dim 1 : vector<1x384xf32>, i32 -> vector<1x384xf32>
    %1077 = vector.broadcast %1075 : vector<1x384xf32> to vector<4x384xf32>
    %1078 = vector.broadcast %13 : vector<4x1xf32> to vector<4x384xf32>
    %1079 = arith.mulf %1077, %1078 : vector<4x384xf32>
    %1080 = arith.addf %1073, %1079 : vector<4x384xf32>
    %1081 = vector.broadcast %1074 : vector<1x384xf32> to vector<4x384xf32>
    %1082 = vector.broadcast %17 : vector<4x1xf32> to vector<4x384xf32>
    %1083 = arith.mulf %1081, %1082 : vector<4x384xf32>
    %1084 = arith.addf %1080, %1083 : vector<4x384xf32>
    %1085 = vector.broadcast %1076 : vector<1x384xf32> to vector<4x384xf32>
    %1086 = vector.broadcast %21 : vector<4x1xf32> to vector<4x384xf32>
    %1087 = arith.mulf %1085, %1086 : vector<4x384xf32>
    %1088 = arith.addf %1084, %1087 : vector<4x384xf32>
    %c1_391 = arith.constant 1 : index
    %c146_392 = arith.constant 146 : index
    %1089 = vector.load %arg6[%c1_391, %c146_392] : memref<4x640xf32, #tpu.memory_space<vmem>>, vector<1x384xf32>
    %c1_i32_393 = arith.constant 1 : i32
    %1090 = tpu.dynamic_rotate %1089 by %c1_i32_393 dim 1 : vector<1x384xf32>, i32 -> vector<1x384xf32>
    %c383_i32_394 = arith.constant 383 : i32
    %1091 = tpu.dynamic_rotate %1089 by %c383_i32_394 dim 1 : vector<1x384xf32>, i32 -> vector<1x384xf32>
    %1092 = vector.broadcast %1090 : vector<1x384xf32> to vector<4x384xf32>
    %1093 = vector.broadcast %25 : vector<4x1xf32> to vector<4x384xf32>
    %1094 = arith.mulf %1092, %1093 : vector<4x384xf32>
    %1095 = arith.addf %1088, %1094 : vector<4x384xf32>
    %1096 = vector.broadcast %1089 : vector<1x384xf32> to vector<4x384xf32>
    %1097 = vector.broadcast %29 : vector<4x1xf32> to vector<4x384xf32>
    %1098 = arith.mulf %1096, %1097 : vector<4x384xf32>
    %1099 = arith.addf %1095, %1098 : vector<4x384xf32>
    %1100 = vector.broadcast %1091 : vector<1x384xf32> to vector<4x384xf32>
    %1101 = vector.broadcast %33 : vector<4x1xf32> to vector<4x384xf32>
    %1102 = arith.mulf %1100, %1101 : vector<4x384xf32>
    %1103 = arith.addf %1099, %1102 : vector<4x384xf32>
    %c2_395 = arith.constant 2 : index
    %c110_396 = arith.constant 110 : index
    %1104 = vector.load %arg6[%c2_395, %c110_396] : memref<4x640xf32, #tpu.memory_space<vmem>>, vector<1x384xf32>
    %c1_i32_397 = arith.constant 1 : i32
    %1105 = tpu.dynamic_rotate %1104 by %c1_i32_397 dim 1 : vector<1x384xf32>, i32 -> vector<1x384xf32>
    %c383_i32_398 = arith.constant 383 : i32
    %1106 = tpu.dynamic_rotate %1104 by %c383_i32_398 dim 1 : vector<1x384xf32>, i32 -> vector<1x384xf32>
    %1107 = vector.broadcast %1105 : vector<1x384xf32> to vector<4x384xf32>
    %1108 = vector.broadcast %2 : vector<4x1xf32> to vector<4x384xf32>
    %1109 = arith.mulf %1107, %1108 : vector<4x384xf32>
    %1110 = arith.addf %1103, %1109 : vector<4x384xf32>
    %1111 = vector.broadcast %1104 : vector<1x384xf32> to vector<4x384xf32>
    %1112 = vector.broadcast %6 : vector<4x1xf32> to vector<4x384xf32>
    %1113 = arith.mulf %1111, %1112 : vector<4x384xf32>
    %1114 = arith.addf %1110, %1113 : vector<4x384xf32>
    %1115 = vector.broadcast %1106 : vector<1x384xf32> to vector<4x384xf32>
    %1116 = vector.broadcast %10 : vector<4x1xf32> to vector<4x384xf32>
    %1117 = arith.mulf %1115, %1116 : vector<4x384xf32>
    %1118 = arith.addf %1114, %1117 : vector<4x384xf32>
    %c2_399 = arith.constant 2 : index
    %c128_400 = arith.constant 128 : index
    %1119 = vector.load %arg6[%c2_399, %c128_400] : memref<4x640xf32, #tpu.memory_space<vmem>>, vector<1x384xf32>
    %c1_i32_401 = arith.constant 1 : i32
    %1120 = tpu.dynamic_rotate %1119 by %c1_i32_401 dim 1 : vector<1x384xf32>, i32 -> vector<1x384xf32>
    %c383_i32_402 = arith.constant 383 : i32
    %1121 = tpu.dynamic_rotate %1119 by %c383_i32_402 dim 1 : vector<1x384xf32>, i32 -> vector<1x384xf32>
    %1122 = vector.broadcast %1120 : vector<1x384xf32> to vector<4x384xf32>
    %1123 = vector.broadcast %14 : vector<4x1xf32> to vector<4x384xf32>
    %1124 = arith.mulf %1122, %1123 : vector<4x384xf32>
    %1125 = arith.addf %1118, %1124 : vector<4x384xf32>
    %1126 = vector.broadcast %1119 : vector<1x384xf32> to vector<4x384xf32>
    %1127 = vector.broadcast %18 : vector<4x1xf32> to vector<4x384xf32>
    %1128 = arith.mulf %1126, %1127 : vector<4x384xf32>
    %1129 = arith.addf %1125, %1128 : vector<4x384xf32>
    %1130 = vector.broadcast %1121 : vector<1x384xf32> to vector<4x384xf32>
    %1131 = vector.broadcast %22 : vector<4x1xf32> to vector<4x384xf32>
    %1132 = arith.mulf %1130, %1131 : vector<4x384xf32>
    %1133 = arith.addf %1129, %1132 : vector<4x384xf32>
    %c2_403 = arith.constant 2 : index
    %c146_404 = arith.constant 146 : index
    %1134 = vector.load %arg6[%c2_403, %c146_404] : memref<4x640xf32, #tpu.memory_space<vmem>>, vector<1x384xf32>
    %c1_i32_405 = arith.constant 1 : i32
    %1135 = tpu.dynamic_rotate %1134 by %c1_i32_405 dim 1 : vector<1x384xf32>, i32 -> vector<1x384xf32>
    %c383_i32_406 = arith.constant 383 : i32
    %1136 = tpu.dynamic_rotate %1134 by %c383_i32_406 dim 1 : vector<1x384xf32>, i32 -> vector<1x384xf32>
    %1137 = vector.broadcast %1135 : vector<1x384xf32> to vector<4x384xf32>
    %1138 = vector.broadcast %26 : vector<4x1xf32> to vector<4x384xf32>
    %1139 = arith.mulf %1137, %1138 : vector<4x384xf32>
    %1140 = arith.addf %1133, %1139 : vector<4x384xf32>
    %1141 = vector.broadcast %1134 : vector<1x384xf32> to vector<4x384xf32>
    %1142 = vector.broadcast %30 : vector<4x1xf32> to vector<4x384xf32>
    %1143 = arith.mulf %1141, %1142 : vector<4x384xf32>
    %1144 = arith.addf %1140, %1143 : vector<4x384xf32>
    %1145 = vector.broadcast %1136 : vector<1x384xf32> to vector<4x384xf32>
    %1146 = vector.broadcast %34 : vector<4x1xf32> to vector<4x384xf32>
    %1147 = arith.mulf %1145, %1146 : vector<4x384xf32>
    %1148 = arith.addf %1144, %1147 : vector<4x384xf32>
    %c3_407 = arith.constant 3 : index
    %c110_408 = arith.constant 110 : index
    %1149 = vector.load %arg6[%c3_407, %c110_408] : memref<4x640xf32, #tpu.memory_space<vmem>>, vector<1x384xf32>
    %c1_i32_409 = arith.constant 1 : i32
    %1150 = tpu.dynamic_rotate %1149 by %c1_i32_409 dim 1 : vector<1x384xf32>, i32 -> vector<1x384xf32>
    %c383_i32_410 = arith.constant 383 : i32
    %1151 = tpu.dynamic_rotate %1149 by %c383_i32_410 dim 1 : vector<1x384xf32>, i32 -> vector<1x384xf32>
    %1152 = vector.broadcast %1150 : vector<1x384xf32> to vector<4x384xf32>
    %1153 = vector.broadcast %3 : vector<4x1xf32> to vector<4x384xf32>
    %1154 = arith.mulf %1152, %1153 : vector<4x384xf32>
    %1155 = arith.addf %1148, %1154 : vector<4x384xf32>
    %1156 = vector.broadcast %1149 : vector<1x384xf32> to vector<4x384xf32>
    %1157 = vector.broadcast %7 : vector<4x1xf32> to vector<4x384xf32>
    %1158 = arith.mulf %1156, %1157 : vector<4x384xf32>
    %1159 = arith.addf %1155, %1158 : vector<4x384xf32>
    %1160 = vector.broadcast %1151 : vector<1x384xf32> to vector<4x384xf32>
    %1161 = vector.broadcast %11 : vector<4x1xf32> to vector<4x384xf32>
    %1162 = arith.mulf %1160, %1161 : vector<4x384xf32>
    %1163 = arith.addf %1159, %1162 : vector<4x384xf32>
    %c3_411 = arith.constant 3 : index
    %c128_412 = arith.constant 128 : index
    %1164 = vector.load %arg6[%c3_411, %c128_412] : memref<4x640xf32, #tpu.memory_space<vmem>>, vector<1x384xf32>
    %c1_i32_413 = arith.constant 1 : i32
    %1165 = tpu.dynamic_rotate %1164 by %c1_i32_413 dim 1 : vector<1x384xf32>, i32 -> vector<1x384xf32>
    %c383_i32_414 = arith.constant 383 : i32
    %1166 = tpu.dynamic_rotate %1164 by %c383_i32_414 dim 1 : vector<1x384xf32>, i32 -> vector<1x384xf32>
    %1167 = vector.broadcast %1165 : vector<1x384xf32> to vector<4x384xf32>
    %1168 = vector.broadcast %15 : vector<4x1xf32> to vector<4x384xf32>
    %1169 = arith.mulf %1167, %1168 : vector<4x384xf32>
    %1170 = arith.addf %1163, %1169 : vector<4x384xf32>
    %1171 = vector.broadcast %1164 : vector<1x384xf32> to vector<4x384xf32>
    %1172 = vector.broadcast %19 : vector<4x1xf32> to vector<4x384xf32>
    %1173 = arith.mulf %1171, %1172 : vector<4x384xf32>
    %1174 = arith.addf %1170, %1173 : vector<4x384xf32>
    %1175 = vector.broadcast %1166 : vector<1x384xf32> to vector<4x384xf32>
    %1176 = vector.broadcast %23 : vector<4x1xf32> to vector<4x384xf32>
    %1177 = arith.mulf %1175, %1176 : vector<4x384xf32>
    %1178 = arith.addf %1174, %1177 : vector<4x384xf32>
    %c3_415 = arith.constant 3 : index
    %c146_416 = arith.constant 146 : index
    %1179 = vector.load %arg6[%c3_415, %c146_416] : memref<4x640xf32, #tpu.memory_space<vmem>>, vector<1x384xf32>
    %c1_i32_417 = arith.constant 1 : i32
    %1180 = tpu.dynamic_rotate %1179 by %c1_i32_417 dim 1 : vector<1x384xf32>, i32 -> vector<1x384xf32>
    %c383_i32_418 = arith.constant 383 : i32
    %1181 = tpu.dynamic_rotate %1179 by %c383_i32_418 dim 1 : vector<1x384xf32>, i32 -> vector<1x384xf32>
    %1182 = vector.broadcast %1180 : vector<1x384xf32> to vector<4x384xf32>
    %1183 = vector.broadcast %27 : vector<4x1xf32> to vector<4x384xf32>
    %1184 = arith.mulf %1182, %1183 : vector<4x384xf32>
    %1185 = arith.addf %1178, %1184 : vector<4x384xf32>
    %1186 = vector.broadcast %1179 : vector<1x384xf32> to vector<4x384xf32>
    %1187 = vector.broadcast %31 : vector<4x1xf32> to vector<4x384xf32>
    %1188 = arith.mulf %1186, %1187 : vector<4x384xf32>
    %1189 = arith.addf %1185, %1188 : vector<4x384xf32>
    %1190 = vector.broadcast %1181 : vector<1x384xf32> to vector<4x384xf32>
    %1191 = vector.broadcast %35 : vector<4x1xf32> to vector<4x384xf32>
    %1192 = arith.mulf %1190, %1191 : vector<4x384xf32>
    %1193 = arith.addf %1189, %1192 : vector<4x384xf32>
    %c1_419 = arith.constant 1 : index
    %c0_420 = arith.constant 0 : index
    %c0_421 = arith.constant 0 : index
    %1194 = vector.load %arg4[%c1_419, %c0_420, %c0_421] : memref<2x4x384xf32, #tpu.memory_space<vmem>>, vector<1x4x384xf32>
    %1195 = vector.shape_cast %1194 : vector<1x4x384xf32> to vector<4x384xf32>
    %1196 = vector.shape_cast %1193 : vector<4x384xf32> to vector<1x4x384xf32>
    tpu.vector_store %arg4[%c1_419, %c0_420, %c0_421], %1196 {strides = array<i32>} : memref<2x4x384xf32, #tpu.memory_space<vmem>>, vector<1x4x384xf32>,
    return
  }
  func.func @transform_0(%arg0: i32) -> (i32, i32) {
    %c0_i32 = arith.constant 0 : i32
    %c0_i32_0 = arith.constant 0 : i32
    %c0_i32_1 = arith.constant 0 : i32
    return %c0_i32, %c0_i32_0 : i32, i32
  }
  func.func @transform_1(%arg0: i32) -> (i32, i32) {
    %c0_i32 = arith.constant 0 : i32
    %c0_i32_0 = arith.constant 0 : i32
    %c0_i32_1 = arith.constant 0 : i32
    return %c0_i32, %c0_i32_0 : i32, i32
  }
  func.func @transform_2(%arg0: i32) -> (i32, i32, i32) {
    %c0_i32 = arith.constant 0 : i32
    %c0_i32_0 = arith.constant 0 : i32
    %c0_i32_1 = arith.constant 0 : i32
    return %arg0, %c0_i32, %c0_i32_0 : i32, i32, i32
  }
  func.func @transform_3(%arg0: i32) -> (i32, i32, i32) {
    %c0_i32 = arith.constant 0 : i32
    %c0_i32_0 = arith.constant 0 : i32
    %c0_i32_1 = arith.constant 0 : i32
    return %arg0, %c0_i32, %c0_i32_0 : i32, i32, i32
  }
}

</mosaic_0001>

<bundles_post_ra>
// kernel: _model_forward_impl.1
= control target key start
LH: loop header
LB: loop body
LE: loop exit
PB: predicated region body
PF: predicated region fallthrough
CT: control target
= control target key end

     0   :  { %v13902_v0 = vlaneseq  ;;  %v7768_v1 = vmov 4   ;;  %v7769_v3 = vmov 0   ;;  %v7770_v12 = vmov 8   ;;  %s7771_s16 = smov 18   ;;  %s7772_s19 = smov 1   ;;  %s13898_s0 = inlined_call_operand.vmem [shape: f32[4,36], index: 0, kind: input, shape index: {}]   ;;  %s13899_s2 = inlined_call_operand.vmem [shape: f32[2,4,640], index: 2, kind: input, shape index: {}]   ;;  %s13900_s1 = inlined_call_operand.vmem [shape: f32[1,384], index: 1, kind: input, shape index: {}]   ;;  %s13901_s3 = inlined_call_operand.vmem [shape: f32[2,4,384], index: 3, kind: output, shape index: {}]  }
   0x1   :  { %7731 = vset.pattern.permute.xlu1 %v7768_v1  ;;  %v7832_v2 = vld [vmem:[%s13898_s0] sm:$0xf]  ;;  %7730 = vset.pattern.permute.xlu0 %v7769_v3  ;;  %v7664_v15 = vld [vmem:[%s13899_s2 + $0x4] ss:$4 sm:$0x7]  ;;  %v7773_v19 = vmov 16  }
   0x2   :  { %103 = vperm.xlu1 %7731, %v7832_v2   ;;  %v23_v4 = vshrl.u32 %v13902_v0, 7  ;;  %v20_v5 = vld [vmem:[%s13899_s2] ss:$4 sm:$0xf]  ;;  %v7774_v20 = vmov 12   ;;  %s7775_s20 = smov 127  }
   0x3   :  { %v7665_v21 = vld [vmem:[%s13899_s2 + $0x4] ss:$4 sm:$0xf]  ;;  %v7776_v23 = vmov 20   ;;  %s7777_s23 = smov 110   ;;  %v7778_v26 = vmov 24  }
   0x4   :  { %v7839_v6 = vsub.s32 0, %v23_v4  ;;  %v7841_v7 = vsub.s32 2, %v23_v4  ;;  %v7843_v8 = vsub.s32 1, %v23_v4  ;;  %v7845_v9 = vsub.s32 3, %v23_v4 }
   0x5   :  { %v7666_v28 = vld [vmem:[%s13899_s2 + $0x1] ss:$4 sm:$0xf]  ;;  %v7779_v29 = vmov 28   ;;  %v7780_v32 = vmov 1   ;;  %v7781_v33 = vmov 32  }
   0x6   :  { %14339 = vst [vmem:[#allocation4_spill] sm:$0xff] %v7841_v7  ;;  %14340 = vst [vmem:[#allocation5_spill] sm:$0xff] %v7843_v8  ;;  %v7848_v10 = vrot.slane %v20_v5, %v7839_v6  ;;  %v7851_v11 = vrot.slane %v20_v5, %v7841_v7  ;;  %7732 = vset.pattern.permute.xlu1 %v7770_v12  ;;  %v7858_v13 = vrot.slane %v20_v5, %v7843_v8  ;;  %v7667_v34 = vld [vmem:[%s13899_s2 + $0x5] ss:$4 sm:$0x7]  ;;  %v7782_v38 = vmov 5  }
   0x7   :  { %14341 = vst [vmem:[#allocation6_spill] sm:$0xff] %v7845_v9  ;;  %v7861_v14 = vrot.slane %v20_v5, %v7845_v9  ;;  %v7873_v16 = vrot.slane %v7664_v15, %v7843_v8  ;;  %v7876_v17 = vrot.slane %v7664_v15, %v7839_v6  ;;  %v7883_v18 = vrot.slane %v7664_v15, %v7841_v7 }
   0x8   :  { %38 = vrot.lane.b32.xlu0 %v7848_v10, %s7771_s16  ;;  %42 = vrot.lane.b32.xlu1 %v7851_v11, %s7771_s16  ;;  %v7899_v22 = vrot.slane %v7665_v21, %v7839_v6  ;;  %v7904_v24 = vrot.slane %v7665_v21, %v7841_v7  ;;  %v7908_v25 = vrot.slane %v7665_v21, %v7843_v8  ;;  %v7783_v40 = vmov 9  }
   0x9   :  { %v7915_v27 = vrot.slane %v7665_v21, %v7845_v9  ;;  %v7922_v30 = vrot.slane %v7666_v28, %v7839_v6  ;;  %v7929_v31 = vrot.slane %v7666_v28, %v7841_v7  ;;  %v7939_v35 = vrot.slane %v7666_v28, %v7843_v8 }
   0xa   :  { %v7943_v36 = vrot.slane %v7667_v34, %v7839_v6  ;;  %v7948_v37 = vrot.slane %v7666_v28, %v7845_v9  ;;  %v7953_v39 = vrot.slane %v7667_v34, %v7841_v7  ;;  %v7962_v41 = vrot.slane %v7667_v34, %v7843_v8 }
   0xb   :  { %v7784_v42 = vmov 17   ;;  %v7785_v43 = vmov 13   ;;  %vm46_vm0 = vcmask 146432   ;;  %vm270_vm1 = vcmask 900096  }
   0xc   :  { %40 = vrot.lane.b32.xlu0 %v7858_v13, %s7771_s16  ;;  %44 = vrot.lane.b32.xlu1 %v7861_v14, %s7771_s16  ;;  %14342 = vst [vmem:[#allocation7_spill] sm:$0xff] %v7943_v36  ;;  %14343 = vst [vmem:[#allocation8_spill] sm:$0xff] %v7953_v39 }
   0xd   :  { %14344 = vst [vmem:[#allocation9_spill] sm:$0xff] %v7962_v41 }
  0x10   :  { %144 = vperm.xlu1 %7732, %v7832_v2   ;;  %89 = vperm.xlu0 %7730, %v7832_v2  }
  0x14   :  { %173 = vrot.lane.b32.xlu1 %v7873_v16, %s7772_s19  ;;  %171 = vrot.lane.b32.xlu0 %v7876_v17, %s7772_s19 }
  0x15   :  { %7734 = vset.pattern.permute.xlu1 %v7773_v19  ;;  %7733 = vset.pattern.permute.xlu0 %v7774_v20 }
  0x18   :  { %180 = vrot.lane.b32.xlu1 %v7876_v17, %s7775_s20  ;;  %175 = vrot.lane.b32.xlu0 %v7883_v18, %s7772_s19 }
  0x1c   :  { %184 = vrot.lane.b32.xlu1 %v7883_v18, %s7775_s20  ;;  %182 = vrot.lane.b32.xlu0 %v7873_v16, %s7775_s20 }
  0x20   :  { %212 = vperm.xlu1 %7734, %v7832_v2   ;;  %202 = vperm.xlu0 %7733, %v7832_v2  }
  0x24   :  { %7735 = vset.pattern.permute.xlu1 %v7776_v23  ;;  %262 = vrot.lane.b32.xlu0 %v7899_v22, %s7777_s23 }
  0x25   :  { %234 = vperm.xlu1 %7735, %v7832_v2   ;;  %7736 = vset.pattern.permute.xlu0 %v7778_v26 }
  0x28   :  { %266 = vrot.lane.b32.xlu0 %v7904_v24, %s7777_s23 }
  0x29   :  { %264 = vrot.lane.b32.xlu1 %v7908_v25, %s7777_s23 }
  0x2a   :  { %7737 = vset.pattern.permute.xlu1 %v7779_v29 }
  0x2c   :  { %308 = vperm.xlu0 %7736, %v7832_v2  }
  0x2d   :  { %268 = vrot.lane.b32.xlu1 %v7915_v27, %s7777_s23 }
  0x30   :  { %391 = vrot.lane.b32.xlu0 %v7922_v30, %s7771_s16 }
  0x31   :  { %322 = vperm.xlu1 %7737, %v7832_v2   ;;  %7739 = vset.pattern.permute.xlu0 %v7780_v32 }
  0x34   :  { %395 = vrot.lane.b32.xlu0 %v7929_v31, %s7771_s16 }
  0x35   :  { %7738 = vset.pattern.permute.xlu1 %v7781_v33 }
  0x36   :  { %363 = vperm.xlu1 %7738, %v7832_v2  }
  0x38   :  { %436 = vperm.xlu0 %7739, %v7832_v2  }
  0x3a   :  { %393 = vrot.lane.b32.xlu1 %v7939_v35, %s7771_s16 }
  0x3b   :  { %7740 = vset.pattern.permute.xlu1 %v7782_v38 }
  0x3c   :  { %518 = vrot.lane.b32.xlu0 %v7943_v36, %s7772_s19 }
  0x3d   :  { %7742 = vset.pattern.permute.xlu0 %v7785_v43 }
  0x3e   :  { %397 = vrot.lane.b32.xlu1 %v7948_v37, %s7771_s16 }
  0x40   :  { %522 = vrot.lane.b32.xlu0 %v7953_v39, %s7772_s19 }
  0x42   :  { %450 = vperm.xlu1 %7740, %v7832_v2  }
  0x46   :  { %7741 = vset.pattern.permute.xlu1 %v7783_v40 }
  0x47   :  { %491 = vperm.xlu1 %7741, %v7832_v2  }
  0x4b   :  { %520 = vrot.lane.b32.xlu1 %v7962_v41, %s7772_s19 }
  0x4c   :  { %7743 = vset.pattern.permute.xlu1 %v7784_v42 }
  0x4f   :  { %527 = vrot.lane.b32.xlu1 %v7943_v36, %s7775_s20 }
  0x7a   :  { %v39_v44 = vpop.permute.xlu0 %38 }
  0x7e   :  { %v41_v45 = vpop.permute.xlu0 %40 }
  0x7f   :  { %v47_v46 = vsel %vm46_vm0, %v39_v44, %v41_v45 }
  0x80   :  { %53 = vrot.lane.b32.xlu0 %v47_v46, %s7772_s19 }
  0x81   :  { %v7970_v47 = vpop.permute.xlu1 %103 }
  0x82   :  { %14345 = vst [vmem:[#allocation10_spill] sm:$0xff] %v7970_v47  ;;  %v107_v38 = vmul.f32 %v7970_v47, %v7858_v13  ;;  %v106_v40 = vmul.f32 %v7970_v47, %v7848_v10  ;;  %v109_v42 = vmul.f32 %v7970_v47, %v7861_v14  ;;  %v108_v43 = vmul.f32 %v7970_v47, %v7851_v11 }
  0x85   :  { %v43_v48 = vpop.permute.xlu1 %42 }
  0x86   :  { %v48_v49 = vsel %vm46_vm0, %v41_v45, %v43_v48 }
  0x87   :  { %55 = vrot.lane.b32.xlu1 %v48_v49, %s7772_s19 }
  0x89   :  { %v45_v50 = vpop.permute.xlu1 %44 }
  0x8a   :  { %v49_v51 = vsel %vm46_vm0, %v43_v48, %v45_v50  ;;  %v7787_v48 = vmov 25  }
  0x8b   :  { %65 = vrot.lane.b32.xlu1 %v47_v46, %s7775_s20  ;;  %57 = vrot.lane.b32.xlu0 %v49_v51, %s7772_s19 }
  0x8f   :  { %69 = vrot.lane.b32.xlu1 %v49_v51, %s7775_s20  ;;  %v7978_v52 = vpop.permute.xlu1 %144  ;;  %67 = vrot.lane.b32.xlu0 %v48_v49, %s7775_s20  ;;  %v7981_v53 = vpop.permute.xlu0 %89  ;;  %v7788_v49 = vmov 29  }
  0x90   :  { %14346 = vst [vmem:[#allocation11_spill] sm:$0xff] %v7978_v52  ;;  %14347 = vst [vmem:[#allocation12_spill] sm:$0xff] %v7981_v53 }
  0x93   :  { %v7983_v54 = vpop.permute.xlu1 %173  ;;  %v7985_v55 = vpop.permute.xlu0 %171 }
  0x97   :  { %v7987_v56 = vpop.permute.xlu1 %180  ;;  %v7989_v57 = vpop.permute.xlu0 %175 }
  0x9b   :  { %v7991_v58 = vpop.permute.xlu1 %184  ;;  %v7993_v59 = vpop.permute.xlu0 %182 }
  0x9f   :  { %v7995_v60 = vpop.permute.xlu1 %212  ;;  %v7997_v61 = vpop.permute.xlu0 %202 }
  0xa0   :  { %14348 = vst [vmem:[#allocation13_spill] sm:$0xff] %v7995_v60  ;;  %14349 = vst [vmem:[#allocation14_spill] sm:$0xff] %v7997_v61 }
  0xa3   :  { %v263_v62 = vpop.permute.xlu0 %262 }
  0xa4   :  { %v7999_v63 = vpop.permute.xlu1 %234 }
  0xa5   :  { %14350 = vst [vmem:[#allocation15_spill] sm:$0xff] %v7999_v63 }
  0xa7   :  { %v267_v1 = vpop.permute.xlu0 %266 }
  0xa8   :  { %v265_v3 = vpop.permute.xlu1 %264 }
  0xa9   :  { %v271_v4 = vsel %vm270_vm1, %v263_v62, %v265_v3  ;;  %v272_v5 = vsel %vm270_vm1, %v265_v3, %v267_v1 }
  0xaa   :  { %277 = vrot.lane.b32.xlu0 %v271_v4, %s7772_s19  ;;  %279 = vrot.lane.b32.xlu1 %v272_v5, %s7772_s19 }
  0xab   :  { %v8005_v12 = vpop.permute.xlu0 %308 }
  0xac   :  { %14351 = vst [vmem:[#allocation16_spill] sm:$0xff] %v8005_v12  ;;  %v269_v15 = vpop.permute.xlu1 %268 }
  0xad   :  { %v273_v19 = vsel %vm270_vm1, %v267_v1, %v269_v15 }
  0xae   :  { %281 = vrot.lane.b32.xlu0 %v273_v19, %s7772_s19  ;;  %286 = vrot.lane.b32.xlu1 %v271_v4, %s7775_s20 }
  0xaf   :  { %v392_v21 = vpop.permute.xlu0 %391 }
  0xb0   :  { %v8010_v20 = vpop.permute.xlu1 %322 }
  0xb1   :  { %14352 = vst [vmem:[#allocation17_spill] sm:$0xff] %v8010_v20  ;;  %v326_v13 = vmul.f32 %v8010_v20, %v7908_v25  ;;  %v325_v10 = vmul.f32 %v8010_v20, %v7899_v22  ;;  %v328_v14 = vmul.f32 %v8010_v20, %v7915_v27  ;;  %v327_v11 = vmul.f32 %v8010_v20, %v7904_v24 }
  0xb2   :  { %288 = vrot.lane.b32.xlu0 %v272_v5, %s7775_s20  ;;  %290 = vrot.lane.b32.xlu1 %v273_v19, %s7775_s20 }
  0xb3   :  { %v396_v26 = vpop.permute.xlu0 %395 }
  0xb5   :  { %v8014_v23 = vpop.permute.xlu1 %363 }
  0xb6   :  { %14353 = vst [vmem:[#allocation18_spill] sm:$0xff] %v8014_v23 }
  0xb7   :  { %v8095_v51 = vpop.permute.xlu0 %436 }
  0xb8   :  { %14356 = vst [vmem:[#allocation21_spill] sm:$0xff] %v8095_v51 }
  0xb9   :  { %v394_v28 = vpop.permute.xlu1 %393 }
  0xba   :  { %v399_v29 = vsel %vm46_vm0, %v392_v21, %v394_v28  ;;  %v400_v32 = vsel %vm46_vm0, %v394_v28, %v396_v26 }
  0xbb   :  { %405 = vrot.lane.b32.xlu0 %v399_v29, %s7772_s19  ;;  %407 = vrot.lane.b32.xlu1 %v400_v32, %s7772_s19  ;;  %v8099_v1 = vpop.permute.xlu0 %518 }
  0xbc   :  { %14358 = vst [vmem:[#allocation23_spill] sm:$0xff] %v8099_v1 }
  0xbd   :  { %v398_v33 = vpop.permute.xlu1 %397 }
  0xbe   :  { %v401_v34 = vsel %vm46_vm0, %v396_v26, %v398_v33 }
  0xbf   :  { %409 = vrot.lane.b32.xlu0 %v401_v34, %s7772_s19  ;;  %414 = vrot.lane.b32.xlu1 %v399_v29, %s7775_s20  ;;  %v8103_v4 = vpop.permute.xlu0 %522 }
  0xc0   :  { %14360 = vst [vmem:[#allocation25_spill] sm:$0xff] %v8103_v4 }
  0xc1   :  { %v8043_v44 = vpop.permute.xlu1 %450 }
  0xc2   :  { %14354 = vst [vmem:[#allocation19_spill] sm:$0xff] %v8043_v44  ;;  %v454_v25 = vmul.f32 %v8043_v44, %v7939_v35  ;;  %v453_v22 = vmul.f32 %v8043_v44, %v7922_v30  ;;  %v456_v27 = vmul.f32 %v8043_v44, %v7948_v37  ;;  %v455_v24 = vmul.f32 %v8043_v44, %v7929_v31  ;;  %v7668_v30 = vld [vmem:[%s13899_s2 + $0x5] ss:$4 sm:$0xf] }
  0xc3   :  { %416 = vrot.lane.b32.xlu0 %v400_v32, %s7775_s20  ;;  %418 = vrot.lane.b32.xlu1 %v401_v34, %s7775_s20  ;;  %v8073_v31 = vrot.slane %v7668_v30, %v7839_v6  ;;  %v7786_v35 = vmov 21   ;;  %v8078_v37 = vrot.slane %v7668_v30, %v7841_v7  ;;  %v8082_v45 = vrot.slane %v7668_v30, %v7843_v8 }
  0xc4   :  { %v8089_v46 = vrot.slane %v7668_v30, %v7845_v9 }
  0xc6   :  { %v8093_v50 = vpop.permute.xlu1 %491 }
  0xc7   :  { %116 = vrot.lane.b32.xlu0 %v107_v38, %s7771_s16  ;;  %114 = vrot.lane.b32.xlu1 %v106_v40, %s7771_s16  ;;  %14355 = vst [vmem:[#allocation20_spill] sm:$0xff] %v8093_v50 }
  0xca   :  { %v8097_v62 = vpop.permute.xlu1 %520 }
  0xcb   :  { %120 = vrot.lane.b32.xlu0 %v109_v42, %s7771_s16  ;;  %118 = vrot.lane.b32.xlu1 %v108_v43, %s7771_s16  ;;  %14357 = vst [vmem:[#allocation22_spill] sm:$0xff] %v8097_v62 }
  0xce   :  { %v8101_v3 = vpop.permute.xlu1 %527 }
  0xcf   :  { %335 = vrot.lane.b32.xlu0 %v326_v13, %s7777_s23  ;;  %333 = vrot.lane.b32.xlu1 %v325_v10, %s7777_s23  ;;  %14359 = vst [vmem:[#allocation24_spill] sm:$0xff] %v8101_v3 }
  0xd3   :  { %339 = vrot.lane.b32.xlu0 %v328_v14, %s7777_s23  ;;  %337 = vrot.lane.b32.xlu1 %v327_v11, %s7777_s23 }
  0xd7   :  { %463 = vrot.lane.b32.xlu0 %v454_v25, %s7771_s16  ;;  %461 = vrot.lane.b32.xlu1 %v453_v22, %s7771_s16 }
  0xdb   :  { %467 = vrot.lane.b32.xlu0 %v456_v27, %s7771_s16  ;;  %465 = vrot.lane.b32.xlu1 %v455_v24, %s7771_s16 }
  0xdf   :  { %529 = vrot.lane.b32.xlu0 %v7962_v41, %s7775_s20  ;;  %531 = vrot.lane.b32.xlu1 %v7953_v39, %s7775_s20 }
  0xe3   :  { %549 = vperm.xlu0 %7742, %v7832_v2   ;;  %559 = vperm.xlu1 %7743, %v7832_v2  }
  0xe7   :  { %7744 = vset.pattern.permute.xlu1 %v7786_v35  ;;  %609 = vrot.lane.b32.xlu0 %v8073_v31, %s7777_s23 }
  0xe8   :  { %581 = vperm.xlu1 %7744, %v7832_v2   ;;  %7745 = vset.pattern.permute.xlu0 %v7787_v48 }
  0xeb   :  { %613 = vrot.lane.b32.xlu0 %v8078_v37, %s7777_s23 }
  0xec   :  { %611 = vrot.lane.b32.xlu1 %v8082_v45, %s7777_s23 }
  0xed   :  { %7746 = vset.pattern.permute.xlu1 %v7788_v49 }
  0xf0   :  { %615 = vrot.lane.b32.xlu1 %v8089_v46, %s7777_s23 }
  0xf2   :  { %v8107_v15 = vpop.permute.xlu0 %53 }
  0xf9   :  { %v8105_v5 = vpop.permute.xlu1 %55 }
  0xfd   :  { %v8109_v19 = vpop.permute.xlu1 %65  ;;  %v8111_v21 = vpop.permute.xlu0 %57 }
 0x101   :  { %v8113_v26 = vpop.permute.xlu1 %69  ;;  %v8115_v28 = vpop.permute.xlu0 %67 }
 0x11c   :  { %v8117_v29 = vpop.permute.xlu1 %279  ;;  %v8119_v32 = vpop.permute.xlu0 %277 }
 0x120   :  { %v8121_v33 = vpop.permute.xlu1 %286  ;;  %v8123_v34 = vpop.permute.xlu0 %281 }
 0x124   :  { %v8125_v38 = vpop.permute.xlu1 %290  ;;  %v8127_v40 = vpop.permute.xlu0 %288 }
 0x12d   :  { %v8129_v42 = vpop.permute.xlu1 %407  ;;  %v8131_v43 = vpop.permute.xlu0 %405 }
 0x131   :  { %v8133_v13 = vpop.permute.xlu1 %414  ;;  %v8135_v10 = vpop.permute.xlu0 %409 }
 0x135   :  { %v8137_v14 = vpop.permute.xlu1 %418  ;;  %v8139_v11 = vpop.permute.xlu0 %416 }
 0x139   :  { %v8141_v25 = vpop.permute.xlu1 %114  ;;  %v8143_v22 = vpop.permute.xlu0 %116 }
 0x13d   :  { %v8145_v27 = vpop.permute.xlu1 %118  ;;  %v8147_v24 = vpop.permute.xlu0 %120 }
 0x141   :  { %v8149_v30 = vpop.permute.xlu1 %333  ;;  %v8151_v35 = vpop.permute.xlu0 %335 }
 0x145   :  { %v8153_v48 = vpop.permute.xlu1 %337  ;;  %v8155_v49 = vpop.permute.xlu0 %339 }
 0x149   :  { %v8157_v0 = vpop.permute.xlu1 %461  ;;  %v8159_v44 = vpop.permute.xlu0 %463 }
 0x14a   :  { %14361 = vst [vmem:[#allocation26_spill] sm:$0xff] %v8157_v0  ;;  %14362 = vst [vmem:[#allocation27_spill] sm:$0xff] %v8159_v44 }
 0x14d   :  { %v8161_v20 = vpop.permute.xlu1 %465  ;;  %v8163_v47 = vpop.permute.xlu0 %467 }
 0x14e   :  { %14363 = vst [vmem:[#allocation28_spill] sm:$0xff] %v8161_v20  ;;  %14364 = vst [vmem:[#allocation29_spill] sm:$0xff] %v8163_v47 }
 0x151   :  { %v8165_v39 = vpop.permute.xlu1 %531  ;;  %v8167_v41 = vpop.permute.xlu0 %529 }
 0x152   :  { %14365 = vst [vmem:[#allocation30_spill] sm:$0xff] %v8165_v39  ;;  %14366 = vst [vmem:[#allocation31_spill] sm:$0xff] %v8167_v41 }
 0x162   :  { %v8169_v36 = vpop.permute.xlu1 %559  ;;  %v8171_v3 = vpop.permute.xlu0 %549 }
 0x163   :  { %14367 = vst [vmem:[#allocation32_spill] sm:$0xff] %v8169_v36  ;;  %14368 = vst [vmem:[#allocation33_spill] sm:$0xff] %v8171_v3 }
 0x166   :  { %v610_v50 = vpop.permute.xlu0 %609 }
 0x167   :  { %v8173_v62 = vpop.permute.xlu1 %581 }
 0x168   :  { %14369 = vst [vmem:[#allocation34_spill] sm:$0xff] %v8173_v62 }
 0x16a   :  { %v614_v4 = vpop.permute.xlu0 %613 }
 0x16b   :  { %v612_v1 = vpop.permute.xlu1 %611 }
 0x16c   :  { %v617_v0 = vsel %vm270_vm1, %v610_v50, %v612_v1  ;;  %v618_v44 = vsel %vm270_vm1, %v612_v1, %v614_v4  ;;  %v7789_v50 = vmov 33  }
 0x16d   :  { %623 = vrot.lane.b32.xlu0 %v617_v0, %s7772_s19  ;;  %625 = vrot.lane.b32.xlu1 %v618_v44, %s7772_s19 }
 0x16f   :  { %v616_v39 = vpop.permute.xlu1 %615 }
 0x170   :  { %v619_v41 = vsel %vm270_vm1, %v614_v4, %v616_v39 }
 0x171   :  { %627 = vrot.lane.b32.xlu0 %v619_v41, %s7772_s19  ;;  %632 = vrot.lane.b32.xlu1 %v617_v0, %s7775_s20 }
 0x175   :  { %634 = vrot.lane.b32.xlu0 %v618_v44, %s7775_s20  ;;  %636 = vrot.lane.b32.xlu1 %v619_v41, %s7775_s20  ;;  %v7669_v44 = vld [vmem:[%s13899_s2 + $0x2] ss:$4 sm:$0xf] }
 0x179   :  { %654 = vperm.xlu0 %7745, %v7832_v2   ;;  %668 = vperm.xlu1 %7746, %v7832_v2  }
 0x17d   :  { %7747 = vset.pattern.permute.xlu1 %v7789_v50 }
 0x1df   :  { %v8186_v1 = vpop.permute.xlu1 %625 }
 0x1e0   :  { %14370 = vst [vmem:[#allocation35_spill] sm:$0xff] %v8186_v1 }
 0x1e3   :  { %v8188_v62 = vpop.permute.xlu1 %632 }
 0x1e4   :  { %14371 = vst [vmem:[#allocation36_spill] sm:$0xff] %v8188_v62 }
 0x1e7   :  { %v8190_v36 = vpop.permute.xlu1 %636 }
 0x1e8   :  { %14372 = vst [vmem:[#allocation37_spill] sm:$0xff] %v8190_v36 }
 0x1f8   :  { %v8192_v39 = vpop.permute.xlu1 %668 }
 0x1f9   :  { %14373 = vst [vmem:[#allocation38_spill] sm:$0xff] %v8192_v39  ;;  %v672_v0 = vmul.f32 %v8192_v39, %v8082_v45  ;;  %v671_v41 = vmul.f32 %v8192_v39, %v8073_v31  ;;  %v674_v4 = vmul.f32 %v8192_v39, %v8089_v46  ;;  %v673_v50 = vmul.f32 %v8192_v39, %v8078_v37 }
 0x1fa   :  { %v724_v31 = vrot.slane %v7669_v44, %v7839_v6  ;;  %v732_v45 = vrot.slane %v7669_v44, %v7841_v7  ;;  %v736_v37 = vrot.slane %v7669_v44, %v7845_v9  ;;  %v7790_v46 = vmov 2  }
 0x1fb   :  { %681 = vrot.lane.b32.xlu0 %v672_v0, %s7777_s23  ;;  %679 = vrot.lane.b32.xlu1 %v671_v41, %s7777_s23  ;;  %v728_v0 = vrot.slane %v7669_v44, %v7843_v8  ;;  %v7791_v41 = vmov 6  }
 0x1fc   :  { %7748 = vset.pattern.permute.xlu0 %v7790_v46 }
 0x1ff   :  { %685 = vrot.lane.b32.xlu0 %v674_v4, %s7777_s23  ;;  %683 = vrot.lane.b32.xlu1 %v673_v50, %s7777_s23  ;;  %v8218_v4 = vpop.permute.xlu0 %623 }
 0x200   :  { %14374 = vst [vmem:[#allocation39_spill] sm:$0xff] %v8218_v4 }
 0x203   :  { %709 = vperm.xlu1 %7747, %v7832_v2   ;;  %737 = vrot.lane.b32.xlu0 %v724_v31, %s7771_s16  ;;  %v8220_v50 = vpop.permute.xlu0 %627 }
 0x204   :  { %14375 = vst [vmem:[#allocation40_spill] sm:$0xff] %v8220_v50 }
 0x207   :  { %741 = vrot.lane.b32.xlu0 %v732_v45, %s7771_s16  ;;  %739 = vrot.lane.b32.xlu1 %v728_v0, %s7771_s16  ;;  %v8222_v39 = vpop.permute.xlu0 %634 }
 0x208   :  { %7749 = vset.pattern.permute.xlu1 %v7791_v41  ;;  %14376 = vst [vmem:[#allocation41_spill] sm:$0xff] %v8222_v39 }
 0x20b   :  { %743 = vrot.lane.b32.xlu1 %v736_v37, %s7771_s16  ;;  %v8224_v36 = vpop.permute.xlu0 %654 }
 0x20c   :  { %14377 = vst [vmem:[#allocation42_spill] sm:$0xff] %v8224_v36 }
 0x26d   :  { %v8226_v62 = vpop.permute.xlu0 %681  ;;  %v8228_v1 = vpop.permute.xlu1 %679 }
 0x26e   :  { %14378 = vst [vmem:[#allocation43_spill] sm:$0xff] %v8226_v62  ;;  %14379 = vst [vmem:[#allocation44_spill] sm:$0xff] %v8228_v1 }
 0x271   :  { %v8230_v3 = vpop.permute.xlu0 %685  ;;  %v8232_v44 = vpop.permute.xlu1 %683 }
 0x272   :  { %14380 = vst [vmem:[#allocation45_spill] sm:$0xff] %v8230_v3  ;;  %14381 = vst [vmem:[#allocation46_spill] sm:$0xff] %v8232_v44 }
 0x275   :  { %v738_v47 = vpop.permute.xlu0 %737 }
 0x279   :  { %v742_v41 = vpop.permute.xlu0 %741 }
 0x282   :  { %v8234_v46 = vpop.permute.xlu1 %709 }
 0x283   :  { %14382 = vst [vmem:[#allocation47_spill] sm:$0xff] %v8234_v46 }
 0x286   :  { %v740_v20 = vpop.permute.xlu1 %739 }
 0x287   :  { %v745_v4 = vsel %vm46_vm0, %v738_v47, %v740_v20  ;;  %v746_v50 = vsel %vm46_vm0, %v740_v20, %v742_v41  ;;  %v7792_v47 = vmov 10   ;;  %v7793_v20 = vmov 14  }
 0x288   :  { %751 = vrot.lane.b32.xlu0 %v745_v4, %s7772_s19  ;;  %753 = vrot.lane.b32.xlu1 %v746_v50, %s7772_s19 }
 0x28a   :  { %v744_v62 = vpop.permute.xlu1 %743 }
 0x28b   :  { %v747_v1 = vsel %vm46_vm0, %v742_v41, %v744_v62 }
 0x28c   :  { %755 = vrot.lane.b32.xlu0 %v747_v1, %s7772_s19  ;;  %760 = vrot.lane.b32.xlu1 %v745_v4, %s7775_s20 }
 0x290   :  { %762 = vrot.lane.b32.xlu0 %v746_v50, %s7775_s20  ;;  %764 = vrot.lane.b32.xlu1 %v747_v1, %s7775_s20  ;;  %v7670_v50 = vld [vmem:[%s13899_s2 + $0x6] ss:$4 sm:$0x7] }
 0x294   :  { %782 = vperm.xlu0 %7748, %v7832_v2   ;;  %796 = vperm.xlu1 %7749, %v7832_v2  }
 0x298   :  { %7750 = vset.pattern.permute.xlu1 %v7792_v47  ;;  %7751 = vset.pattern.permute.xlu0 %v7793_v20 }
 0x2fa   :  { %v8247_v46 = vpop.permute.xlu1 %753 }
 0x2fb   :  { %14383 = vst [vmem:[#allocation48_spill] sm:$0xff] %v8247_v46 }
 0x2fe   :  { %v8249_v3 = vpop.permute.xlu1 %760 }
 0x2ff   :  { %14384 = vst [vmem:[#allocation49_spill] sm:$0xff] %v8249_v3 }
 0x302   :  { %v8251_v62 = vpop.permute.xlu1 %764 }
 0x303   :  { %14385 = vst [vmem:[#allocation50_spill] sm:$0xff] %v8251_v62 }
 0x313   :  { %v8253_v41 = vpop.permute.xlu1 %796 }
 0x314   :  { %14386 = vst [vmem:[#allocation51_spill] sm:$0xff] %v8253_v41  ;;  %v800_v4 = vmul.f32 %v8253_v41, %v728_v0  ;;  %v799_v1 = vmul.f32 %v8253_v41, %v724_v31  ;;  %v802_v47 = vmul.f32 %v8253_v41, %v736_v37  ;;  %v801_v20 = vmul.f32 %v8253_v41, %v732_v45  ;;  %v7671_v37 = vld [vmem:[%s13899_s2 + $0x6] ss:$4 sm:$0xf] }
 0x315   :  { %v8267_v0 = vrot.slane %v7670_v50, %v7839_v6  ;;  %v8273_v31 = vrot.slane %v7670_v50, %v7841_v7  ;;  %v7794_v45 = vmov 18   ;;  %v7796_v41 = vmov 26  }
 0x316   :  { %809 = vrot.lane.b32.xlu0 %v800_v4, %s7771_s16  ;;  %807 = vrot.lane.b32.xlu1 %v799_v1, %s7771_s16  ;;  %v8276_v4 = vrot.slane %v7670_v50, %v7843_v8  ;;  %v942_v1 = vrot.slane %v7671_v37, %v7839_v6  ;;  %v950_v50 = vrot.slane %v7671_v37, %v7841_v7 }
 0x317   :  { %14387 = vst [vmem:[#allocation52_spill] sm:$0xff] %v8267_v0  ;;  %14388 = vst [vmem:[#allocation53_spill] sm:$0xff] %v8273_v31 }
 0x318   :  { %14389 = vst [vmem:[#allocation54_spill] sm:$0xff] %v8276_v4 }
 0x31a   :  { %813 = vrot.lane.b32.xlu0 %v802_v47, %s7771_s16  ;;  %811 = vrot.lane.b32.xlu1 %v801_v20, %s7771_s16  ;;  %v7795_v47 = vmov 22   ;;  %v946_v20 = vrot.slane %v7671_v37, %v7843_v8 }
 0x31e   :  { %864 = vrot.lane.b32.xlu0 %v8267_v0, %s7772_s19  ;;  %837 = vperm.xlu1 %7750, %v7832_v2  }
 0x322   :  { %868 = vrot.lane.b32.xlu0 %v8273_v31, %s7772_s19  ;;  %866 = vrot.lane.b32.xlu1 %v8276_v4, %s7772_s19 }
 0x323   :  { %7752 = vset.pattern.permute.xlu1 %v7794_v45  ;;  %v954_v45 = vrot.slane %v7671_v37, %v7845_v9 }
 0x326   :  { %875 = vrot.lane.b32.xlu0 %v8276_v4, %s7775_s20  ;;  %873 = vrot.lane.b32.xlu1 %v8267_v0, %s7775_s20  ;;  %v8302_v4 = vpop.permute.xlu0 %751 }
 0x327   :  { %14390 = vst [vmem:[#allocation55_spill] sm:$0xff] %v8302_v4 }
 0x32a   :  { %895 = vperm.xlu0 %7751, %v7832_v2   ;;  %877 = vrot.lane.b32.xlu1 %v8273_v31, %s7775_s20  ;;  %v7797_v31 = vmov 30   ;;  %v8304_v0 = vpop.permute.xlu0 %755 }
 0x32b   :  { %14391 = vst [vmem:[#allocation56_spill] sm:$0xff] %v8304_v0 }
 0x32e   :  { %905 = vperm.xlu1 %7752, %v7832_v2   ;;  %955 = vrot.lane.b32.xlu0 %v942_v1, %s7777_s23 }
 0x32f   :  { %7754 = vset.pattern.permute.xlu0 %v7796_v41 }
 0x332   :  { %7753 = vset.pattern.permute.xlu1 %v7795_v47  ;;  %959 = vrot.lane.b32.xlu0 %v950_v50, %s7777_s23  ;;  %v8306_v47 = vpop.permute.xlu0 %762 }
 0x333   :  { %927 = vperm.xlu1 %7753, %v7832_v2   ;;  %14392 = vst [vmem:[#allocation57_spill] sm:$0xff] %v8306_v47 }
 0x336   :  { %v8308_v62 = vpop.permute.xlu0 %782 }
 0x337   :  { %957 = vrot.lane.b32.xlu1 %v946_v20, %s7777_s23  ;;  %14393 = vst [vmem:[#allocation58_spill] sm:$0xff] %v8308_v62 }
 0x338   :  { %7755 = vset.pattern.permute.xlu1 %v7797_v31 }
 0x33b   :  { %961 = vrot.lane.b32.xlu1 %v954_v45, %s7777_s23 }
 0x388   :  { %v8310_v3 = vpop.permute.xlu0 %809  ;;  %v8312_v44 = vpop.permute.xlu1 %807 }
 0x389   :  { %14394 = vst [vmem:[#allocation59_spill] sm:$0xff] %v8310_v3  ;;  %14395 = vst [vmem:[#allocation60_spill] sm:$0xff] %v8312_v44 }
 0x38c   :  { %v8314_v46 = vpop.permute.xlu0 %813  ;;  %v8316_v37 = vpop.permute.xlu1 %811 }
 0x38d   :  { %14396 = vst [vmem:[#allocation61_spill] sm:$0xff] %v8314_v46  ;;  %14397 = vst [vmem:[#allocation62_spill] sm:$0xff] %v8316_v37 }
 0x390   :  { %v8318_v39 = vpop.permute.xlu0 %864 }
 0x391   :  { %14398 = vst [vmem:[#allocation63_spill] sm:$0xff] %v8318_v39 }
 0x394   :  { %v8324_v4 = vpop.permute.xlu0 %868 }
 0x395   :  { %14401 = vst [vmem:[#allocation66_spill] sm:$0xff] %v8324_v4 }
 0x398   :  { %v8328_v47 = vpop.permute.xlu0 %875 }
 0x399   :  { %14403 = vst [vmem:[#allocation68_spill] sm:$0xff] %v8328_v47 }
 0x39d   :  { %v8320_v41 = vpop.permute.xlu1 %837 }
 0x39e   :  { %14399 = vst [vmem:[#allocation64_spill] sm:$0xff] %v8320_v41 }
 0x3a1   :  { %v8322_v31 = vpop.permute.xlu1 %866 }
 0x3a2   :  { %14400 = vst [vmem:[#allocation65_spill] sm:$0xff] %v8322_v31 }
 0x3a5   :  { %v8326_v0 = vpop.permute.xlu1 %873 }
 0x3a6   :  { %14402 = vst [vmem:[#allocation67_spill] sm:$0xff] %v8326_v0 }
 0x3a9   :  { %v8330_v62 = vpop.permute.xlu1 %877  ;;  %v8332_v3 = vpop.permute.xlu0 %895 }
 0x3aa   :  { %14404 = vst [vmem:[#allocation69_spill] sm:$0xff] %v8330_v62  ;;  %14405 = vst [vmem:[#allocation70_spill] sm:$0xff] %v8332_v3 }
 0x3ad   :  { %v8334_v44 = vpop.permute.xlu1 %905  ;;  %v956_v46 = vpop.permute.xlu0 %955 }
 0x3ae   :  { %14406 = vst [vmem:[#allocation71_spill] sm:$0xff] %v8334_v44 }
 0x3b1   :  { %v960_v39 = vpop.permute.xlu0 %959 }
 0x3b2   :  { %v8336_v37 = vpop.permute.xlu1 %927 }
 0x3b3   :  { %14407 = vst [vmem:[#allocation72_spill] sm:$0xff] %v8336_v37 }
 0x3b6   :  { %v958_v36 = vpop.permute.xlu1 %957 }
 0x3b7   :  { %v963_v41 = vsel %vm270_vm1, %v956_v46, %v958_v36  ;;  %v964_v31 = vsel %vm270_vm1, %v958_v36, %v960_v39  ;;  %v7798_v36 = vmov 34  }
 0x3b8   :  { %969 = vrot.lane.b32.xlu0 %v963_v41, %s7772_s19  ;;  %971 = vrot.lane.b32.xlu1 %v964_v31, %s7772_s19 }
 0x3ba   :  { %v962_v0 = vpop.permute.xlu1 %961 }
 0x3bb   :  { %v965_v62 = vsel %vm270_vm1, %v960_v39, %v962_v0 }
 0x3bc   :  { %973 = vrot.lane.b32.xlu0 %v965_v62, %s7772_s19  ;;  %978 = vrot.lane.b32.xlu1 %v963_v41, %s7775_s20 }
 0x3c0   :  { %980 = vrot.lane.b32.xlu0 %v964_v31, %s7775_s20  ;;  %982 = vrot.lane.b32.xlu1 %v965_v62, %s7775_s20  ;;  %v7672_v62 = vld [vmem:[%s13899_s2 + $0x3] ss:$4 sm:$0xf] }
 0x3c4   :  { %1000 = vperm.xlu0 %7754, %v7832_v2   ;;  %1014 = vperm.xlu1 %7755, %v7832_v2  }
 0x3c8   :  { %7756 = vset.pattern.permute.xlu1 %v7798_v36 }
 0x42a   :  { %v8349_v46 = vpop.permute.xlu1 %971 }
 0x42b   :  { %14408 = vst [vmem:[#allocation73_spill] sm:$0xff] %v8349_v46 }
 0x42e   :  { %v8351_v37 = vpop.permute.xlu1 %978 }
 0x42f   :  { %14409 = vst [vmem:[#allocation74_spill] sm:$0xff] %v8351_v37 }
 0x432   :  { %v8353_v44 = vpop.permute.xlu1 %982 }
 0x433   :  { %14410 = vst [vmem:[#allocation75_spill] sm:$0xff] %v8353_v44 }
 0x443   :  { %v8355_v39 = vpop.permute.xlu1 %1014 }
 0x444   :  { %14411 = vst [vmem:[#allocation76_spill] sm:$0xff] %v8355_v39  ;;  %v1018_v0 = vmul.f32 %v8355_v39, %v946_v20  ;;  %v1017_v41 = vmul.f32 %v8355_v39, %v942_v1  ;;  %v1020_v31 = vmul.f32 %v8355_v39, %v954_v45  ;;  %v1019_v36 = vmul.f32 %v8355_v39, %v950_v50 }
 0x445   :  { %v1070_v20 = vrot.slane %v7672_v62, %v7839_v6  ;;  %v1078_v1 = vrot.slane %v7672_v62, %v7841_v7  ;;  %v1082_v50 = vrot.slane %v7672_v62, %v7845_v9  ;;  %v7799_v45 = vmov 3  }
 0x446   :  { %1027 = vrot.lane.b32.xlu0 %v1018_v0, %s7777_s23  ;;  %1025 = vrot.lane.b32.xlu1 %v1017_v41, %s7777_s23  ;;  %v1074_v0 = vrot.slane %v7672_v62, %v7843_v8  ;;  %v7800_v41 = vmov 7  }
 0x447   :  { %7757 = vset.pattern.permute.xlu0 %v7799_v45 }
 0x44a   :  { %1031 = vrot.lane.b32.xlu0 %v1020_v31, %s7777_s23  ;;  %1029 = vrot.lane.b32.xlu1 %v1019_v36, %s7777_s23  ;;  %v8377_v31 = vpop.permute.xlu0 %969 }
 0x44b   :  { %14412 = vst [vmem:[#allocation77_spill] sm:$0xff] %v8377_v31 }
 0x44e   :  { %1055 = vperm.xlu1 %7756, %v7832_v2   ;;  %1083 = vrot.lane.b32.xlu0 %v1070_v20, %s7771_s16  ;;  %v8379_v36 = vpop.permute.xlu0 %973 }
 0x44f   :  { %14413 = vst [vmem:[#allocation78_spill] sm:$0xff] %v8379_v36 }
 0x452   :  { %1087 = vrot.lane.b32.xlu0 %v1078_v1, %s7771_s16  ;;  %1085 = vrot.lane.b32.xlu1 %v1074_v0, %s7771_s16  ;;  %v8381_v39 = vpop.permute.xlu0 %980 }
 0x453   :  { %7758 = vset.pattern.permute.xlu1 %v7800_v41 }
 0x456   :  { %1089 = vrot.lane.b32.xlu1 %v1082_v50, %s7771_s16  ;;  %v8383_v44 = vpop.permute.xlu0 %1000 }
 0x457   :  { %14414 = vst [vmem:[#allocation79_spill] sm:$0xff] %v8383_v44 }
 0x4b8   :  { %v8385_v37 = vpop.permute.xlu0 %1027  ;;  %v8387_v46 = vpop.permute.xlu1 %1025 }
 0x4b9   :  { %14415 = vst [vmem:[#allocation80_spill] sm:$0xff] %v8385_v37  ;;  %14416 = vst [vmem:[#allocation81_spill] sm:$0xff] %v8387_v46 }
 0x4bc   :  { %v8389_v3 = vpop.permute.xlu0 %1031  ;;  %v8391_v62 = vpop.permute.xlu1 %1029 }
 0x4bd   :  { %14417 = vst [vmem:[#allocation82_spill] sm:$0xff] %v8389_v3  ;;  %14418 = vst [vmem:[#allocation83_spill] sm:$0xff] %v8391_v62 }
 0x4c0   :  { %v1084_v47 = vpop.permute.xlu0 %1083 }
 0x4c4   :  { %v1088_v41 = vpop.permute.xlu0 %1087 }
 0x4cd   :  { %v8393_v45 = vpop.permute.xlu1 %1055 }
 0x4ce   :  { %14419 = vst [vmem:[#allocation84_spill] sm:$0xff] %v8393_v45 }
 0x4d1   :  { %v1086_v4 = vpop.permute.xlu1 %1085 }
 0x4d2   :  { %v1091_v31 = vsel %vm46_vm0, %v1084_v47, %v1086_v4  ;;  %v1092_v36 = vsel %vm46_vm0, %v1086_v4, %v1088_v41  ;;  %v7801_v4 = vmov 11   ;;  %v7802_v47 = vmov 15  }
 0x4d3   :  { %1097 = vrot.lane.b32.xlu0 %v1091_v31, %s7772_s19  ;;  %1099 = vrot.lane.b32.xlu1 %v1092_v36, %s7772_s19 }
 0x4d5   :  { %v1090_v37 = vpop.permute.xlu1 %1089 }
 0x4d6   :  { %v1093_v46 = vsel %vm46_vm0, %v1088_v41, %v1090_v37 }
 0x4d7   :  { %1101 = vrot.lane.b32.xlu0 %v1093_v46, %s7772_s19  ;;  %1106 = vrot.lane.b32.xlu1 %v1091_v31, %s7775_s20 }
 0x4db   :  { %1108 = vrot.lane.b32.xlu0 %v1092_v36, %s7775_s20  ;;  %1110 = vrot.lane.b32.xlu1 %v1093_v46, %s7775_s20  ;;  %v7673_v36 = vld [vmem:[%s13899_s2 + $0x7] ss:$4 sm:$0x7] }
 0x4df   :  { %1128 = vperm.xlu0 %7757, %v7832_v2   ;;  %1142 = vperm.xlu1 %7758, %v7832_v2  }
 0x4e3   :  { %7759 = vset.pattern.permute.xlu1 %v7801_v4  ;;  %7760 = vset.pattern.permute.xlu0 %v7802_v47 }
 0x545   :  { %v8406_v45 = vpop.permute.xlu1 %1099 }
 0x549   :  { %v8408_v3 = vpop.permute.xlu1 %1106 }
 0x54a   :  { %14420 = vst [vmem:[#allocation85_spill] sm:$0xff] %v8408_v3 }
 0x54d   :  { %v8410_v37 = vpop.permute.xlu1 %1110 }
 0x54e   :  { %14421 = vst [vmem:[#allocation86_spill] sm:$0xff] %v8410_v37 }
 0x55e   :  { %v8412_v41 = vpop.permute.xlu1 %1142 }
 0x55f   :  { %14422 = vst [vmem:[#allocation87_spill] sm:$0xff] %v8412_v41  ;;  %v1146_v31 = vmul.f32 %v8412_v41, %v1074_v0  ;;  %v1145_v46 = vmul.f32 %v8412_v41, %v1070_v20  ;;  %v1148_v4 = vmul.f32 %v8412_v41, %v1082_v50  ;;  %v1147_v47 = vmul.f32 %v8412_v41, %v1078_v1  ;;  %v7674_v50 = vld [vmem:[%s13899_s2 + $0x7] ss:$4 sm:$0xf] }
 0x560   :  { %v8426_v0 = vrot.slane %v7673_v36, %v7839_v6  ;;  %v8432_v20 = vrot.slane %v7673_v36, %v7841_v7  ;;  %v7803_v1 = vmov 19   ;;  %v7805_v41 = vmov 27  }
 0x561   :  { %1155 = vrot.lane.b32.xlu0 %v1146_v31, %s7771_s16  ;;  %1153 = vrot.lane.b32.xlu1 %v1145_v46, %s7771_s16  ;;  %v8435_v31 = vrot.slane %v7673_v36, %v7843_v8  ;;  %v1288_v46 = vrot.slane %v7674_v50, %v7839_v6  ;;  %v1296_v36 = vrot.slane %v7674_v50, %v7841_v7 }
 0x562   :  { %14423 = vst [vmem:[#allocation88_spill] sm:$0xff] %v8426_v0  ;;  %14424 = vst [vmem:[#allocation89_spill] sm:$0xff] %v8432_v20 }
 0x563   :  { %14425 = vst [vmem:[#allocation90_spill] sm:$0xff] %v8435_v31 }
 0x565   :  { %1159 = vrot.lane.b32.xlu0 %v1148_v4, %s7771_s16  ;;  %1157 = vrot.lane.b32.xlu1 %v1147_v47, %s7771_s16  ;;  %v7804_v4 = vmov 23   ;;  %v1292_v47 = vrot.slane %v7674_v50, %v7843_v8 }
 0x569   :  { %1210 = vrot.lane.b32.xlu0 %v8426_v0, %s7772_s19  ;;  %1183 = vperm.xlu1 %7759, %v7832_v2  }
 0x56d   :  { %1214 = vrot.lane.b32.xlu0 %v8432_v20, %s7772_s19  ;;  %1212 = vrot.lane.b32.xlu1 %v8435_v31, %s7772_s19 }
 0x56e   :  { %7761 = vset.pattern.permute.xlu1 %v7803_v1  ;;  %v1300_v1 = vrot.slane %v7674_v50, %v7845_v9 }
 0x571   :  { %1221 = vrot.lane.b32.xlu0 %v8435_v31, %s7775_s20  ;;  %1219 = vrot.lane.b32.xlu1 %v8426_v0, %s7775_s20  ;;  %v8461_v31 = vpop.permute.xlu0 %1097 }
 0x572   :  { %14426 = vst [vmem:[#allocation91_spill] sm:$0xff] %v8461_v31 }
 0x575   :  { %1241 = vperm.xlu0 %7760, %v7832_v2   ;;  %1223 = vrot.lane.b32.xlu1 %v8432_v20, %s7775_s20  ;;  %v7806_v20 = vmov 31   ;;  %v8463_v7 = vpop.permute.xlu0 %1101 }
 0x576   :  { %14427 = vst [vmem:[#allocation92_spill] sm:$0xff] %v8463_v7 }
 0x579   :  { %1251 = vperm.xlu1 %7761, %v7832_v2   ;;  %1301 = vrot.lane.b32.xlu0 %v1288_v46, %s7777_s23 }
 0x57a   :  { %7763 = vset.pattern.permute.xlu0 %v7805_v41 }
 0x57d   :  { %7762 = vset.pattern.permute.xlu1 %v7804_v4  ;;  %1305 = vrot.lane.b32.xlu0 %v1296_v36, %s7777_s23  ;;  %v8465_v4 = vpop.permute.xlu0 %1108 }
 0x57e   :  { %1273 = vperm.xlu1 %7762, %v7832_v2   ;;  %14428 = vst [vmem:[#allocation93_spill] sm:$0xff] %v8465_v4 }
 0x581   :  { %v8467_v0 = vpop.permute.xlu0 %1128 }
 0x582   :  { %1303 = vrot.lane.b32.xlu1 %v1292_v47, %s7777_s23  ;;  %14429 = vst [vmem:[#allocation94_spill] sm:$0xff] %v8467_v0 }
 0x583   :  { %7764 = vset.pattern.permute.xlu1 %v7806_v20 }
 0x586   :  { %1307 = vrot.lane.b32.xlu1 %v1300_v1, %s7777_s23 }
 0x5d3   :  { %v8469_v37 = vpop.permute.xlu0 %1155  ;;  %v8471_v8 = vpop.permute.xlu1 %1153 }
 0x5d4   :  { %14430 = vst [vmem:[#allocation95_spill] sm:$0xff] %v8469_v37  ;;  %14431 = vst [vmem:[#allocation96_spill] sm:$0xff] %v8471_v8 }
 0x5d7   :  { %v8473_v3 = vpop.permute.xlu0 %1159  ;;  %v8475_v50 = vpop.permute.xlu1 %1157 }
 0x5d8   :  { %14432 = vst [vmem:[#allocation97_spill] sm:$0xff] %v8473_v3  ;;  %14433 = vst [vmem:[#allocation98_spill] sm:$0xff] %v8475_v50 }
 0x5db   :  { %v8477_v9 = vpop.permute.xlu0 %1210 }
 0x5dc   :  { %14434 = vst [vmem:[#allocation99_spill] sm:$0xff] %v8477_v9 }
 0x5df   :  { %v8483_v62 = vpop.permute.xlu0 %1214 }
 0x5e3   :  { %v8487_v4 = vpop.permute.xlu0 %1221 }
 0x5e8   :  { %v8479_v41 = vpop.permute.xlu1 %1183 }
 0x5e9   :  { %14435 = vst [vmem:[#allocation100_spill] sm:$0xff] %v8479_v41 }
 0x5ec   :  { %v8481_v20 = vpop.permute.xlu1 %1212 }
 0x5ed   :  { %14436 = vst [vmem:[#allocation101_spill] sm:$0xff] %v8481_v20 }
 0x5f0   :  { %v8485_v7 = vpop.permute.xlu1 %1219 }
 0x5f1   :  { %14437 = vst [vmem:[#allocation102_spill] sm:$0xff] %v8485_v7 }
 0x5f4   :  { %v8489_v0 = vpop.permute.xlu1 %1223  ;;  %v8491_v37 = vpop.permute.xlu0 %1241 }
 0x5f5   :  { %14438 = vst [vmem:[#allocation103_spill] sm:$0xff] %v8489_v0  ;;  %14439 = vst [vmem:[#allocation104_spill] sm:$0xff] %v8491_v37 }
 0x5f8   :  { %v8493_v8 = vpop.permute.xlu1 %1251  ;;  %v1302_v3 = vpop.permute.xlu0 %1301 }
 0x5f9   :  { %14440 = vst [vmem:[#allocation105_spill] sm:$0xff] %v8493_v8 }
 0x5fc   :  { %v1306_v9 = vpop.permute.xlu0 %1305 }
 0x5fd   :  { %v8495_v50 = vpop.permute.xlu1 %1273 }
 0x5fe   :  { %14441 = vst [vmem:[#allocation106_spill] sm:$0xff] %v8495_v50 }
 0x601   :  { %v1304_v31 = vpop.permute.xlu1 %1303 }
 0x602   :  { %v1309_v41 = vsel %vm270_vm1, %v1302_v3, %v1304_v31  ;;  %v1310_v20 = vsel %vm270_vm1, %v1304_v31, %v1306_v9  ;;  %v7767_v3 = vld [vmem:[%s13898_s0] sm:$0xf]  ;;  %v7807_v31 = vmov 35  }
 0x603   :  { %1315 = vrot.lane.b32.xlu0 %v1309_v41, %s7772_s19  ;;  %1317 = vrot.lane.b32.xlu1 %v1310_v20, %s7772_s19 }
 0x605   :  { %v1308_v7 = vpop.permute.xlu1 %1307 }
 0x606   :  { %v1311_v0 = vsel %vm270_vm1, %v1306_v9, %v1308_v7 }
 0x607   :  { %1319 = vrot.lane.b32.xlu0 %v1311_v0, %s7772_s19  ;;  %1324 = vrot.lane.b32.xlu1 %v1309_v41, %s7775_s20 }
 0x60b   :  { %1326 = vrot.lane.b32.xlu0 %v1310_v20, %s7775_s20  ;;  %1328 = vrot.lane.b32.xlu1 %v1311_v0, %s7775_s20 }
 0x60f   :  { %1346 = vperm.xlu0 %7763, %v7832_v2   ;;  %1360 = vperm.xlu1 %7764, %v7767_v3  }
 0x613   :  { %7765 = vset.pattern.permute.xlu1 %v7807_v31  ;;  %7766 = vset.pattern.permute.xlu0 %v7807_v31 }
 0x675   :  { %v8510_v50 = vpop.permute.xlu1 %1317 }
 0x679   :  { %v8512_v7 = vpop.permute.xlu1 %1324 }
 0x67d   :  { %v8514_v9 = vpop.permute.xlu1 %1328 }
 0x67e   :  { %14442 = vst [vmem:[#allocation107_spill] sm:$0xff] %v8514_v9  ;;  %v7808_v9 = vmov 0.0  }
 0x67f   :  { %16 = vst [vmem:[#allocation2] sm:$0xf] %v7808_v9  ;;  %17 = vst [vmem:[#allocation2 + $0x10] sm:$0xf] %v7808_v9 }
 0x680   :  { %18 = vst [vmem:[#allocation3] sm:$0xf] %v7808_v9  ;;  %19 = vst [vmem:[#allocation3 + $0x10] sm:$0xf] %v7808_v9 }
 0x68e   :  { %v8516_v41 = vpop.permute.xlu1 %1360 }
 0x68f   :  { %14443 = vst [vmem:[#allocation108_spill] sm:$0xff] %v8516_v41  ;;  %v1364_v0 = vmul.f32 %v8516_v41, %v1292_v47  ;;  %v1363_v2 = vmul.f32 %v8516_v41, %v1288_v46  ;;  %v1366_v20 = vmul.f32 %v8516_v41, %v1300_v1  ;;  %v1365_v31 = vmul.f32 %v8516_v41, %v1296_v36 }
 0x690   :  { %v14444_v47 = vlaneseq }
 0x691   :  { %1373 = vrot.lane.b32.xlu0 %v1364_v0, %s7777_s23  ;;  %1371 = vrot.lane.b32.xlu1 %v1363_v2, %s7777_s23 }
 0x692   :  { %v8527_v46 = vand.u32 127, %v14444_v47 }
 0x694   :  { %vm61_vm2 = vcmp.lt.s32.totalorder %v8527_v46, 1  ;;  %vm71_vm3 = vcmp.lt.s32.totalorder %v8527_v46, 127 }
 0x695   :  { %1377 = vrot.lane.b32.xlu0 %v1366_v20, %s7777_s23  ;;  %1375 = vrot.lane.b32.xlu1 %v1365_v31, %s7777_s23  ;;  %v64_v36 = vsel %vm61_vm2, %v8111_v21, %v8107_v15  ;;  %v63_v1 = vsel %vm61_vm2, %v8107_v15, %v8105_v5  ;;  %v73_v2 = vsel %vm71_vm3, %v8109_v19, %v8115_v28 }
 0x696   :  { %v78_v9 = vrot.slane %v64_v36, %v7839_v6  ;;  %v82_v0 = vrot.slane %v63_v1, %v7839_v6  ;;  %v74_v15 = vsel %vm71_vm3, %v8113_v26, %v8109_v19  ;;  %v134_v31 = vrot.slane %v73_v2, %v7839_v6 }
 0x697   :  { %v123_v1 = vsel %vm46_vm0, %v8143_v22, %v8145_v27  ;;  %v124_v19 = vsel %vm46_vm0, %v8145_v27, %v8147_v24  ;;  %v177_v2 = vsel %vm61_vm2, %v7983_v54, %v7989_v57 }
 0x698   :  { %v92_v47 = vmul.f32 %v7981_v53, %v78_v9  ;;  %v93_v36 = vmul.f32 %v7981_v53, %v82_v0  ;;  %v179_v9 = vsel %vm61_vm2, %v7989_v57, %v7985_v55  ;;  %v147_v0 = vmul.f32 %v7978_v52, %v134_v31 }
 0x699   :  { %1401 = vperm.xlu1 %7765, %v7767_v3   ;;  %v62_v3 = vsel %vm61_vm2, %v8105_v5, %v8111_v21  ;;  %v72_v5 = vsel %vm71_vm3, %v8115_v28, %v8113_v26  ;;  %v122_v21 = vsel %vm46_vm0, %v8141_v25, %v8143_v22  ;;  %v142_v26 = vrot.slane %v74_v15, %v7839_v6 }
 0x69a   :  { %v86_v20 = vrot.slane %v62_v3, %v7839_v6  ;;  %v138_v28 = vrot.slane %v72_v5, %v7839_v6  ;;  %v128_v3 = vadd.f32 %v122_v21, %v92_v47  ;;  %v178_v22 = vsel %vm61_vm2, %v7985_v55, %v7983_v54 }
 0x69b   :  { %v129_v27 = vadd.f32 %v123_v1, %v93_v36  ;;  %v149_v15 = vmul.f32 %v7978_v52, %v142_v26  ;;  %v196_v47 = vrot.slane %v178_v22, %v7839_v6  ;;  %v200_v55 = vrot.slane %v177_v2, %v7839_v6 }
 0x69c   :  { %v94_v25 = vmul.f32 %v7981_v53, %v86_v20  ;;  %v192_v20 = vrot.slane %v179_v9, %v7839_v6  ;;  %v148_v5 = vmul.f32 %v7978_v52, %v138_v28  ;;  %v150_v21 = vadd.f32 %v147_v0, %v128_v3 }
 0x69d   :  { %v207_v54 = vmul.f32 %v7997_v61, %v200_v55  ;;  %v188_v57 = vsel %vm71_vm3, %v7991_v58, %v7987_v56  ;;  %v187_v26 = vsel %vm71_vm3, %v7987_v56, %v7993_v59  ;;  %v186_v28 = vsel %vm71_vm3, %v7993_v59, %v7991_v58 }
 0x69e   :  { %v130_v24 = vadd.f32 %v124_v19, %v94_v25  ;;  %v205_v31 = vmul.f32 %v7997_v61, %v192_v20  ;;  %v151_v36 = vadd.f32 %v148_v5, %v129_v27  ;;  %v206_v25 = vmul.f32 %v7997_v61, %v196_v47 }
 0x69f   :  { %v215_v22 = vmul.f32 %v7995_v60, %v7876_v17  ;;  %v285_v0 = vsel %vm61_vm2, %v8123_v34, %v8119_v32  ;;  %v224_v27 = vrot.slane %v187_v26, %v7839_v6  ;;  %v216_v56 = vmul.f32 %v7995_v60, %v7873_v16 }
 0x6a0   :  { %v152_v1 = vadd.f32 %v149_v15, %v130_v24  ;;  %v208_v19 = vadd.f32 %v205_v31, %v150_v21  ;;  %v209_v3 = vadd.f32 %v206_v25, %v151_v36  ;;  %v217_v2 = vmul.f32 %v7995_v60, %v7883_v18 }
 0x6a1   :  { %v232_v58 = vrot.slane %v188_v57, %v7839_v6  ;;  %v228_v59 = vrot.slane %v186_v28, %v7839_v6  ;;  %v284_v17 = vsel %vm61_vm2, %v8119_v32, %v8117_v29  ;;  %v283_v20 = vsel %vm61_vm2, %v8117_v29, %v8123_v34 }
 0x6a2   :  { %v210_v9 = vadd.f32 %v207_v54, %v152_v1  ;;  %v218_v24 = vadd.f32 %v215_v22, %v208_v19  ;;  %v298_v15 = vrot.slane %v285_v0, %v7839_v6  ;;  %v237_v16 = vmul.f32 %v7999_v63, %v224_v27 }
 0x6a3   :  { %v219_v5 = vadd.f32 %v216_v56, %v209_v3  ;;  %v238_v21 = vmul.f32 %v7999_v63, %v228_v59  ;;  %v302_v47 = vrot.slane %v284_v17, %v7839_v6  ;;  %v306_v55 = vrot.slane %v283_v20, %v7839_v6 }
 0x6a4   :  { %v220_v18 = vadd.f32 %v217_v2, %v210_v9  ;;  %v240_v31 = vadd.f32 %v237_v16, %v218_v24  ;;  %v239_v32 = vmul.f32 %v7999_v63, %v232_v58  ;;  %v311_v36 = vmul.f32 %v8005_v12, %v298_v15 }
 0x6a5   :  { %v241_v1 = vadd.f32 %v238_v21, %v219_v5  ;;  %v293_v29 = vsel %vm71_vm3, %v8121_v33, %v8127_v40  ;;  %v312_v34 = vmul.f32 %v8005_v12, %v302_v47  ;;  %v313_v25 = vmul.f32 %v8005_v12, %v306_v55 }
 0x6a6   :  { %v242_v19 = vadd.f32 %v239_v32, %v220_v18  ;;  %v314_v54 = vadd.f32 %v311_v36, %v240_v31  ;;  %v294_v57 = vsel %vm71_vm3, %v8125_v38, %v8121_v33  ;;  %v292_v26 = vsel %vm71_vm3, %v8127_v40, %v8125_v38  ;;  %v14445_v31 = vld [vmem:[#allocation23_spill] sm:$0xff]  ;;  %v14446_v32 = vld [vmem:[#allocation25_spill] sm:$0xff] }
 0x6a7   :  { %v353_v28 = vrot.slane %v293_v29, %v7839_v6  ;;  %v315_v3 = vadd.f32 %v312_v34, %v241_v1  ;;  %v413_v22 = vsel %vm61_vm2, %v8135_v10, %v8131_v43  ;;  %v341_v0 = vsel %vm270_vm1, %v8149_v30, %v8151_v35  ;;  %v14447_v1 = vld [vmem:[#allocation22_spill] sm:$0xff] }
 0x6a8   :  { %v316_v9 = vadd.f32 %v313_v25, %v242_v19  ;;  %v361_v33 = vrot.slane %v294_v57, %v7839_v6  ;;  %v357_v27 = vrot.slane %v292_v26, %v7839_v6  ;;  %v412_v38 = vsel %vm61_vm2, %v8131_v43, %v8129_v42  ;;  %v14449_v57 = vld [vmem:[#allocation26_spill] sm:$0xff] }
 0x6a9   :  { %v347_v40 = vadd.f32 %v341_v0, %v314_v54  ;;  %v411_v24 = vsel %vm61_vm2, %v8129_v42, %v8135_v10  ;;  %v342_v56 = vsel %vm270_vm1, %v8151_v35, %v8153_v48  ;;  %v343_v30 = vsel %vm270_vm1, %v8153_v48, %v8155_v49  ;;  %v14448_v54 = vld [vmem:[#allocation27_spill] sm:$0xff]  ;;  %v14450_v0 = vld [vmem:[#allocation28_spill] sm:$0xff] }
 0x6aa   :  { %v366_v2 = vmul.f32 %v8014_v23, %v353_v28  ;;  %v426_v58 = vrot.slane %v413_v22, %v7839_v6  ;;  %v348_v59 = vadd.f32 %v342_v56, %v315_v3  ;;  %v349_v43 = vadd.f32 %v343_v30, %v316_v9 }
 0x6ab   :  { %v430_v17 = vrot.slane %v412_v38, %v7839_v6  ;;  %v368_v20 = vmul.f32 %v8014_v23, %v361_v33  ;;  %v367_v42 = vmul.f32 %v8014_v23, %v357_v27  ;;  %v434_v10 = vrot.slane %v411_v24, %v7839_v6  ;;  %v14451_v27 = vld [vmem:[#allocation29_spill] sm:$0xff] }
 0x6ac   :  { %v369_v15 = vadd.f32 %v366_v2, %v347_v40  ;;  %v439_v35 = vmul.f32 %v8095_v51, %v426_v58  ;;  %v421_v49 = vsel %vm71_vm3, %v8133_v13, %v8139_v11  ;;  %v422_v21 = vsel %vm71_vm3, %v8137_v14, %v8133_v13  ;;  %v14452_v40 = vld [vmem:[#allocation20_spill] sm:$0xff]  ;;  %v14453_v2 = vld [vmem:[#allocation33_spill] sm:$0xff] }
 0x6ad   :  { %v370_v16 = vadd.f32 %v367_v42, %v348_v59  ;;  %v371_v5 = vadd.f32 %v368_v20, %v349_v43  ;;  %v440_v48 = vmul.f32 %v8095_v51, %v430_v17  ;;  %v441_v18 = vmul.f32 %v8095_v51, %v434_v10  ;;  %v14454_v20 = vld [vmem:[#allocation31_spill] sm:$0xff]  ;;  %v14455_v42 = vld [vmem:[#allocation24_spill] sm:$0xff] }
 0x6ae   :  { %v420_v47 = vsel %vm71_vm3, %v8139_v11, %v8137_v14  ;;  %v442_v55 = vadd.f32 %v439_v35, %v369_v15  ;;  %v526_v36 = vsel %vm61_vm2, %v14446_v32, %v14445_v31  ;;  %v524_v19 = vsel %vm61_vm2, %v14447_v1, %v14446_v32 }
 0x6af   :  { %v525_v13 = vsel %vm61_vm2, %v14445_v31, %v14447_v1  ;;  %v481_v29 = vrot.slane %v421_v49, %v7839_v6  ;;  %v443_v34 = vadd.f32 %v440_v48, %v370_v16  ;;  %v444_v14 = vadd.f32 %v441_v18, %v371_v5  ;;  %v14456_v16 = vld [vmem:[#allocation30_spill] sm:$0xff]  ;;  %v14458_v31 = vld [vmem:[#allocation40_spill] sm:$0xff] }
 0x6b0   :  { %v489_v11 = vrot.slane %v422_v21, %v7839_v6  ;;  %v485_v25 = vrot.slane %v420_v47, %v7839_v6  ;;  %v469_v26 = vsel %vm46_vm0, %v14449_v57, %v14448_v54  ;;  %v539_v28 = vrot.slane %v526_v36, %v7839_v6  ;;  %v14459_v36 = vld [vmem:[#allocation7_spill] sm:$0xff]  ;;  %v14460_v1 = vld [vmem:[#allocation32_spill] sm:$0xff] }
 0x6b1   :  { %v475_v3 = vadd.f32 %v469_v26, %v442_v55  ;;  %v543_v9 = vrot.slane %v525_v13, %v7839_v6  ;;  %v547_v22 = vrot.slane %v524_v19, %v7839_v6  ;;  %v470_v33 = vsel %vm46_vm0, %v14448_v54, %v14450_v0  ;;  %v14457_v55 = vld [vmem:[#allocation39_spill] sm:$0xff]  ;;  %v14462_v54 = vld [vmem:[#allocation8_spill] sm:$0xff] }
 0x6b2   :  { %v471_v38 = vsel %vm46_vm0, %v14450_v0, %v14451_v27  ;;  %v494_v24 = vmul.f32 %v14452_v40, %v481_v29  ;;  %v476_v56 = vadd.f32 %v470_v33, %v443_v34  ;;  %v552_v58 = vmul.f32 %v14453_v2, %v539_v28  ;;  %v14463_v26 = vld [vmem:[#allocation35_spill] sm:$0xff] }
 0x6b3   :  { %v477_v30 = vadd.f32 %v471_v38, %v444_v14  ;;  %v496_v59 = vmul.f32 %v14452_v40, %v489_v11  ;;  %v495_v43 = vmul.f32 %v14452_v40, %v485_v25  ;;  %v534_v10 = vsel %vm71_vm3, %v14455_v42, %v14454_v20  ;;  %v14461_v11 = vld [vmem:[#allocation9_spill] sm:$0xff] }
 0x6b4   :  { %v497_v17 = vadd.f32 %v494_v24, %v475_v3  ;;  %v553_v15 = vmul.f32 %v14453_v2, %v543_v9  ;;  %v554_v35 = vmul.f32 %v14453_v2, %v547_v22  ;;  %v535_v5 = vsel %vm71_vm3, %v14456_v16, %v14455_v42  ;;  %v14464_v22 = vld [vmem:[#allocation34_spill] sm:$0xff] }
 0x6b5   :  { %v498_v48 = vadd.f32 %v495_v43, %v476_v56  ;;  %v499_v49 = vadd.f32 %v496_v59, %v477_v30  ;;  %v533_v18 = vsel %vm71_vm3, %v14454_v20, %v14456_v16  ;;  %v571_v47 = vrot.slane %v534_v10, %v7839_v6  ;;  %v14465_v59 = vld [vmem:[#allocation42_spill] sm:$0xff]  ;;  %v14467_v20 = vld [vmem:[#allocation37_spill] sm:$0xff] }
 0x6b6   :  { %v555_v21 = vadd.f32 %v552_v58, %v497_v17  ;;  %v631_v32 = vsel %vm61_vm2, %v14458_v31, %v14457_v55  ;;  %v562_v19 = vmul.f32 %v14460_v1, %v14459_v36  ;;  %v579_v34 = vrot.slane %v535_v5, %v7839_v6  ;;  %v14466_v17 = vld [vmem:[#allocation36_spill] sm:$0xff] }
 0x6b7   :  { %v556_v13 = vadd.f32 %v553_v15, %v498_v48  ;;  %v557_v29 = vadd.f32 %v554_v35, %v499_v49  ;;  %v575_v14 = vrot.slane %v533_v18, %v7839_v6  ;;  %v563_v25 = vmul.f32 %v14460_v1, %v14461_v11  ;;  %v14468_v15 = vld [vmem:[#allocation41_spill] sm:$0xff]  ;;  %v14469_v49 = vld [vmem:[#allocation43_spill] sm:$0xff]  ;;  %v14470_v18 = vld [vmem:[#allocation44_spill] sm:$0xff] }
 0x6b8   :  { %v564_v57 = vmul.f32 %v14460_v1, %v14462_v54  ;;  %v630_v28 = vsel %vm61_vm2, %v14457_v55, %v14463_v26  ;;  %v629_v3 = vsel %vm61_vm2, %v14463_v26, %v14458_v31  ;;  %v565_v9 = vadd.f32 %v562_v19, %v555_v21  ;;  %v14471_v36 = vld [vmem:[#allocation48_spill] sm:$0xff]  ;;  %v14472_v19 = vld [vmem:[#allocation55_spill] sm:$0xff] }
 0x6b9   :  { %v584_v0 = vmul.f32 %v14464_v22, %v571_v47  ;;  %v644_v33 = vrot.slane %v631_v32, %v7839_v6  ;;  %v566_v27 = vadd.f32 %v563_v25, %v556_v13  ;;  %v585_v38 = vmul.f32 %v14464_v22, %v575_v14  ;;  %v14474_v25 = vld [vmem:[#allocation46_spill] sm:$0xff] }
 0x6ba   :  { %v567_v24 = vadd.f32 %v564_v57, %v557_v29  ;;  %v586_v56 = vmul.f32 %v14464_v22, %v579_v34  ;;  %v648_v30 = vrot.slane %v630_v28, %v7839_v6  ;;  %v652_v58 = vrot.slane %v629_v3, %v7839_v6  ;;  %v14473_v29 = vld [vmem:[#allocation56_spill] sm:$0xff] }
 0x6bb   :  { %v657_v43 = vmul.f32 %v14465_v59, %v644_v33  ;;  %v640_v42 = vsel %vm71_vm3, %v14467_v20, %v14466_v17  ;;  %v587_v10 = vadd.f32 %v584_v0, %v565_v9  ;;  %v638_v35 = vsel %vm71_vm3, %v14468_v15, %v14467_v20  ;;  %v14475_v9 = vld [vmem:[#allocation45_spill] sm:$0xff] }
 0x6bc   :  { %v639_v16 = vsel %vm71_vm3, %v14466_v17, %v14468_v15  ;;  %v658_v5 = vmul.f32 %v14465_v59, %v648_v30  ;;  %v659_v48 = vmul.f32 %v14465_v59, %v652_v58  ;;  %v687_v21 = vsel %vm270_vm1, %v14470_v18, %v14469_v49  ;;  %v14478_v17 = vld [vmem:[#allocation50_spill] sm:$0xff] }
 0x6bd   :  { %v588_v47 = vadd.f32 %v585_v38, %v566_v27  ;;  %v589_v55 = vadd.f32 %v586_v56, %v567_v24  ;;  %v707_v31 = vrot.slane %v640_v42, %v7839_v6  ;;  %v660_v32 = vadd.f32 %v657_v43, %v587_v10  ;;  %v14476_v38 = vld [vmem:[#allocation47_spill] sm:$0xff]  ;;  %v14477_v43 = vld [vmem:[#allocation49_spill] sm:$0xff] }
 0x6be   :  { %v758_v13 = vsel %vm61_vm2, %v14472_v19, %v14471_v36  ;;  %v759_v34 = vsel %vm61_vm2, %v14473_v29, %v14472_v19  ;;  %v699_v14 = vrot.slane %v639_v16, %v7839_v6  ;;  %v703_v11 = vrot.slane %v638_v35, %v7839_v6  ;;  %v14479_v10 = vld [vmem:[#allocation57_spill] sm:$0xff]  ;;  %v14480_v16 = vld [vmem:[#allocation58_spill] sm:$0xff] }
 0x6bf   :  { %v688_v54 = vsel %vm270_vm1, %v14469_v49, %v14474_v25  ;;  %v757_v57 = vsel %vm61_vm2, %v14471_v36, %v14473_v29  ;;  %v693_v26 = vadd.f32 %v687_v21, %v660_v32  ;;  %v661_v28 = vadd.f32 %v658_v5, %v588_v47 }
 0x6c0   :  { %v662_v3 = vadd.f32 %v659_v48, %v589_v55  ;;  %v689_v0 = vsel %vm270_vm1, %v14474_v25, %v14475_v9  ;;  %v776_v33 = vrot.slane %v758_v13, %v7839_v6  ;;  %v772_v27 = vrot.slane %v759_v34, %v7839_v6  ;;  %v14481_v55 = vld [vmem:[#allocation63_spill] sm:$0xff] }
 0x6c1   :  { %v712_v24 = vmul.f32 %v14476_v38, %v699_v14  ;;  %v713_v56 = vmul.f32 %v14476_v38, %v703_v11  ;;  %v694_v30 = vadd.f32 %v688_v54, %v661_v28  ;;  %v780_v58 = vrot.slane %v757_v57, %v7839_v6  ;;  %v14483_v14 = vld [vmem:[#allocation59_spill] sm:$0xff]  ;;  %v14484_v11 = vld [vmem:[#allocation60_spill] sm:$0xff]  ;;  %v14485_v57 = vld [vmem:[#allocation62_spill] sm:$0xff] }
 0x6c2   :  { %v768_v20 = vsel %vm71_vm3, %v14478_v17, %v14477_v43  ;;  %v714_v42 = vmul.f32 %v14476_v38, %v707_v31  ;;  %v766_v15 = vsel %vm71_vm3, %v14479_v10, %v14478_v17  ;;  %v767_v35 = vsel %vm71_vm3, %v14477_v43, %v14479_v10  ;;  %v14482_v31 = vld [vmem:[#allocation66_spill] sm:$0xff] }
 0x6c3   :  { %v785_v5 = vmul.f32 %v14480_v16, %v772_v27  ;;  %v786_v48 = vmul.f32 %v14480_v16, %v776_v33  ;;  %v695_v49 = vadd.f32 %v689_v0, %v662_v3  ;;  %v787_v18 = vmul.f32 %v14480_v16, %v780_v58  ;;  %v14486_v3 = vld [vmem:[#allocation61_spill] sm:$0xff] }
 0x6c4   :  { %v715_v21 = vadd.f32 %v712_v24, %v693_v26  ;;  %v716_v47 = vadd.f32 %v713_v56, %v694_v30  ;;  %v872_v32 = vsel %vm61_vm2, %v14482_v31, %v14481_v55  ;;  %v835_v36 = vrot.slane %v768_v20, %v7839_v6  ;;  %v14487_v33 = vld [vmem:[#allocation65_spill] sm:$0xff]  ;;  %v14488_v56 = vld [vmem:[#allocation64_spill] sm:$0xff] }
 0x6c5   :  { %v827_v19 = vrot.slane %v767_v35, %v7839_v6  ;;  %v831_v13 = vrot.slane %v766_v15, %v7839_v6  ;;  %v717_v29 = vadd.f32 %v714_v42, %v695_v49  ;;  %v815_v25 = vsel %vm46_vm0, %v14484_v11, %v14483_v14  ;;  %v14489_v15 = vld [vmem:[#allocation68_spill] sm:$0xff]  ;;  %v14490_v35 = vld [vmem:[#allocation67_spill] sm:$0xff] }
 0x6c6   :  { %v788_v34 = vadd.f32 %v785_v5, %v715_v21  ;;  %v789_v54 = vadd.f32 %v786_v48, %v716_v47  ;;  %v816_v26 = vsel %vm46_vm0, %v14483_v14, %v14485_v57  ;;  %v817_v9 = vsel %vm46_vm0, %v14485_v57, %v14486_v3  ;;  %v14491_v48 = vld [vmem:[#allocation70_spill] sm:$0xff]  ;;  %v14492_v21 = vld [vmem:[#allocation69_spill] sm:$0xff]  ;;  %v14495_v11 = vld [vmem:[#allocation52_spill] sm:$0xff] }
 0x6c7   :  { %v790_v28 = vadd.f32 %v787_v18, %v717_v29  ;;  %v885_v0 = vrot.slane %v872_v32, %v7839_v6  ;;  %v871_v27 = vsel %vm61_vm2, %v14481_v55, %v14487_v33  ;;  %v870_v24 = vsel %vm61_vm2, %v14487_v33, %v14482_v31  ;;  %v14493_v29 = vld [vmem:[#allocation77_spill] sm:$0xff] }
 0x6c8   :  { %v840_v30 = vmul.f32 %v14488_v56, %v827_v19  ;;  %v841_v58 = vmul.f32 %v14488_v56, %v831_v13  ;;  %v842_v43 = vmul.f32 %v14488_v56, %v835_v36  ;;  %v821_v17 = vadd.f32 %v815_v25, %v788_v34  ;;  %v14494_v34 = vld [vmem:[#allocation78_spill] sm:$0xff]  ;;  %v14496_v25 = vld [vmem:[#allocation71_spill] sm:$0xff]  ;;  %v14498_v33 = vld [vmem:[#allocation73_spill] sm:$0xff] }
 0x6c9   :  { %v822_v20 = vadd.f32 %v816_v26, %v789_v54  ;;  %v823_v42 = vadd.f32 %v817_v9, %v790_v28  ;;  %v889_v10 = vrot.slane %v871_v27, %v7839_v6  ;;  %v880_v5 = vsel %vm71_vm3, %v14490_v35, %v14489_v15  ;;  %v14497_v9 = vld [vmem:[#allocation54_spill] sm:$0xff] }
 0x6ca   :  { %v898_v49 = vmul.f32 %v14491_v48, %v885_v0  ;;  %v893_v18 = vrot.slane %v870_v24, %v7839_v6  ;;  %v879_v47 = vsel %vm71_vm3, %v14489_v15, %v14492_v21  ;;  %v881_v55 = vsel %vm71_vm3, %v14492_v21, %v14490_v35 }
 0x6cb   :  { %v843_v31 = vadd.f32 %v840_v30, %v821_v17  ;;  %v844_v32 = vadd.f32 %v841_v58, %v822_v20  ;;  %v899_v36 = vmul.f32 %v14491_v48, %v889_v10  ;;  %v845_v19 = vadd.f32 %v842_v43, %v823_v42  ;;  %v14499_v30 = vld [vmem:[#allocation72_spill] sm:$0xff]  ;;  %v14500_v43 = vld [vmem:[#allocation53_spill] sm:$0xff] }
 0x6cc   :  { %v917_v13 = vrot.slane %v880_v5, %v7839_v6  ;;  %v977_v14 = vsel %vm61_vm2, %v14494_v34, %v14493_v29  ;;  %v908_v54 = vmul.f32 %v14496_v25, %v14495_v11  ;;  %v900_v57 = vmul.f32 %v14491_v48, %v893_v18 }
 0x6cd   :  { %v921_v26 = vrot.slane %v879_v47, %v7839_v6  ;;  %v925_v28 = vrot.slane %v881_v55, %v7839_v6  ;;  %v901_v3 = vadd.f32 %v898_v49, %v843_v31  ;;  %v909_v0 = vmul.f32 %v14496_v25, %v14497_v9  ;;  %v8898_v47 = vpop.permute.xlu0 %1315  ;;  %v14501_v55 = vld [vmem:[#allocation74_spill] sm:$0xff]  ;;  %v14502_v31 = vld [vmem:[#allocation75_spill] sm:$0xff] }
 0x6ce   :  { %v976_v27 = vsel %vm61_vm2, %v14493_v29, %v14498_v33  ;;  %v975_v24 = vsel %vm61_vm2, %v14498_v33, %v14494_v34  ;;  %v930_v58 = vmul.f32 %v14499_v30, %v917_v13  ;;  %v910_v17 = vmul.f32 %v14496_v25, %v14500_v43  ;;  %v14505_v33 = vld [vmem:[#allocation91_spill] sm:$0xff] }
 0x6cf   :  { %v990_v20 = vrot.slane %v977_v14, %v7839_v6  ;;  %v902_v42 = vadd.f32 %v899_v36, %v844_v32  ;;  %v911_v10 = vadd.f32 %v908_v54, %v901_v3  ;;  %v931_v15 = vmul.f32 %v14499_v30, %v921_v26  ;;  %v14503_v54 = vld [vmem:[#allocation80_spill] sm:$0xff] }
 0x6d0   :  { %v903_v35 = vadd.f32 %v900_v57, %v845_v19  ;;  %v932_v5 = vmul.f32 %v14499_v30, %v925_v28  ;;  %v994_v49 = vrot.slane %v976_v27, %v7839_v6  ;;  %v998_v18 = vrot.slane %v975_v24, %v7839_v6  ;;  %v14504_v57 = vld [vmem:[#allocation81_spill] sm:$0xff] }
 0x6d1   :  { %v1003_v21 = vmul.f32 %v8383_v44, %v990_v20  ;;  %v986_v13 = vsel %vm71_vm3, %v14502_v31, %v14501_v55  ;;  %v933_v32 = vadd.f32 %v930_v58, %v911_v10  ;;  %v912_v36 = vadd.f32 %v909_v0, %v902_v42 }
 0x6d2   :  { %v913_v29 = vadd.f32 %v910_v17, %v903_v35  ;;  %v984_v19 = vsel %vm71_vm3, %v8381_v39, %v14502_v31  ;;  %v985_v34 = vsel %vm71_vm3, %v14501_v55, %v8381_v39  ;;  %v1004_v14 = vmul.f32 %v8383_v44, %v994_v49  ;;  %v14506_v39 = vld [vmem:[#allocation92_spill] sm:$0xff]  ;;  %v14507_v17 = vld [vmem:[#allocation83_spill] sm:$0xff] }
 0x6d3   :  { %v1005_v11 = vmul.f32 %v8383_v44, %v998_v18  ;;  %v1033_v26 = vsel %vm270_vm1, %v14504_v57, %v14503_v54  ;;  %v934_v28 = vadd.f32 %v931_v15, %v912_v36  ;;  %v1053_v9 = vrot.slane %v986_v13, %v7839_v6  ;;  %v1320_v18 = vpop.permute.xlu0 %1319  ;;  %v14509_v31 = vld [vmem:[#allocation84_spill] sm:$0xff] }
 0x6d4   :  { %v935_v3 = vadd.f32 %v932_v5, %v913_v29  ;;  %v1006_v0 = vadd.f32 %v1003_v21, %v933_v32  ;;  %v1104_v27 = vsel %vm61_vm2, %v14505_v33, %v8406_v45  ;;  %v1105_v24 = vsel %vm61_vm2, %v14506_v39, %v14505_v33  ;;  %v14508_v5 = vld [vmem:[#allocation82_spill] sm:$0xff] }
 0x6d5   :  { %v1045_v58 = vrot.slane %v985_v34, %v7839_v6  ;;  %v1049_v43 = vrot.slane %v984_v19, %v7839_v6  ;;  %v1034_v20 = vsel %vm270_vm1, %v14503_v54, %v14507_v17  ;;  %v1103_v42 = vsel %vm61_vm2, %v8406_v45, %v14506_v39  ;;  %v14510_v45 = vld [vmem:[#allocation85_spill] sm:$0xff]  ;;  %v14511_v19 = vld [vmem:[#allocation86_spill] sm:$0xff] }
 0x6d6   :  { %v1039_v10 = vadd.f32 %v1033_v26, %v1006_v0  ;;  %v1007_v15 = vadd.f32 %v1004_v14, %v934_v28  ;;  %v1008_v35 = vadd.f32 %v1005_v11, %v935_v3  ;;  %v1035_v49 = vsel %vm270_vm1, %v14507_v17, %v14508_v5  ;;  %v14512_v11 = vld [vmem:[#allocation93_spill] sm:$0xff]  ;;  %v14513_v26 = vld [vmem:[#allocation94_spill] sm:$0xff] }
 0x6d7   :  { %v1122_v21 = vrot.slane %v1104_v27, %v7839_v6  ;;  %v1118_v55 = vrot.slane %v1105_v24, %v7839_v6  ;;  %v1058_v13 = vmul.f32 %v14509_v31, %v1045_v58  ;;  %v1059_v32 = vmul.f32 %v14509_v31, %v1049_v43  ;;  %v1327_v17 = vpop.permute.xlu0 %1326 }
 0x6d8   :  { %v1040_v36 = vadd.f32 %v1034_v20, %v1007_v15  ;;  %v1126_v29 = vrot.slane %v1103_v42, %v7839_v6  ;;  %v1114_v34 = vsel %vm71_vm3, %v14511_v19, %v14510_v45  ;;  %v1060_v14 = vmul.f32 %v14509_v31, %v1053_v9  ;;  %v14514_v15 = vld [vmem:[#allocation99_spill] sm:$0xff] }
 0x6d9   :  { %v1112_v54 = vsel %vm71_vm3, %v14512_v11, %v14511_v19  ;;  %v1113_v57 = vsel %vm71_vm3, %v14510_v45, %v14512_v11  ;;  %v1131_v28 = vmul.f32 %v14513_v26, %v1118_v55  ;;  %v1132_v3 = vmul.f32 %v14513_v26, %v1122_v21  ;;  %v14517_v21 = vld [vmem:[#allocation96_spill] sm:$0xff] }
 0x6da   :  { %v1041_v0 = vadd.f32 %v1035_v49, %v1008_v35  ;;  %v1133_v33 = vmul.f32 %v14513_v26, %v1126_v29  ;;  %v1061_v27 = vadd.f32 %v1058_v13, %v1039_v10  ;;  %v1062_v39 = vadd.f32 %v1059_v32, %v1040_v36  ;;  %v14515_v35 = vld [vmem:[#allocation101_spill] sm:$0xff]  ;;  %v14516_v49 = vld [vmem:[#allocation95_spill] sm:$0xff]  ;;  %v14518_v13 = vld [vmem:[#allocation98_spill] sm:$0xff] }
 0x6db   :  { %v1181_v9 = vrot.slane %v1114_v34, %v7839_v6  ;;  %v1173_v24 = vrot.slane %v1113_v57, %v7839_v6  ;;  %v1177_v58 = vrot.slane %v1112_v54, %v7839_v6  ;;  %v1218_v5 = vsel %vm61_vm2, %v8483_v62, %v14514_v15  ;;  %v14519_v29 = vld [vmem:[#allocation97_spill] sm:$0xff]  ;;  %v14520_v34 = vld [vmem:[#allocation100_spill] sm:$0xff] }
 0x6dc   :  { %v1063_v43 = vadd.f32 %v1060_v14, %v1041_v0  ;;  %v1134_v20 = vadd.f32 %v1131_v28, %v1061_v27  ;;  %v1135_v42 = vadd.f32 %v1132_v3, %v1062_v39  ;;  %v1217_v10 = vsel %vm61_vm2, %v14514_v15, %v14515_v35  ;;  %v8988_v3 = vpop.permute.xlu0 %1346  ;;  %v14522_v39 = vld [vmem:[#allocation102_spill] sm:$0xff] }
 0x6dd   :  { %v1161_v55 = vsel %vm46_vm0, %v14517_v21, %v14516_v49  ;;  %v1162_v32 = vsel %vm46_vm0, %v14516_v49, %v14518_v13  ;;  %v1163_v45 = vsel %vm46_vm0, %v14518_v13, %v14519_v29  ;;  %v1216_v19 = vsel %vm61_vm2, %v14515_v35, %v8483_v62  ;;  %14521 = vst [vmem:[#allocation23_spill] sm:$0xff] %v8988_v3  ;;  %v14524_v29 = vld [vmem:[#allocation88_spill] sm:$0xff] }
 0x6de   :  { %v1136_v36 = vadd.f32 %v1133_v33, %v1063_v43  ;;  %v1186_v14 = vmul.f32 %v14520_v34, %v1173_v24  ;;  %v1187_v11 = vmul.f32 %v14520_v34, %v1177_v58  ;;  %v1188_v54 = vmul.f32 %v14520_v34, %v1181_v9  ;;  %v14523_v43 = vld [vmem:[#allocation103_spill] sm:$0xff] }
 0x6df   :  { %v1231_v57 = vrot.slane %v1218_v5, %v7839_v6  ;;  %v1235_v28 = vrot.slane %v1217_v10, %v7839_v6  ;;  %v1167_v0 = vadd.f32 %v1161_v55, %v1134_v20  ;;  %v1168_v33 = vadd.f32 %v1162_v32, %v1135_v42 }
 0x6e0   :  { %v1169_v27 = vadd.f32 %v1163_v45, %v1136_v36  ;;  %v1226_v62 = vsel %vm71_vm3, %v14522_v39, %v8487_v4  ;;  %v1239_v24 = vrot.slane %v1216_v19, %v7839_v6  ;;  %v1225_v9 = vsel %vm71_vm3, %v8487_v4, %v14523_v43  ;;  %v14525_v19 = vld [vmem:[#allocation90_spill] sm:$0xff] }
 0x6e1   :  { %v1244_v58 = vmul.f32 %v8491_v37, %v1231_v57  ;;  %v1245_v15 = vmul.f32 %v8491_v37, %v1235_v28  ;;  %v1227_v20 = vsel %vm71_vm3, %v14523_v43, %v14522_v39  ;;  %v1189_v5 = vadd.f32 %v1186_v14, %v1167_v0 }
 0x6e2   :  { %v1190_v35 = vadd.f32 %v1187_v11, %v1168_v33  ;;  %v1191_v10 = vadd.f32 %v1188_v54, %v1169_v27  ;;  %v1263_v49 = vrot.slane %v1226_v62, %v7839_v6  ;;  %v1322_v4 = vsel %vm61_vm2, %v8898_v47, %v8510_v50  ;;  %v14527_v27 = vld [vmem:[#allocation106_spill] sm:$0xff] }
 0x6e3   :  { %v1323_v21 = vsel %vm61_vm2, %v1320_v18, %v8898_v47  ;;  %v1246_v13 = vmul.f32 %v8491_v37, %v1239_v24  ;;  %v1267_v32 = vrot.slane %v1225_v9, %v7839_v6  ;;  %v1321_v36 = vsel %vm61_vm2, %v8510_v50, %v1320_v18  ;;  %v14526_v47 = vld [vmem:[#allocation89_spill] sm:$0xff] }
 0x6e4   :  { %v1254_v45 = vmul.f32 %v8493_v8, %v14524_v29  ;;  %v1255_v14 = vmul.f32 %v8493_v8, %v14525_v19  ;;  %v1271_v11 = vrot.slane %v1227_v20, %v7839_v6  ;;  %v1247_v54 = vadd.f32 %v1244_v58, %v1189_v5  ;;  %v14528_v5 = vld [vmem:[#allocation107_spill] sm:$0xff] }
 0x6e5   :  { %v1248_v57 = vadd.f32 %v1245_v15, %v1190_v35  ;;  %v1256_v28 = vmul.f32 %v8493_v8, %v14526_v47  ;;  %v1340_v0 = vrot.slane %v1322_v4, %v7839_v6  ;;  %v1336_v33 = vrot.slane %v1323_v21, %v7839_v6  ;;  %v15_v29 = vld [vmem:[%s13900_s1] sm:$0x7] }
 0x6e6   :  { %v1276_v39 = vmul.f32 %v14527_v27, %v1263_v49  ;;  %v1277_v50 = vmul.f32 %v14527_v27, %v1267_v32  ;;  %v1344_v18 = vrot.slane %v1321_v36, %v7839_v6  ;;  %v1249_v62 = vadd.f32 %v1246_v13, %v1191_v10 }
 0x6e7   :  { %v1278_v24 = vmul.f32 %v14527_v27, %v1271_v11  ;;  %v1257_v43 = vadd.f32 %v1254_v45, %v1247_v54  ;;  %v1349_v9 = vmul.f32 %v8988_v3, %v1336_v33  ;;  %v1258_v58 = vadd.f32 %v1255_v14, %v1248_v57 }
 0x6e8   :  { %v1350_v20 = vmul.f32 %v8988_v3, %v1340_v0  ;;  %v1332_v35 = vsel %vm71_vm3, %v14528_v5, %v8512_v7  ;;  %v1259_v49 = vadd.f32 %v1256_v28, %v1249_v62  ;;  %v1351_v4 = vmul.f32 %v8988_v3, %v1344_v18  ;;  %v14533_v18 = vld [vmem:[#allocation4_spill] sm:$0xff] }
 0x6e9   :  { %v1330_v10 = vsel %vm71_vm3, %v1327_v17, %v14528_v5  ;;  %v1331_v13 = vsel %vm71_vm3, %v8512_v7, %v1327_v17  ;;  %v1279_v32 = vadd.f32 %v1276_v39, %v1257_v43  ;;  %v1280_v36 = vadd.f32 %v1277_v50, %v1258_v58 }
 0x6ea   :  { %v1281_v14 = vadd.f32 %v1278_v24, %v1259_v49  ;;  %v1399_v11 = vrot.slane %v1332_v35, %v7839_v6  ;;  %v1391_v28 = vrot.slane %v1331_v13, %v7839_v6  ;;  %v1395_v7 = vrot.slane %v1330_v10, %v7839_v6 }
 0x6eb   :  { %v1352_v54 = vadd.f32 %v1349_v9, %v1279_v32  ;;  %v1353_v57 = vadd.f32 %v1350_v20, %v1280_v36  ;;  %v9054_v0 = vrot.slane %v15_v29, %v7839_v6  ;;  %v9062_v62 = vrot.slane %v15_v29, %v14533_v18  ;;  %v14535_v36 = vld [vmem:[#allocation6_spill] sm:$0xff] }
 0x6ec   :  { %v1354_v17 = vadd.f32 %v1351_v4, %v1281_v14 }
 0x6ed   :  { %14529 = vst [vmem:[#allocation25_spill] sm:$0xff] %v9054_v0  ;;  %14534 = vst [vmem:[#allocation26_spill] sm:$0xff] %v9062_v62 }
 0x703   :  { %v1372_v42 = vpop.permute.xlu1 %1371  ;;  %v1374_v55 = vpop.permute.xlu0 %1373 }
 0x704   :  { %v1379_v45 = vsel %vm270_vm1, %v1372_v42, %v1374_v55 }
 0x705   :  { %v1385_v33 = vadd.f32 %v1379_v45, %v1352_v54 }
 0x707   :  { %v1376_v15 = vpop.permute.xlu1 %1375  ;;  %v1378_v21 = vpop.permute.xlu0 %1377 }
 0x708   :  { %v1380_v19 = vsel %vm270_vm1, %v1374_v55, %v1376_v15  ;;  %v1381_v47 = vsel %vm270_vm1, %v1376_v15, %v1378_v21  ;;  %v14531_v55 = vld [vmem:[#allocation5_spill] sm:$0xff] }
 0x709   :  { %v1386_v39 = vadd.f32 %v1380_v19, %v1353_v57  ;;  %v9059_v50 = vrot.slane %v15_v29, %v14531_v55  ;;  %v1387_v24 = vadd.f32 %v1381_v47, %v1354_v17  ;;  %v14536_v19 = vld [vmem:[#allocation10_spill] sm:$0xff] }
 0x70b   :  { %14532 = vst [vmem:[#allocation27_spill] sm:$0xff] %v9059_v50 }
 0x718   :  { %v9056_v42 = vpop.permute.xlu1 %1401 }
 0x719   :  { %14530 = vst [vmem:[#allocation22_spill] sm:$0xff] %v9056_v42  ;;  %v1404_v43 = vmul.f32 %v9056_v42, %v1391_v28  ;;  %v1405_v9 = vmul.f32 %v9056_v42, %v1395_v7  ;;  %v1406_v58 = vmul.f32 %v9056_v42, %v1399_v11 }
 0x71b   :  { %v1407_v15 = vadd.f32 %v1404_v43, %v1385_v33  ;;  %v1408_v20 = vadd.f32 %v1405_v9, %v1386_v39  ;;  %v1409_v5 = vadd.f32 %v1406_v58, %v1387_v24  ;;  %v14537_v58 = vld [vmem:[#allocation17_spill] sm:$0xff] }
 0x71d   :  { %v1426_v35 = vmul.f32 %v9054_v0, %v1407_v15  ;;  %v1427_v49 = vmul.f32 %v9059_v50, %v1408_v20  ;;  %v1428_v4 = vmul.f32 %v9062_v62, %v1409_v5 }
 0x71f   :  { %v1431_v21 = vcombine.low %v1426_v35, %v1427_v49  ;;  %1434 = vst [vmem:[#allocation2 + $0xc] sm:$0xf] %v1428_v4 }
 0x721   :  { %1433 = vst [vmem:[#allocation2 + $0x4] sm:$0xff] %v1431_v21 }
 0x728   :  { %v1435_v10 = vld [vmem:[#allocation2] ss:$4 sm:$0xf]  ;;  %v1745_v49 = vld [vmem:[#allocation2 + $0x1] ss:$4 sm:$0xf] }
 0x729   :  { %v1444_v13 = vrot.slane %v1435_v10, %v14531_v55  ;;  %v1440_v32 = vrot.slane %v1435_v10, %v7839_v6  ;;  %v1452_v29 = vrot.slane %v1435_v10, %v14535_v36  ;;  %v1448_v45 = vrot.slane %v1435_v10, %v14533_v18  ;;  %v1551_v47 = vld [vmem:[#allocation2 + $0x4] ss:$4 sm:$0x7] }
 0x72a   :  { %v9087_v28 = vrot.slane %v1551_v47, %v14531_v55  ;;  %v9090_v7 = vrot.slane %v1551_v47, %v7839_v6  ;;  %v9097_v17 = vrot.slane %v1551_v47, %v14533_v18  ;;  %v1629_v33 = vld [vmem:[#allocation2 + $0x4] ss:$4 sm:$0xf]  ;;  %v9124_v4 = vrot.slane %v1745_v49, %v14531_v55 }
 0x72b   :  { %1455 = vrot.lane.b32.xlu1 %v1444_v13, %s7771_s16  ;;  %1453 = vrot.lane.b32.xlu0 %v1440_v32, %s7771_s16  ;;  %v1508_v14 = vmul.f32 %v1444_v13, %v14536_v19  ;;  %v1507_v11 = vmul.f32 %v1440_v32, %v14536_v19  ;;  %v1510_v54 = vmul.f32 %v1452_v29, %v14536_v19 }
 0x72c   :  { %v1509_v57 = vmul.f32 %v1448_v45, %v14536_v19  ;;  %v1638_v39 = vrot.slane %v1629_v33, %v14531_v55  ;;  %v1634_v24 = vrot.slane %v1629_v33, %v7839_v6  ;;  %v1646_v43 = vrot.slane %v1629_v33, %v14535_v36 }
 0x72d   :  { %v1642_v9 = vrot.slane %v1629_v33, %v14533_v18  ;;  %v1750_v21 = vrot.slane %v1745_v49, %v7839_v6  ;;  %v9131_v10 = vrot.slane %v1745_v49, %v14535_v36  ;;  %v1758_v13 = vrot.slane %v1745_v49, %v14533_v18 }
 0x72e   :  { %v1702_v15 = vmul.f32 %v1638_v39, %v14537_v58  ;;  %v1701_v20 = vmul.f32 %v1634_v24, %v14537_v58  ;;  %v1704_v5 = vmul.f32 %v1646_v43, %v14537_v58 }
 0x72f   :  { %1459 = vrot.lane.b32.xlu1 %v1452_v29, %s7771_s16  ;;  %1457 = vrot.lane.b32.xlu0 %v1448_v45, %s7771_s16  ;;  %v1703_v35 = vmul.f32 %v1642_v9, %v14537_v58 }
 0x733   :  { %1517 = vrot.lane.b32.xlu1 %v1508_v14, %s7771_s16  ;;  %1515 = vrot.lane.b32.xlu0 %v1507_v11, %s7771_s16 }
 0x737   :  { %1521 = vrot.lane.b32.xlu1 %v1510_v54, %s7771_s16  ;;  %1519 = vrot.lane.b32.xlu0 %v1509_v57, %s7771_s16 }
 0x73b   :  { %1570 = vrot.lane.b32.xlu1 %v9087_v28, %s7772_s19  ;;  %1568 = vrot.lane.b32.xlu0 %v9090_v7, %s7772_s19 }
 0x73f   :  { %1577 = vrot.lane.b32.xlu1 %v9090_v7, %s7775_s20  ;;  %1572 = vrot.lane.b32.xlu0 %v9097_v17, %s7772_s19 }
 0x743   :  { %1581 = vrot.lane.b32.xlu1 %v9097_v17, %s7775_s20  ;;  %1579 = vrot.lane.b32.xlu0 %v9087_v28, %s7775_s20 }
 0x747   :  { %1649 = vrot.lane.b32.xlu1 %v1638_v39, %s7777_s23  ;;  %1647 = vrot.lane.b32.xlu0 %v1634_v24, %s7777_s23 }
 0x74b   :  { %1653 = vrot.lane.b32.xlu1 %v1646_v43, %s7777_s23  ;;  %1651 = vrot.lane.b32.xlu0 %v1642_v9, %s7777_s23 }
 0x74f   :  { %1711 = vrot.lane.b32.xlu1 %v1702_v15, %s7777_s23  ;;  %1709 = vrot.lane.b32.xlu0 %v1701_v20, %s7777_s23 }
 0x753   :  { %1715 = vrot.lane.b32.xlu1 %v1704_v5, %s7777_s23  ;;  %1713 = vrot.lane.b32.xlu0 %v1703_v35, %s7777_s23 }
 0x757   :  { %1765 = vrot.lane.b32.xlu1 %v9124_v4, %s7771_s16  ;;  %1763 = vrot.lane.b32.xlu0 %v1750_v21, %s7771_s16 }
 0x75b   :  { %1769 = vrot.lane.b32.xlu1 %v9131_v10, %s7771_s16  ;;  %1767 = vrot.lane.b32.xlu0 %v1758_v13, %s7771_s16 }
 0x79d   :  { %v1456_v32 = vpop.permute.xlu1 %1455  ;;  %v1454_v29 = vpop.permute.xlu0 %1453 }
 0x79e   :  { %v1461_v45 = vsel %vm46_vm0, %v1454_v29, %v1456_v32 }
 0x79f   :  { %1467 = vrot.lane.b32.xlu0 %v1461_v45, %s7772_s19 }
 0x7a1   :  { %v1460_v14 = vpop.permute.xlu1 %1459  ;;  %v1458_v11 = vpop.permute.xlu0 %1457 }
 0x7a2   :  { %v1462_v54 = vsel %vm46_vm0, %v1456_v32, %v1458_v11  ;;  %v1463_v57 = vsel %vm46_vm0, %v1458_v11, %v1460_v14 }
 0x7a3   :  { %1469 = vrot.lane.b32.xlu1 %v1462_v54, %s7772_s19  ;;  %1471 = vrot.lane.b32.xlu0 %v1463_v57, %s7772_s19 }
 0x7a5   :  { %v9143_v47 = vpop.permute.xlu1 %1517  ;;  %v9145_v33 = vpop.permute.xlu0 %1515 }
 0x7a7   :  { %1476 = vrot.lane.b32.xlu1 %v1461_v45, %s7775_s20  ;;  %1478 = vrot.lane.b32.xlu0 %v1462_v54, %s7775_s20 }
 0x7a9   :  { %v9149_v39 = vpop.permute.xlu1 %1521  ;;  %v9151_v24 = vpop.permute.xlu0 %1519 }
 0x7ab   :  { %1480 = vrot.lane.b32.xlu1 %v1463_v57, %s7775_s20 }
 0x7ad   :  { %v9154_v43 = vpop.permute.xlu1 %1570  ;;  %v9156_v9 = vpop.permute.xlu0 %1568 }
 0x7b1   :  { %v9158_v15 = vpop.permute.xlu1 %1577  ;;  %v9160_v20 = vpop.permute.xlu0 %1572 }
 0x7b5   :  { %v9162_v5 = vpop.permute.xlu1 %1581  ;;  %v9164_v35 = vpop.permute.xlu0 %1579 }
 0x7b9   :  { %v1650_v49 = vpop.permute.xlu1 %1649  ;;  %v1648_v32 = vpop.permute.xlu0 %1647 }
 0x7ba   :  { %v1655_v29 = vsel %vm270_vm1, %v1648_v32, %v1650_v49 }
 0x7bb   :  { %1661 = vrot.lane.b32.xlu0 %v1655_v29, %s7772_s19 }
 0x7bd   :  { %v1654_v45 = vpop.permute.xlu1 %1653  ;;  %v1652_v14 = vpop.permute.xlu0 %1651 }
 0x7be   :  { %v1657_v11 = vsel %vm270_vm1, %v1652_v14, %v1654_v45  ;;  %v1656_v54 = vsel %vm270_vm1, %v1650_v49, %v1652_v14 }
 0x7bf   :  { %1665 = vrot.lane.b32.xlu0 %v1657_v11, %s7772_s19  ;;  %1663 = vrot.lane.b32.xlu1 %v1656_v54, %s7772_s19 }
 0x7c1   :  { %v9172_v57 = vpop.permute.xlu1 %1711  ;;  %v9174_v58 = vpop.permute.xlu0 %1709 }
 0x7c3   :  { %1672 = vrot.lane.b32.xlu0 %v1656_v54, %s7775_s20  ;;  %1670 = vrot.lane.b32.xlu1 %v1655_v29, %s7775_s20  ;;  %v14538_v29 = vld [vmem:[#allocation19_spill] sm:$0xff] }
 0x7c5   :  { %v9178_v32 = vpop.permute.xlu1 %1715  ;;  %v9180_v19 = vpop.permute.xlu0 %1713 }
 0x7c7   :  { %1674 = vrot.lane.b32.xlu1 %v1657_v11, %s7775_s20  ;;  %v1817_v11 = vmul.f32 %v1750_v21, %v14538_v29  ;;  %v1820_v21 = vmul.f32 %v9131_v10, %v14538_v29 }
 0x7c9   :  { %v1766_v45 = vpop.permute.xlu1 %1765  ;;  %v1764_v49 = vpop.permute.xlu0 %1763 }
 0x7ca   :  { %v1771_v14 = vsel %vm46_vm0, %v1764_v49, %v1766_v45  ;;  %v1819_v49 = vmul.f32 %v1758_v13, %v14538_v29  ;;  %v1939_v13 = vld [vmem:[#allocation2 + $0x5] ss:$4 sm:$0xf] }
 0x7cb   :  { %1777 = vrot.lane.b32.xlu0 %v1771_v14, %s7772_s19  ;;  %v1944_v10 = vrot.slane %v1939_v13, %v7839_v6 }
 0x7cd   :  { %v1770_v62 = vpop.permute.xlu1 %1769  ;;  %v1768_v50 = vpop.permute.xlu0 %1767 }
 0x7ce   :  { %v1773_v0 = vsel %vm46_vm0, %v1768_v50, %v1770_v62  ;;  %v1772_v54 = vsel %vm46_vm0, %v1766_v45, %v1768_v50  ;;  %v1818_v62 = vmul.f32 %v9124_v4, %v14538_v29  ;;  %v1861_v50 = vld [vmem:[#allocation2 + $0x5] ss:$4 sm:$0x7] }
 0x7cf   :  { %1781 = vrot.lane.b32.xlu0 %v1773_v0, %s7772_s19  ;;  %1779 = vrot.lane.b32.xlu1 %v1772_v54, %s7772_s19  ;;  %v9200_v45 = vrot.slane %v1861_v50, %v7839_v6  ;;  %v9211_v4 = vrot.slane %v1861_v50, %v14531_v55 }
 0x7d1   :  { %14539 = vst [vmem:[#allocation28_spill] sm:$0xff] %v9200_v45  ;;  %14541 = vst [vmem:[#allocation31_spill] sm:$0xff] %v9211_v4 }
 0x7d3   :  { %1788 = vrot.lane.b32.xlu0 %v1772_v54, %s7775_s20  ;;  %1786 = vrot.lane.b32.xlu1 %v1771_v14, %s7775_s20  ;;  %v1952_v14 = vrot.slane %v1939_v13, %v14533_v18  ;;  %v1948_v54 = vrot.slane %v1939_v13, %v14531_v55 }
 0x7d7   :  { %1825 = vrot.lane.b32.xlu0 %v1817_v11, %s7771_s16  ;;  %1790 = vrot.lane.b32.xlu1 %v1773_v0, %s7775_s20  ;;  %v9208_v0 = vrot.slane %v1861_v50, %v14533_v18  ;;  %v1956_v11 = vrot.slane %v1939_v13, %v14535_v36 }
 0x7d9   :  { %14540 = vst [vmem:[#allocation29_spill] sm:$0xff] %v9208_v0 }
 0x7db   :  { %1829 = vrot.lane.b32.xlu0 %v1819_v49, %s7771_s16  ;;  %1827 = vrot.lane.b32.xlu1 %v1818_v62, %s7771_s16 }
 0x7df   :  { %1878 = vrot.lane.b32.xlu0 %v9200_v45, %s7772_s19  ;;  %1831 = vrot.lane.b32.xlu1 %v1820_v21, %s7771_s16 }
 0x7e3   :  { %1882 = vrot.lane.b32.xlu0 %v9208_v0, %s7772_s19  ;;  %1880 = vrot.lane.b32.xlu1 %v9211_v4, %s7772_s19 }
 0x7e7   :  { %1889 = vrot.lane.b32.xlu0 %v9211_v4, %s7775_s20  ;;  %1887 = vrot.lane.b32.xlu1 %v9200_v45, %s7775_s20 }
 0x7eb   :  { %1957 = vrot.lane.b32.xlu0 %v1944_v10, %s7777_s23  ;;  %1891 = vrot.lane.b32.xlu1 %v9208_v0, %s7775_s20 }
 0x7ef   :  { %1961 = vrot.lane.b32.xlu0 %v1952_v14, %s7777_s23  ;;  %1959 = vrot.lane.b32.xlu1 %v1948_v54, %s7777_s23 }
 0x7f3   :  { %1963 = vrot.lane.b32.xlu1 %v1956_v11, %s7777_s23 }
 0x811   :  { %v9231_v49 = vpop.permute.xlu0 %1467 }
 0x815   :  { %v9233_v62 = vpop.permute.xlu1 %1469  ;;  %v9235_v50 = vpop.permute.xlu0 %1471 }
 0x819   :  { %v9237_v21 = vpop.permute.xlu1 %1476  ;;  %v9239_v29 = vpop.permute.xlu0 %1478 }
 0x81d   :  { %v9241_v42 = vpop.permute.xlu1 %1480 }
 0x82d   :  { %v9243_v3 = vpop.permute.xlu0 %1661 }
 0x831   :  { %v9245_v27 = vpop.permute.xlu1 %1663  ;;  %v9247_v8 = vpop.permute.xlu0 %1665 }
 0x835   :  { %v9249_v13 = vpop.permute.xlu1 %1670  ;;  %v9251_v37 = vpop.permute.xlu0 %1672 }
 0x839   :  { %v9253_v34 = vpop.permute.xlu1 %1674 }
 0x83d   :  { %v9255_v26 = vpop.permute.xlu0 %1777 }
 0x841   :  { %v9257_v31 = vpop.permute.xlu1 %1779  ;;  %v9259_v44 = vpop.permute.xlu0 %1781 }
 0x845   :  { %v9261_v30 = vpop.permute.xlu1 %1786  ;;  %v9263_v25 = vpop.permute.xlu0 %1788 }
 0x849   :  { %v9265_v48 = vpop.permute.xlu1 %1790  ;;  %v9267_v56 = vpop.permute.xlu0 %1825 }
 0x84a   :  { %14542 = vst [vmem:[#allocation24_spill] sm:$0xff] %v9265_v48  ;;  %14543 = vst [vmem:[#allocation30_spill] sm:$0xff] %v9267_v56 }
 0x84d   :  { %v9269_v16 = vpop.permute.xlu1 %1827  ;;  %v9271_v38 = vpop.permute.xlu0 %1829 }
 0x84e   :  { %14544 = vst [vmem:[#allocation39_spill] sm:$0xff] %v9269_v16  ;;  %14545 = vst [vmem:[#allocation40_spill] sm:$0xff] %v9271_v38 }
 0x851   :  { %v9273_v59 = vpop.permute.xlu1 %1831  ;;  %v9275_v0 = vpop.permute.xlu0 %1878 }
 0x852   :  { %14546 = vst [vmem:[#allocation7_spill] sm:$0xff] %v9273_v59  ;;  %14547 = vst [vmem:[#allocation9_spill] sm:$0xff] %v9275_v0 }
 0x855   :  { %v9277_v22 = vpop.permute.xlu1 %1880  ;;  %v9279_v4 = vpop.permute.xlu0 %1882 }
 0x856   :  { %14548 = vst [vmem:[#allocation8_spill] sm:$0xff] %v9277_v22  ;;  %14549 = vst [vmem:[#allocation35_spill] sm:$0xff] %v9279_v4 }
 0x859   :  { %v9281_v45 = vpop.permute.xlu1 %1887  ;;  %v9283_v1 = vpop.permute.xlu0 %1889 }
 0x85a   :  { %14550 = vst [vmem:[#allocation36_spill] sm:$0xff] %v9281_v45  ;;  %14551 = vst [vmem:[#allocation37_spill] sm:$0xff] %v9283_v1 }
 0x85d   :  { %v9285_v2 = vpop.permute.xlu1 %1891  ;;  %v1958_v40 = vpop.permute.xlu0 %1957 }
 0x85e   :  { %14552 = vst [vmem:[#allocation41_spill] sm:$0xff] %v9285_v2  ;;  %v14553_v2 = vld [vmem:[#allocation38_spill] sm:$0xff] }
 0x85f   :  { %v2011_v45 = vmul.f32 %v1944_v10, %v14553_v2 }
 0x861   :  { %v1960_v56 = vpop.permute.xlu1 %1959  ;;  %v1962_v48 = vpop.permute.xlu0 %1961 }
 0x862   :  { %v1965_v16 = vsel %vm270_vm1, %v1958_v40, %v1960_v56  ;;  %v1966_v38 = vsel %vm270_vm1, %v1960_v56, %v1962_v48  ;;  %v2012_v40 = vmul.f32 %v1948_v54, %v14553_v2  ;;  %v2013_v56 = vmul.f32 %v1952_v14, %v14553_v2 }
 0x863   :  { %1971 = vrot.lane.b32.xlu0 %v1965_v16, %s7772_s19  ;;  %1973 = vrot.lane.b32.xlu1 %v1966_v38, %s7772_s19 }
 0x865   :  { %v1964_v59 = vpop.permute.xlu1 %1963 }
 0x866   :  { %v1967_v22 = vsel %vm270_vm1, %v1962_v48, %v1964_v59  ;;  %v2014_v59 = vmul.f32 %v1956_v11, %v14553_v2  ;;  %v2055_v48 = vld [vmem:[#allocation2 + $0x2] ss:$4 sm:$0xf] }
 0x867   :  { %1975 = vrot.lane.b32.xlu0 %v1967_v22, %s7772_s19  ;;  %1980 = vrot.lane.b32.xlu1 %v1965_v16, %s7775_s20  ;;  %v2068_v16 = vrot.slane %v2055_v48, %v14533_v18 }
 0x86b   :  { %1982 = vrot.lane.b32.xlu0 %v1966_v38, %s7775_s20  ;;  %1984 = vrot.lane.b32.xlu1 %v1967_v22, %s7775_s20  ;;  %v2060_v38 = vrot.slane %v2055_v48, %v7839_v6  ;;  %v2064_v22 = vrot.slane %v2055_v48, %v14531_v55 }
 0x86f   :  { %2019 = vrot.lane.b32.xlu0 %v2011_v45, %s7777_s23  ;;  %2021 = vrot.lane.b32.xlu1 %v2012_v40, %s7777_s23  ;;  %v2072_v45 = vrot.slane %v2055_v48, %v14535_v36 }
 0x873   :  { %2023 = vrot.lane.b32.xlu0 %v2013_v56, %s7777_s23  ;;  %2025 = vrot.lane.b32.xlu1 %v2014_v59, %s7777_s23 }
 0x877   :  { %2073 = vrot.lane.b32.xlu0 %v2060_v38, %s7771_s16  ;;  %2075 = vrot.lane.b32.xlu1 %v2064_v22, %s7771_s16 }
 0x87b   :  { %2077 = vrot.lane.b32.xlu0 %v2068_v16, %s7771_s16  ;;  %2079 = vrot.lane.b32.xlu1 %v2072_v45, %s7771_s16 }
 0x8d5   :  { %v9312_v10 = vpop.permute.xlu1 %1973  ;;  %v9314_v14 = vpop.permute.xlu0 %1971 }
 0x8d6   :  { %14554 = vst [vmem:[#allocation43_spill] sm:$0xff] %v9312_v10  ;;  %14555 = vst [vmem:[#allocation44_spill] sm:$0xff] %v9314_v14 }
 0x8d9   :  { %v9316_v54 = vpop.permute.xlu1 %1980  ;;  %v9318_v11 = vpop.permute.xlu0 %1975 }
 0x8da   :  { %14556 = vst [vmem:[#allocation48_spill] sm:$0xff] %v9316_v54  ;;  %14557 = vst [vmem:[#allocation55_spill] sm:$0xff] %v9318_v11 }
 0x8dd   :  { %v9320_v40 = vpop.permute.xlu1 %1984  ;;  %v9322_v56 = vpop.permute.xlu0 %1982 }
 0x8de   :  { %14558 = vst [vmem:[#allocation56_spill] sm:$0xff] %v9320_v40  ;;  %14559 = vst [vmem:[#allocation46_spill] sm:$0xff] %v9322_v56 }
 0x8e1   :  { %v9324_v59 = vpop.permute.xlu1 %2021  ;;  %v9326_v2 = vpop.permute.xlu0 %2019 }
 0x8e2   :  { %14560 = vst [vmem:[#allocation45_spill] sm:$0xff] %v9324_v59  ;;  %14561 = vst [vmem:[#allocation49_spill] sm:$0xff] %v9326_v2  ;;  %v2171_v2 = vld [vmem:[#allocation2 + $0x6] ss:$4 sm:$0x7] }
 0x8e5   :  { %v9328_v48 = vpop.permute.xlu1 %2025  ;;  %v9330_v1 = vpop.permute.xlu0 %2023 }
 0x8e6   :  { %14562 = vst [vmem:[#allocation50_spill] sm:$0xff] %v9328_v48  ;;  %14563 = vst [vmem:[#allocation57_spill] sm:$0xff] %v9330_v1  ;;  %v14564_v48 = vld [vmem:[#allocation51_spill] sm:$0xff] }
 0x8e7   :  { %v2127_v1 = vmul.f32 %v2060_v38, %v14564_v48  ;;  %v9358_v38 = vrot.slane %v2171_v2, %v14531_v55 }
 0x8e9   :  { %v2076_v4 = vpop.permute.xlu1 %2075  ;;  %v2074_v10 = vpop.permute.xlu0 %2073  ;;  %14567 = vst [vmem:[#allocation59_spill] sm:$0xff] %v9358_v38 }
 0x8ea   :  { %v2081_v14 = vsel %vm46_vm0, %v2074_v10, %v2076_v4  ;;  %v2129_v10 = vmul.f32 %v2068_v16, %v14564_v48 }
 0x8eb   :  { %2087 = vrot.lane.b32.xlu0 %v2081_v14, %s7772_s19 }
 0x8ed   :  { %v2080_v54 = vpop.permute.xlu1 %2079  ;;  %v2078_v11 = vpop.permute.xlu0 %2077 }
 0x8ee   :  { %v2083_v40 = vsel %vm46_vm0, %v2078_v11, %v2080_v54  ;;  %v2082_v56 = vsel %vm46_vm0, %v2076_v4, %v2078_v11  ;;  %v2128_v54 = vmul.f32 %v2064_v22, %v14564_v48  ;;  %v9348_v4 = vrot.slane %v2171_v2, %v7839_v6  ;;  %v2249_v22 = vld [vmem:[#allocation2 + $0x6] ss:$4 sm:$0xf] }
 0x8ef   :  { %2091 = vrot.lane.b32.xlu0 %v2083_v40, %s7772_s19  ;;  %2089 = vrot.lane.b32.xlu1 %v2082_v56, %s7772_s19  ;;  %v2254_v16 = vrot.slane %v2249_v22, %v7839_v6  ;;  %v2266_v11 = vrot.slane %v2249_v22, %v14535_v36 }
 0x8f0   :  { %14565 = vst [vmem:[#allocation63_spill] sm:$0xff] %v9348_v4 }
 0x8f3   :  { %2098 = vrot.lane.b32.xlu0 %v2082_v56, %s7775_s20  ;;  %2096 = vrot.lane.b32.xlu1 %v2081_v14, %s7775_s20  ;;  %v2130_v14 = vmul.f32 %v2072_v45, %v14564_v48  ;;  %v2258_v45 = vrot.slane %v2249_v22, %v14531_v55 }
 0x8f7   :  { %2135 = vrot.lane.b32.xlu0 %v2127_v1, %s7771_s16  ;;  %2100 = vrot.lane.b32.xlu1 %v2083_v40, %s7775_s20  ;;  %v9355_v1 = vrot.slane %v2171_v2, %v14533_v18  ;;  %v2262_v2 = vrot.slane %v2249_v22, %v14533_v18 }
 0x8f9   :  { %14566 = vst [vmem:[#allocation66_spill] sm:$0xff] %v9355_v1 }
 0x8fb   :  { %2139 = vrot.lane.b32.xlu0 %v2129_v10, %s7771_s16  ;;  %2137 = vrot.lane.b32.xlu1 %v2128_v54, %s7771_s16 }
 0x8ff   :  { %2188 = vrot.lane.b32.xlu0 %v9348_v4, %s7772_s19  ;;  %2141 = vrot.lane.b32.xlu1 %v2130_v14, %s7771_s16 }
 0x903   :  { %2192 = vrot.lane.b32.xlu0 %v9355_v1, %s7772_s19  ;;  %2190 = vrot.lane.b32.xlu1 %v9358_v38, %s7772_s19 }
 0x907   :  { %2199 = vrot.lane.b32.xlu0 %v9358_v38, %s7775_s20  ;;  %2197 = vrot.lane.b32.xlu1 %v9348_v4, %s7775_s20 }
 0x90b   :  { %2267 = vrot.lane.b32.xlu0 %v2254_v16, %s7777_s23  ;;  %2201 = vrot.lane.b32.xlu1 %v9355_v1, %s7775_s20 }
 0x90f   :  { %2271 = vrot.lane.b32.xlu0 %v2262_v2, %s7777_s23  ;;  %2269 = vrot.lane.b32.xlu1 %v2258_v45, %s7777_s23 }
 0x913   :  { %2273 = vrot.lane.b32.xlu1 %v2266_v11, %s7777_s23 }
 0x95d   :  { %v9378_v40 = vpop.permute.xlu0 %2087 }
 0x95e   :  { %14568 = vst [vmem:[#allocation60_spill] sm:$0xff] %v9378_v40 }
 0x961   :  { %v9380_v56 = vpop.permute.xlu1 %2089  ;;  %v9382_v10 = vpop.permute.xlu0 %2091 }
 0x962   :  { %14569 = vst [vmem:[#allocation62_spill] sm:$0xff] %v9380_v56  ;;  %14570 = vst [vmem:[#allocation61_spill] sm:$0xff] %v9382_v10 }
 0x965   :  { %v9384_v54 = vpop.permute.xlu1 %2096  ;;  %v9386_v14 = vpop.permute.xlu0 %2098 }
 0x966   :  { %14571 = vst [vmem:[#allocation65_spill] sm:$0xff] %v9384_v54  ;;  %14572 = vst [vmem:[#allocation68_spill] sm:$0xff] %v9386_v14 }
 0x969   :  { %v9388_v48 = vpop.permute.xlu1 %2100  ;;  %v9390_v1 = vpop.permute.xlu0 %2135 }
 0x96a   :  { %14573 = vst [vmem:[#allocation67_spill] sm:$0xff] %v9388_v48  ;;  %14574 = vst [vmem:[#allocation69_spill] sm:$0xff] %v9390_v1 }
 0x96d   :  { %v9392_v38 = vpop.permute.xlu1 %2137  ;;  %v9394_v4 = vpop.permute.xlu0 %2139 }
 0x96e   :  { %14575 = vst [vmem:[#allocation77_spill] sm:$0xff] %v9392_v38  ;;  %14576 = vst [vmem:[#allocation78_spill] sm:$0xff] %v9394_v4 }
 0x971   :  { %v9396_v22 = vpop.permute.xlu1 %2141  ;;  %v9398_v59 = vpop.permute.xlu0 %2188 }
 0x972   :  { %14577 = vst [vmem:[#allocation52_spill] sm:$0xff] %v9396_v22 }
 0x975   :  { %v9400_v40 = vpop.permute.xlu1 %2190  ;;  %v9402_v56 = vpop.permute.xlu0 %2192 }
 0x976   :  { %14578 = vst [vmem:[#allocation54_spill] sm:$0xff] %v9400_v40  ;;  %14579 = vst [vmem:[#allocation73_spill] sm:$0xff] %v9402_v56 }
 0x979   :  { %v9404_v10 = vpop.permute.xlu1 %2197  ;;  %v9406_v54 = vpop.permute.xlu0 %2199 }
 0x97a   :  { %14580 = vst [vmem:[#allocation53_spill] sm:$0xff] %v9404_v10  ;;  %14581 = vst [vmem:[#allocation74_spill] sm:$0xff] %v9406_v54 }
 0x97d   :  { %v9408_v14 = vpop.permute.xlu1 %2201  ;;  %v2268_v48 = vpop.permute.xlu0 %2267 }
 0x97e   :  { %14582 = vst [vmem:[#allocation75_spill] sm:$0xff] %v9408_v14  ;;  %v14583_v14 = vld [vmem:[#allocation76_spill] sm:$0xff] }
 0x97f   :  { %v2321_v10 = vmul.f32 %v2254_v16, %v14583_v14 }
 0x981   :  { %v2270_v1 = vpop.permute.xlu1 %2269  ;;  %v2272_v0 = vpop.permute.xlu0 %2271 }
 0x982   :  { %v2275_v38 = vsel %vm270_vm1, %v2268_v48, %v2270_v1  ;;  %v2276_v4 = vsel %vm270_vm1, %v2270_v1, %v2272_v0  ;;  %v2322_v48 = vmul.f32 %v2258_v45, %v14583_v14  ;;  %v2323_v1 = vmul.f32 %v2262_v2, %v14583_v14 }
 0x983   :  { %2281 = vrot.lane.b32.xlu0 %v2275_v38, %s7772_s19  ;;  %2283 = vrot.lane.b32.xlu1 %v2276_v4, %s7772_s19 }
 0x985   :  { %v2274_v22 = vpop.permute.xlu1 %2273 }
 0x986   :  { %v2277_v40 = vsel %vm270_vm1, %v2272_v0, %v2274_v22  ;;  %v2324_v0 = vmul.f32 %v2266_v11, %v14583_v14  ;;  %v2365_v22 = vld [vmem:[#allocation2 + $0x3] ss:$4 sm:$0xf] }
 0x987   :  { %2285 = vrot.lane.b32.xlu0 %v2277_v40, %s7772_s19  ;;  %2290 = vrot.lane.b32.xlu1 %v2275_v38, %s7775_s20  ;;  %v2374_v38 = vrot.slane %v2365_v22, %v14531_v55  ;;  %v2378_v16 = vrot.slane %v2365_v22, %v14533_v18  ;;  %v2382_v45 = vrot.slane %v2365_v22, %v14535_v36 }
 0x98b   :  { %2292 = vrot.lane.b32.xlu0 %v2276_v4, %s7775_s20  ;;  %2294 = vrot.lane.b32.xlu1 %v2277_v40, %s7775_s20  ;;  %v2370_v4 = vrot.slane %v2365_v22, %v7839_v6 }
 0x98f   :  { %2329 = vrot.lane.b32.xlu0 %v2321_v10, %s7777_s23  ;;  %2331 = vrot.lane.b32.xlu1 %v2322_v48, %s7777_s23 }
 0x993   :  { %2333 = vrot.lane.b32.xlu0 %v2323_v1, %s7777_s23  ;;  %2335 = vrot.lane.b32.xlu1 %v2324_v0, %s7777_s23 }
 0x997   :  { %2383 = vrot.lane.b32.xlu0 %v2370_v4, %s7771_s16  ;;  %2385 = vrot.lane.b32.xlu1 %v2374_v38, %s7771_s16 }
 0x99b   :  { %2387 = vrot.lane.b32.xlu0 %v2378_v16, %s7771_s16  ;;  %2389 = vrot.lane.b32.xlu1 %v2382_v45, %s7771_s16 }
 0x9f5   :  { %v9435_v2 = vpop.permute.xlu1 %2283  ;;  %v9437_v11 = vpop.permute.xlu0 %2281 }
 0x9f6   :  { %14584 = vst [vmem:[#allocation80_spill] sm:$0xff] %v9435_v2  ;;  %14585 = vst [vmem:[#allocation81_spill] sm:$0xff] %v9437_v11 }
 0x9f9   :  { %v9439_v40 = vpop.permute.xlu1 %2290  ;;  %v9441_v10 = vpop.permute.xlu0 %2285 }
 0x9fa   :  { %14586 = vst [vmem:[#allocation91_spill] sm:$0xff] %v9439_v40  ;;  %14587 = vst [vmem:[#allocation92_spill] sm:$0xff] %v9441_v10 }
 0x9fd   :  { %v9443_v48 = vpop.permute.xlu1 %2294  ;;  %v9445_v1 = vpop.permute.xlu0 %2292 }
 0x9fe   :  { %14588 = vst [vmem:[#allocation83_spill] sm:$0xff] %v9443_v48  ;;  %14589 = vst [vmem:[#allocation82_spill] sm:$0xff] %v9445_v1 }
 0xa01   :  { %v9447_v0 = vpop.permute.xlu1 %2331  ;;  %v9449_v14 = vpop.permute.xlu0 %2329 }
 0xa02   :  { %14590 = vst [vmem:[#allocation85_spill] sm:$0xff] %v9447_v0  ;;  %14591 = vst [vmem:[#allocation86_spill] sm:$0xff] %v9449_v14  ;;  %v2481_v14 = vld [vmem:[#allocation2 + $0x7] ss:$4 sm:$0x7] }
 0xa05   :  { %v9451_v22 = vpop.permute.xlu1 %2335  ;;  %v9453_v54 = vpop.permute.xlu0 %2333 }
 0xa06   :  { %14592 = vst [vmem:[#allocation93_spill] sm:$0xff] %v9451_v22  ;;  %14593 = vst [vmem:[#allocation99_spill] sm:$0xff] %v9453_v54  ;;  %v14594_v22 = vld [vmem:[#allocation87_spill] sm:$0xff] }
 0xa07   :  { %v2437_v54 = vmul.f32 %v2370_v4, %v14594_v22  ;;  %v9481_v4 = vrot.slane %v2481_v14, %v14531_v55 }
 0xa09   :  { %v2386_v56 = vpop.permute.xlu1 %2385  ;;  %v2384_v2 = vpop.permute.xlu0 %2383  ;;  %14597 = vst [vmem:[#allocation96_spill] sm:$0xff] %v9481_v4 }
 0xa0a   :  { %v2391_v11 = vsel %vm46_vm0, %v2384_v2, %v2386_v56  ;;  %v2439_v2 = vmul.f32 %v2378_v16, %v14594_v22 }
 0xa0b   :  { %2397 = vrot.lane.b32.xlu0 %v2391_v11, %s7772_s19 }
 0xa0d   :  { %v2390_v40 = vpop.permute.xlu1 %2389  ;;  %v2388_v10 = vpop.permute.xlu0 %2387 }
 0xa0e   :  { %v2393_v48 = vsel %vm46_vm0, %v2388_v10, %v2390_v40  ;;  %v2392_v1 = vsel %vm46_vm0, %v2386_v56, %v2388_v10  ;;  %v2438_v40 = vmul.f32 %v2374_v38, %v14594_v22  ;;  %v9471_v56 = vrot.slane %v2481_v14, %v7839_v6  ;;  %v2559_v38 = vld [vmem:[#allocation2 + $0x7] ss:$4 sm:$0xf] }
 0xa0f   :  { %2401 = vrot.lane.b32.xlu0 %v2393_v48, %s7772_s19  ;;  %2399 = vrot.lane.b32.xlu1 %v2392_v1, %s7772_s19  ;;  %v2564_v16 = vrot.slane %v2559_v38, %v7839_v6  ;;  %v2576_v10 = vrot.slane %v2559_v38, %v14535_v36 }
 0xa10   :  { %14595 = vst [vmem:[#allocation101_spill] sm:$0xff] %v9471_v56 }
 0xa13   :  { %2408 = vrot.lane.b32.xlu0 %v2392_v1, %s7775_s20  ;;  %2406 = vrot.lane.b32.xlu1 %v2391_v11, %s7775_s20  ;;  %v2440_v11 = vmul.f32 %v2382_v45, %v14594_v22  ;;  %v2568_v45 = vrot.slane %v2559_v38, %v14531_v55 }
 0xa17   :  { %2445 = vrot.lane.b32.xlu0 %v2437_v54, %s7771_s16  ;;  %2410 = vrot.lane.b32.xlu1 %v2393_v48, %s7775_s20  ;;  %v9478_v54 = vrot.slane %v2481_v14, %v14533_v18  ;;  %v2572_v14 = vrot.slane %v2559_v38, %v14533_v18 }
 0xa19   :  { %14596 = vst [vmem:[#allocation95_spill] sm:$0xff] %v9478_v54 }
 0xa1b   :  { %2449 = vrot.lane.b32.xlu0 %v2439_v2, %s7771_s16  ;;  %2447 = vrot.lane.b32.xlu1 %v2438_v40, %s7771_s16 }
 0xa1f   :  { %2498 = vrot.lane.b32.xlu0 %v9471_v56, %s7772_s19  ;;  %2451 = vrot.lane.b32.xlu1 %v2440_v11, %s7771_s16 }
 0xa23   :  { %2502 = vrot.lane.b32.xlu0 %v9478_v54, %s7772_s19  ;;  %2500 = vrot.lane.b32.xlu1 %v9481_v4, %s7772_s19 }
 0xa27   :  { %2509 = vrot.lane.b32.xlu0 %v9481_v4, %s7775_s20  ;;  %2507 = vrot.lane.b32.xlu1 %v9471_v56, %s7775_s20 }
 0xa2b   :  { %2577 = vrot.lane.b32.xlu0 %v2564_v16, %s7777_s23  ;;  %2511 = vrot.lane.b32.xlu1 %v9478_v54, %s7775_s20 }
 0xa2f   :  { %2581 = vrot.lane.b32.xlu0 %v2572_v14, %s7777_s23  ;;  %2579 = vrot.lane.b32.xlu1 %v2568_v45, %s7777_s23 }
 0xa33   :  { %2583 = vrot.lane.b32.xlu1 %v2576_v10, %s7777_s23 }
 0xa7d   :  { %v9501_v48 = vpop.permute.xlu0 %2397 }
 0xa81   :  { %v9503_v1 = vpop.permute.xlu1 %2399  ;;  %v9505_v2 = vpop.permute.xlu0 %2401 }
 0xa82   :  { %14598 = vst [vmem:[#allocation98_spill] sm:$0xff] %v9503_v1 }
 0xa85   :  { %v9507_v40 = vpop.permute.xlu1 %2406  ;;  %v9509_v11 = vpop.permute.xlu0 %2408 }
 0xa86   :  { %14599 = vst [vmem:[#allocation97_spill] sm:$0xff] %v9507_v40  ;;  %14600 = vst [vmem:[#allocation102_spill] sm:$0xff] %v9509_v11 }
 0xa89   :  { %v9511_v22 = vpop.permute.xlu1 %2410  ;;  %v9513_v18 = vpop.permute.xlu0 %2445 }
 0xa8a   :  { %14601 = vst [vmem:[#allocation103_spill] sm:$0xff] %v9511_v22  ;;  %14602 = vst [vmem:[#allocation88_spill] sm:$0xff] %v9513_v18 }
 0xa8d   :  { %v9515_v55 = vpop.permute.xlu1 %2447  ;;  %v9517_v4 = vpop.permute.xlu0 %2449 }
 0xa8e   :  { %14603 = vst [vmem:[#allocation90_spill] sm:$0xff] %v9515_v55  ;;  %14604 = vst [vmem:[#allocation89_spill] sm:$0xff] %v9517_v4 }
 0xa91   :  { %v9519_v38 = vpop.permute.xlu1 %2451  ;;  %v9521_v36 = vpop.permute.xlu0 %2498 }
 0xa92   :  { %14605 = vst [vmem:[#allocation107_spill] sm:$0xff] %v9519_v38 }
 0xa95   :  { %v9523_v54 = vpop.permute.xlu1 %2500  ;;  %v9525_v56 = vpop.permute.xlu0 %2502 }
 0xa96   :  { %14606 = vst [vmem:[#allocation109_spill] sm:$0xff] %v9523_v54 }
 0xa99   :  { %v9527_v1 = vpop.permute.xlu1 %2507  ;;  %v9529_v40 = vpop.permute.xlu0 %2509 }
 0xa9d   :  { %v9531_v11 = vpop.permute.xlu1 %2511  ;;  %v2578_v22 = vpop.permute.xlu0 %2577 }
 0xa9e   :  { %14607 = vst [vmem:[#allocation110_spill] sm:$0xff] %v9531_v11  ;;  %v2631_v11 = vmul.f32 %v2564_v16, %v8516_v41 }
 0xaa1   :  { %v2580_v18 = vpop.permute.xlu1 %2579  ;;  %v2582_v0 = vpop.permute.xlu0 %2581 }
 0xaa2   :  { %v2585_v55 = vsel %vm270_vm1, %v2578_v22, %v2580_v18  ;;  %v2586_v4 = vsel %vm270_vm1, %v2580_v18, %v2582_v0  ;;  %v2632_v22 = vmul.f32 %v2568_v45, %v8516_v41  ;;  %v2633_v18 = vmul.f32 %v2572_v14, %v8516_v41 }
 0xaa3   :  { %2591 = vrot.lane.b32.xlu0 %v2585_v55, %s7772_s19  ;;  %2593 = vrot.lane.b32.xlu1 %v2586_v4, %s7772_s19  ;;  %v1473_v14 = vsel %vm61_vm2, %v9233_v62, %v9235_v50 }
 0xaa5   :  { %v2584_v38 = vpop.permute.xlu1 %2583 }
 0xaa6   :  { %v2587_v54 = vsel %vm270_vm1, %v2582_v0, %v2584_v38  ;;  %v2634_v0 = vmul.f32 %v2576_v10, %v8516_v41  ;;  %v1482_v10 = vsel %vm71_vm3, %v9239_v29, %v9241_v42  ;;  %v1496_v38 = vrot.slane %v1473_v14, %v7839_v6 }
 0xaa7   :  { %2595 = vrot.lane.b32.xlu0 %v2587_v54, %s7772_s19  ;;  %2600 = vrot.lane.b32.xlu1 %v2585_v55, %s7775_s20  ;;  %v1475_v55 = vsel %vm61_vm2, %v9235_v50, %v9231_v49  ;;  %v1539_v50 = vrot.slane %v1482_v10, %v7839_v6  ;;  %v1525_v10 = vsel %vm46_vm0, %v9151_v24, %v9149_v39 }
 0xaa8   :  { %v1488_v16 = vrot.slane %v1475_v55, %v7839_v6  ;;  %v1574_v55 = vsel %vm61_vm2, %v9154_v43, %v9160_v20 }
 0xaa9   :  { %v1545_v14 = vmul.f32 %v1539_v50, %v7978_v52  ;;  %v1604_v50 = vmul.f32 %v9090_v7, %v7995_v60  ;;  %v1668_v7 = vsel %vm61_vm2, %v9243_v3, %v9245_v27 }
 0xaab   :  { %2602 = vrot.lane.b32.xlu0 %v2586_v4, %s7775_s20  ;;  %2604 = vrot.lane.b32.xlu1 %v2587_v54, %s7775_s20  ;;  %v1483_v54 = vsel %vm71_vm3, %v9237_v21, %v9239_v29  ;;  %v1474_v4 = vsel %vm61_vm2, %v9231_v49, %v9233_v62  ;;  %v1484_v49 = vsel %vm71_vm3, %v9241_v42, %v9237_v21 }
 0xaac   :  { %v1535_v45 = vrot.slane %v1483_v54, %v7839_v6  ;;  %v1576_v62 = vsel %vm61_vm2, %v9160_v20, %v9156_v9  ;;  %v1575_v42 = vsel %vm61_vm2, %v9156_v9, %v9154_v43  ;;  %v1597_v20 = vrot.slane %v1574_v55, %v7839_v6 }
 0xaad   :  { %v1589_v54 = vrot.slane %v1576_v62, %v7839_v6  ;;  %v1593_v43 = vrot.slane %v1575_v42, %v7839_v6  ;;  %v1669_v62 = vsel %vm61_vm2, %v9247_v8, %v9243_v3  ;;  %v1583_v42 = vsel %vm71_vm3, %v9164_v35, %v9162_v5 }
 0xaae   :  { %v1544_v29 = vmul.f32 %v1535_v45, %v7978_v52  ;;  %v1682_v55 = vrot.slane %v1669_v62, %v7839_v6  ;;  %v1606_v3 = vmul.f32 %v9097_v17, %v7995_v60 }
 0xaaf   :  { %2639 = vrot.lane.b32.xlu0 %v2631_v11, %s7777_s23  ;;  %2641 = vrot.lane.b32.xlu1 %v2632_v22, %s7777_s23  ;;  %v1492_v11 = vrot.slane %v1474_v4, %v7839_v6  ;;  %v1497_v22 = vmul.f32 %v1488_v16, %v7981_v53  ;;  %v1499_v4 = vmul.f32 %v1496_v38, %v7981_v53 }
 0xab1   :  { %v1498_v21 = vmul.f32 %v1492_v11, %v7981_v53  ;;  %v1531_v38 = vadd.f32 %v1525_v10, %v1499_v4 }
 0xab3   :  { %2643 = vrot.lane.b32.xlu0 %v2633_v18, %s7777_s23  ;;  %2645 = vrot.lane.b32.xlu1 %v2634_v0, %s7777_s23  ;;  %v1543_v18 = vrot.slane %v1484_v49, %v7839_v6  ;;  %v1523_v0 = vsel %vm46_vm0, %v9145_v33, %v9143_v47  ;;  %v1524_v33 = vsel %vm46_vm0, %v9143_v47, %v9151_v24 }
 0xab4   :  { %v1529_v16 = vadd.f32 %v1523_v0, %v1497_v22  ;;  %v1530_v11 = vadd.f32 %v1524_v33, %v1498_v21  ;;  %v1598_v49 = vmul.f32 %v1589_v54, %v7997_v61  ;;  %v1584_v47 = vsel %vm71_vm3, %v9158_v15, %v9164_v35 }
 0xab5   :  { %v1546_v9 = vmul.f32 %v1543_v18, %v7978_v52  ;;  %v1600_v18 = vmul.f32 %v1597_v20, %v7997_v61  ;;  %v1585_v0 = vsel %vm71_vm3, %v9162_v5, %v9158_v15  ;;  %v1613_v21 = vrot.slane %v1584_v47, %v7839_v6 }
 0xab6   :  { %v1547_v45 = vadd.f32 %v1544_v29, %v1529_v16  ;;  %v1548_v22 = vadd.f32 %v1545_v14, %v1530_v11  ;;  %v1599_v29 = vmul.f32 %v1593_v43, %v7997_v61  ;;  %v1667_v15 = vsel %vm61_vm2, %v9245_v27, %v9247_v8 }
 0xab7   :  { %v1549_v24 = vadd.f32 %v1546_v9, %v1531_v38  ;;  %v1605_v5 = vmul.f32 %v9087_v28, %v7995_v60  ;;  %v1621_v35 = vrot.slane %v1585_v0, %v7839_v6  ;;  %v1617_v14 = vrot.slane %v1583_v42, %v7839_v6 }
 0xab8   :  { %v1601_v39 = vadd.f32 %v1598_v49, %v1547_v45  ;;  %v1602_v54 = vadd.f32 %v1599_v29, %v1548_v22  ;;  %v1686_v33 = vrot.slane %v1668_v7, %v7839_v6  ;;  %v1622_v45 = vmul.f32 %v1613_v21, %v7999_v63 }
 0xab9   :  { %v1603_v4 = vadd.f32 %v1600_v18, %v1549_v24  ;;  %v1690_v9 = vrot.slane %v1667_v15, %v7839_v6  ;;  %v1691_v8 = vmul.f32 %v1682_v55, %v8005_v12  ;;  %v1677_v28 = vsel %vm71_vm3, %v9249_v13, %v9251_v37 }
 0xaba   :  { %v1607_v16 = vadd.f32 %v1604_v50, %v1601_v39  ;;  %v1608_v27 = vadd.f32 %v1605_v5, %v1602_v54  ;;  %v1676_v20 = vsel %vm71_vm3, %v9251_v37, %v9253_v34  ;;  %v1624_v17 = vmul.f32 %v1621_v35, %v7999_v63  ;;  %v14608_v35 = vld [vmem:[#allocation9_spill] sm:$0xff] }
 0xabb   :  { %v1609_v10 = vadd.f32 %v1606_v3, %v1603_v4  ;;  %v1623_v11 = vmul.f32 %v1617_v14, %v7999_v63  ;;  %v1692_v49 = vmul.f32 %v1686_v33, %v8005_v12  ;;  %v1785_v38 = vsel %vm61_vm2, %v9259_v44, %v9255_v26  ;;  %v14609_v14 = vld [vmem:[#allocation35_spill] sm:$0xff]  ;;  %v14610_v3 = vld [vmem:[#allocation24_spill] sm:$0xff] }
 0xabc   :  { %v1625_v43 = vadd.f32 %v1622_v45, %v1607_v16  ;;  %v1693_v47 = vmul.f32 %v1690_v9, %v8005_v12  ;;  %v1729_v62 = vrot.slane %v1677_v28, %v7839_v6  ;;  %v1678_v37 = vsel %vm71_vm3, %v9253_v34, %v9249_v13  ;;  %v14612_v28 = vld [vmem:[#allocation30_spill] sm:$0xff] }
 0xabd   :  { %v1626_v39 = vadd.f32 %v1623_v11, %v1608_v27  ;;  %v1733_v24 = vrot.slane %v1676_v20, %v7839_v6  ;;  %v1784_v50 = vsel %vm61_vm2, %v9255_v26, %v9257_v31  ;;  %v1627_v29 = vadd.f32 %v1624_v17, %v1609_v10  ;;  %v14613_v11 = vld [vmem:[#allocation8_spill] sm:$0xff] }
 0xabe   :  { %v1694_v22 = vadd.f32 %v1691_v8, %v1625_v43  ;;  %v1783_v18 = vsel %vm61_vm2, %v9257_v31, %v9259_v44  ;;  %v1798_v0 = vrot.slane %v1785_v38, %v7839_v6  ;;  %v1717_v34 = vsel %vm270_vm1, %v9174_v58, %v9172_v57 }
 0xabf   :  { %v1695_v13 = vadd.f32 %v1692_v49, %v1626_v39  ;;  %v1737_v42 = vrot.slane %v1678_v37, %v7839_v6  ;;  %v1696_v21 = vadd.f32 %v1693_v47, %v1627_v29  ;;  %v1738_v7 = vmul.f32 %v1729_v62, %v8014_v23  ;;  %v14614_v47 = vld [vmem:[#allocation40_spill] sm:$0xff]  ;;  %v14615_v29 = vld [vmem:[#allocation7_spill] sm:$0xff] }
 0xac0   :  { %v1802_v26 = vrot.slane %v1784_v50, %v7839_v6  ;;  %v1723_v55 = vadd.f32 %v1717_v34, %v1694_v22  ;;  %v1739_v54 = vmul.f32 %v1733_v24, %v8014_v23  ;;  %v1806_v15 = vrot.slane %v1783_v18, %v7839_v6  ;;  %v14616_v34 = vld [vmem:[#allocation20_spill] sm:$0xff] }
 0xac1   :  { %v1718_v44 = vsel %vm270_vm1, %v9172_v57, %v9180_v19  ;;  %v1807_v31 = vmul.f32 %v1798_v0, %v8095_v51  ;;  %v1793_v58 = vsel %vm71_vm3, %v9261_v30, %v9263_v25  ;;  %v1719_v4 = vsel %vm270_vm1, %v9180_v19, %v9178_v32  ;;  %v14611_v32 = vld [vmem:[#allocation39_spill] sm:$0xff] }
 0xac2   :  { %v1740_v16 = vmul.f32 %v1737_v42, %v8014_v23  ;;  %v1724_v5 = vadd.f32 %v1718_v44, %v1695_v13  ;;  %v1886_v33 = vsel %vm61_vm2, %v14609_v14, %v14608_v35  ;;  %v1808_v57 = vmul.f32 %v1802_v26, %v8095_v51  ;;  %v14618_v44 = vld [vmem:[#allocation37_spill] sm:$0xff] }
 0xac3   :  { %v1792_v45 = vsel %vm71_vm3, %v9263_v25, %v14610_v3  ;;  %v1741_v9 = vadd.f32 %v1738_v7, %v1723_v55  ;;  %v1725_v8 = vadd.f32 %v1719_v4, %v1696_v21  ;;  %v1809_v27 = vmul.f32 %v1806_v15, %v8095_v51  ;;  %v14617_v7 = vld [vmem:[#allocation33_spill] sm:$0xff] }
 0xac4   :  { %v1845_v19 = vrot.slane %v1793_v58, %v7839_v6  ;;  %v1833_v10 = vsel %vm46_vm0, %v14612_v28, %v14611_v32  ;;  %v1742_v43 = vadd.f32 %v1739_v54, %v1724_v5  ;;  %v1794_v20 = vsel %vm71_vm3, %v14610_v3, %v9261_v30  ;;  %v14620_v4 = vld [vmem:[#allocation41_spill] sm:$0xff]  ;;  %v14621_v3 = vld [vmem:[#allocation44_spill] sm:$0xff] }
 0xac5   :  { %v1810_v17 = vadd.f32 %v1807_v31, %v1741_v9  ;;  %v1885_v25 = vsel %vm61_vm2, %v14608_v35, %v14613_v11  ;;  %v1899_v49 = vrot.slane %v1886_v33, %v7839_v6  ;;  %v1849_v38 = vrot.slane %v1792_v45, %v7839_v6  ;;  %v14619_v31 = vld [vmem:[#allocation36_spill] sm:$0xff]  ;;  %v14622_v45 = vld [vmem:[#allocation55_spill] sm:$0xff] }
 0xac6   :  { %v1834_v22 = vsel %vm46_vm0, %v14611_v32, %v14614_v47  ;;  %v1743_v62 = vadd.f32 %v1740_v16, %v1725_v8  ;;  %v1884_v30 = vsel %vm61_vm2, %v14613_v11, %v14609_v14  ;;  %v1811_v39 = vadd.f32 %v1808_v57, %v1742_v43  ;;  %v14623_v32 = vld [vmem:[#allocation43_spill] sm:$0xff]  ;;  %v14624_v11 = vld [vmem:[#allocation32_spill] sm:$0xff] }
 0xac7   :  { %v1839_v37 = vadd.f32 %v1833_v10, %v1810_v17  ;;  %v1853_v24 = vrot.slane %v1794_v20, %v7839_v6  ;;  %v1835_v18 = vsel %vm46_vm0, %v14614_v47, %v14615_v29  ;;  %v1903_v0 = vrot.slane %v1885_v25, %v7839_v6  ;;  %v14625_v25 = vld [vmem:[#allocation28_spill] sm:$0xff] }
 0xac8   :  { %v1812_v50 = vadd.f32 %v1809_v27, %v1743_v62  ;;  %v1854_v13 = vmul.f32 %v1845_v19, %v14616_v34  ;;  %v1840_v42 = vadd.f32 %v1834_v22, %v1811_v39  ;;  %v1907_v21 = vrot.slane %v1884_v30, %v7839_v6 }
 0xac9   :  { %v1908_v26 = vmul.f32 %v1899_v49, %v14617_v7  ;;  %v1855_v55 = vmul.f32 %v1849_v38, %v14616_v34  ;;  %v1894_v58 = vsel %vm71_vm3, %v14619_v31, %v14618_v44  ;;  %v1893_v16 = vsel %vm71_vm3, %v14618_v44, %v14620_v4  ;;  %v14626_v38 = vld [vmem:[#allocation31_spill] sm:$0xff] }
 0xaca   :  { %v1857_v54 = vadd.f32 %v1854_v13, %v1839_v37  ;;  %v1841_v15 = vadd.f32 %v1835_v18, %v1812_v50  ;;  %v1856_v5 = vmul.f32 %v1853_v24, %v14616_v34  ;;  %v1909_v35 = vmul.f32 %v1903_v0, %v14617_v7  ;;  %v14627_v37 = vld [vmem:[#allocation34_spill] sm:$0xff]  ;;  %v14628_v18 = vld [vmem:[#allocation29_spill] sm:$0xff] }
 0xacb   :  { %v1858_v14 = vadd.f32 %v1855_v55, %v1840_v42  ;;  %v1910_v33 = vmul.f32 %v1907_v21, %v14617_v7  ;;  %v1979_v9 = vsel %vm61_vm2, %v14622_v45, %v14621_v3  ;;  %v1923_v8 = vrot.slane %v1894_v58, %v7839_v6  ;;  %v14629_v13 = vld [vmem:[#allocation42_spill] sm:$0xff]  ;;  %v14632_v58 = vld [vmem:[#allocation60_spill] sm:$0xff] }
 0xacc   :  { %v1911_v57 = vadd.f32 %v1908_v26, %v1857_v54  ;;  %v1895_v27 = vsel %vm71_vm3, %v14620_v4, %v14619_v31  ;;  %v1927_v19 = vrot.slane %v1893_v16, %v7839_v6  ;;  %v1978_v28 = vsel %vm61_vm2, %v14621_v3, %v14623_v32  ;;  %v14630_v21 = vld [vmem:[#allocation46_spill] sm:$0xff]  ;;  %v14631_v26 = vld [vmem:[#allocation48_spill] sm:$0xff]  ;;  %v14633_v4 = vld [vmem:[#allocation61_spill] sm:$0xff] }
 0xacd   :  { %v1859_v10 = vadd.f32 %v1856_v5, %v1841_v15  ;;  %v1977_v43 = vsel %vm61_vm2, %v14623_v32, %v14622_v45  ;;  %v1912_v20 = vadd.f32 %v1909_v35, %v1858_v14  ;;  %v1992_v17 = vrot.slane %v1979_v9, %v7839_v6  ;;  %v14634_v35 = vld [vmem:[#allocation56_spill] sm:$0xff]  ;;  %v14635_v9 = vld [vmem:[#allocation45_spill] sm:$0xff] }
 0xace   :  { %v1914_v49 = vmul.f32 %v14625_v25, %v14624_v11  ;;  %v1915_v47 = vmul.f32 %v14626_v38, %v14624_v11  ;;  %v1931_v62 = vrot.slane %v1895_v27, %v7839_v6  ;;  %v1996_v30 = vrot.slane %v1978_v28, %v7839_v6 }
 0xacf   :  { %v1913_v22 = vadd.f32 %v1910_v33, %v1859_v10  ;;  %v1932_v39 = vmul.f32 %v1923_v8, %v14627_v37  ;;  %v1933_v24 = vmul.f32 %v1927_v19, %v14627_v37  ;;  %v2000_v50 = vrot.slane %v1977_v43, %v7839_v6  ;;  %v14636_v8 = vld [vmem:[#allocation49_spill] sm:$0xff]  ;;  %v14637_v19 = vld [vmem:[#allocation62_spill] sm:$0xff] }
 0xad0   :  { %v1917_v29 = vadd.f32 %v1914_v49, %v1911_v57  ;;  %v1916_v0 = vmul.f32 %v14628_v18, %v14624_v11  ;;  %v2001_v42 = vmul.f32 %v1992_v17, %v14629_v13  ;;  %v1987_v55 = vsel %vm71_vm3, %v14631_v26, %v14630_v21  ;;  %v14638_v10 = vld [vmem:[#allocation57_spill] sm:$0xff]  ;;  %v14640_v18 = vld [vmem:[#allocation47_spill] sm:$0xff] }
 0xad1   :  { %v1918_v54 = vadd.f32 %v1915_v47, %v1912_v20  ;;  %v1934_v15 = vmul.f32 %v1931_v62, %v14627_v37  ;;  %v2002_v44 = vmul.f32 %v1996_v30, %v14629_v13  ;;  %v2095_v16 = vsel %vm61_vm2, %v14633_v4, %v14632_v58  ;;  %v14639_v62 = vld [vmem:[#allocation50_spill] sm:$0xff] }
 0xad2   :  { %v1919_v31 = vadd.f32 %v1916_v0, %v1913_v22  ;;  %v2003_v5 = vmul.f32 %v2000_v50, %v14629_v13  ;;  %v1986_v14 = vsel %vm71_vm3, %v14630_v21, %v14634_v35  ;;  %v1935_v33 = vadd.f32 %v1932_v39, %v1917_v29 }
 0xad3   :  { %v1936_v57 = vadd.f32 %v1933_v24, %v1918_v54  ;;  %v1988_v3 = vsel %vm71_vm3, %v14634_v35, %v14631_v26  ;;  %v2039_v45 = vrot.slane %v1987_v55, %v7839_v6  ;;  %v2027_v27 = vsel %vm270_vm1, %v14636_v8, %v14635_v9  ;;  %v14642_v26 = vld [vmem:[#allocation68_spill] sm:$0xff]  ;;  %v14643_v55 = vld [vmem:[#allocation65_spill] sm:$0xff]  ;;  %v14645_v35 = vld [vmem:[#allocation67_spill] sm:$0xff] }
 0xad4   :  { %v2094_v32 = vsel %vm61_vm2, %v14632_v58, %v14637_v19  ;;  %v2004_v28 = vadd.f32 %v2001_v42, %v1935_v33  ;;  %v2028_v43 = vsel %vm270_vm1, %v14635_v9, %v14638_v10  ;;  %v2093_v20 = vsel %vm61_vm2, %v14637_v19, %v14633_v4  ;;  %v14641_v42 = vld [vmem:[#allocation58_spill] sm:$0xff]  ;;  %v14647_v9 = vld [vmem:[#allocation69_spill] sm:$0xff] }
 0xad5   :  { %v2108_v17 = vrot.slane %v2095_v16, %v7839_v6  ;;  %v2043_v25 = vrot.slane %v1986_v14, %v7839_v6  ;;  %v1937_v49 = vadd.f32 %v1934_v15, %v1919_v31  ;;  %v2005_v38 = vadd.f32 %v2002_v44, %v1936_v57  ;;  %v14644_v31 = vld [vmem:[#allocation73_spill] sm:$0xff] }
 0xad6   :  { %v2047_v47 = vrot.slane %v1988_v3, %v7839_v6  ;;  %v2033_v22 = vadd.f32 %v2027_v27, %v2004_v28  ;;  %v2029_v30 = vsel %vm270_vm1, %v14638_v10, %v14639_v62  ;;  %v2112_v39 = vrot.slane %v2094_v32, %v7839_v6  ;;  %v14648_v32 = vld [vmem:[#allocation54_spill] sm:$0xff] }
 0xad7   :  { %v2006_v24 = vadd.f32 %v2003_v5, %v1937_v49  ;;  %v2034_v50 = vadd.f32 %v2028_v43, %v2005_v38  ;;  %v2116_v29 = vrot.slane %v2093_v20, %v7839_v6  ;;  %v2048_v0 = vmul.f32 %v2039_v45, %v14640_v18  ;;  %v14646_v45 = vld [vmem:[#allocation77_spill] sm:$0xff] }
 0xad8   :  { %v2117_v21 = vmul.f32 %v2108_v17, %v14641_v42  ;;  %v2103_v54 = vsel %vm71_vm3, %v14643_v55, %v14642_v26  ;;  %v2049_v15 = vmul.f32 %v2043_v25, %v14640_v18  ;;  %v2196_v58 = vsel %vm61_vm2, %v14644_v31, %v9398_v59  ;;  %v14649_v17 = vld [vmem:[#allocation78_spill] sm:$0xff] }
 0xad9   :  { %v2035_v44 = vadd.f32 %v2029_v30, %v2006_v24  ;;  %v2050_v4 = vmul.f32 %v2047_v47, %v14640_v18  ;;  %v2051_v16 = vadd.f32 %v2048_v0, %v2033_v22  ;;  %v2118_v5 = vmul.f32 %v2112_v39, %v14641_v42  ;;  %v14651_v24 = vld [vmem:[#allocation64_spill] sm:$0xff] }
 0xada   :  { %v2102_v14 = vsel %vm71_vm3, %v14642_v26, %v14645_v35  ;;  %v2052_v33 = vadd.f32 %v2049_v15, %v2034_v50  ;;  %v2119_v57 = vmul.f32 %v2116_v29, %v14641_v42  ;;  %v2155_v3 = vrot.slane %v2103_v54, %v7839_v6 }
 0xadb   :  { %v2143_v8 = vsel %vm46_vm0, %v14647_v9, %v14646_v45  ;;  %v2104_v27 = vsel %vm71_vm3, %v14645_v35, %v14643_v55  ;;  %v2120_v19 = vadd.f32 %v2117_v21, %v2051_v16  ;;  %v2195_v28 = vsel %vm61_vm2, %v9398_v59, %v14648_v32  ;;  %v14650_v59 = vld [vmem:[#allocation52_spill] sm:$0xff]  ;;  %v14652_v21 = vld [vmem:[#allocation70_spill] sm:$0xff] }
 0xadc   :  { %v2209_v10 = vrot.slane %v2196_v58, %v7839_v6  ;;  %v2053_v43 = vadd.f32 %v2050_v4, %v2035_v44  ;;  %v2159_v20 = vrot.slane %v2102_v14, %v7839_v6  ;;  %v2144_v25 = vsel %vm46_vm0, %v14646_v45, %v14649_v17  ;;  %v14653_v44 = vld [vmem:[#allocation74_spill] sm:$0xff]  ;;  %v14655_v4 = vld [vmem:[#allocation75_spill] sm:$0xff]  ;;  %v14657_v45 = vld [vmem:[#allocation92_spill] sm:$0xff] }
 0xadd   :  { %v2194_v49 = vsel %vm61_vm2, %v14648_v32, %v14644_v31  ;;  %v2149_v38 = vadd.f32 %v2143_v8, %v2120_v19  ;;  %v2121_v47 = vadd.f32 %v2118_v5, %v2052_v33  ;;  %v2163_v22 = vrot.slane %v2104_v27, %v7839_v6  ;;  %v14654_v31 = vld [vmem:[#allocation53_spill] sm:$0xff]  ;;  %v14658_v32 = vld [vmem:[#allocation80_spill] sm:$0xff] }
 0xade   :  { %v2122_v62 = vadd.f32 %v2119_v57, %v2053_v43  ;;  %v2145_v30 = vsel %vm46_vm0, %v14649_v17, %v14650_v59  ;;  %v2213_v39 = vrot.slane %v2195_v28, %v7839_v6  ;;  %v2164_v50 = vmul.f32 %v2155_v3, %v14651_v24  ;;  %v14656_v3 = vld [vmem:[#allocation81_spill] sm:$0xff] }
 0xadf   :  { %v2150_v29 = vadd.f32 %v2144_v25, %v2121_v47  ;;  %v2217_v0 = vrot.slane %v2194_v49, %v7839_v6  ;;  %v2218_v26 = vmul.f32 %v2209_v10, %v14652_v21  ;;  %v2165_v55 = vmul.f32 %v2159_v20, %v14651_v24  ;;  %v14659_v25 = vld [vmem:[#allocation71_spill] sm:$0xff] }
 0xae0   :  { %v2167_v54 = vadd.f32 %v2164_v50, %v2149_v38  ;;  %v2151_v15 = vadd.f32 %v2145_v30, %v2122_v62  ;;  %v2204_v58 = vsel %vm71_vm3, %v14654_v31, %v14653_v44  ;;  %v2203_v16 = vsel %vm71_vm3, %v14653_v44, %v14655_v4  ;;  %v14660_v49 = vld [vmem:[#allocation63_spill] sm:$0xff] }
 0xae1   :  { %v2166_v5 = vmul.f32 %v2163_v22, %v14651_v24  ;;  %v2219_v35 = vmul.f32 %v2213_v39, %v14652_v21  ;;  %v2168_v14 = vadd.f32 %v2165_v55, %v2150_v29  ;;  %v2220_v33 = vmul.f32 %v2217_v0, %v14652_v21  ;;  %v14661_v47 = vld [vmem:[#allocation59_spill] sm:$0xff]  ;;  %v14662_v39 = vld [vmem:[#allocation72_spill] sm:$0xff]  ;;  %v14663_v55 = vld [vmem:[#allocation66_spill] sm:$0xff] }
 0xae2   :  { %v2221_v57 = vadd.f32 %v2218_v26, %v2167_v54  ;;  %v2289_v9 = vsel %vm61_vm2, %v14657_v45, %v14656_v3  ;;  %v2233_v8 = vrot.slane %v2204_v58, %v7839_v6  ;;  %v2205_v27 = vsel %vm71_vm3, %v14655_v4, %v14654_v31 }
 0xae3   :  { %v2237_v19 = vrot.slane %v2203_v16, %v7839_v6  ;;  %v2288_v28 = vsel %vm61_vm2, %v14656_v3, %v14658_v32  ;;  %v2169_v10 = vadd.f32 %v2166_v5, %v2151_v15  ;;  %v2287_v43 = vsel %vm61_vm2, %v14658_v32, %v14657_v45  ;;  %v14664_v15 = vld [vmem:[#allocation79_spill] sm:$0xff]  ;;  %v14665_v16 = vld [vmem:[#allocation82_spill] sm:$0xff] }
 0xae4   :  { %v2222_v20 = vadd.f32 %v2219_v35, %v2168_v14  ;;  %v2302_v17 = vrot.slane %v2289_v9, %v7839_v6  ;;  %v2224_v38 = vmul.f32 %v14660_v49, %v14659_v25  ;;  %v2225_v22 = vmul.f32 %v14661_v47, %v14659_v25  ;;  %v14666_v5 = vld [vmem:[#allocation91_spill] sm:$0xff]  ;;  %v14669_v32 = vld [vmem:[#allocation86_spill] sm:$0xff] }
 0xae5   :  { %v2223_v62 = vadd.f32 %v2220_v33, %v2169_v10  ;;  %v2241_v59 = vrot.slane %v2205_v27, %v7839_v6  ;;  %v2306_v30 = vrot.slane %v2288_v28, %v7839_v6  ;;  %v2242_v50 = vmul.f32 %v2233_v8, %v14662_v39  ;;  %v14667_v9 = vld [vmem:[#allocation83_spill] sm:$0xff]  ;;  %v14670_v10 = vld [vmem:[#allocation98_spill] sm:$0xff] }
 0xae6   :  { %v2243_v29 = vmul.f32 %v2237_v19, %v14662_v39  ;;  %v2310_v0 = vrot.slane %v2287_v43, %v7839_v6  ;;  %v2227_v26 = vadd.f32 %v2224_v38, %v2221_v57  ;;  %v2226_v54 = vmul.f32 %v14663_v55, %v14659_v25  ;;  %v14668_v19 = vld [vmem:[#allocation85_spill] sm:$0xff] }
 0xae7   :  { %v2311_v44 = vmul.f32 %v2302_v17, %v14664_v15  ;;  %v2228_v31 = vadd.f32 %v2225_v22, %v2222_v20  ;;  %v2244_v58 = vmul.f32 %v2241_v59, %v14662_v39  ;;  %v2312_v4 = vmul.f32 %v2306_v30, %v14664_v15 }
 0xae8   :  { %v2297_v35 = vsel %vm71_vm3, %v14666_v5, %v14665_v16  ;;  %v2405_v14 = vsel %vm61_vm2, %v9505_v2, %v9501_v48  ;;  %v2313_v33 = vmul.f32 %v2310_v0, %v14664_v15  ;;  %v2245_v57 = vadd.f32 %v2242_v50, %v2227_v26 }
 0xae9   :  { %v2229_v3 = vadd.f32 %v2226_v54, %v2223_v62  ;;  %v2246_v45 = vadd.f32 %v2243_v29, %v2228_v31  ;;  %v2298_v8 = vsel %vm71_vm3, %v14667_v9, %v14666_v5  ;;  %v2296_v27 = vsel %vm71_vm3, %v14665_v16, %v14667_v9  ;;  %v14671_v62 = vld [vmem:[#allocation99_spill] sm:$0xff]  ;;  %v14673_v54 = vld [vmem:[#allocation84_spill] sm:$0xff]  ;;  %v14675_v16 = vld [vmem:[#allocation102_spill] sm:$0xff] }
 0xaea   :  { %v2337_v28 = vsel %vm270_vm1, %v14669_v32, %v14668_v19  ;;  %v2404_v43 = vsel %vm61_vm2, %v9501_v48, %v14670_v10  ;;  %v2349_v20 = vrot.slane %v2297_v35, %v7839_v6  ;;  %v2314_v17 = vadd.f32 %v2311_v44, %v2245_v57  ;;  %v14672_v48 = vld [vmem:[#allocation93_spill] sm:$0xff]  ;;  %v14678_v32 = vld [vmem:[#allocation88_spill] sm:$0xff] }
 0xaeb   :  { %v2403_v49 = vsel %vm61_vm2, %v14670_v10, %v9505_v2  ;;  %v2418_v38 = vrot.slane %v2405_v14, %v7839_v6  ;;  %v2247_v47 = vadd.f32 %v2244_v58, %v2229_v3  ;;  %v2315_v22 = vadd.f32 %v2312_v4, %v2246_v45  ;;  %v14674_v58 = vld [vmem:[#allocation94_spill] sm:$0xff]  ;;  %v14676_v5 = vld [vmem:[#allocation97_spill] sm:$0xff] }
 0xaec   :  { %v2338_v59 = vsel %vm270_vm1, %v14668_v19, %v14671_v62  ;;  %v2353_v30 = vrot.slane %v2296_v27, %v7839_v6  ;;  %v2343_v50 = vadd.f32 %v2337_v28, %v2314_v17  ;;  %v2339_v29 = vsel %vm270_vm1, %v14671_v62, %v14672_v48  ;;  %v14677_v19 = vld [vmem:[#allocation90_spill] sm:$0xff]  ;;  %v14681_v48 = vld [vmem:[#allocation100_spill] sm:$0xff] }
 0xaed   :  { %v2422_v0 = vrot.slane %v2404_v43, %v7839_v6  ;;  %v2357_v26 = vrot.slane %v2298_v8, %v7839_v6  ;;  %v2316_v2 = vadd.f32 %v2313_v33, %v2247_v47  ;;  %v2426_v55 = vrot.slane %v2403_v49, %v7839_v6  ;;  %v14679_v49 = vld [vmem:[#allocation103_spill] sm:$0xff] }
 0xaee   :  { %v2358_v44 = vmul.f32 %v2349_v20, %v14673_v54  ;;  %v2344_v31 = vadd.f32 %v2338_v59, %v2315_v22  ;;  %v2427_v4 = vmul.f32 %v2418_v38, %v14674_v58  ;;  %v2413_v35 = vsel %vm71_vm3, %v14676_v5, %v14675_v16  ;;  %v14680_v59 = vld [vmem:[#allocation109_spill] sm:$0xff] }
 0xaef   :  { %v2345_v14 = vadd.f32 %v2339_v29, %v2316_v2  ;;  %v2506_v57 = vsel %vm61_vm2, %v9525_v56, %v9521_v36  ;;  %v2359_v33 = vmul.f32 %v2353_v30, %v14673_v54  ;;  %v2428_v45 = vmul.f32 %v2422_v0, %v14674_v58  ;;  %v14682_v0 = vld [vmem:[#allocation89_spill] sm:$0xff] }
 0xaf0   :  { %v2361_v3 = vadd.f32 %v2358_v44, %v2343_v50  ;;  %v2360_v9 = vmul.f32 %v2357_v26, %v14673_v54  ;;  %v2429_v8 = vmul.f32 %v2426_v55, %v14674_v58  ;;  %v2465_v27 = vrot.slane %v2413_v35, %v7839_v6  ;;  %v14683_v55 = vld [vmem:[#allocation107_spill] sm:$0xff] }
 0xaf1   :  { %v2453_v28 = vsel %vm46_vm0, %v14678_v32, %v14677_v19  ;;  %v2362_v10 = vadd.f32 %v2359_v33, %v2344_v31  ;;  %v2519_v20 = vrot.slane %v2506_v57, %v7839_v6  ;;  %v2412_v38 = vsel %vm71_vm3, %v14675_v16, %v14679_v49 }
 0xaf2   :  { %v2430_v43 = vadd.f32 %v2427_v4, %v2361_v3  ;;  %v2363_v17 = vadd.f32 %v2360_v9, %v2345_v14  ;;  %v2414_v47 = vsel %vm71_vm3, %v14679_v49, %v14676_v5  ;;  %v2505_v30 = vsel %vm61_vm2, %v9521_v36, %v14680_v59  ;;  %v14684_v4 = vld [vmem:[#allocation104_spill] sm:$0xff] }
 0xaf3   :  { %v2431_v62 = vadd.f32 %v2428_v45, %v2362_v10  ;;  %v2504_v50 = vsel %vm61_vm2, %v14680_v59, %v9525_v56  ;;  %v2474_v29 = vmul.f32 %v2465_v27, %v14681_v48  ;;  %v2454_v26 = vsel %vm46_vm0, %v14677_v19, %v14682_v0  ;;  %v14685_v10 = vld [vmem:[#allocation110_spill] sm:$0xff] }
 0xaf4   :  { %v2459_v22 = vadd.f32 %v2453_v28, %v2430_v43  ;;  %v2432_v2 = vadd.f32 %v2429_v8, %v2363_v17  ;;  %v2455_v44 = vsel %vm46_vm0, %v14682_v0, %v14683_v55  ;;  %v2469_v31 = vrot.slane %v2412_v38, %v7839_v6 }
 0xaf5   :  { %v2473_v36 = vrot.slane %v2414_v47, %v7839_v6  ;;  %v2528_v16 = vmul.f32 %v2519_v20, %v14684_v4  ;;  %v2514_v56 = vsel %vm71_vm3, %v9527_v1, %v9529_v40  ;;  %v2523_v5 = vrot.slane %v2505_v30, %v7839_v6  ;;  %v14688_v30 = vld [vmem:[#allocation106_spill] sm:$0xff] }
 0xaf6   :  { %v2527_v35 = vrot.slane %v2504_v50, %v7839_v6  ;;  %v2477_v14 = vadd.f32 %v2474_v29, %v2459_v22  ;;  %v2460_v57 = vadd.f32 %v2454_v26, %v2431_v62  ;;  %v2461_v33 = vadd.f32 %v2455_v44, %v2432_v2  ;;  %v14686_v22 = vld [vmem:[#allocation105_spill] sm:$0xff] }
 0xaf7   :  { %v2543_v9 = vrot.slane %v2514_v56, %v7839_v6  ;;  %v2475_v8 = vmul.f32 %v2469_v31, %v14681_v48  ;;  %v2476_v27 = vmul.f32 %v2473_v36, %v14681_v48  ;;  %v2529_v32 = vmul.f32 %v2523_v5, %v14684_v4  ;;  %v14687_v62 = vld [vmem:[#allocation101_spill] sm:$0xff]  ;;  %v14689_v56 = vld [vmem:[#allocation23_spill] sm:$0xff] }
 0xaf8   :  { %v2531_v19 = vadd.f32 %v2528_v16, %v2477_v14  ;;  %v2530_v28 = vmul.f32 %v2527_v35, %v14684_v4  ;;  %v2513_v43 = vsel %vm71_vm3, %v9529_v40, %v14685_v10  ;;  %v2515_v20 = vsel %vm71_vm3, %v14685_v10, %v9527_v1 }
 0xaf9   :  { %v2478_v17 = vadd.f32 %v2475_v8, %v2460_v57  ;;  %v2479_v49 = vadd.f32 %v2476_v27, %v2461_v33  ;;  %v2534_v59 = vmul.f32 %v14687_v62, %v14686_v22  ;;  %v2552_v50 = vmul.f32 %v2543_v9, %v14688_v30  ;;  %v14690_v57 = vld [vmem:[#allocation95_spill] sm:$0xff] }
 0xafa   :  { %v2547_v1 = vrot.slane %v2513_v43, %v7839_v6  ;;  %v2551_v26 = vrot.slane %v2515_v20, %v7839_v6  ;;  %v2536_v33 = vmul.f32 %v14690_v57, %v14686_v22 }
 0xafb   :  { %v2537_v55 = vadd.f32 %v2534_v59, %v2531_v19  ;;  %v2532_v44 = vadd.f32 %v2529_v32, %v2478_v17  ;;  %v2533_v31 = vadd.f32 %v2530_v28, %v2479_v49 }
 0xafc   :  { %v2553_v8 = vmul.f32 %v2547_v1, %v14688_v30  ;;  %v2554_v27 = vmul.f32 %v2551_v26, %v14688_v30  ;;  %v14692_v26 = vld [vmem:[#allocation22_spill] sm:$0xff] }
 0xafd   :  { %v2555_v32 = vadd.f32 %v2552_v50, %v2537_v55  ;;  %v2539_v43 = vadd.f32 %v2536_v33, %v2533_v31 }
 0xaff   :  { %v2557_v1 = vadd.f32 %v2554_v27, %v2539_v43 }
 0xb15   :  { %v2594_v3 = vpop.permute.xlu1 %2593  ;;  %v2592_v45 = vpop.permute.xlu0 %2591 }
 0xb16   :  { %v2598_v29 = vsel %vm61_vm2, %v2592_v45, %v2594_v3 }
 0xb17   :  { %v2616_v36 = vrot.slane %v2598_v29, %v7839_v6 }
 0xb19   :  { %v2601_v38 = vpop.permute.xlu1 %2600  ;;  %v2596_v47 = vpop.permute.xlu0 %2595  ;;  %v2622_v20 = vmul.f32 %v2616_v36, %v14689_v56 }
 0xb1a   :  { %v2597_v40 = vsel %vm61_vm2, %v2594_v3, %v2596_v47  ;;  %v2599_v0 = vsel %vm61_vm2, %v2596_v47, %v2592_v45  ;;  %v14691_v3 = vld [vmem:[#allocation96_spill] sm:$0xff] }
 0xb1b   :  { %v2612_v2 = vrot.slane %v2599_v0, %v7839_v6  ;;  %v2620_v16 = vrot.slane %v2597_v40, %v7839_v6  ;;  %v2535_v45 = vmul.f32 %v14691_v3, %v14686_v22 }
 0xb1d   :  { %v2621_v5 = vmul.f32 %v2612_v2, %v14689_v56  ;;  %v2605_v35 = vpop.permute.xlu1 %2604  ;;  %v2603_v14 = vpop.permute.xlu0 %2602  ;;  %v2538_v10 = vadd.f32 %v2535_v45, %v2532_v44  ;;  %v2623_v17 = vmul.f32 %v2620_v16, %v14689_v56 }
 0xb1e   :  { %v2607_v9 = vsel %vm71_vm3, %v2601_v38, %v2603_v14  ;;  %v2608_v19 = vsel %vm71_vm3, %v2605_v35, %v2601_v38  ;;  %v2606_v28 = vsel %vm71_vm3, %v2603_v14, %v2605_v35 }
 0xb1f   :  { %v2659_v49 = vrot.slane %v2607_v9, %v7839_v6  ;;  %v2624_v62 = vadd.f32 %v2621_v5, %v2555_v32  ;;  %v2667_v29 = vrot.slane %v2608_v19, %v7839_v6  ;;  %v2663_v38 = vrot.slane %v2606_v28, %v7839_v6  ;;  %v14694_v19 = vld [vmem:[#allocation27_spill] sm:$0xff]  ;;  %v14695_v28 = vld [vmem:[#allocation26_spill] sm:$0xff] }
 0xb20   :  { %v2556_v0 = vadd.f32 %v2553_v8, %v2538_v10  ;;  %v2626_v31 = vadd.f32 %v2623_v17, %v2557_v1  ;;  %v14693_v8 = vld [vmem:[#allocation25_spill] sm:$0xff] }
 0xb21   :  { %v2642_v47 = vpop.permute.xlu1 %2641  ;;  %v2640_v59 = vpop.permute.xlu0 %2639  ;;  %v2668_v2 = vmul.f32 %v2659_v49, %v14692_v26  ;;  %v2670_v16 = vmul.f32 %v2667_v29, %v14692_v26  ;;  %v2669_v14 = vmul.f32 %v2663_v38, %v14692_v26  ;;  %v14696_v17 = vld [vmem:[#allocation5_spill] sm:$0xff]  ;;  %v14698_v29 = vld [vmem:[#allocation4_spill] sm:$0xff]  ;;  %v14699_v38 = vld [vmem:[#allocation10_spill] sm:$0xff] }
 0xb22   :  { %v2647_v40 = vsel %vm270_vm1, %v2640_v59, %v2642_v47  ;;  %v2625_v44 = vadd.f32 %v2622_v20, %v2556_v0 }
 0xb23   :  { %v2653_v50 = vadd.f32 %v2647_v40, %v2624_v62  ;;  %v14697_v62 = vld [vmem:[#allocation6_spill] sm:$0xff] }
 0xb25   :  { %v2646_v55 = vpop.permute.xlu1 %2645  ;;  %v2644_v36 = vpop.permute.xlu0 %2643  ;;  %v2671_v57 = vadd.f32 %v2668_v2, %v2653_v50 }
 0xb26   :  { %v2648_v5 = vsel %vm270_vm1, %v2642_v47, %v2644_v36  ;;  %v2649_v35 = vsel %vm270_vm1, %v2644_v36, %v2646_v55 }
 0xb27   :  { %v2654_v33 = vadd.f32 %v2648_v5, %v2625_v44  ;;  %v2655_v3 = vadd.f32 %v2649_v35, %v2626_v31  ;;  %v2674_v27 = vmul.f32 %v2671_v57, %v14693_v8 }
 0xb29   :  { %v2672_v45 = vadd.f32 %v2669_v14, %v2654_v33  ;;  %v2673_v9 = vadd.f32 %v2670_v16, %v2655_v3  ;;  %v14700_v33 = vld [vmem:[#allocation17_spill] sm:$0xff] }
 0xb2b   :  { %v2675_v32 = vmul.f32 %v2672_v45, %v14694_v19  ;;  %v2676_v10 = vmul.f32 %v2673_v9, %v14695_v28 }
 0xb2d   :  { %v2679_v43 = vcombine.low %v2674_v27, %v2675_v32  ;;  %2682 = vst [vmem:[#allocation3 + $0xc] sm:$0xf] %v2676_v10 }
 0xb2f   :  { %2681 = vst [vmem:[#allocation3 + $0x4] sm:$0xff] %v2679_v43 }
 0xb36   :  { %v2683_v20 = vld [vmem:[#allocation3] ss:$4 sm:$0xf]  ;;  %v2993_v32 = vld [vmem:[#allocation3 + $0x1] ss:$4 sm:$0xf] }
 0xb37   :  { %v2692_v49 = vrot.slane %v2683_v20, %v14696_v17  ;;  %v2688_v47 = vrot.slane %v2683_v20, %v7839_v6  ;;  %v2700_v59 = vrot.slane %v2683_v20, %v14697_v62  ;;  %v2696_v40 = vrot.slane %v2683_v20, %v14698_v29  ;;  %v2799_v55 = vld [vmem:[#allocation3 + $0x4] ss:$4 sm:$0x7] }
 0xb38   :  { %v10080_v44 = vrot.slane %v2799_v55, %v14696_v17  ;;  %v10083_v31 = vrot.slane %v2799_v55, %v7839_v6  ;;  %v10090_v36 = vrot.slane %v2799_v55, %v14698_v29  ;;  %v2877_v16 = vld [vmem:[#allocation3 + $0x4] ss:$4 sm:$0xf]  ;;  %v3002_v10 = vrot.slane %v2993_v32, %v14696_v17 }
 0xb39   :  { %2703 = vrot.lane.b32.xlu1 %v2692_v49, %s7771_s16  ;;  %2701 = vrot.lane.b32.xlu0 %v2688_v47, %s7771_s16  ;;  %v2756_v50 = vmul.f32 %v2692_v49, %v14699_v38  ;;  %v2755_v0 = vmul.f32 %v2688_v47, %v14699_v38  ;;  %v2758_v1 = vmul.f32 %v2700_v59, %v14699_v38  ;;  %v14701_v47 = vld [vmem:[#allocation19_spill] sm:$0xff] }
 0xb3a   :  { %v2757_v2 = vmul.f32 %v2696_v40, %v14699_v38  ;;  %v2886_v5 = vrot.slane %v2877_v16, %v14696_v17  ;;  %v2882_v35 = vrot.slane %v2877_v16, %v7839_v6  ;;  %v2894_v14 = vrot.slane %v2877_v16, %v14697_v62 }
 0xb3b   :  { %v2890_v57 = vrot.slane %v2877_v16, %v14698_v29  ;;  %v2998_v43 = vrot.slane %v2993_v32, %v7839_v6  ;;  %v3010_v20 = vrot.slane %v2993_v32, %v14697_v62  ;;  %v3006_v49 = vrot.slane %v2993_v32, %v14698_v29 }
 0xb3c   :  { %v2950_v3 = vmul.f32 %v2886_v5, %v14700_v33  ;;  %v2949_v45 = vmul.f32 %v2882_v35, %v14700_v33  ;;  %v2952_v9 = vmul.f32 %v2894_v14, %v14700_v33 }
 0xb3d   :  { %2707 = vrot.lane.b32.xlu1 %v2700_v59, %s7771_s16  ;;  %2705 = vrot.lane.b32.xlu0 %v2696_v40, %s7771_s16  ;;  %v2951_v27 = vmul.f32 %v2890_v57, %v14700_v33  ;;  %v3066_v59 = vmul.f32 %v3002_v10, %v14701_v47  ;;  %v3065_v40 = vmul.f32 %v2998_v43, %v14701_v47 }
 0xb41   :  { %2765 = vrot.lane.b32.xlu1 %v2756_v50, %s7771_s16  ;;  %2763 = vrot.lane.b32.xlu0 %v2755_v0, %s7771_s16  ;;  %v3068_v50 = vmul.f32 %v3010_v20, %v14701_v47  ;;  %v3067_v0 = vmul.f32 %v3006_v49, %v14701_v47 }
 0xb45   :  { %2769 = vrot.lane.b32.xlu1 %v2758_v1, %s7771_s16  ;;  %2767 = vrot.lane.b32.xlu0 %v2757_v2, %s7771_s16  ;;  %v3109_v1 = vld [vmem:[#allocation3 + $0x5] ss:$4 sm:$0x7] }
 0xb46   :  { %v10133_v2 = vrot.slane %v3109_v1, %v14696_v17  ;;  %v10136_v55 = vrot.slane %v3109_v1, %v7839_v6  ;;  %v10143_v16 = vrot.slane %v3109_v1, %v14698_v29 }
 0xb49   :  { %2818 = vrot.lane.b32.xlu1 %v10080_v44, %s7772_s19  ;;  %2816 = vrot.lane.b32.xlu0 %v10083_v31, %s7772_s19 }
 0xb4d   :  { %2825 = vrot.lane.b32.xlu1 %v10083_v31, %s7775_s20  ;;  %2820 = vrot.lane.b32.xlu0 %v10090_v36, %s7772_s19 }
 0xb51   :  { %2829 = vrot.lane.b32.xlu1 %v10090_v36, %s7775_s20  ;;  %2827 = vrot.lane.b32.xlu0 %v10080_v44, %s7775_s20 }
 0xb55   :  { %2897 = vrot.lane.b32.xlu1 %v2886_v5, %s7777_s23  ;;  %2895 = vrot.lane.b32.xlu0 %v2882_v35, %s7777_s23  ;;  %v3187_v5 = vld [vmem:[#allocation3 + $0x5] ss:$4 sm:$0xf] }
 0xb56   :  { %v3196_v35 = vrot.slane %v3187_v5, %v14696_v17 }
 0xb59   :  { %2901 = vrot.lane.b32.xlu1 %v2894_v14, %s7777_s23  ;;  %2899 = vrot.lane.b32.xlu0 %v2890_v57, %s7777_s23  ;;  %v3192_v14 = vrot.slane %v3187_v5, %v7839_v6  ;;  %v10158_v57 = vrot.slane %v3187_v5, %v14697_v62 }
 0xb5d   :  { %2959 = vrot.lane.b32.xlu1 %v2950_v3, %s7777_s23  ;;  %2957 = vrot.lane.b32.xlu0 %v2949_v45, %s7777_s23  ;;  %v10161_v3 = vrot.slane %v3187_v5, %v14698_v29  ;;  %v14702_v45 = vld [vmem:[#allocation38_spill] sm:$0xff] }
 0xb5f   :  { %v3261_v25 = vmul.f32 %v10161_v3, %v14702_v45 }
 0xb61   :  { %2963 = vrot.lane.b32.xlu1 %v2952_v9, %s7777_s23  ;;  %2961 = vrot.lane.b32.xlu0 %v2951_v27, %s7777_s23  ;;  %v3260_v9 = vmul.f32 %v3196_v35, %v14702_v45  ;;  %v3259_v27 = vmul.f32 %v3192_v14, %v14702_v45 }
 0xb65   :  { %3013 = vrot.lane.b32.xlu1 %v3002_v10, %s7771_s16  ;;  %3011 = vrot.lane.b32.xlu0 %v2998_v43, %s7771_s16 }
 0xb69   :  { %3017 = vrot.lane.b32.xlu1 %v3010_v20, %s7771_s16  ;;  %3015 = vrot.lane.b32.xlu0 %v3006_v49, %s7771_s16 }
 0xb6d   :  { %3075 = vrot.lane.b32.xlu1 %v3066_v59, %s7771_s16  ;;  %3073 = vrot.lane.b32.xlu0 %v3065_v40, %s7771_s16 }
 0xb71   :  { %3079 = vrot.lane.b32.xlu1 %v3068_v50, %s7771_s16  ;;  %3077 = vrot.lane.b32.xlu0 %v3067_v0, %s7771_s16 }
 0xb75   :  { %3128 = vrot.lane.b32.xlu1 %v10133_v2, %s7772_s19  ;;  %3126 = vrot.lane.b32.xlu0 %v10136_v55, %s7772_s19 }
 0xb79   :  { %3135 = vrot.lane.b32.xlu1 %v10136_v55, %s7775_s20  ;;  %3130 = vrot.lane.b32.xlu0 %v10143_v16, %s7772_s19 }
 0xb7d   :  { %3139 = vrot.lane.b32.xlu1 %v10143_v16, %s7775_s20  ;;  %3137 = vrot.lane.b32.xlu0 %v10133_v2, %s7775_s20 }
 0xb81   :  { %3207 = vrot.lane.b32.xlu1 %v3196_v35, %s7777_s23  ;;  %3205 = vrot.lane.b32.xlu0 %v3192_v14, %s7777_s23 }
 0xb85   :  { %3211 = vrot.lane.b32.xlu1 %v10158_v57, %s7777_s23  ;;  %3209 = vrot.lane.b32.xlu0 %v10161_v3, %s7777_s23 }
 0xb89   :  { %3269 = vrot.lane.b32.xlu1 %v3260_v9, %s7777_s23  ;;  %3267 = vrot.lane.b32.xlu0 %v3259_v27, %s7777_s23 }
 0xbab   :  { %v2704_v32 = vpop.permute.xlu1 %2703  ;;  %v2702_v10 = vpop.permute.xlu0 %2701 }
 0xbac   :  { %v2709_v43 = vsel %vm46_vm0, %v2702_v10, %v2704_v32 }
 0xbad   :  { %2715 = vrot.lane.b32.xlu0 %v2709_v43, %s7772_s19 }
 0xbaf   :  { %v2708_v20 = vpop.permute.xlu1 %2707  ;;  %v2706_v49 = vpop.permute.xlu0 %2705 }
 0xbb0   :  { %v2710_v59 = vsel %vm46_vm0, %v2704_v32, %v2706_v49  ;;  %v2711_v40 = vsel %vm46_vm0, %v2706_v49, %v2708_v20 }
 0xbb1   :  { %2717 = vrot.lane.b32.xlu1 %v2710_v59, %s7772_s19  ;;  %2719 = vrot.lane.b32.xlu0 %v2711_v40, %s7772_s19 }
 0xbb3   :  { %v10177_v50 = vpop.permute.xlu1 %2765  ;;  %v10179_v0 = vpop.permute.xlu0 %2763 }
 0xbb5   :  { %2724 = vrot.lane.b32.xlu1 %v2709_v43, %s7775_s20  ;;  %2726 = vrot.lane.b32.xlu0 %v2710_v59, %s7775_s20 }
 0xbb7   :  { %v10183_v1 = vpop.permute.xlu1 %2769  ;;  %v10185_v5 = vpop.permute.xlu0 %2767 }
 0xbb9   :  { %2728 = vrot.lane.b32.xlu1 %v2711_v40, %s7775_s20 }
 0xbbb   :  { %v10188_v35 = vpop.permute.xlu1 %2818  ;;  %v10190_v14 = vpop.permute.xlu0 %2816 }
 0xbbf   :  { %v10192_v9 = vpop.permute.xlu1 %2825  ;;  %v10194_v27 = vpop.permute.xlu0 %2820 }
 0xbc3   :  { %v10196_v32 = vpop.permute.xlu1 %2829  ;;  %v10198_v10 = vpop.permute.xlu0 %2827 }
 0xbc7   :  { %v2898_v43 = vpop.permute.xlu1 %2897  ;;  %v2896_v20 = vpop.permute.xlu0 %2895 }
 0xbc8   :  { %v2903_v49 = vsel %vm270_vm1, %v2896_v20, %v2898_v43 }
 0xbc9   :  { %2909 = vrot.lane.b32.xlu0 %v2903_v49, %s7772_s19 }
 0xbcb   :  { %v2902_v59 = vpop.permute.xlu1 %2901  ;;  %v2900_v40 = vpop.permute.xlu0 %2899 }
 0xbcc   :  { %v2905_v28 = vsel %vm270_vm1, %v2900_v40, %v2902_v59  ;;  %v2904_v19 = vsel %vm270_vm1, %v2898_v43, %v2900_v40 }
 0xbcd   :  { %2913 = vrot.lane.b32.xlu0 %v2905_v28, %s7772_s19  ;;  %2911 = vrot.lane.b32.xlu1 %v2904_v19, %s7772_s19 }
 0xbcf   :  { %v10206_v8 = vpop.permute.xlu1 %2959  ;;  %v10208_v47 = vpop.permute.xlu0 %2957 }
 0xbd1   :  { %2920 = vrot.lane.b32.xlu0 %v2904_v19, %s7775_s20  ;;  %2918 = vrot.lane.b32.xlu1 %v2903_v49, %s7775_s20 }
 0xbd3   :  { %v10212_v20 = vpop.permute.xlu1 %2963  ;;  %v10214_v33 = vpop.permute.xlu0 %2961 }
 0xbd5   :  { %2922 = vrot.lane.b32.xlu1 %v2905_v28, %s7775_s20 }
 0xbd7   :  { %v3014_v59 = vpop.permute.xlu1 %3013  ;;  %v3012_v43 = vpop.permute.xlu0 %3011 }
 0xbd8   :  { %v3019_v40 = vsel %vm46_vm0, %v3012_v43, %v3014_v59 }
 0xbd9   :  { %3025 = vrot.lane.b32.xlu0 %v3019_v40, %s7772_s19 }
 0xbdb   :  { %v3018_v38 = vpop.permute.xlu1 %3017  ;;  %v3016_v26 = vpop.permute.xlu0 %3015 }
 0xbdc   :  { %v3021_v56 = vsel %vm46_vm0, %v3016_v26, %v3018_v38  ;;  %v3020_v19 = vsel %vm46_vm0, %v3014_v59, %v3016_v26 }
 0xbdd   :  { %3029 = vrot.lane.b32.xlu0 %v3021_v56, %s7772_s19  ;;  %3027 = vrot.lane.b32.xlu1 %v3020_v19, %s7772_s19 }
 0xbdf   :  { %v10223_v49 = vpop.permute.xlu1 %3075  ;;  %v10225_v30 = vpop.permute.xlu0 %3073 }
 0xbe1   :  { %3036 = vrot.lane.b32.xlu0 %v3020_v19, %s7775_s20  ;;  %3034 = vrot.lane.b32.xlu1 %v3019_v40, %s7775_s20 }
 0xbe3   :  { %v10229_v28 = vpop.permute.xlu1 %3079  ;;  %v10231_v43 = vpop.permute.xlu0 %3077 }
 0xbe5   :  { %3038 = vrot.lane.b32.xlu1 %v3021_v56, %s7775_s20 }
 0xbe7   :  { %v10234_v38 = vpop.permute.xlu1 %3128  ;;  %v10236_v26 = vpop.permute.xlu0 %3126 }
 0xbeb   :  { %v10238_v59 = vpop.permute.xlu1 %3135  ;;  %v10240_v22 = vpop.permute.xlu0 %3130 }
 0xbec   :  { %14703 = vst [vmem:[#allocation9_spill] sm:$0xff] %v10238_v59 }
 0xbef   :  { %v10242_v4 = vpop.permute.xlu1 %3139  ;;  %v10244_v48 = vpop.permute.xlu0 %3137 }
 0xbf0   :  { %14704 = vst [vmem:[#allocation35_spill] sm:$0xff] %v10242_v4  ;;  %14705 = vst [vmem:[#allocation24_spill] sm:$0xff] %v10244_v48 }
 0xbf3   :  { %v3208_v19 = vpop.permute.xlu1 %3207  ;;  %v3206_v40 = vpop.permute.xlu0 %3205 }
 0xbf4   :  { %v3213_v58 = vsel %vm270_vm1, %v3206_v40, %v3208_v19  ;;  %v3303_v40 = vld [vmem:[#allocation3 + $0x2] ss:$4 sm:$0xf] }
 0xbf5   :  { %3219 = vrot.lane.b32.xlu0 %v3213_v58, %s7772_s19 }
 0xbf7   :  { %v3212_v54 = vpop.permute.xlu1 %3211  ;;  %v3210_v56 = vpop.permute.xlu0 %3209 }
 0xbf8   :  { %v3215_v15 = vsel %vm270_vm1, %v3210_v56, %v3212_v54  ;;  %v3214_v39 = vsel %vm270_vm1, %v3208_v19, %v3210_v56  ;;  %v10259_v54 = vrot.slane %v3303_v40, %v7839_v6  ;;  %v3262_v19 = vmul.f32 %v10158_v57, %v14702_v45 }
 0xbf9   :  { %3223 = vrot.lane.b32.xlu0 %v3215_v15, %s7772_s19  ;;  %3221 = vrot.lane.b32.xlu1 %v3214_v39, %s7772_s19 }
 0xbfb   :  { %v10283_v57 = vpop.permute.xlu1 %3269 }
 0xbfc   :  { %14707 = vst [vmem:[#allocation30_spill] sm:$0xff] %v10283_v57 }
 0xbfd   :  { %3230 = vrot.lane.b32.xlu0 %v3214_v39, %s7775_s20  ;;  %3228 = vrot.lane.b32.xlu1 %v3213_v58, %s7775_s20  ;;  %v10267_v39 = vrot.slane %v3303_v40, %v14698_v29  ;;  %v10270_v58 = vrot.slane %v3303_v40, %v14696_v17 }
 0xc01   :  { %3271 = vrot.lane.b32.xlu0 %v3261_v25, %s7777_s23  ;;  %3232 = vrot.lane.b32.xlu1 %v3215_v15, %s7775_s20  ;;  %v10277_v25 = vrot.slane %v3303_v40, %v14697_v62  ;;  %v10281_v15 = vpop.permute.xlu0 %3267 }
 0xc02   :  { %14706 = vst [vmem:[#allocation39_spill] sm:$0xff] %v10281_v15 }
 0xc05   :  { %3321 = vrot.lane.b32.xlu0 %v10259_v54, %s7771_s16  ;;  %3273 = vrot.lane.b32.xlu1 %v3262_v19, %s7777_s23 }
 0xc09   :  { %3325 = vrot.lane.b32.xlu0 %v10267_v39, %s7771_s16  ;;  %3323 = vrot.lane.b32.xlu1 %v10270_v58, %s7771_s16 }
 0xc0d   :  { %3327 = vrot.lane.b32.xlu1 %v10277_v25, %s7771_s16 }
 0xc1f   :  { %v2716_v3 = vpop.permute.xlu0 %2715 }
 0xc23   :  { %v2718_v56 = vpop.permute.xlu1 %2717  ;;  %v2720_v19 = vpop.permute.xlu0 %2719 }
 0xc24   :  { %v2723_v24 = vsel %vm61_vm2, %v2720_v19, %v2716_v3  ;;  %v2722_v18 = vsel %vm61_vm2, %v2716_v3, %v2718_v56  ;;  %v2721_v15 = vsel %vm61_vm2, %v2718_v56, %v2720_v19  ;;  %v2824_v3 = vsel %vm61_vm2, %v10194_v27, %v10190_v14 }
 0xc25   :  { %v2736_v57 = vrot.slane %v2723_v24, %v7839_v6  ;;  %v2740_v59 = vrot.slane %v2722_v18, %v7839_v6  ;;  %v2744_v48 = vrot.slane %v2721_v15, %v7839_v6 }
 0xc27   :  { %v2725_v45 = vpop.permute.xlu1 %2724  ;;  %v2727_v21 = vpop.permute.xlu0 %2726  ;;  %v2745_v41 = vmul.f32 %v2736_v57, %v7981_v53  ;;  %v2746_v18 = vmul.f32 %v2740_v59, %v7981_v53  ;;  %v2747_v15 = vmul.f32 %v2744_v48, %v7981_v53  ;;  %v2823_v57 = vsel %vm61_vm2, %v10190_v14, %v10188_v35 }
 0xc28   :  { %v2731_v42 = vsel %vm71_vm3, %v2725_v45, %v2727_v21  ;;  %v2772_v48 = vsel %vm46_vm0, %v10177_v50, %v10185_v5  ;;  %v2773_v14 = vsel %vm46_vm0, %v10185_v5, %v10183_v1  ;;  %v2852_v5 = vmul.f32 %v10083_v31, %v7995_v60 }
 0xc29   :  { %v2783_v13 = vrot.slane %v2731_v42, %v7839_v6 }
 0xc2b   :  { %v2729_v40 = vpop.permute.xlu1 %2728 }
 0xc2c   :  { %v2730_v37 = vsel %vm71_vm3, %v2727_v21, %v2729_v40  ;;  %v2732_v4 = vsel %vm71_vm3, %v2729_v40, %v2725_v45  ;;  %v2792_v21 = vmul.f32 %v2783_v13, %v7978_v52  ;;  %v2771_v45 = vsel %vm46_vm0, %v10179_v0, %v10177_v50 }
 0xc2d   :  { %v2787_v24 = vrot.slane %v2730_v37, %v7839_v6  ;;  %v2791_v42 = vrot.slane %v2732_v4, %v7839_v6  ;;  %v2822_v37 = vsel %vm61_vm2, %v10188_v35, %v10194_v27  ;;  %v2837_v13 = vrot.slane %v2824_v3, %v7839_v6 }
 0xc2e   :  { %v2777_v4 = vadd.f32 %v2771_v45, %v2745_v41  ;;  %v2841_v40 = vrot.slane %v2823_v57, %v7839_v6  ;;  %v2845_v35 = vrot.slane %v2822_v37, %v7839_v6  ;;  %v2778_v27 = vadd.f32 %v2772_v48, %v2746_v18 }
 0xc2f   :  { %v2793_v0 = vmul.f32 %v2787_v24, %v7978_v52  ;;  %v2794_v59 = vmul.f32 %v2791_v42, %v7978_v52  ;;  %v2779_v41 = vadd.f32 %v2773_v14, %v2747_v15  ;;  %v2846_v3 = vmul.f32 %v2837_v13, %v7997_v61 }
 0xc30   :  { %v2795_v19 = vadd.f32 %v2792_v21, %v2777_v4  ;;  %v2832_v50 = vsel %vm71_vm3, %v10192_v9, %v10198_v10  ;;  %v2847_v18 = vmul.f32 %v2841_v40, %v7997_v61  ;;  %v2848_v15 = vmul.f32 %v2845_v35, %v7997_v61 }
 0xc31   :  { %v2796_v42 = vadd.f32 %v2793_v0, %v2778_v27  ;;  %v2797_v52 = vadd.f32 %v2794_v59, %v2779_v41  ;;  %v2833_v57 = vsel %vm71_vm3, %v10196_v32, %v10192_v9  ;;  %v2831_v37 = vsel %vm71_vm3, %v10198_v10, %v10196_v32 }
 0xc32   :  { %v2849_v21 = vadd.f32 %v2846_v3, %v2795_v19  ;;  %v2861_v13 = vrot.slane %v2832_v50, %v7839_v6  ;;  %v2853_v9 = vmul.f32 %v10080_v44, %v7995_v60  ;;  %v2869_v19 = vrot.slane %v2833_v57, %v7839_v6 }
 0xc33   :  { %v2850_v48 = vadd.f32 %v2847_v18, %v2796_v42  ;;  %v2851_v14 = vadd.f32 %v2848_v15, %v2797_v52  ;;  %v2854_v10 = vmul.f32 %v10090_v36, %v7995_v60 }
 0xc34   :  { %v2855_v40 = vadd.f32 %v2852_v5, %v2849_v21  ;;  %v2870_v41 = vmul.f32 %v2861_v13, %v7999_v63  ;;  %v2872_v50 = vmul.f32 %v2869_v19, %v7999_v63  ;;  %v2967_v19 = vsel %vm270_vm1, %v10214_v33, %v10212_v20 }
 0xc35   :  { %v2857_v44 = vadd.f32 %v2854_v10, %v2851_v14 }
 0xc36   :  { %v2873_v42 = vadd.f32 %v2870_v41, %v2855_v40 }
 0xc3b   :  { %v2910_v56 = vpop.permute.xlu0 %2909 }
 0xc3f   :  { %v2912_v24 = vpop.permute.xlu1 %2911  ;;  %v2914_v45 = vpop.permute.xlu0 %2913 }
 0xc40   :  { %v2917_v1 = vsel %vm61_vm2, %v2914_v45, %v2910_v56  ;;  %v2916_v31 = vsel %vm61_vm2, %v2910_v56, %v2912_v24  ;;  %v2915_v4 = vsel %vm61_vm2, %v2912_v24, %v2914_v45  ;;  %v2865_v56 = vrot.slane %v2831_v37, %v7839_v6 }
 0xc41   :  { %v2930_v0 = vrot.slane %v2917_v1, %v7839_v6  ;;  %v2934_v35 = vrot.slane %v2916_v31, %v7839_v6  ;;  %v2938_v27 = vrot.slane %v2915_v4, %v7839_v6  ;;  %v2856_v24 = vadd.f32 %v2853_v9, %v2850_v48 }
 0xc42   :  { %v2871_v1 = vmul.f32 %v2865_v56, %v7999_v63  ;;  %v2875_v31 = vadd.f32 %v2872_v50, %v2857_v44  ;;  %v2965_v48 = vsel %vm270_vm1, %v10208_v47, %v10206_v8 }
 0xc43   :  { %v2919_v59 = vpop.permute.xlu1 %2918  ;;  %v2921_v32 = vpop.permute.xlu0 %2920  ;;  %v2939_v52 = vmul.f32 %v2930_v0, %v8005_v12  ;;  %v2940_v5 = vmul.f32 %v2934_v35, %v8005_v12  ;;  %v2941_v21 = vmul.f32 %v2938_v27, %v8005_v12 }
 0xc44   :  { %v2925_v45 = vsel %vm71_vm3, %v2919_v59, %v2921_v32  ;;  %v2874_v13 = vadd.f32 %v2871_v1, %v2856_v24 }
 0xc45   :  { %v2942_v15 = vadd.f32 %v2939_v52, %v2873_v42  ;;  %v2977_v57 = vrot.slane %v2925_v45, %v7839_v6  ;;  %v2944_v9 = vadd.f32 %v2941_v21, %v2875_v31  ;;  %v3133_v21 = vsel %vm61_vm2, %v10236_v26, %v10234_v38 }
 0xc46   :  { %v2943_v14 = vadd.f32 %v2940_v5, %v2874_v13 }
 0xc47   :  { %v2923_v3 = vpop.permute.xlu1 %2922  ;;  %v2971_v40 = vadd.f32 %v2965_v48, %v2942_v15  ;;  %v2973_v44 = vadd.f32 %v2967_v19, %v2944_v9  ;;  %v3082_v48 = vsel %vm46_vm0, %v10223_v49, %v10231_v43 }
 0xc48   :  { %v2924_v36 = vsel %vm71_vm3, %v2921_v32, %v2923_v3  ;;  %v2926_v18 = vsel %vm71_vm3, %v2923_v3, %v2919_v59  ;;  %v2966_v59 = vsel %vm270_vm1, %v10206_v8, %v10214_v33  ;;  %v2986_v32 = vmul.f32 %v2977_v57, %v8014_v23 }
 0xc49   :  { %v2981_v4 = vrot.slane %v2924_v36, %v7839_v6  ;;  %v2985_v0 = vrot.slane %v2926_v18, %v7839_v6  ;;  %v3134_v3 = vsel %vm61_vm2, %v10240_v22, %v10236_v26  ;;  %v2972_v24 = vadd.f32 %v2966_v59, %v2943_v14 }
 0xc4a   :  { %v2989_v45 = vadd.f32 %v2986_v32, %v2971_v40  ;;  %v3132_v18 = vsel %vm61_vm2, %v10234_v38, %v10240_v22  ;;  %v3151_v59 = vrot.slane %v3133_v21, %v7839_v6 }
 0xc4b   :  { %v3026_v37 = vpop.permute.xlu0 %3025  ;;  %v2987_v35 = vmul.f32 %v2981_v4, %v8014_v23  ;;  %v2988_v41 = vmul.f32 %v2985_v0, %v8014_v23  ;;  %v3081_v0 = vsel %vm46_vm0, %v10225_v30, %v10223_v49  ;;  %v3155_v19 = vrot.slane %v3132_v18, %v7839_v6  ;;  %v14710_v23 = vld [vmem:[#allocation87_spill] sm:$0xff] }
 0xc4d   :  { %v2990_v15 = vadd.f32 %v2987_v35, %v2972_v24  ;;  %v2991_v13 = vadd.f32 %v2988_v41, %v2973_v44  ;;  %v3162_v35 = vmul.f32 %v10136_v55, %v14624_v11  ;;  %v3163_v55 = vmul.f32 %v10133_v2, %v14624_v11 }
 0xc4f   :  { %v3028_v10 = vpop.permute.xlu1 %3027  ;;  %v3030_v56 = vpop.permute.xlu0 %3029 }
 0xc50   :  { %v3032_v47 = vsel %vm61_vm2, %v3026_v37, %v3028_v10  ;;  %v3031_v27 = vsel %vm61_vm2, %v3028_v10, %v3030_v56  ;;  %v3033_v8 = vsel %vm61_vm2, %v3030_v56, %v3026_v37  ;;  %v3147_v37 = vrot.slane %v3134_v3, %v7839_v6 }
 0xc51   :  { %v3050_v33 = vrot.slane %v3032_v47, %v7839_v6  ;;  %v3046_v20 = vrot.slane %v3033_v8, %v7839_v6  ;;  %v3054_v52 = vrot.slane %v3031_v27, %v7839_v6  ;;  %v3083_v47 = vsel %vm46_vm0, %v10231_v43, %v10229_v28 }
 0xc52   :  { %v3156_v32 = vmul.f32 %v3147_v37, %v14617_v7  ;;  %v3158_v3 = vmul.f32 %v3155_v19, %v14617_v7  ;;  %v3164_v43 = vmul.f32 %v10143_v16, %v14624_v11  ;;  %v3419_v19 = vld [vmem:[#allocation3 + $0x6] ss:$4 sm:$0x7] }
 0xc53   :  { %v3056_v50 = vmul.f32 %v3050_v33, %v8095_v51  ;;  %v3055_v42 = vmul.f32 %v3046_v20, %v8095_v51  ;;  %v3057_v36 = vmul.f32 %v3054_v52, %v8095_v51  ;;  %v3035_v1 = vpop.permute.xlu1 %3034  ;;  %v3037_v5 = vpop.permute.xlu0 %3036  ;;  %v3157_v52 = vmul.f32 %v3151_v59, %v14617_v7 }
 0xc54   :  { %v3041_v57 = vsel %vm71_vm3, %v3035_v1, %v3037_v5 }
 0xc55   :  { %v3058_v31 = vadd.f32 %v3055_v42, %v2989_v45  ;;  %v3093_v4 = vrot.slane %v3041_v57, %v7839_v6  ;;  %v3059_v26 = vadd.f32 %v3056_v50, %v2990_v15  ;;  %v3060_v22 = vadd.f32 %v3057_v36, %v2991_v13 }
 0xc57   :  { %v3087_v38 = vadd.f32 %v3081_v0, %v3058_v31  ;;  %v3102_v14 = vmul.f32 %v3093_v4, %v14616_v34  ;;  %v3039_v9 = vpop.permute.xlu1 %3038  ;;  %v3088_v27 = vadd.f32 %v3082_v48, %v3059_v26  ;;  %v3089_v41 = vadd.f32 %v3083_v47, %v3060_v22  ;;  %v14708_v22 = vld [vmem:[#allocation51_spill] sm:$0xff] }
 0xc58   :  { %v3040_v40 = vsel %vm71_vm3, %v3037_v5, %v3039_v9  ;;  %v3042_v30 = vsel %vm71_vm3, %v3039_v9, %v3035_v1  ;;  %v3377_v9 = vmul.f32 %v10267_v39, %v14708_v22  ;;  %v3378_v59 = vmul.f32 %v10277_v25, %v14708_v22  ;;  %v3497_v25 = vld [vmem:[#allocation3 + $0x6] ss:$4 sm:$0xf] }
 0xc59   :  { %v3105_v10 = vadd.f32 %v3102_v14, %v3087_v38  ;;  %v3097_v49 = vrot.slane %v3040_v40, %v7839_v6  ;;  %v3101_v56 = vrot.slane %v3042_v30, %v7839_v6  ;;  %v3375_v38 = vmul.f32 %v10259_v54, %v14708_v22 }
 0xc5a   :  { %v3376_v14 = vmul.f32 %v10270_v58, %v14708_v22  ;;  %v10494_v54 = vrot.slane %v3419_v19, %v7839_v6  ;;  %v10497_v58 = vrot.slane %v3419_v19, %v14696_v17  ;;  %v10504_v39 = vrot.slane %v3419_v19, %v14698_v29 }
 0xc5b   :  { %v3159_v8 = vadd.f32 %v3156_v32, %v3105_v10  ;;  %v3103_v33 = vmul.f32 %v3097_v49, %v14616_v34  ;;  %v3104_v20 = vmul.f32 %v3101_v56, %v14616_v34  ;;  %v3502_v40 = vrot.slane %v3497_v25, %v7839_v6 }
 0xc5c   :  { %v3506_v30 = vrot.slane %v3497_v25, %v14696_v17  ;;  %v3510_v32 = vrot.slane %v3497_v25, %v14698_v29  ;;  %v3514_v10 = vrot.slane %v3497_v25, %v14697_v62 }
 0xc5d   :  { %v3106_v24 = vadd.f32 %v3103_v33, %v3088_v27  ;;  %v3107_v44 = vadd.f32 %v3104_v20, %v3089_v41  ;;  %v10446_v45 = vadd.f32 %v3162_v35, %v3159_v8 }
 0xc5f   :  { %v3160_v50 = vadd.f32 %v3157_v52, %v3106_v24  ;;  %v3161_v28 = vadd.f32 %v3158_v3, %v3107_v44 }
 0xc61   :  { %v10452_v42 = vadd.f32 %v3163_v55, %v3160_v50  ;;  %v10454_v36 = vadd.f32 %v3164_v43, %v3161_v28 }
 0xc67   :  { %v10456_v1 = vpop.permute.xlu0 %3219 }
 0xc6b   :  { %v10458_v5 = vpop.permute.xlu1 %3221  ;;  %v10460_v21 = vpop.permute.xlu0 %3223 }
 0xc6f   :  { %v10462_v18 = vpop.permute.xlu1 %3228  ;;  %v10464_v15 = vpop.permute.xlu0 %3230 }
 0xc73   :  { %v10466_v2 = vpop.permute.xlu1 %3232  ;;  %v10468_v57 = vpop.permute.xlu0 %3271 }
 0xc77   :  { %v10470_v37 = vpop.permute.xlu1 %3273  ;;  %v3322_v16 = vpop.permute.xlu0 %3321 }
 0xc7b   :  { %v3324_v13 = vpop.permute.xlu1 %3323  ;;  %v3326_v31 = vpop.permute.xlu0 %3325 }
 0xc7c   :  { %v3329_v4 = vsel %vm46_vm0, %v3322_v16, %v3324_v13  ;;  %v3330_v0 = vsel %vm46_vm0, %v3324_v13, %v3326_v31 }
 0xc7d   :  { %3335 = vrot.lane.b32.xlu0 %v3329_v4, %s7772_s19  ;;  %3337 = vrot.lane.b32.xlu1 %v3330_v0, %s7772_s19 }
 0xc7f   :  { %v3328_v26 = vpop.permute.xlu1 %3327 }
 0xc80   :  { %v3331_v48 = vsel %vm46_vm0, %v3326_v31, %v3328_v26 }
 0xc81   :  { %3339 = vrot.lane.b32.xlu0 %v3331_v48, %s7772_s19  ;;  %3344 = vrot.lane.b32.xlu1 %v3329_v4, %s7775_s20 }
 0xc85   :  { %3346 = vrot.lane.b32.xlu0 %v3330_v0, %s7775_s20  ;;  %3348 = vrot.lane.b32.xlu1 %v3331_v48, %s7775_s20  ;;  %v14709_v48 = vld [vmem:[#allocation76_spill] sm:$0xff] }
 0xc86   :  { %v3572_v25 = vmul.f32 %v3514_v10, %v14709_v48 }
 0xc89   :  { %3383 = vrot.lane.b32.xlu0 %v3375_v38, %s7771_s16  ;;  %3385 = vrot.lane.b32.xlu1 %v3376_v14, %s7771_s16  ;;  %v3569_v38 = vmul.f32 %v3502_v40, %v14709_v48  ;;  %v3571_v14 = vmul.f32 %v3510_v32, %v14709_v48 }
 0xc8d   :  { %3387 = vrot.lane.b32.xlu0 %v3377_v9, %s7771_s16  ;;  %3389 = vrot.lane.b32.xlu1 %v3378_v59, %s7771_s16  ;;  %v3570_v9 = vmul.f32 %v3506_v30, %v14709_v48  ;;  %v3613_v59 = vld [vmem:[#allocation3 + $0x3] ss:$4 sm:$0xf] }
 0xc8e   :  { %v3618_v19 = vrot.slane %v3613_v59, %v7839_v6 }
 0xc90   :  { %v3685_v12 = vmul.f32 %v3618_v19, %v14710_v23 }
 0xc91   :  { %3436 = vrot.lane.b32.xlu0 %v10494_v54, %s7772_s19  ;;  %3438 = vrot.lane.b32.xlu1 %v10497_v58, %s7772_s19 }
 0xc95   :  { %3440 = vrot.lane.b32.xlu0 %v10504_v39, %s7772_s19  ;;  %3445 = vrot.lane.b32.xlu1 %v10494_v54, %s7775_s20 }
 0xc99   :  { %3447 = vrot.lane.b32.xlu0 %v10497_v58, %s7775_s20  ;;  %3449 = vrot.lane.b32.xlu1 %v10504_v39, %s7775_s20 }
 0xc9d   :  { %3515 = vrot.lane.b32.xlu0 %v3502_v40, %s7777_s23  ;;  %3517 = vrot.lane.b32.xlu1 %v3506_v30, %s7777_s23  ;;  %v3626_v40 = vrot.slane %v3613_v59, %v14698_v29  ;;  %v3630_v30 = vrot.slane %v3613_v59, %v14697_v62 }
 0xca1   :  { %3519 = vrot.lane.b32.xlu0 %v3510_v32, %s7777_s23  ;;  %3521 = vrot.lane.b32.xlu1 %v3514_v10, %s7777_s23 }
 0xcef   :  { %v10522_v49 = vpop.permute.xlu1 %3337  ;;  %v10524_v56 = vpop.permute.xlu0 %3335 }
 0xcf3   :  { %v10526_v35 = vpop.permute.xlu1 %3344  ;;  %v10528_v47 = vpop.permute.xlu0 %3339 }
 0xcf7   :  { %v10530_v27 = vpop.permute.xlu1 %3348  ;;  %v10532_v8 = vpop.permute.xlu0 %3346 }
 0xcfb   :  { %v10534_v41 = vpop.permute.xlu1 %3385  ;;  %v10536_v33 = vpop.permute.xlu0 %3383 }
 0xcff   :  { %v10538_v20 = vpop.permute.xlu1 %3389  ;;  %v10540_v52 = vpop.permute.xlu0 %3387 }
 0xd03   :  { %v10542_v3 = vpop.permute.xlu1 %3438  ;;  %v10544_v24 = vpop.permute.xlu0 %3436 }
 0xd07   :  { %v10546_v44 = vpop.permute.xlu1 %3445  ;;  %v10548_v55 = vpop.permute.xlu0 %3440 }
 0xd0b   :  { %v10550_v50 = vpop.permute.xlu1 %3449  ;;  %v10552_v28 = vpop.permute.xlu0 %3447 }
 0xd0f   :  { %v3518_v43 = vpop.permute.xlu1 %3517  ;;  %v3516_v16 = vpop.permute.xlu0 %3515 }
 0xd10   :  { %v3523_v13 = vsel %vm270_vm1, %v3516_v16, %v3518_v43 }
 0xd11   :  { %3529 = vrot.lane.b32.xlu0 %v3523_v13, %s7772_s19 }
 0xd13   :  { %v3522_v31 = vpop.permute.xlu1 %3521  ;;  %v3520_v4 = vpop.permute.xlu0 %3519 }
 0xd14   :  { %v3525_v0 = vsel %vm270_vm1, %v3520_v4, %v3522_v31  ;;  %v3524_v26 = vsel %vm270_vm1, %v3518_v43, %v3520_v4  ;;  %v3622_v43 = vrot.slane %v3613_v59, %v14696_v17 }
 0xd15   :  { %3533 = vrot.lane.b32.xlu0 %v3525_v0, %s7772_s19  ;;  %3531 = vrot.lane.b32.xlu1 %v3524_v26, %s7772_s19 }
 0xd19   :  { %3540 = vrot.lane.b32.xlu0 %v3524_v26, %s7775_s20  ;;  %3538 = vrot.lane.b32.xlu1 %v3523_v13, %s7775_s20 }
 0xd1d   :  { %3577 = vrot.lane.b32.xlu0 %v3569_v38, %s7777_s23  ;;  %3542 = vrot.lane.b32.xlu1 %v3525_v0, %s7775_s20 }
 0xd21   :  { %3581 = vrot.lane.b32.xlu0 %v3571_v14, %s7777_s23  ;;  %3579 = vrot.lane.b32.xlu1 %v3570_v9, %s7777_s23 }
 0xd25   :  { %3631 = vrot.lane.b32.xlu0 %v3618_v19, %s7771_s16  ;;  %3583 = vrot.lane.b32.xlu1 %v3572_v25, %s7777_s23 }
 0xd29   :  { %3635 = vrot.lane.b32.xlu0 %v3626_v40, %s7771_s16  ;;  %3633 = vrot.lane.b32.xlu1 %v3622_v43, %s7771_s16 }
 0xd2d   :  { %3637 = vrot.lane.b32.xlu1 %v3630_v30, %s7771_s16 }
 0xd83   :  { %v10579_v32 = vpop.permute.xlu0 %3529 }
 0xd87   :  { %v10581_v16 = vpop.permute.xlu1 %3531  ;;  %v10583_v10 = vpop.permute.xlu0 %3533 }
 0xd8b   :  { %v10585_v13 = vpop.permute.xlu1 %3538  ;;  %v10587_v31 = vpop.permute.xlu0 %3540 }
 0xd8f   :  { %v10589_v4 = vpop.permute.xlu1 %3542  ;;  %v10591_v0 = vpop.permute.xlu0 %3577 }
 0xd93   :  { %v10593_v26 = vpop.permute.xlu1 %3579  ;;  %v10595_v38 = vpop.permute.xlu0 %3581 }
 0xd97   :  { %v10597_v14 = vpop.permute.xlu1 %3583  ;;  %v3632_v9 = vpop.permute.xlu0 %3631 }
 0xd9b   :  { %v3634_v59 = vpop.permute.xlu1 %3633  ;;  %v3636_v25 = vpop.permute.xlu0 %3635 }
 0xd9c   :  { %v3639_v11 = vsel %vm46_vm0, %v3632_v9, %v3634_v59  ;;  %v3640_v7 = vsel %vm46_vm0, %v3634_v59, %v3636_v25  ;;  %v3686_v9 = vmul.f32 %v3622_v43, %v14710_v23  ;;  %v3687_v59 = vmul.f32 %v3626_v40, %v14710_v23 }
 0xd9d   :  { %3645 = vrot.lane.b32.xlu0 %v3639_v11, %s7772_s19  ;;  %3647 = vrot.lane.b32.xlu1 %v3640_v7, %s7772_s19 }
 0xd9f   :  { %v3638_v34 = vpop.permute.xlu1 %3637 }
 0xda0   :  { %v3641_v51 = vsel %vm46_vm0, %v3636_v25, %v3638_v34  ;;  %v3688_v34 = vmul.f32 %v3630_v30, %v14710_v23  ;;  %v3729_v25 = vld [vmem:[#allocation3 + $0x7] ss:$4 sm:$0x7] }
 0xda1   :  { %3649 = vrot.lane.b32.xlu0 %v3641_v51, %s7772_s19  ;;  %3654 = vrot.lane.b32.xlu1 %v3639_v11, %s7775_s20  ;;  %v3807_v11 = vld [vmem:[#allocation3 + $0x7] ss:$4 sm:$0xf] }
 0xda2   :  { %v3812_v19 = vrot.slane %v3807_v11, %v7839_v6  ;;  %v3816_v40 = vrot.slane %v3807_v11, %v14696_v17  ;;  %v3820_v43 = vrot.slane %v3807_v11, %v14698_v29  ;;  %v3824_v30 = vrot.slane %v3807_v11, %v14697_v62 }
 0xda5   :  { %3656 = vrot.lane.b32.xlu0 %v3640_v7, %s7775_s20  ;;  %3658 = vrot.lane.b32.xlu1 %v3641_v51, %s7775_s20  ;;  %v10617_v7 = vrot.slane %v3729_v25, %v7839_v6  ;;  %v10620_v51 = vrot.slane %v3729_v25, %v14696_v17 }
 0xda7   :  { %14711 = vst [vmem:[#allocation8_spill] sm:$0xff] %v10617_v7  ;;  %14712 = vst [vmem:[#allocation40_spill] sm:$0xff] %v10620_v51 }
 0xda9   :  { %3693 = vrot.lane.b32.xlu0 %v3685_v12, %s7771_s16  ;;  %3695 = vrot.lane.b32.xlu1 %v3686_v9, %s7771_s16  ;;  %v10627_v12 = vrot.slane %v3729_v25, %v14698_v29 }
 0xdab   :  { %14713 = vst [vmem:[#allocation7_spill] sm:$0xff] %v10627_v12 }
 0xdad   :  { %3697 = vrot.lane.b32.xlu0 %v3687_v59, %s7771_s16  ;;  %3699 = vrot.lane.b32.xlu1 %v3688_v34, %s7771_s16 }
 0xdb1   :  { %3746 = vrot.lane.b32.xlu0 %v10617_v7, %s7772_s19  ;;  %3748 = vrot.lane.b32.xlu1 %v10620_v51, %s7772_s19 }
 0xdb5   :  { %3750 = vrot.lane.b32.xlu0 %v10627_v12, %s7772_s19  ;;  %3755 = vrot.lane.b32.xlu1 %v10617_v7, %s7775_s20 }
 0xdb9   :  { %3757 = vrot.lane.b32.xlu0 %v10620_v51, %s7775_s20  ;;  %3759 = vrot.lane.b32.xlu1 %v10627_v12, %s7775_s20 }
 0xdbd   :  { %3825 = vrot.lane.b32.xlu0 %v3812_v19, %s7777_s23  ;;  %3827 = vrot.lane.b32.xlu1 %v3816_v40, %s7777_s23 }
 0xdc1   :  { %3829 = vrot.lane.b32.xlu0 %v3820_v43, %s7777_s23  ;;  %3831 = vrot.lane.b32.xlu1 %v3824_v30, %s7777_s23 }
 0xe0f   :  { %v10645_v9 = vpop.permute.xlu1 %3647  ;;  %v10647_v59 = vpop.permute.xlu0 %3645 }
 0xe13   :  { %v10649_v34 = vpop.permute.xlu1 %3654  ;;  %v10651_v25 = vpop.permute.xlu0 %3649 }
 0xe14   :  { %14714 = vst [vmem:[#allocation37_spill] sm:$0xff] %v10649_v34 }
 0xe17   :  { %v10653_v63 = vpop.permute.xlu1 %3658  ;;  %v10655_v60 = vpop.permute.xlu0 %3656 }
 0xe18   :  { %14715 = vst [vmem:[#allocation36_spill] sm:$0xff] %v10653_v63 }
 0xe1b   :  { %v10657_v61 = vpop.permute.xlu1 %3695  ;;  %v10659_v53 = vpop.permute.xlu0 %3693 }
 0xe1c   :  { %14716 = vst [vmem:[#allocation41_spill] sm:$0xff] %v10657_v61  ;;  %14717 = vst [vmem:[#allocation44_spill] sm:$0xff] %v10659_v53 }
 0xe1f   :  { %v10661_v11 = vpop.permute.xlu1 %3699  ;;  %v10663_v23 = vpop.permute.xlu0 %3697 }
 0xe20   :  { %14718 = vst [vmem:[#allocation55_spill] sm:$0xff] %v10661_v11  ;;  %14719 = vst [vmem:[#allocation43_spill] sm:$0xff] %v10663_v23 }
 0xe23   :  { %v10665_v48 = vpop.permute.xlu1 %3748  ;;  %v10667_v22 = vpop.permute.xlu0 %3746 }
 0xe24   :  { %14720 = vst [vmem:[#allocation28_spill] sm:$0xff] %v10665_v48  ;;  %14721 = vst [vmem:[#allocation31_spill] sm:$0xff] %v10667_v22 }
 0xe27   :  { %v10669_v12 = vpop.permute.xlu1 %3755  ;;  %v10671_v51 = vpop.permute.xlu0 %3750 }
 0xe28   :  { %14722 = vst [vmem:[#allocation29_spill] sm:$0xff] %v10669_v12  ;;  %v14724_v12 = vld [vmem:[#allocation108_spill] sm:$0xff] }
 0xe2b   :  { %v10673_v7 = vpop.permute.xlu1 %3759  ;;  %v10675_v63 = vpop.permute.xlu0 %3757 }
 0xe2c   :  { %14723 = vst [vmem:[#allocation46_spill] sm:$0xff] %v10675_v63  ;;  %v3879_v63 = vmul.f32 %v3812_v19, %v14724_v12 }
 0xe2f   :  { %v3828_v34 = vpop.permute.xlu1 %3827  ;;  %v3826_v61 = vpop.permute.xlu0 %3825 }
 0xe30   :  { %v3833_v53 = vsel %vm270_vm1, %v3826_v61, %v3828_v34  ;;  %v3881_v61 = vmul.f32 %v3820_v43, %v14724_v12  ;;  %v14730_v43 = vld [vmem:[#allocation9_spill] sm:$0xff] }
 0xe31   :  { %3839 = vrot.lane.b32.xlu0 %v3833_v53, %s7772_s19 }
 0xe33   :  { %v3832_v11 = vpop.permute.xlu1 %3831  ;;  %v3830_v23 = vpop.permute.xlu0 %3829 }
 0xe34   :  { %v3835_v48 = vsel %vm270_vm1, %v3830_v23, %v3832_v11  ;;  %v3834_v22 = vsel %vm270_vm1, %v3828_v34, %v3830_v23  ;;  %v3880_v11 = vmul.f32 %v3816_v40, %v14724_v12  ;;  %v7675_v23 = vld [vmem:[%s13899_s2 + $0x14] ss:$4 sm:$0xf]  ;;  %v14729_v40 = vld [vmem:[#allocation24_spill] sm:$0xff]  ;;  %v3227_v34 = vsel %vm61_vm2, %v10460_v21, %v10456_v1 }
 0xe35   :  { %3843 = vrot.lane.b32.xlu0 %v3835_v48, %s7772_s19  ;;  %3841 = vrot.lane.b32.xlu1 %v3834_v22, %s7772_s19  ;;  %v10713_v19 = vrot.slane %v7675_v23, %v14697_v62 }
 0xe37   :  { %14728 = vst [vmem:[#allocation56_spill] sm:$0xff] %v10713_v19 }
 0xe39   :  { %3850 = vrot.lane.b32.xlu0 %v3834_v22, %s7775_s20  ;;  %3848 = vrot.lane.b32.xlu1 %v3833_v53, %s7775_s20  ;;  %v10696_v53 = vrot.slane %v7675_v23, %v7839_v6  ;;  %v3882_v22 = vmul.f32 %v3824_v30, %v14724_v12  ;;  %v3142_v30 = vsel %vm71_vm3, %v14730_v43, %v14729_v40 }
 0xe3a   :  { %v3226_v12 = vsel %vm61_vm2, %v10456_v1, %v10458_v5  ;;  %v3235_v1 = vsel %vm71_vm3, %v10462_v18, %v10464_v15 }
 0xe3b   :  { %14725 = vst [vmem:[#allocation48_spill] sm:$0xff] %v10696_v53 }
 0xe3d   :  { %3887 = vrot.lane.b32.xlu0 %v3879_v63, %s7777_s23  ;;  %3852 = vrot.lane.b32.xlu1 %v3835_v48, %s7775_s20  ;;  %v10703_v63 = vrot.slane %v7675_v23, %v14698_v29  ;;  %v10706_v48 = vrot.slane %v7675_v23, %v14696_v17  ;;  %v3171_v23 = vrot.slane %v3142_v30, %v7839_v6  ;;  %v14732_v17 = vld [vmem:[#allocation34_spill] sm:$0xff] }
 0xe3e   :  { %v14733_v30 = vld [vmem:[#allocation42_spill] sm:$0xff] }
 0xe3f   :  { %14726 = vst [vmem:[#allocation60_spill] sm:$0xff] %v10703_v63  ;;  %14727 = vst [vmem:[#allocation61_spill] sm:$0xff] %v10706_v48 }
 0xe41   :  { %3891 = vrot.lane.b32.xlu0 %v3881_v61, %s7777_s23  ;;  %3889 = vrot.lane.b32.xlu1 %v3880_v11, %s7777_s23  ;;  %v14731_v61 = vld [vmem:[#allocation35_spill] sm:$0xff] }
 0xe42   :  { %v3141_v11 = vsel %vm71_vm3, %v14729_v40, %v14731_v61  ;;  %v3143_v62 = vsel %vm71_vm3, %v14731_v61, %v14730_v43  ;;  %v3225_v40 = vsel %vm61_vm2, %v10458_v5, %v10460_v21  ;;  %v3287_v21 = vrot.slane %v3235_v1, %v7839_v6 }
 0xe43   :  { %v3175_v29 = vrot.slane %v3141_v11, %v7839_v6  ;;  %v3179_v43 = vrot.slane %v3143_v62, %v7839_v6  ;;  %v3234_v11 = vsel %vm71_vm3, %v10464_v15, %v10466_v2  ;;  %v3248_v5 = vrot.slane %v3225_v40, %v7839_v6  ;;  %v14734_v40 = vld [vmem:[#allocation30_spill] sm:$0xff] }
 0xe44   :  { %v3291_v15 = vrot.slane %v3234_v11, %v7839_v6 }
 0xe45   :  { %3947 = vrot.lane.b32.xlu0 %v10696_v53, %s7771_s16  ;;  %3893 = vrot.lane.b32.xlu1 %v3882_v22, %s7777_s23  ;;  %v3240_v22 = vrot.slane %v3227_v34, %v7839_v6 }
 0xe47   :  { %v3249_v34 = vmul.f32 %v3240_v22, %v14733_v30 }
 0xe49   :  { %3951 = vrot.lane.b32.xlu0 %v10703_v63, %s7771_s16  ;;  %3949 = vrot.lane.b32.xlu1 %v10706_v48, %s7771_s16  ;;  %v3244_v63 = vrot.slane %v3226_v12, %v7839_v6  ;;  %v3343_v12 = vsel %vm61_vm2, %v10528_v47, %v10524_v56 }
 0xe4a   :  { %v3356_v48 = vrot.slane %v3343_v12, %v7839_v6  ;;  %v14737_v12 = vld [vmem:[#allocation58_spill] sm:$0xff] }
 0xe4b   :  { %v3250_v62 = vmul.f32 %v3244_v63, %v14733_v30  ;;  %v3341_v63 = vsel %vm61_vm2, %v10522_v49, %v10528_v47 }
 0xe4d   :  { %3953 = vrot.lane.b32.xlu1 %v10713_v19, %s7771_s16  ;;  %v3180_v19 = vmul.f32 %v3171_v23, %v14732_v17  ;;  %v3181_v23 = vmul.f32 %v3175_v29, %v14732_v17  ;;  %v3342_v29 = vsel %vm61_vm2, %v10524_v56, %v10522_v49 }
 0xe4f   :  { %v3183_v61 = vadd.f32 %v3180_v19, %v10446_v45  ;;  %v3236_v45 = vsel %vm71_vm3, %v10466_v2, %v10462_v18  ;;  %v3182_v19 = vmul.f32 %v3179_v43, %v14732_v17  ;;  %v3251_v18 = vmul.f32 %v3248_v5, %v14733_v30  ;;  %v14736_v2 = vld [vmem:[#allocation47_spill] sm:$0xff]  ;;  %v14779_v30 = vld [vmem:[#allocation38_spill] sm:$0xff] }
 0xe50   :  { %v3184_v11 = vadd.f32 %v3181_v23, %v10452_v42  ;;  %v3295_v56 = vrot.slane %v3236_v45, %v7839_v6  ;;  %v3276_v43 = vsel %vm270_vm1, %v14734_v40, %v10468_v57  ;;  %v3297_v53 = vmul.f32 %v3291_v15, %v14736_v2 }
 0xe51   :  { %v3252_v22 = vadd.f32 %v3249_v34, %v3183_v61  ;;  %v14735_v34 = vld [vmem:[#allocation39_spill] sm:$0xff]  ;;  %v3296_v61 = vmul.f32 %v3287_v21, %v14736_v2  ;;  %v3185_v47 = vadd.f32 %v3182_v19, %v10454_v36  ;;  %v3364_v5 = vrot.slane %v3341_v63, %v7839_v6 }
 0xe52   :  { %v3275_v1 = vsel %vm270_vm1, %v14735_v34, %v14734_v40  ;;  %v3360_v34 = vrot.slane %v3342_v29, %v7839_v6  ;;  %v3253_v49 = vadd.f32 %v3250_v62, %v3184_v11  ;;  %v3277_v42 = vsel %vm270_vm1, %v10468_v57, %v10470_v37 }
 0xe53   :  { %v3281_v17 = vadd.f32 %v3275_v1, %v3252_v22  ;;  %v3254_v23 = vadd.f32 %v3251_v18, %v3185_v47  ;;  %v3365_v45 = vmul.f32 %v3356_v48, %v14737_v12  ;;  %v3351_v22 = vsel %vm71_vm3, %v10526_v35, %v10532_v8  ;;  %v14739_v47 = vld [vmem:[#allocation70_spill] sm:$0xff] }
 0xe54   :  { %v3282_v21 = vadd.f32 %v3276_v43, %v3253_v49  ;;  %v3298_v15 = vmul.f32 %v3295_v56, %v14736_v2  ;;  %v3366_v62 = vmul.f32 %v3360_v34, %v14737_v12  ;;  %v3444_v29 = vsel %vm61_vm2, %v10548_v55, %v10544_v24  ;;  %v14738_v49 = vld [vmem:[#allocation64_spill] sm:$0xff] }
 0xe55   :  { %v3299_v36 = vadd.f32 %v3296_v61, %v3281_v17  ;;  %v3283_v37 = vadd.f32 %v3277_v42, %v3254_v23  ;;  %v3367_v19 = vmul.f32 %v3364_v5, %v14737_v12  ;;  %v3350_v48 = vsel %vm71_vm3, %v10532_v8, %v10530_v27 }
 0xe56   :  { %v3300_v57 = vadd.f32 %v3297_v53, %v3282_v21  ;;  %v3352_v40 = vsel %vm71_vm3, %v10530_v27, %v10526_v35  ;;  %v3403_v17 = vrot.slane %v3351_v22, %v7839_v6  ;;  %v3391_v1 = vsel %vm46_vm0, %v10536_v33, %v10534_v41 }
 0xe57   :  { %v3443_v53 = vsel %vm61_vm2, %v10544_v24, %v10542_v3  ;;  %v3368_v63 = vadd.f32 %v3365_v45, %v3299_v36  ;;  %v3392_v8 = vsel %vm46_vm0, %v10534_v41, %v10540_v52  ;;  %v3442_v35 = vsel %vm61_vm2, %v10542_v3, %v10548_v55 }
 0xe58   :  { %v3457_v27 = vrot.slane %v3444_v29, %v7839_v6  ;;  %v3407_v18 = vrot.slane %v3350_v48, %v7839_v6  ;;  %v3369_v33 = vadd.f32 %v3366_v62, %v3300_v57  ;;  %v3301_v61 = vadd.f32 %v3298_v15, %v3283_v37  ;;  %v14740_v48 = vld [vmem:[#allocation71_spill] sm:$0xff] }
 0xe59   :  { %v3397_v11 = vadd.f32 %v3391_v1, %v3368_v63  ;;  %v3461_v56 = vrot.slane %v3443_v53, %v7839_v6  ;;  %v3411_v24 = vrot.slane %v3352_v40, %v7839_v6  ;;  %v3393_v41 = vsel %vm46_vm0, %v10540_v52, %v10538_v20 }
 0xe5a   :  { %v3398_v43 = vadd.f32 %v3392_v8, %v3369_v33  ;;  %v3465_v34 = vrot.slane %v3442_v35, %v7839_v6  ;;  %v3412_v3 = vmul.f32 %v3403_v17, %v14738_v49  ;;  %v3370_v55 = vadd.f32 %v3367_v19, %v3301_v61  ;;  %v14741_v35 = vld [vmem:[#allocation72_spill] sm:$0xff] }
 0xe5b   :  { %v3466_v5 = vmul.f32 %v3457_v27, %v14739_v47  ;;  %v3413_v42 = vmul.f32 %v3407_v18, %v14738_v49  ;;  %v3452_v21 = vsel %vm71_vm3, %v10546_v44, %v10552_v28  ;;  %v3467_v22 = vmul.f32 %v3461_v56, %v14739_v47 }
 0xe5c   :  { %v3415_v23 = vadd.f32 %v3412_v3, %v3397_v11  ;;  %v3399_v45 = vadd.f32 %v3393_v41, %v3370_v55  ;;  %v3451_v20 = vsel %vm71_vm3, %v10552_v28, %v10550_v50  ;;  %v3414_v52 = vmul.f32 %v3411_v24, %v14738_v49  ;;  %v14742_v11 = vld [vmem:[#allocation79_spill] sm:$0xff] }
 0xe5d   :  { %v3416_v15 = vadd.f32 %v3413_v42, %v3398_v43  ;;  %v3468_v62 = vmul.f32 %v3465_v34, %v14739_v47  ;;  %v3453_v36 = vsel %vm71_vm3, %v10550_v50, %v10546_v44  ;;  %v3481_v57 = vrot.slane %v3452_v21, %v7839_v6 }
 0xe5e   :  { %v3469_v29 = vadd.f32 %v3466_v5, %v3415_v23  ;;  %v3536_v37 = vsel %vm61_vm2, %v10579_v32, %v10581_v16  ;;  %v3537_v28 = vsel %vm61_vm2, %v10583_v10, %v10579_v32  ;;  %v3485_v19 = vrot.slane %v3451_v20, %v7839_v6 }
 0xe5f   :  { %v3472_v40 = vmul.f32 %v10494_v54, %v14740_v48  ;;  %v3417_v17 = vadd.f32 %v3414_v52, %v3399_v45  ;;  %v3470_v44 = vadd.f32 %v3467_v22, %v3416_v15  ;;  %v3535_v50 = vsel %vm61_vm2, %v10581_v16, %v10583_v10 }
 0xe60   :  { %v3489_v1 = vrot.slane %v3453_v36, %v7839_v6  ;;  %v3554_v53 = vrot.slane %v3536_v37, %v7839_v6  ;;  %v3550_v63 = vrot.slane %v3537_v28, %v7839_v6  ;;  %v3473_v32 = vmul.f32 %v10497_v58, %v14740_v48  ;;  %v14744_v37 = vld [vmem:[#allocation94_spill] sm:$0xff] }
 0xe61   :  { %v3471_v8 = vadd.f32 %v3468_v62, %v3417_v17  ;;  %v3490_v27 = vmul.f32 %v3481_v57, %v14741_v35  ;;  %v3475_v54 = vadd.f32 %v3472_v40, %v3469_v29  ;;  %v3491_v18 = vmul.f32 %v3485_v19, %v14741_v35  ;;  %v14745_v19 = vld [vmem:[#allocation37_spill] sm:$0xff] }
 0xe62   :  { %v3558_v33 = vrot.slane %v3535_v50, %v7839_v6  ;;  %v3476_v61 = vadd.f32 %v3473_v32, %v3470_v44  ;;  %v3474_v16 = vmul.f32 %v10504_v39, %v14740_v48  ;;  %v3492_v10 = vmul.f32 %v3489_v1, %v14741_v35  ;;  %v14747_v32 = vld [vmem:[#allocation36_spill] sm:$0xff] }
 0xe63   :  { %v3560_v56 = vmul.f32 %v3554_v53, %v14742_v11  ;;  %v3559_v24 = vmul.f32 %v3550_v63, %v14742_v11  ;;  %v3545_v58 = vsel %vm71_vm3, %v10585_v13, %v10587_v31  ;;  %v3544_v41 = vsel %vm71_vm3, %v10587_v31, %v10589_v4 }
 0xe64   :  { %v3493_v43 = vadd.f32 %v3490_v27, %v3475_v54  ;;  %v3477_v34 = vadd.f32 %v3474_v16, %v3471_v8  ;;  %v3653_v39 = vsel %vm61_vm2, %v10651_v25, %v10647_v59  ;;  %v3561_v3 = vmul.f32 %v3558_v33, %v14742_v11  ;;  %v14749_v33 = vld [vmem:[#allocation44_spill] sm:$0xff] }
 0xe65   :  { %v3546_v55 = vsel %vm71_vm3, %v10589_v4, %v10585_v13  ;;  %v3494_v5 = vadd.f32 %v3491_v18, %v3476_v61  ;;  %v3652_v31 = vsel %vm61_vm2, %v10647_v59, %v10645_v9  ;;  %v3597_v42 = vrot.slane %v3545_v58, %v7839_v6  ;;  %v14748_v18 = vld [vmem:[#allocation41_spill] sm:$0xff]  ;;  %v14750_v16 = vld [vmem:[#allocation28_spill] sm:$0xff] }
 0xe66   :  { %v3585_v21 = vsel %vm270_vm1, %v10591_v0, %v10593_v26  ;;  %v3586_v23 = vsel %vm270_vm1, %v10593_v26, %v10595_v38  ;;  %v3651_v13 = vsel %vm61_vm2, %v10645_v9, %v10651_v25  ;;  %v3601_v4 = vrot.slane %v3544_v41, %v7839_v6  ;;  %v14743_v25 = vld [vmem:[#allocation84_spill] sm:$0xff] }
 0xe67   :  { %v3562_v45 = vadd.f32 %v3559_v24, %v3493_v43  ;;  %v3563_v22 = vadd.f32 %v3560_v56, %v3494_v5  ;;  %v3666_v59 = vrot.slane %v3653_v39, %v7839_v6  ;;  %v3605_v20 = vrot.slane %v3546_v55, %v7839_v6  ;;  %v14751_v24 = vld [vmem:[#allocation43_spill] sm:$0xff] }
 0xe68   :  { %v3495_v52 = vadd.f32 %v3492_v10, %v3477_v34  ;;  %v3670_v0 = vrot.slane %v3652_v31, %v7839_v6  ;;  %v3587_v26 = vsel %vm270_vm1, %v10595_v38, %v10597_v14  ;;  %v3674_v36 = vrot.slane %v3651_v13, %v7839_v6  ;;  %v14746_v38 = vld [vmem:[#allocation31_spill] sm:$0xff] }
 0xe69   :  { %v3591_v15 = vadd.f32 %v3585_v21, %v3562_v45  ;;  %v3592_v62 = vadd.f32 %v3586_v23, %v3563_v22  ;;  %v3606_v29 = vmul.f32 %v3597_v42, %v14743_v25  ;;  %v3607_v57 = vmul.f32 %v3601_v4, %v14743_v25  ;;  %v14752_v5 = vld [vmem:[#allocation55_spill] sm:$0xff]  ;;  %v14753_v4 = vld [vmem:[#allocation100_spill] sm:$0xff] }
 0xe6a   :  { %v3564_v9 = vadd.f32 %v3561_v3, %v3495_v52  ;;  %v3675_v28 = vmul.f32 %v3666_v59, %v14744_v37  ;;  %v3661_v40 = vsel %vm71_vm3, %v14745_v19, %v10655_v60  ;;  %v3608_v17 = vmul.f32 %v3605_v20, %v14743_v25  ;;  %v14754_v22 = vld [vmem:[#allocation104_spill] sm:$0xff] }
 0xe6b   :  { %v3676_v50 = vmul.f32 %v3670_v0, %v14744_v37  ;;  %v3754_v14 = vsel %vm61_vm2, %v10671_v51, %v14746_v38  ;;  %v3609_v1 = vadd.f32 %v3606_v29, %v3591_v15  ;;  %v3610_v53 = vadd.f32 %v3607_v57, %v3592_v62  ;;  %v14755_v0 = vld [vmem:[#allocation46_spill] sm:$0xff]  ;;  %v14756_v62 = vld [vmem:[#allocation29_spill] sm:$0xff] }
 0xe6c   :  { %v3593_v44 = vadd.f32 %v3587_v26, %v3564_v9  ;;  %v3677_v63 = vmul.f32 %v3674_v36, %v14744_v37  ;;  %v3660_v8 = vsel %vm71_vm3, %v10655_v60, %v14747_v32  ;;  %v3662_v27 = vsel %vm71_vm3, %v14747_v32, %v14745_v19  ;;  %v14758_v32 = vld [vmem:[#allocation8_spill] sm:$0xff] }
 0xe6d   :  { %v3713_v54 = vrot.slane %v3661_v40, %v7839_v6  ;;  %v3701_v61 = vsel %vm46_vm0, %v14749_v33, %v14748_v18  ;;  %v3753_v10 = vsel %vm61_vm2, %v14746_v38, %v14750_v16  ;;  %v3678_v56 = vadd.f32 %v3675_v28, %v3609_v1 }
 0xe6e   :  { %v3702_v60 = vsel %vm46_vm0, %v14748_v18, %v14751_v24  ;;  %v3752_v58 = vsel %vm61_vm2, %v14750_v16, %v10671_v51  ;;  %v3767_v41 = vrot.slane %v3754_v14, %v7839_v6  ;;  %v3611_v43 = vadd.f32 %v3608_v17, %v3593_v44  ;;  %v14759_v16 = vld [vmem:[#allocation40_spill] sm:$0xff] }
 0xe6f   :  { %v3717_v34 = vrot.slane %v3660_v8, %v7839_v6  ;;  %v3679_v39 = vadd.f32 %v3676_v50, %v3610_v53  ;;  %v3721_v3 = vrot.slane %v3662_v27, %v7839_v6  ;;  %v3707_v55 = vadd.f32 %v3701_v61, %v3678_v56 }
 0xe70   :  { %v3703_v31 = vsel %vm46_vm0, %v14751_v24, %v14752_v5  ;;  %v3771_v42 = vrot.slane %v3753_v10, %v7839_v6  ;;  %v3680_v23 = vadd.f32 %v3677_v63, %v3611_v43  ;;  %v3775_v51 = vrot.slane %v3752_v58, %v7839_v6  ;;  %v14757_v63 = vld [vmem:[#allocation105_spill] sm:$0xff] }
 0xe71   :  { %v3708_v13 = vadd.f32 %v3702_v60, %v3679_v39  ;;  %v3722_v45 = vmul.f32 %v3713_v54, %v14753_v4  ;;  %v3776_v59 = vmul.f32 %v3767_v41, %v14754_v22  ;;  %v3723_v20 = vmul.f32 %v3717_v34, %v14753_v4  ;;  %v14760_v60 = vld [vmem:[#allocation106_spill] sm:$0xff]  ;;  %v14761_v39 = vld [vmem:[#allocation7_spill] sm:$0xff] }
 0xe72   :  { %v3709_v52 = vadd.f32 %v3703_v31, %v3680_v23  ;;  %v3761_v15 = vsel %vm71_vm3, %v14755_v0, %v10673_v7  ;;  %v3762_v26 = vsel %vm71_vm3, %v14756_v62, %v14755_v0  ;;  %v3724_v36 = vmul.f32 %v3721_v3, %v14753_v4 }
 0xe73   :  { %v3725_v9 = vadd.f32 %v3722_v45, %v3707_v55  ;;  %v3777_v29 = vmul.f32 %v3771_v42, %v14754_v22  ;;  %v3726_v19 = vadd.f32 %v3723_v20, %v3708_v13  ;;  %v3778_v40 = vmul.f32 %v3775_v51, %v14754_v22  ;;  %v14762_v55 = vld [vmem:[#allocation23_spill] sm:$0xff] }
 0xe74   :  { %v3763_v38 = vsel %vm71_vm3, %v10673_v7, %v14756_v62  ;;  %v3791_v14 = vrot.slane %v3762_v26, %v7839_v6  ;;  %v3795_v1 = vrot.slane %v3761_v15, %v7839_v6  ;;  %v3727_v53 = vadd.f32 %v3724_v36, %v3709_v52 }
 0xe75   :  { %v3779_v50 = vadd.f32 %v3776_v59, %v3725_v9  ;;  %v3782_v8 = vmul.f32 %v14758_v32, %v14757_v63  ;;  %v3780_v27 = vadd.f32 %v3777_v29, %v3726_v19  ;;  %v3783_v10 = vmul.f32 %v14759_v16, %v14757_v63 }
 0xe76   :  { %v3781_v56 = vadd.f32 %v3778_v40, %v3727_v53  ;;  %v3799_v7 = vrot.slane %v3763_v38, %v7839_v6  ;;  %v3800_v58 = vmul.f32 %v3791_v14, %v14760_v60  ;;  %v3801_v41 = vmul.f32 %v3795_v1, %v14760_v60 }
 0xe77   :  { %v3785_v34 = vadd.f32 %v3782_v8, %v3779_v50  ;;  %v3784_v3 = vmul.f32 %v14761_v39, %v14757_v63  ;;  %v3786_v13 = vadd.f32 %v3783_v10, %v3780_v27  ;;  %v14765_v39 = vld [vmem:[#allocation48_spill] sm:$0xff] }
 0xe78   :  { %v3802_v51 = vmul.f32 %v3799_v7, %v14760_v60 }
 0xe79   :  { %v3787_v20 = vadd.f32 %v3784_v3, %v3781_v56  ;;  %v3803_v0 = vadd.f32 %v3800_v58, %v3785_v34  ;;  %v3804_v15 = vadd.f32 %v3801_v41, %v3786_v13  ;;  %v14764_v34 = vld [vmem:[#allocation10_spill] sm:$0xff] }
 0xe7a   :  { %v4001_v3 = vmul.f32 %v14765_v39, %v14764_v34 }
 0xea3   :  { %v3840_v21 = vpop.permute.xlu0 %3839 }
 0xea7   :  { %v3842_v57 = vpop.permute.xlu1 %3841  ;;  %v3844_v28 = vpop.permute.xlu0 %3843 }
 0xea8   :  { %v3846_v17 = vsel %vm61_vm2, %v3840_v21, %v3842_v57  ;;  %v3847_v44 = vsel %vm61_vm2, %v3844_v28, %v3840_v21  ;;  %v3845_v24 = vsel %vm61_vm2, %v3842_v57, %v3844_v28  ;;  %v14763_v28 = vld [vmem:[#allocation22_spill] sm:$0xff] }
 0xea9   :  { %v3864_v54 = vrot.slane %v3846_v17, %v7839_v6  ;;  %v3860_v18 = vrot.slane %v3847_v44, %v7839_v6  ;;  %v3868_v31 = vrot.slane %v3845_v24, %v7839_v6  ;;  %v3805_v44 = vadd.f32 %v3802_v51, %v3787_v20  ;;  %v7676_v51 = vld [vmem:[%s13899_s2 + $0x18] ss:$4 sm:$0x7] }
 0xeab   :  { %v3849_v33 = vpop.permute.xlu1 %3848  ;;  %v3851_v61 = vpop.permute.xlu0 %3850  ;;  %v3870_v5 = vmul.f32 %v3864_v54, %v14762_v55  ;;  %v3869_v42 = vmul.f32 %v3860_v18, %v14762_v55  ;;  %v3871_v26 = vmul.f32 %v3868_v31, %v14762_v55 }
 0xeac   :  { %v3855_v43 = vsel %vm71_vm3, %v3849_v33, %v3851_v61 }
 0xead   :  { %v3907_v45 = vrot.slane %v3855_v43, %v7839_v6  ;;  %v3872_v9 = vadd.f32 %v3869_v42, %v3803_v0  ;;  %v3873_v29 = vadd.f32 %v3870_v5, %v3804_v15  ;;  %v3874_v27 = vadd.f32 %v3871_v26, %v3805_v44  ;;  %v14766_v5 = vld [vmem:[#allocation61_spill] sm:$0xff]  ;;  %v14767_v42 = vld [vmem:[#allocation60_spill] sm:$0xff]  ;;  %v7677_v15 = vld [vmem:[%s13899_s2 + $0x18] ss:$4 sm:$0xf] }
 0xeae   :  { %v4002_v31 = vmul.f32 %v14766_v5, %v14764_v34  ;;  %v7678_v5 = vld [vmem:[%s13899_s2 + $0x15] ss:$4 sm:$0xf] }
 0xeaf   :  { %v3853_v21 = vpop.permute.xlu1 %3852  ;;  %v3888_v23 = vpop.permute.xlu0 %3887  ;;  %v3916_v19 = vmul.f32 %v3907_v45, %v14763_v28  ;;  %v11060_v45 = vrot.slane %v7676_v51, %v7839_v6 }
 0xeb0   :  { %v3854_v59 = vsel %vm71_vm3, %v3851_v61, %v3853_v21  ;;  %v3856_v62 = vsel %vm71_vm3, %v3853_v21, %v3849_v33  ;;  %v4003_v21 = vmul.f32 %v14767_v42, %v14764_v34 }
 0xeb1   :  { %v3911_v52 = vrot.slane %v3854_v59, %v7839_v6  ;;  %v3915_v50 = vrot.slane %v3856_v62, %v7839_v6  ;;  %v14769_v59 = vld [vmem:[#allocation5_spill] sm:$0xff]  ;;  %v4128_v62 = vrot.slane %v7677_v15, %v7839_v6 }
 0xeb2   :  { %v11063_v20 = vrot.slane %v7676_v51, %v14769_v59  ;;  %v4132_v26 = vrot.slane %v7677_v15, %v14769_v59 }
 0xeb3   :  { %v3890_v36 = vpop.permute.xlu1 %3889  ;;  %v3892_v57 = vpop.permute.xlu0 %3891  ;;  %v3917_v38 = vmul.f32 %v3911_v52, %v14763_v28  ;;  %v3918_v33 = vmul.f32 %v3915_v50, %v14763_v28  ;;  %v14770_v52 = vld [vmem:[#allocation4_spill] sm:$0xff] }
 0xeb4   :  { %v3895_v40 = vsel %vm270_vm1, %v3888_v23, %v3890_v36  ;;  %v3896_v17 = vsel %vm270_vm1, %v3890_v36, %v3892_v57  ;;  %v14768_v23 = vld [vmem:[#allocation56_spill] sm:$0xff]  ;;  %v11070_v0 = vrot.slane %v7676_v51, %v14770_v52  ;;  %v4136_v36 = vrot.slane %v7677_v15, %v14770_v52 }
 0xeb5   :  { %v3901_v14 = vadd.f32 %v3895_v40, %v3872_v9  ;;  %v3902_v1 = vadd.f32 %v3896_v17, %v3873_v29  ;;  %v4004_v13 = vmul.f32 %v14768_v23, %v14764_v34  ;;  %v14771_v9 = vld [vmem:[#allocation6_spill] sm:$0xff]  ;;  %v4248_v23 = vrot.slane %v7678_v5, %v14769_v59 }
 0xeb6   :  { %v4140_v29 = vrot.slane %v7677_v15, %v14771_v9 }
 0xeb7   :  { %v3919_v53 = vadd.f32 %v3916_v19, %v3901_v14  ;;  %v3920_v32 = vadd.f32 %v3917_v38, %v3902_v1  ;;  %v3894_v8 = vpop.permute.xlu1 %3893  ;;  %v3948_v54 = vpop.permute.xlu0 %3947 }
 0xeb8   :  { %v3897_v18 = vsel %vm270_vm1, %v3892_v57, %v3894_v8 }
 0xeb9   :  { %v3924_v61 = vcombine.low %v3919_v53, %v3920_v32  ;;  %v3903_v16 = vadd.f32 %v3897_v18, %v3874_v27 }
 0xebb   :  { %3926 = vst [vmem:[%s13901_s3] sm:$0xff] %v3924_v61  ;;  %v3921_v10 = vadd.f32 %v3918_v33, %v3903_v16  ;;  %v3950_v56 = vpop.permute.xlu1 %3949  ;;  %v3952_v7 = vpop.permute.xlu0 %3951 }
 0xebc   :  { %v3955_v24 = vsel %vm46_vm0, %v3948_v54, %v3950_v56  ;;  %v3956_v58 = vsel %vm46_vm0, %v3950_v56, %v3952_v7 }
 0xebd   :  { %3927 = vst [vmem:[%s13901_s3 + $0x8] sm:$0xf] %v3921_v10  ;;  %3961 = vrot.lane.b32.xlu0 %v3955_v24, %s7772_s19  ;;  %3963 = vrot.lane.b32.xlu1 %v3956_v58, %s7772_s19 }
 0xebf   :  { %v3954_v41 = vpop.permute.xlu1 %3953 }
 0xec0   :  { %v3957_v43 = vsel %vm46_vm0, %v3952_v7, %v3954_v41  ;;  %v14772_v41 = vld [vmem:[#allocation17_spill] sm:$0xff] }
 0xec1   :  { %3965 = vrot.lane.b32.xlu0 %v3957_v43, %s7772_s19  ;;  %3970 = vrot.lane.b32.xlu1 %v3955_v24, %s7775_s20  ;;  %v4197_v39 = vmul.f32 %v4136_v36, %v14772_v41  ;;  %v4198_v42 = vmul.f32 %v4140_v29, %v14772_v41 }
 0xec5   :  { %3972 = vrot.lane.b32.xlu0 %v3956_v58, %s7775_s20  ;;  %3974 = vrot.lane.b32.xlu1 %v3957_v43, %s7775_s20  ;;  %v4195_v43 = vmul.f32 %v4128_v62, %v14772_v41 }
 0xec9   :  { %4009 = vrot.lane.b32.xlu0 %v4001_v3, %s7771_s16  ;;  %4011 = vrot.lane.b32.xlu1 %v4002_v31, %s7771_s16  ;;  %v4196_v3 = vmul.f32 %v4132_v26, %v14772_v41  ;;  %v4244_v31 = vrot.slane %v7678_v5, %v7839_v6 }
 0xecd   :  { %4013 = vrot.lane.b32.xlu0 %v4003_v21, %s7771_s16  ;;  %4015 = vrot.lane.b32.xlu1 %v4004_v13, %s7771_s16  ;;  %v4252_v21 = vrot.slane %v7678_v5, %v14770_v52  ;;  %v4256_v13 = vrot.slane %v7678_v5, %v14771_v9 }
 0xed1   :  { %4062 = vrot.lane.b32.xlu0 %v11060_v45, %s7772_s19  ;;  %4064 = vrot.lane.b32.xlu1 %v11063_v20, %s7772_s19 }
 0xed5   :  { %4066 = vrot.lane.b32.xlu0 %v11070_v0, %s7772_s19  ;;  %4071 = vrot.lane.b32.xlu1 %v11060_v45, %s7775_s20 }
 0xed9   :  { %4073 = vrot.lane.b32.xlu0 %v11063_v20, %s7775_s20  ;;  %4075 = vrot.lane.b32.xlu1 %v11070_v0, %s7775_s20 }
 0xedd   :  { %4141 = vrot.lane.b32.xlu0 %v4128_v62, %s7777_s23  ;;  %4143 = vrot.lane.b32.xlu1 %v4132_v26, %s7777_s23 }
 0xee1   :  { %4145 = vrot.lane.b32.xlu0 %v4136_v36, %s7777_s23  ;;  %4147 = vrot.lane.b32.xlu1 %v4140_v29, %s7777_s23 }
 0xf2f   :  { %v11091_v57 = vpop.permute.xlu1 %3963  ;;  %v11093_v19 = vpop.permute.xlu0 %3961 }
 0xf33   :  { %v11095_v40 = vpop.permute.xlu1 %3970  ;;  %v11097_v17 = vpop.permute.xlu0 %3965 }
 0xf37   :  { %v11099_v44 = vpop.permute.xlu1 %3974  ;;  %v11101_v50 = vpop.permute.xlu0 %3972 }
 0xf3b   :  { %v11103_v38 = vpop.permute.xlu1 %4011  ;;  %v11105_v14 = vpop.permute.xlu0 %4009 }
 0xf3f   :  { %v11107_v1 = vpop.permute.xlu1 %4015  ;;  %v11109_v53 = vpop.permute.xlu0 %4013 }
 0xf43   :  { %v11111_v32 = vpop.permute.xlu1 %4064  ;;  %v11113_v8 = vpop.permute.xlu0 %4062 }
 0xf47   :  { %v11115_v27 = vpop.permute.xlu1 %4071  ;;  %v11117_v54 = vpop.permute.xlu0 %4066 }
 0xf4b   :  { %v11119_v18 = vpop.permute.xlu1 %4075  ;;  %v11121_v33 = vpop.permute.xlu0 %4073 }
 0xf4f   :  { %v4144_v61 = vpop.permute.xlu1 %4143  ;;  %v4142_v16 = vpop.permute.xlu0 %4141 }
 0xf50   :  { %v4149_v10 = vsel %vm270_vm1, %v4142_v16, %v4144_v61 }
 0xf51   :  { %4155 = vrot.lane.b32.xlu0 %v4149_v10, %s7772_s19 }
 0xf53   :  { %v4148_v56 = vpop.permute.xlu1 %4147  ;;  %v4146_v7 = vpop.permute.xlu0 %4145 }
 0xf54   :  { %v4151_v24 = vsel %vm270_vm1, %v4146_v7, %v4148_v56  ;;  %v4150_v58 = vsel %vm270_vm1, %v4144_v61, %v4146_v7 }
 0xf55   :  { %4159 = vrot.lane.b32.xlu0 %v4151_v24, %s7772_s19  ;;  %4157 = vrot.lane.b32.xlu1 %v4150_v58, %s7772_s19 }
 0xf59   :  { %4166 = vrot.lane.b32.xlu0 %v4150_v58, %s7775_s20  ;;  %4164 = vrot.lane.b32.xlu1 %v4149_v10, %s7775_s20 }
 0xf5d   :  { %4203 = vrot.lane.b32.xlu0 %v4195_v43, %s7777_s23  ;;  %4168 = vrot.lane.b32.xlu1 %v4151_v24, %s7775_s20 }
 0xf61   :  { %4207 = vrot.lane.b32.xlu0 %v4197_v39, %s7777_s23  ;;  %4205 = vrot.lane.b32.xlu1 %v4196_v3, %s7777_s23 }
 0xf65   :  { %4257 = vrot.lane.b32.xlu0 %v4244_v31, %s7771_s16  ;;  %4209 = vrot.lane.b32.xlu1 %v4198_v42, %s7777_s23  ;;  %v14773_v42 = vld [vmem:[#allocation19_spill] sm:$0xff] }
 0xf66   :  { %v4311_v41 = vmul.f32 %v4244_v31, %v14773_v42 }
 0xf69   :  { %4261 = vrot.lane.b32.xlu0 %v4252_v21, %s7771_s16  ;;  %4259 = vrot.lane.b32.xlu1 %v4248_v23, %s7771_s16 }
 0xf6d   :  { %4263 = vrot.lane.b32.xlu1 %v4256_v13, %s7771_s16 }
 0xfc3   :  { %v11151_v51 = vpop.permute.xlu0 %4155 }
 0xfc7   :  { %v11153_v15 = vpop.permute.xlu1 %4157  ;;  %v11155_v62 = vpop.permute.xlu0 %4159 }
 0xfcb   :  { %v11157_v26 = vpop.permute.xlu1 %4164  ;;  %v11159_v36 = vpop.permute.xlu0 %4166 }
 0xfcf   :  { %v11161_v29 = vpop.permute.xlu1 %4168  ;;  %v11163_v61 = vpop.permute.xlu0 %4203 }
 0xfd3   :  { %v11165_v16 = vpop.permute.xlu1 %4205  ;;  %v11167_v10 = vpop.permute.xlu0 %4207 }
 0xfd7   :  { %v11169_v56 = vpop.permute.xlu1 %4209  ;;  %v4258_v7 = vpop.permute.xlu0 %4257 }
 0xfdb   :  { %v4260_v24 = vpop.permute.xlu1 %4259  ;;  %v4262_v58 = vpop.permute.xlu0 %4261 }
 0xfdc   :  { %v4265_v43 = vsel %vm46_vm0, %v4258_v7, %v4260_v24  ;;  %v4266_v39 = vsel %vm46_vm0, %v4260_v24, %v4262_v58  ;;  %v4312_v7 = vmul.f32 %v4248_v23, %v14773_v42  ;;  %v4313_v24 = vmul.f32 %v4252_v21, %v14773_v42  ;;  %v7680_v21 = vld [vmem:[%s13899_s2 + $0x19] ss:$4 sm:$0xf] }
 0xfdd   :  { %4271 = vrot.lane.b32.xlu0 %v4265_v43, %s7772_s19  ;;  %4273 = vrot.lane.b32.xlu1 %v4266_v39, %s7772_s19 }
 0xfdf   :  { %v4264_v3 = vpop.permute.xlu1 %4263 }
 0xfe0   :  { %v4267_v5 = vsel %vm46_vm0, %v4262_v58, %v4264_v3  ;;  %v4314_v58 = vmul.f32 %v4256_v13, %v14773_v42  ;;  %v4438_v13 = vrot.slane %v7680_v21, %v7839_v6  ;;  %v4446_v3 = vrot.slane %v7680_v21, %v14770_v52 }
 0xfe1   :  { %4275 = vrot.lane.b32.xlu0 %v4267_v5, %s7772_s19  ;;  %4280 = vrot.lane.b32.xlu1 %v4265_v43, %s7775_s20  ;;  %v7679_v43 = vld [vmem:[%s13899_s2 + $0x19] ss:$4 sm:$0x7] }
 0xfe2   :  { %v11192_v31 = vrot.slane %v7679_v43, %v7839_v6  ;;  %v11195_v23 = vrot.slane %v7679_v43, %v14769_v59 }
 0xfe4   :  { %14774 = vst [vmem:[#allocation45_spill] sm:$0xff] %v11192_v31  ;;  %14775 = vst [vmem:[#allocation49_spill] sm:$0xff] %v11195_v23 }
 0xfe5   :  { %4282 = vrot.lane.b32.xlu0 %v4266_v39, %s7775_s20  ;;  %4284 = vrot.lane.b32.xlu1 %v4267_v5, %s7775_s20  ;;  %v4442_v39 = vrot.slane %v7680_v21, %v14769_v59  ;;  %v4450_v5 = vrot.slane %v7680_v21, %v14771_v9 }
 0xfe9   :  { %4319 = vrot.lane.b32.xlu0 %v4311_v41, %s7771_s16  ;;  %4321 = vrot.lane.b32.xlu1 %v4312_v7, %s7771_s16  ;;  %v11202_v41 = vrot.slane %v7679_v43, %v14770_v52 }
 0xfeb   :  { %14776 = vst [vmem:[#allocation62_spill] sm:$0xff] %v11202_v41 }
 0xfed   :  { %4323 = vrot.lane.b32.xlu0 %v4313_v24, %s7771_s16  ;;  %4325 = vrot.lane.b32.xlu1 %v4314_v58, %s7771_s16 }
 0xff1   :  { %4372 = vrot.lane.b32.xlu0 %v11192_v31, %s7772_s19  ;;  %4374 = vrot.lane.b32.xlu1 %v11195_v23, %s7772_s19 }
 0xff5   :  { %4376 = vrot.lane.b32.xlu0 %v11202_v41, %s7772_s19  ;;  %4381 = vrot.lane.b32.xlu1 %v11192_v31, %s7775_s20 }
 0xff9   :  { %4383 = vrot.lane.b32.xlu0 %v11195_v23, %s7775_s20  ;;  %4385 = vrot.lane.b32.xlu1 %v11202_v41, %s7775_s20  ;;  %v4505_v23 = vmul.f32 %v4438_v13, %v14779_v30 }
 0xffd   :  { %4451 = vrot.lane.b32.xlu0 %v4438_v13, %s7777_s23  ;;  %4453 = vrot.lane.b32.xlu1 %v4442_v39, %s7777_s23 }
0x1001   :  { %4455 = vrot.lane.b32.xlu0 %v4446_v3, %s7777_s23  ;;  %4457 = vrot.lane.b32.xlu1 %v4450_v5, %s7777_s23 }
0x104f   :  { %v11223_v7 = vpop.permute.xlu1 %4273  ;;  %v11225_v24 = vpop.permute.xlu0 %4271 }
0x1053   :  { %v11227_v58 = vpop.permute.xlu1 %4280  ;;  %v11229_v43 = vpop.permute.xlu0 %4275 }
0x1057   :  { %v11231_v42 = vpop.permute.xlu1 %4284  ;;  %v11233_v34 = vpop.permute.xlu0 %4282 }
0x105b   :  { %v11235_v28 = vpop.permute.xlu1 %4321  ;;  %v11237_v55 = vpop.permute.xlu0 %4319 }
0x105f   :  { %v11239_v21 = vpop.permute.xlu1 %4325  ;;  %v11241_v60 = vpop.permute.xlu0 %4323 }
0x1063   :  { %v11243_v63 = vpop.permute.xlu1 %4374  ;;  %v11245_v22 = vpop.permute.xlu0 %4372 }
0x1067   :  { %v11247_v4 = vpop.permute.xlu1 %4381  ;;  %v11249_v37 = vpop.permute.xlu0 %4376 }
0x1068   :  { %14777 = vst [vmem:[#allocation57_spill] sm:$0xff] %v11247_v4 }
0x106b   :  { %v11251_v25 = vpop.permute.xlu1 %4385  ;;  %v11253_v11 = vpop.permute.xlu0 %4383 }
0x106c   :  { %14778 = vst [vmem:[#allocation50_spill] sm:$0xff] %v11251_v25 }
0x106f   :  { %v4454_v35 = vpop.permute.xlu1 %4453  ;;  %v4452_v48 = vpop.permute.xlu0 %4451 }
0x1070   :  { %v4459_v47 = vsel %vm270_vm1, %v4452_v48, %v4454_v35  ;;  %v4507_v48 = vmul.f32 %v4446_v3, %v14779_v30 }
0x1071   :  { %4465 = vrot.lane.b32.xlu0 %v4459_v47, %s7772_s19 }
0x1073   :  { %v4458_v49 = vpop.permute.xlu1 %4457  ;;  %v4456_v12 = vpop.permute.xlu0 %4455 }
0x1074   :  { %v4461_v2 = vsel %vm270_vm1, %v4456_v12, %v4458_v49  ;;  %v4460_v41 = vsel %vm270_vm1, %v4454_v35, %v4456_v12  ;;  %v4506_v49 = vmul.f32 %v4442_v39, %v14779_v30  ;;  %v7681_v12 = vld [vmem:[%s13899_s2 + $0x16] ss:$4 sm:$0xf]  ;;  %v4508_v35 = vmul.f32 %v4450_v5, %v14779_v30 }
0x1075   :  { %4469 = vrot.lane.b32.xlu0 %v4461_v2, %s7772_s19  ;;  %4467 = vrot.lane.b32.xlu1 %v4460_v41, %s7772_s19 }
0x1079   :  { %4476 = vrot.lane.b32.xlu0 %v4460_v41, %s7775_s20  ;;  %4474 = vrot.lane.b32.xlu1 %v4459_v47, %s7775_s20  ;;  %v4554_v47 = vrot.slane %v7681_v12, %v7839_v6  ;;  %v4566_v41 = vrot.slane %v7681_v12, %v14771_v9 }
0x107d   :  { %4513 = vrot.lane.b32.xlu0 %v4505_v23, %s7777_s23  ;;  %4478 = vrot.lane.b32.xlu1 %v4461_v2, %s7775_s20  ;;  %v4562_v2 = vrot.slane %v7681_v12, %v14770_v52  ;;  %v4558_v23 = vrot.slane %v7681_v12, %v14769_v59 }
0x1081   :  { %4517 = vrot.lane.b32.xlu0 %v4507_v48, %s7777_s23  ;;  %4515 = vrot.lane.b32.xlu1 %v4506_v49, %s7777_s23 }
0x1085   :  { %4567 = vrot.lane.b32.xlu0 %v4554_v47, %s7771_s16  ;;  %4519 = vrot.lane.b32.xlu1 %v4508_v35, %s7777_s23 }
0x1089   :  { %4571 = vrot.lane.b32.xlu0 %v4562_v2, %s7771_s16  ;;  %4569 = vrot.lane.b32.xlu1 %v4558_v23, %s7771_s16 }
0x108d   :  { %4573 = vrot.lane.b32.xlu1 %v4566_v41, %s7771_s16 }
0x10e3   :  { %v11283_v13 = vpop.permute.xlu0 %4465 }
0x10e4   :  { %14780 = vst [vmem:[#allocation68_spill] sm:$0xff] %v11283_v13 }
0x10e7   :  { %v11285_v39 = vpop.permute.xlu1 %4467  ;;  %v11287_v3 = vpop.permute.xlu0 %4469 }
0x10e8   :  { %14781 = vst [vmem:[#allocation65_spill] sm:$0xff] %v11285_v39  ;;  %14782 = vst [vmem:[#allocation73_spill] sm:$0xff] %v11287_v3 }
0x10eb   :  { %v11289_v5 = vpop.permute.xlu1 %4474  ;;  %v11291_v48 = vpop.permute.xlu0 %4476 }
0x10ec   :  { %14783 = vst [vmem:[#allocation67_spill] sm:$0xff] %v11289_v5  ;;  %14784 = vst [vmem:[#allocation77_spill] sm:$0xff] %v11291_v48 }
0x10ef   :  { %v11293_v49 = vpop.permute.xlu1 %4478  ;;  %v11295_v35 = vpop.permute.xlu0 %4513 }
0x10f0   :  { %14785 = vst [vmem:[#allocation69_spill] sm:$0xff] %v11293_v49  ;;  %14786 = vst [vmem:[#allocation54_spill] sm:$0xff] %v11295_v35 }
0x10f3   :  { %v11297_v30 = vpop.permute.xlu1 %4515  ;;  %v11299_v31 = vpop.permute.xlu0 %4517 }
0x10f4   :  { %14787 = vst [vmem:[#allocation78_spill] sm:$0xff] %v11297_v30  ;;  %14788 = vst [vmem:[#allocation52_spill] sm:$0xff] %v11299_v31 }
0x10f7   :  { %v11301_v12 = vpop.permute.xlu1 %4519  ;;  %v4568_v25 = vpop.permute.xlu0 %4567 }
0x10f8   :  { %14789 = vst [vmem:[#allocation74_spill] sm:$0xff] %v11301_v12  ;;  %v14790_v12 = vld [vmem:[#allocation51_spill] sm:$0xff] }
0x10f9   :  { %v4621_v31 = vmul.f32 %v4554_v47, %v14790_v12 }
0x10fb   :  { %v4570_v13 = vpop.permute.xlu1 %4569  ;;  %v4572_v4 = vpop.permute.xlu0 %4571 }
0x10fc   :  { %v4575_v39 = vsel %vm46_vm0, %v4568_v25, %v4570_v13  ;;  %v4576_v3 = vsel %vm46_vm0, %v4570_v13, %v4572_v4  ;;  %v4622_v25 = vmul.f32 %v4558_v23, %v14790_v12  ;;  %v4623_v13 = vmul.f32 %v4562_v2, %v14790_v12  ;;  %v7683_v2 = vld [vmem:[%s13899_s2 + $0x1a] ss:$4 sm:$0xf] }
0x10fd   :  { %4581 = vrot.lane.b32.xlu0 %v4575_v39, %s7772_s19  ;;  %4583 = vrot.lane.b32.xlu1 %v4576_v3, %s7772_s19 }
0x10ff   :  { %v4574_v49 = vpop.permute.xlu1 %4573 }
0x1100   :  { %v4577_v35 = vsel %vm46_vm0, %v4572_v4, %v4574_v49  ;;  %v4624_v4 = vmul.f32 %v4566_v41, %v14790_v12  ;;  %v4748_v41 = vrot.slane %v7683_v2, %v7839_v6  ;;  %v4756_v49 = vrot.slane %v7683_v2, %v14770_v52 }
0x1101   :  { %4585 = vrot.lane.b32.xlu0 %v4577_v35, %s7772_s19  ;;  %4590 = vrot.lane.b32.xlu1 %v4575_v39, %s7775_s20  ;;  %v7682_v39 = vld [vmem:[%s13899_s2 + $0x1a] ss:$4 sm:$0x7] }
0x1102   :  { %v11324_v47 = vrot.slane %v7682_v39, %v7839_v6  ;;  %v11327_v23 = vrot.slane %v7682_v39, %v14769_v59 }
0x1104   :  { %14791 = vst [vmem:[#allocation53_spill] sm:$0xff] %v11324_v47  ;;  %14792 = vst [vmem:[#allocation75_spill] sm:$0xff] %v11327_v23 }
0x1105   :  { %4592 = vrot.lane.b32.xlu0 %v4576_v3, %s7775_s20  ;;  %4594 = vrot.lane.b32.xlu1 %v4577_v35, %s7775_s20  ;;  %v4752_v3 = vrot.slane %v7683_v2, %v14769_v59  ;;  %v4760_v35 = vrot.slane %v7683_v2, %v14771_v9 }
0x1109   :  { %4629 = vrot.lane.b32.xlu0 %v4621_v31, %s7771_s16  ;;  %4631 = vrot.lane.b32.xlu1 %v4622_v25, %s7771_s16  ;;  %v11334_v31 = vrot.slane %v7682_v39, %v14770_v52 }
0x110b   :  { %14793 = vst [vmem:[#allocation81_spill] sm:$0xff] %v11334_v31 }
0x110d   :  { %4633 = vrot.lane.b32.xlu0 %v4623_v13, %s7771_s16  ;;  %4635 = vrot.lane.b32.xlu1 %v4624_v4, %s7771_s16 }
0x1111   :  { %4682 = vrot.lane.b32.xlu0 %v11324_v47, %s7772_s19  ;;  %4684 = vrot.lane.b32.xlu1 %v11327_v23, %s7772_s19 }
0x1115   :  { %4686 = vrot.lane.b32.xlu0 %v11334_v31, %s7772_s19  ;;  %4691 = vrot.lane.b32.xlu1 %v11324_v47, %s7775_s20 }
0x1119   :  { %4693 = vrot.lane.b32.xlu0 %v11327_v23, %s7775_s20  ;;  %4695 = vrot.lane.b32.xlu1 %v11334_v31, %s7775_s20 }
0x111d   :  { %4761 = vrot.lane.b32.xlu0 %v4748_v41, %s7777_s23  ;;  %4763 = vrot.lane.b32.xlu1 %v4752_v3, %s7777_s23 }
0x1121   :  { %4765 = vrot.lane.b32.xlu0 %v4756_v49, %s7777_s23  ;;  %4767 = vrot.lane.b32.xlu1 %v4760_v35, %s7777_s23 }
0x116f   :  { %v11355_v25 = vpop.permute.xlu1 %4583  ;;  %v11357_v13 = vpop.permute.xlu0 %4581 }
0x1170   :  { %14794 = vst [vmem:[#allocation92_spill] sm:$0xff] %v11355_v25  ;;  %14795 = vst [vmem:[#allocation80_spill] sm:$0xff] %v11357_v13 }
0x1173   :  { %v11359_v4 = vpop.permute.xlu1 %4590  ;;  %v11361_v39 = vpop.permute.xlu0 %4585 }
0x1174   :  { %14796 = vst [vmem:[#allocation63_spill] sm:$0xff] %v11359_v4  ;;  %14797 = vst [vmem:[#allocation59_spill] sm:$0xff] %v11361_v39 }
0x1177   :  { %v11363_v12 = vpop.permute.xlu1 %4594  ;;  %v11365_v31 = vpop.permute.xlu0 %4592 }
0x1178   :  { %14798 = vst [vmem:[#allocation66_spill] sm:$0xff] %v11363_v12  ;;  %14799 = vst [vmem:[#allocation82_spill] sm:$0xff] %v11365_v31 }
0x117b   :  { %v11367_v23 = vpop.permute.xlu1 %4631  ;;  %v11369_v47 = vpop.permute.xlu0 %4629 }
0x117c   :  { %14800 = vst [vmem:[#allocation91_spill] sm:$0xff] %v11367_v23  ;;  %14801 = vst [vmem:[#allocation83_spill] sm:$0xff] %v11369_v47 }
0x117f   :  { %v11371_v2 = vpop.permute.xlu1 %4635  ;;  %v11373_v30 = vpop.permute.xlu0 %4633 }
0x1180   :  { %14802 = vst [vmem:[#allocation85_spill] sm:$0xff] %v11371_v2  ;;  %14803 = vst [vmem:[#allocation86_spill] sm:$0xff] %v11373_v30 }
0x1183   :  { %v11375_v5 = vpop.permute.xlu1 %4684  ;;  %v11377_v25 = vpop.permute.xlu0 %4682 }
0x1184   :  { %14804 = vst [vmem:[#allocation98_spill] sm:$0xff] %v11375_v5  ;;  %14805 = vst [vmem:[#allocation99_spill] sm:$0xff] %v11377_v25 }
0x1187   :  { %v11379_v13 = vpop.permute.xlu1 %4691  ;;  %v11381_v4 = vpop.permute.xlu0 %4686 }
0x1188   :  { %14806 = vst [vmem:[#allocation93_spill] sm:$0xff] %v11379_v13  ;;  %14807 = vst [vmem:[#allocation102_spill] sm:$0xff] %v11381_v4 }
0x118b   :  { %v11383_v39 = vpop.permute.xlu1 %4695  ;;  %v11385_v12 = vpop.permute.xlu0 %4693 }
0x118c   :  { %14808 = vst [vmem:[#allocation97_spill] sm:$0xff] %v11383_v39  ;;  %14809 = vst [vmem:[#allocation90_spill] sm:$0xff] %v11385_v12  ;;  %v14810_v39 = vld [vmem:[#allocation76_spill] sm:$0xff] }
0x118d   :  { %v4815_v13 = vmul.f32 %v4748_v41, %v14810_v39 }
0x118f   :  { %v4764_v31 = vpop.permute.xlu1 %4763  ;;  %v4762_v23 = vpop.permute.xlu0 %4761 }
0x1190   :  { %v4769_v47 = vsel %vm270_vm1, %v4762_v23, %v4764_v31  ;;  %v4817_v23 = vmul.f32 %v4756_v49, %v14810_v39 }
0x1191   :  { %4775 = vrot.lane.b32.xlu0 %v4769_v47, %s7772_s19 }
0x1193   :  { %v4768_v2 = vpop.permute.xlu1 %4767  ;;  %v4766_v30 = vpop.permute.xlu0 %4765 }
0x1194   :  { %v4771_v5 = vsel %vm270_vm1, %v4766_v30, %v4768_v2  ;;  %v4770_v25 = vsel %vm270_vm1, %v4764_v31, %v4766_v30  ;;  %v4816_v2 = vmul.f32 %v4752_v3, %v14810_v39  ;;  %v7684_v30 = vld [vmem:[%s13899_s2 + $0x17] ss:$4 sm:$0xf]  ;;  %v4818_v31 = vmul.f32 %v4760_v35, %v14810_v39 }
0x1195   :  { %4779 = vrot.lane.b32.xlu0 %v4771_v5, %s7772_s19  ;;  %4777 = vrot.lane.b32.xlu1 %v4770_v25, %s7772_s19  ;;  %v4868_v41 = vrot.slane %v7684_v30, %v14769_v59  ;;  %v4876_v3 = vrot.slane %v7684_v30, %v14771_v9 }
0x1199   :  { %4786 = vrot.lane.b32.xlu0 %v4770_v25, %s7775_s20  ;;  %4784 = vrot.lane.b32.xlu1 %v4769_v47, %s7775_s20  ;;  %v4864_v47 = vrot.slane %v7684_v30, %v7839_v6 }
0x119d   :  { %4823 = vrot.lane.b32.xlu0 %v4815_v13, %s7777_s23  ;;  %4788 = vrot.lane.b32.xlu1 %v4771_v5, %s7775_s20  ;;  %v4872_v5 = vrot.slane %v7684_v30, %v14770_v52 }
0x11a1   :  { %4827 = vrot.lane.b32.xlu0 %v4817_v23, %s7777_s23  ;;  %4825 = vrot.lane.b32.xlu1 %v4816_v2, %s7777_s23 }
0x11a5   :  { %4877 = vrot.lane.b32.xlu0 %v4864_v47, %s7771_s16  ;;  %4829 = vrot.lane.b32.xlu1 %v4818_v31, %s7777_s23 }
0x11a9   :  { %4881 = vrot.lane.b32.xlu0 %v4872_v5, %s7771_s16  ;;  %4879 = vrot.lane.b32.xlu1 %v4868_v41, %s7771_s16 }
0x11ad   :  { %4883 = vrot.lane.b32.xlu1 %v4876_v3, %s7771_s16 }
0x1203   :  { %v11415_v49 = vpop.permute.xlu0 %4775 }
0x1204   :  { %14811 = vst [vmem:[#allocation88_spill] sm:$0xff] %v11415_v49 }
0x1207   :  { %v11417_v25 = vpop.permute.xlu1 %4777  ;;  %v11419_v35 = vpop.permute.xlu0 %4779 }
0x1208   :  { %14812 = vst [vmem:[#allocation103_spill] sm:$0xff] %v11417_v25  ;;  %14813 = vst [vmem:[#allocation109_spill] sm:$0xff] %v11419_v35 }
0x120b   :  { %v11421_v13 = vpop.permute.xlu1 %4784  ;;  %v11423_v23 = vpop.permute.xlu0 %4786 }
0x120f   :  { %v11425_v2 = vpop.permute.xlu1 %4788  ;;  %v11427_v31 = vpop.permute.xlu0 %4823 }
0x1210   :  { %14814 = vst [vmem:[#allocation89_spill] sm:$0xff] %v11425_v2  ;;  %14815 = vst [vmem:[#allocation107_spill] sm:$0xff] %v11427_v31 }
0x1213   :  { %v11429_v39 = vpop.permute.xlu1 %4825  ;;  %v11431_v12 = vpop.permute.xlu0 %4827 }
0x1214   :  { %14816 = vst [vmem:[#allocation110_spill] sm:$0xff] %v11429_v39  ;;  %14817 = vst [vmem:[#allocation101_spill] sm:$0xff] %v11431_v12 }
0x1217   :  { %v11433_v30 = vpop.permute.xlu1 %4829  ;;  %v4878_v4 = vpop.permute.xlu0 %4877 }
0x1218   :  { %14818 = vst [vmem:[#allocation95_spill] sm:$0xff] %v11433_v30  ;;  %v14819_v30 = vld [vmem:[#allocation87_spill] sm:$0xff] }
0x1219   :  { %v4931_v12 = vmul.f32 %v4864_v47, %v14819_v30 }
0x121b   :  { %v4880_v49 = vpop.permute.xlu1 %4879  ;;  %v4882_v48 = vpop.permute.xlu0 %4881 }
0x121c   :  { %v4885_v25 = vsel %vm46_vm0, %v4878_v4, %v4880_v49  ;;  %v4886_v35 = vsel %vm46_vm0, %v4880_v49, %v4882_v48  ;;  %v4932_v4 = vmul.f32 %v4868_v41, %v14819_v30  ;;  %v4933_v49 = vmul.f32 %v4872_v5, %v14819_v30  ;;  %v7686_v5 = vld [vmem:[%s13899_s2 + $0x1b] ss:$4 sm:$0xf] }
0x121d   :  { %4891 = vrot.lane.b32.xlu0 %v4885_v25, %s7772_s19  ;;  %4893 = vrot.lane.b32.xlu1 %v4886_v35, %s7772_s19 }
0x121f   :  { %v4884_v2 = vpop.permute.xlu1 %4883 }
0x1220   :  { %v4887_v31 = vsel %vm46_vm0, %v4882_v48, %v4884_v2  ;;  %v4934_v48 = vmul.f32 %v4876_v3, %v14819_v30  ;;  %v5058_v3 = vrot.slane %v7686_v5, %v7839_v6  ;;  %v5066_v2 = vrot.slane %v7686_v5, %v14770_v52 }
0x1221   :  { %4895 = vrot.lane.b32.xlu0 %v4887_v31, %s7772_s19  ;;  %4900 = vrot.lane.b32.xlu1 %v4885_v25, %s7775_s20  ;;  %v7685_v25 = vld [vmem:[%s13899_s2 + $0x1b] ss:$4 sm:$0x7] }
0x1222   :  { %v11456_v47 = vrot.slane %v7685_v25, %v7839_v6  ;;  %v11459_v41 = vrot.slane %v7685_v25, %v14769_v59 }
0x1224   :  { %14820 = vst [vmem:[#allocation96_spill] sm:$0xff] %v11456_v47  ;;  %14821 = vst [vmem:[#allocation24_spill] sm:$0xff] %v11459_v41 }
0x1225   :  { %4902 = vrot.lane.b32.xlu0 %v4886_v35, %s7775_s20  ;;  %4904 = vrot.lane.b32.xlu1 %v4887_v31, %s7775_s20  ;;  %v5062_v35 = vrot.slane %v7686_v5, %v14769_v59  ;;  %v5070_v31 = vrot.slane %v7686_v5, %v14771_v9 }
0x1229   :  { %4939 = vrot.lane.b32.xlu0 %v4931_v12, %s7771_s16  ;;  %4941 = vrot.lane.b32.xlu1 %v4932_v4, %s7771_s16  ;;  %v11466_v12 = vrot.slane %v7685_v25, %v14770_v52 }
0x122b   :  { %14822 = vst [vmem:[#allocation9_spill] sm:$0xff] %v11466_v12 }
0x122d   :  { %4943 = vrot.lane.b32.xlu0 %v4933_v49, %s7771_s16  ;;  %4945 = vrot.lane.b32.xlu1 %v4934_v48, %s7771_s16 }
0x1231   :  { %4992 = vrot.lane.b32.xlu0 %v11456_v47, %s7772_s19  ;;  %4994 = vrot.lane.b32.xlu1 %v11459_v41, %s7772_s19 }
0x1235   :  { %4996 = vrot.lane.b32.xlu0 %v11466_v12, %s7772_s19  ;;  %5001 = vrot.lane.b32.xlu1 %v11456_v47, %s7775_s20 }
0x1239   :  { %5003 = vrot.lane.b32.xlu0 %v11459_v41, %s7775_s20  ;;  %5005 = vrot.lane.b32.xlu1 %v11466_v12, %s7775_s20 }
0x123d   :  { %5071 = vrot.lane.b32.xlu0 %v5058_v3, %s7777_s23  ;;  %5073 = vrot.lane.b32.xlu1 %v5062_v35, %s7777_s23 }
0x1241   :  { %5075 = vrot.lane.b32.xlu0 %v5066_v2, %s7777_s23  ;;  %5077 = vrot.lane.b32.xlu1 %v5070_v31, %s7777_s23 }
0x128f   :  { %v11487_v4 = vpop.permute.xlu1 %4893  ;;  %v11489_v49 = vpop.permute.xlu0 %4891 }
0x1290   :  { %14823 = vst [vmem:[#allocation35_spill] sm:$0xff] %v11487_v4 }
0x1293   :  { %v11491_v48 = vpop.permute.xlu1 %4900  ;;  %v11493_v25 = vpop.permute.xlu0 %4895 }
0x1294   :  { %14824 = vst [vmem:[#allocation30_spill] sm:$0xff] %v11491_v48 }
0x1297   :  { %v11495_v30 = vpop.permute.xlu1 %4904  ;;  %v11497_v59 = vpop.permute.xlu0 %4902 }
0x1298   :  { %14825 = vst [vmem:[#allocation39_spill] sm:$0xff] %v11495_v30  ;;  %14826 = vst [vmem:[#allocation37_spill] sm:$0xff] %v11497_v59 }
0x129b   :  { %v11499_v12 = vpop.permute.xlu1 %4941  ;;  %v11501_v52 = vpop.permute.xlu0 %4939 }
0x129c   :  { %14827 = vst [vmem:[#allocation31_spill] sm:$0xff] %v11499_v12  ;;  %14828 = vst [vmem:[#allocation36_spill] sm:$0xff] %v11501_v52 }
0x129f   :  { %v11503_v5 = vpop.permute.xlu1 %4945  ;;  %v11505_v9 = vpop.permute.xlu0 %4943 }
0x12a0   :  { %14829 = vst [vmem:[#allocation41_spill] sm:$0xff] %v11503_v5  ;;  %14830 = vst [vmem:[#allocation44_spill] sm:$0xff] %v11505_v9 }
0x12a3   :  { %v11507_v41 = vpop.permute.xlu1 %4994  ;;  %v11509_v47 = vpop.permute.xlu0 %4992 }
0x12a4   :  { %14831 = vst [vmem:[#allocation28_spill] sm:$0xff] %v11507_v41  ;;  %14832 = vst [vmem:[#allocation43_spill] sm:$0xff] %v11509_v47 }
0x12a7   :  { %v11511_v39 = vpop.permute.xlu1 %5001  ;;  %v11513_v48 = vpop.permute.xlu0 %4996 }
0x12a8   :  { %14833 = vst [vmem:[#allocation55_spill] sm:$0xff] %v11511_v39  ;;  %v14835_v39 = vld [vmem:[#allocation108_spill] sm:$0xff] }
0x12ab   :  { %v11515_v4 = vpop.permute.xlu1 %5005  ;;  %v11517_v30 = vpop.permute.xlu0 %5003 }
0x12ac   :  { %14834 = vst [vmem:[#allocation46_spill] sm:$0xff] %v11517_v30  ;;  %v5125_v30 = vmul.f32 %v5058_v3, %v14835_v39  ;;  %v3977_v3 = vsel %vm71_vm3, %v11095_v40, %v11101_v50 }
0x12af   :  { %v5074_v59 = vpop.permute.xlu1 %5073  ;;  %v5072_v12 = vpop.permute.xlu0 %5071 }
0x12b0   :  { %v5079_v52 = vsel %vm270_vm1, %v5072_v12, %v5074_v59  ;;  %v5127_v12 = vmul.f32 %v5066_v2, %v14835_v39  ;;  %v14836_v2 = vld [vmem:[#allocation12_spill] sm:$0xff] }
0x12b1   :  { %5085 = vrot.lane.b32.xlu0 %v5079_v52, %s7772_s19 }
0x12b3   :  { %v5078_v5 = vpop.permute.xlu1 %5077  ;;  %v5076_v9 = vpop.permute.xlu0 %5075 }
0x12b4   :  { %v5081_v41 = vsel %vm270_vm1, %v5076_v9, %v5078_v5  ;;  %v5080_v47 = vsel %vm270_vm1, %v5074_v59, %v5076_v9  ;;  %v5126_v5 = vmul.f32 %v5062_v35, %v14835_v39  ;;  %v5128_v59 = vmul.f32 %v5070_v31, %v14835_v39  ;;  %v14837_v39 = vld [vmem:[#allocation11_spill] sm:$0xff] }
0x12b5   :  { %5089 = vrot.lane.b32.xlu0 %v5081_v41, %s7772_s19  ;;  %5087 = vrot.lane.b32.xlu1 %v5080_v47, %s7772_s19  ;;  %v3968_v9 = vsel %vm61_vm2, %v11093_v19, %v11091_v57  ;;  %v4070_v35 = vsel %vm61_vm2, %v11117_v54, %v11113_v8 }
0x12b9   :  { %5096 = vrot.lane.b32.xlu0 %v5080_v47, %s7775_s20  ;;  %5094 = vrot.lane.b32.xlu1 %v5079_v52, %s7775_s20  ;;  %v3969_v52 = vsel %vm61_vm2, %v11097_v17, %v11093_v19 }
0x12ba   :  { %v3982_v47 = vrot.slane %v3969_v52, %v7839_v6 }
0x12bc   :  { %v3991_v31 = vmul.f32 %v3982_v47, %v14836_v2 }
0x12bd   :  { %5133 = vrot.lane.b32.xlu0 %v5125_v30, %s7777_s23  ;;  %5098 = vrot.lane.b32.xlu1 %v5081_v41, %s7775_s20  ;;  %v3967_v30 = vsel %vm61_vm2, %v11091_v57, %v11097_v17  ;;  %v3986_v41 = vrot.slane %v3968_v9, %v7839_v6  ;;  %v3976_v57 = vsel %vm71_vm3, %v11101_v50, %v11099_v44 }
0x12be   :  { %v3990_v19 = vrot.slane %v3967_v30, %v7839_v6  ;;  %v3978_v17 = vsel %vm71_vm3, %v11099_v44, %v11095_v40  ;;  %v4018_v50 = vsel %vm46_vm0, %v11103_v38, %v11109_v53  ;;  %v4068_v40 = vsel %vm61_vm2, %v11111_v32, %v11117_v54 }
0x12bf   :  { %v4083_v44 = vrot.slane %v4070_v35, %v7839_v6  ;;  %v3992_v52 = vmul.f32 %v3986_v41, %v14836_v2  ;;  %v4037_v30 = vrot.slane %v3978_v17, %v7839_v6  ;;  %v14838_v35 = vld [vmem:[#allocation14_spill] sm:$0xff]  ;;  %v4078_v17 = vsel %vm71_vm3, %v11115_v27, %v11121_v33 }
0x12c0   :  { %v3993_v54 = vmul.f32 %v3990_v19, %v14836_v2 }
0x12c1   :  { %5137 = vrot.lane.b32.xlu0 %v5127_v12, %s7777_s23  ;;  %5135 = vrot.lane.b32.xlu1 %v5126_v5, %s7777_s23  ;;  %v4017_v12 = vsel %vm46_vm0, %v11105_v14, %v11103_v38  ;;  %v4069_v5 = vsel %vm61_vm2, %v11113_v8, %v11111_v32  ;;  %v4033_v14 = vrot.slane %v3976_v57, %v7839_v6 }
0x12c2   :  { %v4023_v9 = vadd.f32 %v4017_v12, %v3991_v31  ;;  %v4087_v8 = vrot.slane %v4069_v5, %v7839_v6  ;;  %v4019_v38 = vsel %vm46_vm0, %v11109_v53, %v11107_v1  ;;  %v4024_v47 = vadd.f32 %v4018_v50, %v3992_v52 }
0x12c3   :  { %v4092_v57 = vmul.f32 %v4083_v44, %v14838_v35  ;;  %v4039_v41 = vmul.f32 %v4033_v14, %v14837_v39  ;;  %v4025_v12 = vadd.f32 %v4019_v38, %v3993_v54  ;;  %v4077_v53 = vsel %vm71_vm3, %v11121_v33, %v11119_v18  ;;  %v14840_v54 = vld [vmem:[#allocation15_spill] sm:$0xff] }
0x12c4   :  { %v4093_v1 = vmul.f32 %v4087_v8, %v14838_v35  ;;  %v4040_v19 = vmul.f32 %v4037_v30, %v14837_v39  ;;  %v4163_v50 = vsel %vm61_vm2, %v11155_v62, %v11151_v51  ;;  %v4079_v44 = vsel %vm71_vm3, %v11119_v18, %v11115_v27 }
0x12c5   :  { %5139 = vrot.lane.b32.xlu1 %v5128_v59, %s7777_s23  ;;  %v4029_v59 = vrot.slane %v3977_v3, %v7839_v6  ;;  %v4091_v3 = vrot.slane %v4068_v40, %v7839_v6  ;;  %v4042_v5 = vadd.f32 %v4039_v41, %v4024_v47  ;;  %v4107_v14 = vrot.slane %v4078_v17, %v7839_v6  ;;  %v14841_v17 = vld [vmem:[#allocation16_spill] sm:$0xff] }
0x12c6   :  { %v4162_v33 = vsel %vm61_vm2, %v11151_v51, %v11153_v15  ;;  %v4111_v52 = vrot.slane %v4077_v53, %v7839_v6  ;;  %v4043_v30 = vadd.f32 %v4040_v19, %v4025_v12  ;;  %v4176_v47 = vrot.slane %v4163_v50, %v7839_v6 }
0x12c7   :  { %v4038_v32 = vmul.f32 %v4029_v59, %v14837_v39  ;;  %v4094_v59 = vmul.f32 %v4091_v3, %v14838_v35  ;;  %v4096_v38 = vadd.f32 %v4093_v1, %v4042_v5  ;;  %v4115_v27 = vrot.slane %v4079_v44, %v7839_v6 }
0x12c8   :  { %v4180_v18 = vrot.slane %v4162_v33, %v7839_v6  ;;  %v4161_v51 = vsel %vm61_vm2, %v11153_v15, %v11155_v62  ;;  %v4117_v41 = vmul.f32 %v4111_v52, %v14840_v54  ;;  %v4171_v15 = vsel %vm71_vm3, %v11157_v26, %v11159_v36 }
0x12c9   :  { %v4041_v31 = vadd.f32 %v4038_v32, %v4023_v9  ;;  %v14839_v9 = vld [vmem:[#allocation13_spill] sm:$0xff]  ;;  %v4097_v32 = vadd.f32 %v4094_v59, %v4043_v30  ;;  %v4118_v1 = vmul.f32 %v4115_v27, %v14840_v54  ;;  %v4184_v19 = vrot.slane %v4161_v51, %v7839_v6 }
0x12ca   :  { %v4098_v8 = vmul.f32 %v11060_v45, %v14839_v9  ;;  %v4099_v3 = vmul.f32 %v11063_v20, %v14839_v9  ;;  %v4100_v20 = vmul.f32 %v11070_v0, %v14839_v9  ;;  %v4186_v53 = vmul.f32 %v4180_v18, %v14841_v17  ;;  %v14842_v18 = vld [vmem:[#allocation18_spill] sm:$0xff]  ;;  %v14843_v51 = vld [vmem:[#allocation21_spill] sm:$0xff] }
0x12cb   :  { %v4095_v40 = vadd.f32 %v4092_v57, %v4041_v31  ;;  %v4116_v57 = vmul.f32 %v4107_v14, %v14840_v54  ;;  %v4185_v31 = vmul.f32 %v4176_v47, %v14841_v17  ;;  %v4170_v62 = vsel %vm71_vm3, %v11159_v36, %v11161_v29 }
0x12cc   :  { %v4102_v12 = vadd.f32 %v4099_v3, %v4096_v38  ;;  %v4103_v59 = vadd.f32 %v4100_v20, %v4097_v32  ;;  %v4279_v0 = vsel %vm61_vm2, %v11229_v43, %v11225_v24  ;;  %v4172_v50 = vsel %vm71_vm3, %v11161_v29, %v11157_v26 }
0x12cd   :  { %v4101_v45 = vadd.f32 %v4098_v8, %v4095_v40  ;;  %v4211_v40 = vsel %vm270_vm1, %v11163_v61, %v11165_v16  ;;  %v4278_v36 = vsel %vm61_vm2, %v11225_v24, %v11223_v7  ;;  %v4223_v14 = vrot.slane %v4171_v15, %v7839_v6 }
0x12ce   :  { %v4120_v44 = vadd.f32 %v4117_v41, %v4102_v12  ;;  %v4212_v52 = vsel %vm270_vm1, %v11165_v16, %v11167_v10  ;;  %v4277_v26 = vsel %vm61_vm2, %v11223_v7, %v11229_v43  ;;  %v4187_v29 = vmul.f32 %v4184_v19, %v14841_v17 }
0x12cf   :  { %v4119_v5 = vadd.f32 %v4116_v57, %v4101_v45  ;;  %v4227_v61 = vrot.slane %v4170_v62, %v7839_v6  ;;  %v4292_v30 = vrot.slane %v4279_v0, %v7839_v6  ;;  %v4231_v24 = vrot.slane %v4172_v50, %v7839_v6 }
0x12d0   :  { %v4189_v8 = vadd.f32 %v4186_v53, %v4120_v44  ;;  %v4296_v47 = vrot.slane %v4278_v36, %v7839_v6  ;;  %v4121_v27 = vadd.f32 %v4118_v1, %v4103_v59  ;;  %v4300_v16 = vrot.slane %v4277_v26, %v7839_v6  ;;  %v14845_v26 = vld [vmem:[#allocation33_spill] sm:$0xff] }
0x12d1   :  { %v4188_v33 = vadd.f32 %v4185_v31, %v4119_v5  ;;  %v4232_v32 = vmul.f32 %v4223_v14, %v14842_v18  ;;  %v4213_v7 = vsel %vm270_vm1, %v11167_v10, %v11169_v56  ;;  %v4233_v43 = vmul.f32 %v4227_v61, %v14842_v18 }
0x12d2   :  { %v4218_v3 = vadd.f32 %v4212_v52, %v4189_v8  ;;  %v4190_v57 = vadd.f32 %v4187_v29, %v4121_v27  ;;  %v4301_v45 = vmul.f32 %v4292_v30, %v14843_v51  ;;  %v4287_v41 = vsel %vm71_vm3, %v11227_v58, %v11233_v34  ;;  %v14844_v52 = vld [vmem:[#allocation20_spill] sm:$0xff]  ;;  %v14846_v8 = vld [vmem:[#allocation57_spill] sm:$0xff] }
0x12d3   :  { %v4217_v38 = vadd.f32 %v4211_v40, %v4188_v33  ;;  %v4234_v31 = vmul.f32 %v4231_v24, %v14842_v18  ;;  %v4302_v20 = vmul.f32 %v4296_v47, %v14843_v51  ;;  %v4380_v10 = vsel %vm61_vm2, %v11249_v37, %v11245_v22 }
0x12d4   :  { %v4236_v56 = vadd.f32 %v4233_v43, %v4218_v3  ;;  %v4219_v1 = vadd.f32 %v4213_v7, %v4190_v57  ;;  %v4303_v53 = vmul.f32 %v4300_v16, %v14843_v51  ;;  %v4286_v19 = vsel %vm71_vm3, %v11233_v34, %v11231_v42  ;;  %v14849_v7 = vld [vmem:[#allocation73_spill] sm:$0xff] }
0x12d5   :  { %v4235_v12 = vadd.f32 %v4232_v32, %v4217_v38  ;;  %v4288_v15 = vsel %vm71_vm3, %v11231_v42, %v11227_v58  ;;  %v4339_v62 = vrot.slane %v4287_v41, %v7839_v6  ;;  %v4327_v5 = vsel %vm46_vm0, %v11237_v55, %v11235_v28  ;;  %v14848_v32 = vld [vmem:[#allocation68_spill] sm:$0xff] }
0x12d6   :  { %v4379_v59 = vsel %vm61_vm2, %v11245_v22, %v11243_v63  ;;  %v4328_v34 = vsel %vm46_vm0, %v11235_v28, %v11241_v60  ;;  %v4378_v42 = vsel %vm61_vm2, %v11243_v63, %v11249_v37  ;;  %v4393_v58 = vrot.slane %v4380_v10, %v7839_v6  ;;  %v14852_v10 = vld [vmem:[#allocation45_spill] sm:$0xff] }
0x12d7   :  { %v4304_v0 = vadd.f32 %v4301_v45, %v4235_v12  ;;  %v4343_v50 = vrot.slane %v4286_v19, %v7839_v6  ;;  %v4305_v55 = vadd.f32 %v4302_v20, %v4236_v56  ;;  %v4237_v40 = vadd.f32 %v4234_v31, %v4219_v1  ;;  %v14850_v31 = vld [vmem:[#allocation65_spill] sm:$0xff]  ;;  %v14851_v20 = vld [vmem:[#allocation32_spill] sm:$0xff] }
0x12d8   :  { %v4397_v36 = vrot.slane %v4379_v59, %v7839_v6  ;;  %v4347_v22 = vrot.slane %v4288_v15, %v7839_v6  ;;  %v4329_v28 = vsel %vm46_vm0, %v11241_v60, %v11239_v21  ;;  %v4401_v33 = vrot.slane %v4378_v42, %v7839_v6  ;;  %v14847_v60 = vld [vmem:[#allocation50_spill] sm:$0xff]  ;;  %v14853_v15 = vld [vmem:[#allocation49_spill] sm:$0xff] }
0x12d9   :  { %v4333_v44 = vadd.f32 %v4327_v5, %v4304_v0  ;;  %v4334_v14 = vadd.f32 %v4328_v34, %v4305_v55  ;;  %v4348_v37 = vmul.f32 %v4339_v62, %v14844_v52  ;;  %v4306_v63 = vadd.f32 %v4303_v53, %v4237_v40  ;;  %v14854_v34 = vld [vmem:[#allocation34_spill] sm:$0xff] }
0x12da   :  { %v4402_v29 = vmul.f32 %v4393_v58, %v14845_v26  ;;  %v4349_v61 = vmul.f32 %v4343_v50, %v14844_v52  ;;  %v4388_v30 = vsel %vm71_vm3, %v14846_v8, %v11253_v11  ;;  %v4403_v47 = vmul.f32 %v4397_v36, %v14845_v26  ;;  %v14855_v40 = vld [vmem:[#allocation42_spill] sm:$0xff] }
0x12db   :  { %v4351_v24 = vadd.f32 %v4348_v37, %v4333_v44  ;;  %v4335_v38 = vadd.f32 %v4329_v28, %v4306_v63  ;;  %v4387_v21 = vsel %vm71_vm3, %v11253_v11, %v14847_v60  ;;  %v4350_v3 = vmul.f32 %v4347_v22, %v14844_v52  ;;  %v14856_v22 = vld [vmem:[#allocation62_spill] sm:$0xff]  ;;  %v14857_v63 = vld [vmem:[#allocation77_spill] sm:$0xff] }
0x12dc   :  { %v4352_v27 = vadd.f32 %v4349_v61, %v4334_v14  ;;  %v4404_v16 = vmul.f32 %v4401_v33, %v14845_v26  ;;  %v4473_v43 = vsel %vm61_vm2, %v14849_v7, %v14848_v32  ;;  %v4389_v45 = vsel %vm71_vm3, %v14847_v60, %v14846_v8  ;;  %v14859_v8 = vld [vmem:[#allocation69_spill] sm:$0xff]  ;;  %v14861_v60 = vld [vmem:[#allocation59_spill] sm:$0xff] }
0x12dd   :  { %v4405_v57 = vadd.f32 %v4402_v29, %v4351_v24  ;;  %v4417_v41 = vrot.slane %v4388_v30, %v7839_v6  ;;  %v4472_v11 = vsel %vm61_vm2, %v14848_v32, %v14850_v31  ;;  %v4421_v12 = vrot.slane %v4387_v21, %v7839_v6  ;;  %v14858_v29 = vld [vmem:[#allocation67_spill] sm:$0xff] }
0x12de   :  { %v4408_v56 = vmul.f32 %v14852_v10, %v14851_v20  ;;  %v4353_v1 = vadd.f32 %v4350_v3, %v4335_v38  ;;  %v4406_v53 = vadd.f32 %v4403_v47, %v4352_v27  ;;  %v4486_v19 = vrot.slane %v4473_v43, %v7839_v6  ;;  %v14860_v47 = vld [vmem:[#allocation80_spill] sm:$0xff]  ;;  %v14862_v27 = vld [vmem:[#allocation78_spill] sm:$0xff] }
0x12df   :  { %v4409_v62 = vmul.f32 %v14853_v15, %v14851_v20  ;;  %v4425_v5 = vrot.slane %v4389_v45, %v7839_v6  ;;  %v4490_v59 = vrot.slane %v4472_v11, %v7839_v6  ;;  %v4426_v42 = vmul.f32 %v4417_v41, %v14854_v34  ;;  %v14864_v43 = vld [vmem:[#allocation92_spill] sm:$0xff] }
0x12e0   :  { %v4407_v0 = vadd.f32 %v4404_v16, %v4353_v1  ;;  %v4471_v58 = vsel %vm61_vm2, %v14850_v31, %v14849_v7  ;;  %v4411_v50 = vadd.f32 %v4408_v56, %v4405_v57  ;;  %v4427_v55 = vmul.f32 %v4421_v12, %v14854_v34  ;;  %v14863_v16 = vld [vmem:[#allocation54_spill] sm:$0xff]  ;;  %v14865_v31 = vld [vmem:[#allocation52_spill] sm:$0xff] }
0x12e1   :  { %v4495_v44 = vmul.f32 %v4486_v19, %v14855_v40  ;;  %v4412_v36 = vadd.f32 %v4409_v62, %v4406_v53  ;;  %v4410_v28 = vmul.f32 %v14856_v22, %v14851_v20  ;;  %v4428_v14 = vmul.f32 %v4425_v5, %v14854_v34  ;;  %v14868_v22 = vld [vmem:[#allocation58_spill] sm:$0xff] }
0x12e2   :  { %v4496_v33 = vmul.f32 %v4490_v59, %v14855_v40  ;;  %v4494_v37 = vrot.slane %v4471_v58, %v7839_v6  ;;  %v4481_v61 = vsel %vm71_vm3, %v14858_v29, %v14857_v63  ;;  %v4480_v30 = vsel %vm71_vm3, %v14857_v63, %v14859_v8 }
0x12e3   :  { %v4429_v24 = vadd.f32 %v4426_v42, %v4411_v50  ;;  %v4413_v38 = vadd.f32 %v4410_v28, %v4407_v0  ;;  %v4589_v21 = vsel %vm61_vm2, %v14861_v60, %v14860_v47  ;;  %v4482_v3 = vsel %vm71_vm3, %v14859_v8, %v14858_v29  ;;  %v14866_v42 = vld [vmem:[#allocation47_spill] sm:$0xff]  ;;  %v14867_v50 = vld [vmem:[#allocation74_spill] sm:$0xff] }
0x12e4   :  { %v4521_v32 = vsel %vm270_vm1, %v14863_v16, %v14862_v27  ;;  %v4430_v7 = vadd.f32 %v4427_v55, %v4412_v36  ;;  %v4588_v57 = vsel %vm61_vm2, %v14860_v47, %v14864_v43  ;;  %v4533_v45 = vrot.slane %v4481_v61, %v7839_v6  ;;  %v14871_v8 = vld [vmem:[#allocation99_spill] sm:$0xff] }
0x12e5   :  { %v4498_v41 = vadd.f32 %v4495_v44, %v4429_v24  ;;  %v4522_v11 = vsel %vm270_vm1, %v14862_v27, %v14865_v31  ;;  %v4587_v12 = vsel %vm61_vm2, %v14864_v43, %v14861_v60  ;;  %v4497_v10 = vmul.f32 %v4494_v37, %v14855_v40  ;;  %v14870_v37 = vld [vmem:[#allocation63_spill] sm:$0xff] }
0x12e6   :  { %v4537_v56 = vrot.slane %v4480_v30, %v7839_v6  ;;  %v4499_v1 = vadd.f32 %v4496_v33, %v4430_v7  ;;  %v4602_v53 = vrot.slane %v4589_v21, %v7839_v6  ;;  %v4541_v19 = vrot.slane %v4482_v3, %v7839_v6  ;;  %v14869_v33 = vld [vmem:[#allocation82_spill] sm:$0xff]  ;;  %v14875_v7 = vld [vmem:[#allocation83_spill] sm:$0xff] }
0x12e7   :  { %v4527_v15 = vadd.f32 %v4521_v32, %v4498_v41  ;;  %v4606_v62 = vrot.slane %v4588_v57, %v7839_v6  ;;  %v4431_v59 = vadd.f32 %v4428_v14, %v4413_v38  ;;  %v4610_v0 = vrot.slane %v4587_v12, %v7839_v6  ;;  %v14872_v30 = vld [vmem:[#allocation102_spill] sm:$0xff]  ;;  %v14874_v32 = vld [vmem:[#allocation91_spill] sm:$0xff] }
0x12e8   :  { %v4528_v5 = vadd.f32 %v4522_v11, %v4499_v1  ;;  %v4542_v58 = vmul.f32 %v4533_v45, %v14866_v42  ;;  %v4523_v55 = vsel %vm270_vm1, %v14865_v31, %v14867_v50  ;;  %v4543_v44 = vmul.f32 %v4537_v56, %v14866_v42  ;;  %v14873_v21 = vld [vmem:[#allocation66_spill] sm:$0xff]  ;;  %v14879_v50 = vld [vmem:[#allocation64_spill] sm:$0xff] }
0x12e9   :  { %v4500_v36 = vadd.f32 %v4497_v10, %v4431_v59  ;;  %v4611_v28 = vmul.f32 %v4602_v53, %v14868_v22  ;;  %v4597_v63 = vsel %vm71_vm3, %v14870_v37, %v14869_v33  ;;  %v4544_v14 = vmul.f32 %v4541_v19, %v14866_v42  ;;  %v14876_v57 = vld [vmem:[#allocation98_spill] sm:$0xff] }
0x12ea   :  { %v4545_v29 = vadd.f32 %v4542_v58, %v4527_v15  ;;  %v4612_v61 = vmul.f32 %v4606_v62, %v14868_v22  ;;  %v4690_v24 = vsel %vm61_vm2, %v14872_v30, %v14871_v8  ;;  %v4546_v38 = vadd.f32 %v4543_v44, %v4528_v5  ;;  %v14877_v31 = vld [vmem:[#allocation86_spill] sm:$0xff]  ;;  %v14878_v5 = vld [vmem:[#allocation85_spill] sm:$0xff] }
0x12eb   :  { %v4529_v47 = vadd.f32 %v4523_v55, %v4500_v36  ;;  %v4613_v60 = vmul.f32 %v4610_v0, %v14868_v22  ;;  %v4596_v3 = vsel %vm71_vm3, %v14869_v33, %v14873_v21  ;;  %v4598_v27 = vsel %vm71_vm3, %v14873_v21, %v14870_v37  ;;  %v14880_v36 = vld [vmem:[#allocation70_spill] sm:$0xff] }
0x12ec   :  { %v4649_v16 = vrot.slane %v4597_v63, %v7839_v6  ;;  %v4637_v43 = vsel %vm46_vm0, %v14875_v7, %v14874_v32  ;;  %v4689_v45 = vsel %vm61_vm2, %v14871_v8, %v14876_v57  ;;  %v4614_v41 = vadd.f32 %v4611_v28, %v4545_v29  ;;  %v14881_v37 = vld [vmem:[#allocation90_spill] sm:$0xff]  ;;  %v14882_v63 = vld [vmem:[#allocation93_spill] sm:$0xff] }
0x12ed   :  { %v4638_v11 = vsel %vm46_vm0, %v14874_v32, %v14877_v31  ;;  %v4688_v12 = vsel %vm61_vm2, %v14876_v57, %v14872_v30  ;;  %v4703_v10 = vrot.slane %v4690_v24, %v7839_v6  ;;  %v4653_v56 = vrot.slane %v4596_v3, %v7839_v6  ;;  %v14883_v30 = vld [vmem:[#allocation97_spill] sm:$0xff]  ;;  %v14885_v32 = vld [vmem:[#allocation88_spill] sm:$0xff] }
0x12ee   :  { %v4615_v1 = vadd.f32 %v4612_v61, %v4546_v38  ;;  %v4547_v53 = vadd.f32 %v4544_v14, %v4529_v47  ;;  %v4643_v19 = vadd.f32 %v4637_v43, %v4614_v41  ;;  %v4707_v15 = vrot.slane %v4689_v45, %v7839_v6  ;;  %v14886_v43 = vld [vmem:[#allocation109_spill] sm:$0xff]  ;;  %v14887_v41 = vld [vmem:[#allocation71_spill] sm:$0xff] }
0x12ef   :  { %v4657_v62 = vrot.slane %v4598_v27, %v7839_v6  ;;  %v4639_v59 = vsel %vm46_vm0, %v14877_v31, %v14878_v5  ;;  %v4711_v58 = vrot.slane %v4688_v12, %v7839_v6  ;;  %v4658_v55 = vmul.f32 %v4649_v16, %v14879_v50  ;;  %v14884_v16 = vld [vmem:[#allocation103_spill] sm:$0xff]  ;;  %v14888_v31 = vld [vmem:[#allocation53_spill] sm:$0xff] }
0x12f0   :  { %v4644_v0 = vadd.f32 %v4638_v11, %v4615_v1  ;;  %v4616_v44 = vadd.f32 %v4613_v60, %v4547_v53  ;;  %v4712_v28 = vmul.f32 %v4703_v10, %v14880_v36  ;;  %v4659_v33 = vmul.f32 %v4653_v56, %v14879_v50 }
0x12f1   :  { %v4698_v14 = vsel %vm71_vm3, %v14882_v63, %v14881_v37  ;;  %v4661_v29 = vadd.f32 %v4658_v55, %v4643_v19  ;;  %v4713_v8 = vmul.f32 %v4707_v15, %v14880_v36  ;;  %v4697_v24 = vsel %vm71_vm3, %v14881_v37, %v14883_v30  ;;  %v14889_v15 = vld [vmem:[#allocation75_spill] sm:$0xff] }
0x12f2   :  { %v4645_v61 = vadd.f32 %v4639_v59, %v4616_v44  ;;  %v4660_v38 = vmul.f32 %v4657_v62, %v14879_v50  ;;  %v4662_v47 = vadd.f32 %v4659_v33, %v4644_v0  ;;  %v4714_v60 = vmul.f32 %v4711_v58, %v14880_v36  ;;  %v14890_v59 = vld [vmem:[#allocation72_spill] sm:$0xff]  ;;  %v14891_v33 = vld [vmem:[#allocation81_spill] sm:$0xff] }
0x12f3   :  { %v4699_v21 = vsel %vm71_vm3, %v14883_v30, %v14882_v63  ;;  %v4715_v3 = vadd.f32 %v4712_v28, %v4661_v29  ;;  %v4727_v27 = vrot.slane %v4698_v14, %v7839_v6  ;;  %v4782_v7 = vsel %vm61_vm2, %v14885_v32, %v14884_v16  ;;  %v14892_v14 = vld [vmem:[#allocation79_spill] sm:$0xff]  ;;  %v14893_v30 = vld [vmem:[#allocation89_spill] sm:$0xff] }
0x12f4   :  { %v4783_v57 = vsel %vm61_vm2, %v14886_v43, %v14885_v32  ;;  %v4731_v45 = vrot.slane %v4697_v24, %v7839_v6  ;;  %v4718_v11 = vmul.f32 %v14888_v31, %v14887_v41  ;;  %v4663_v12 = vadd.f32 %v4660_v38, %v4645_v61 }
0x12f5   :  { %v4716_v10 = vadd.f32 %v4713_v8, %v4662_v47  ;;  %v4781_v56 = vsel %vm61_vm2, %v14884_v16, %v14886_v43  ;;  %v4735_v1 = vrot.slane %v4699_v21, %v7839_v6  ;;  %v4800_v53 = vrot.slane %v4782_v7, %v7839_v6  ;;  %v14894_v16 = vld [vmem:[#allocation35_spill] sm:$0xff]  ;;  %v14895_v7 = vld [vmem:[#allocation110_spill] sm:$0xff] }
0x12f6   :  { %v4796_v19 = vrot.slane %v4783_v57, %v7839_v6  ;;  %v4719_v62 = vmul.f32 %v14889_v15, %v14887_v41  ;;  %v4717_v5 = vadd.f32 %v4714_v60, %v4663_v12  ;;  %v4736_v0 = vmul.f32 %v4727_v27, %v14890_v59  ;;  %v14896_v43 = vld [vmem:[#allocation107_spill] sm:$0xff] }
0x12f7   :  { %v4721_v58 = vadd.f32 %v4718_v11, %v4715_v3  ;;  %v4737_v55 = vmul.f32 %v4731_v45, %v14890_v59  ;;  %v4804_v44 = vrot.slane %v4781_v56, %v7839_v6  ;;  %v4720_v37 = vmul.f32 %v14891_v33, %v14887_v41  ;;  %v14897_v45 = vld [vmem:[#allocation101_spill] sm:$0xff] }
0x12f8   :  { %v4722_v28 = vadd.f32 %v4719_v62, %v4716_v10  ;;  %v4738_v63 = vmul.f32 %v4735_v1, %v14890_v59  ;;  %v4806_v29 = vmul.f32 %v4800_v53, %v14892_v14  ;;  %v4805_v61 = vmul.f32 %v4796_v19, %v14892_v14  ;;  %v14898_v62 = vld [vmem:[#allocation95_spill] sm:$0xff] }
0x12f9   :  { %v4791_v8 = vsel %vm71_vm3, %v11421_v13, %v11423_v23  ;;  %v4790_v24 = vsel %vm71_vm3, %v11423_v23, %v14893_v30  ;;  %v4739_v38 = vadd.f32 %v4736_v0, %v4721_v58  ;;  %v4723_v47 = vadd.f32 %v4720_v37, %v4717_v5  ;;  %v14899_v58 = vld [vmem:[#allocation84_spill] sm:$0xff]  ;;  %v14901_v37 = vld [vmem:[#allocation37_spill] sm:$0xff]  ;;  %v14929_v59 = vld [vmem:[#allocation19_spill] sm:$0xff] }
0x12fa   :  { %v4899_v60 = vsel %vm61_vm2, %v11493_v25, %v11489_v49  ;;  %v4807_v21 = vmul.f32 %v4804_v44, %v14892_v14  ;;  %v4792_v3 = vsel %vm71_vm3, %v14893_v30, %v11421_v13  ;;  %v4740_v27 = vadd.f32 %v4737_v55, %v4722_v28  ;;  %v14900_v28 = vld [vmem:[#allocation94_spill] sm:$0xff] }
0x12fb   :  { %v4898_v23 = vsel %vm61_vm2, %v11489_v49, %v14894_v16  ;;  %v4843_v32 = vrot.slane %v4791_v8, %v7839_v6  ;;  %v4831_v57 = vsel %vm270_vm1, %v14896_v43, %v14895_v7  ;;  %v4832_v31 = vsel %vm270_vm1, %v14895_v7, %v14897_v45  ;;  %v14906_v7 = vld [vmem:[#allocation36_spill] sm:$0xff] }
0x12fc   :  { %v4897_v13 = vsel %vm61_vm2, %v14894_v16, %v11493_v25  ;;  %v4847_v11 = vrot.slane %v4790_v24, %v7839_v6  ;;  %v4808_v12 = vadd.f32 %v4805_v61, %v4739_v38  ;;  %v4809_v10 = vadd.f32 %v4806_v29, %v4740_v27  ;;  %v14902_v29 = vld [vmem:[#allocation30_spill] sm:$0xff]  ;;  %v14903_v24 = vld [vmem:[#allocation43_spill] sm:$0xff] }
0x12fd   :  { %v4912_v49 = vrot.slane %v4899_v60, %v7839_v6  ;;  %v4851_v56 = vrot.slane %v4792_v3, %v7839_v6  ;;  %v4741_v1 = vadd.f32 %v4738_v63, %v4723_v47  ;;  %v4916_v53 = vrot.slane %v4898_v23, %v7839_v6  ;;  %v14904_v3 = vld [vmem:[#allocation39_spill] sm:$0xff] }
0x12fe   :  { %v4837_v19 = vadd.f32 %v4831_v57, %v4808_v12  ;;  %v4838_v15 = vadd.f32 %v4832_v31, %v4809_v10  ;;  %v4833_v5 = vsel %vm270_vm1, %v14897_v45, %v14898_v62  ;;  %v4920_v0 = vrot.slane %v4897_v13, %v7839_v6  ;;  %v14907_v57 = vld [vmem:[#allocation28_spill] sm:$0xff] }
0x12ff   :  { %v4810_v25 = vadd.f32 %v4807_v21, %v4741_v1  ;;  %v4852_v55 = vmul.f32 %v4843_v32, %v14899_v58  ;;  %v4853_v44 = vmul.f32 %v4847_v11, %v14899_v58  ;;  %v4921_v33 = vmul.f32 %v4912_v49, %v14900_v28  ;;  %v14905_v32 = vld [vmem:[#allocation31_spill] sm:$0xff]  ;;  %v14908_v13 = vld [vmem:[#allocation44_spill] sm:$0xff] }
0x1300   :  { %v4907_v63 = vsel %vm71_vm3, %v14902_v29, %v14901_v37  ;;  %v4854_v61 = vmul.f32 %v4851_v56, %v14899_v58  ;;  %v4922_v30 = vmul.f32 %v4916_v53, %v14900_v28  ;;  %v5000_v38 = vsel %vm61_vm2, %v11513_v48, %v14903_v24 }
0x1301   :  { %v4839_v8 = vadd.f32 %v4833_v5, %v4810_v25  ;;  %v4855_v47 = vadd.f32 %v4852_v55, %v4837_v19  ;;  %v4856_v60 = vadd.f32 %v4853_v44, %v4838_v15  ;;  %v4923_v21 = vmul.f32 %v4920_v0, %v14900_v28  ;;  %v14909_v15 = vld [vmem:[#allocation41_spill] sm:$0xff]  ;;  %v14910_v44 = vld [vmem:[#allocation100_spill] sm:$0xff] }
0x1302   :  { %v4906_v27 = vsel %vm71_vm3, %v14901_v37, %v14904_v3  ;;  %v4908_v16 = vsel %vm71_vm3, %v14904_v3, %v14902_v29  ;;  %v4959_v23 = vrot.slane %v4907_v63, %v7839_v6  ;;  %v4947_v43 = vsel %vm46_vm0, %v14906_v7, %v14905_v32  ;;  %v14911_v37 = vld [vmem:[#allocation104_spill] sm:$0xff] }
0x1303   :  { %v4999_v45 = vsel %vm61_vm2, %v14903_v24, %v14907_v57  ;;  %v4924_v31 = vadd.f32 %v4921_v33, %v4855_v47  ;;  %v4948_v11 = vsel %vm46_vm0, %v14905_v32, %v14908_v13  ;;  %v4998_v12 = vsel %vm61_vm2, %v14907_v57, %v11513_v48  ;;  %v14913_v24 = vld [vmem:[#allocation55_spill] sm:$0xff] }
0x1304   :  { %v5013_v10 = vrot.slane %v5000_v38, %v7839_v6  ;;  %v4857_v49 = vadd.f32 %v4854_v61, %v4839_v8  ;;  %v4963_v56 = vrot.slane %v4906_v27, %v7839_v6  ;;  %v4925_v1 = vadd.f32 %v4922_v30, %v4856_v60  ;;  %v14912_v8 = vld [vmem:[#allocation46_spill] sm:$0xff] }
0x1305   :  { %v4967_v53 = vrot.slane %v4908_v16, %v7839_v6  ;;  %v4953_v19 = vadd.f32 %v4947_v43, %v4924_v31  ;;  %v4949_v62 = vsel %vm46_vm0, %v14908_v13, %v14909_v15  ;;  %v5017_v5 = vrot.slane %v4999_v45, %v7839_v6  ;;  %v14916_v15 = vld [vmem:[#allocation24_spill] sm:$0xff] }
0x1306   :  { %v4926_v25 = vadd.f32 %v4923_v21, %v4857_v49  ;;  %v4954_v55 = vadd.f32 %v4948_v11, %v4925_v1  ;;  %v5021_v48 = vrot.slane %v4998_v12, %v7839_v6  ;;  %v4968_v33 = vmul.f32 %v4959_v23, %v14910_v44  ;;  %v14914_v11 = vld [vmem:[#allocation105_spill] sm:$0xff]  ;;  %v14915_v12 = vld [vmem:[#allocation96_spill] sm:$0xff] }
0x1307   :  { %v5022_v29 = vmul.f32 %v5013_v10, %v14911_v37  ;;  %v4969_v63 = vmul.f32 %v4963_v56, %v14910_v44  ;;  %v5007_v30 = vsel %vm71_vm3, %v14912_v8, %v11515_v4  ;;  %v5008_v38 = vsel %vm71_vm3, %v14913_v24, %v14912_v8  ;;  %v14919_v8 = vld [vmem:[#allocation23_spill] sm:$0xff] }
0x1308   :  { %v4955_v61 = vadd.f32 %v4949_v62, %v4926_v25  ;;  %v4970_v47 = vmul.f32 %v4967_v53, %v14910_v44  ;;  %v4971_v60 = vadd.f32 %v4968_v33, %v4953_v19  ;;  %v5023_v21 = vmul.f32 %v5017_v5, %v14911_v37  ;;  %v14917_v25 = vld [vmem:[#allocation106_spill] sm:$0xff] }
0x1309   :  { %v4972_v16 = vadd.f32 %v4969_v63, %v4954_v55  ;;  %v5024_v23 = vmul.f32 %v5021_v48, %v14911_v37  ;;  %v5009_v57 = vsel %vm71_vm3, %v11515_v4, %v14913_v24  ;;  %v5037_v45 = vrot.slane %v5008_v38, %v7839_v6  ;;  %v14918_v63 = vld [vmem:[#allocation9_spill] sm:$0xff] }
0x130a   :  { %v5025_v43 = vadd.f32 %v5022_v29, %v4971_v60  ;;  %v5041_v31 = vrot.slane %v5007_v30, %v7839_v6  ;;  %v4973_v13 = vadd.f32 %v4970_v47, %v4955_v61  ;;  %v5028_v10 = vmul.f32 %v14915_v12, %v14914_v11 }
0x130b   :  { %v5026_v49 = vadd.f32 %v5023_v21, %v4972_v16  ;;  %v5029_v62 = vmul.f32 %v14916_v15, %v14914_v11  ;;  %v5045_v4 = vrot.slane %v5009_v57, %v7839_v6  ;;  %v5046_v55 = vmul.f32 %v5037_v45, %v14917_v25 }
0x130c   :  { %v5027_v5 = vadd.f32 %v5024_v23, %v4973_v13  ;;  %v5047_v48 = vmul.f32 %v5041_v31, %v14917_v25  ;;  %v5031_v29 = vadd.f32 %v5028_v10, %v5025_v43  ;;  %v5030_v61 = vmul.f32 %v14918_v63, %v14914_v11 }
0x130d   :  { %v5032_v21 = vadd.f32 %v5029_v62, %v5026_v49  ;;  %v14920_v49 = vld [vmem:[#allocation22_spill] sm:$0xff] }
0x130e   :  { %v5033_v23 = vadd.f32 %v5030_v61, %v5027_v5  ;;  %v14921_v61 = vld [vmem:[#allocation25_spill] sm:$0xff] }
0x130f   :  { %v5050_v43 = vadd.f32 %v5047_v48, %v5032_v21 }
0x1323   :  { %v5086_v0 = vpop.permute.xlu0 %5085 }
0x1327   :  { %v5088_v3 = vpop.permute.xlu1 %5087  ;;  %v5090_v27 = vpop.permute.xlu0 %5089 }
0x1328   :  { %v5092_v32 = vsel %vm61_vm2, %v5086_v0, %v5088_v3  ;;  %v5093_v7 = vsel %vm61_vm2, %v5090_v27, %v5086_v0  ;;  %v5091_v0 = vsel %vm61_vm2, %v5088_v3, %v5090_v27  ;;  %v5048_v3 = vmul.f32 %v5045_v4, %v14917_v25 }
0x1329   :  { %v5110_v56 = vrot.slane %v5092_v32, %v7839_v6  ;;  %v5106_v1 = vrot.slane %v5093_v7, %v7839_v6  ;;  %v5114_v24 = vrot.slane %v5091_v0, %v7839_v6  ;;  %v5049_v7 = vadd.f32 %v5046_v55, %v5031_v29 }
0x132a   :  { %v5051_v15 = vadd.f32 %v5048_v3, %v5033_v23  ;;  %v14923_v3 = vld [vmem:[#allocation26_spill] sm:$0xff]  ;;  %v14924_v23 = vld [vmem:[#allocation5_spill] sm:$0xff] }
0x132b   :  { %v5095_v53 = vpop.permute.xlu1 %5094  ;;  %v5097_v19 = vpop.permute.xlu0 %5096  ;;  %v5116_v30 = vmul.f32 %v5110_v56, %v14919_v8  ;;  %v5115_v38 = vmul.f32 %v5106_v1, %v14919_v8  ;;  %v5117_v45 = vmul.f32 %v5114_v24, %v14919_v8  ;;  %v14922_v24 = vld [vmem:[#allocation27_spill] sm:$0xff] }
0x132c   :  { %v5101_v33 = vsel %vm71_vm3, %v5095_v53, %v5097_v19 }
0x132d   :  { %v5153_v27 = vrot.slane %v5101_v33, %v7839_v6  ;;  %v5118_v13 = vadd.f32 %v5115_v38, %v5049_v7  ;;  %v5119_v12 = vadd.f32 %v5116_v30, %v5050_v43  ;;  %v5120_v33 = vadd.f32 %v5117_v45, %v5051_v15  ;;  %v14925_v43 = vld [vmem:[#allocation6_spill] sm:$0xff]  ;;  %v14926_v45 = vld [vmem:[#allocation4_spill] sm:$0xff] }
0x132f   :  { %v5099_v47 = vpop.permute.xlu1 %5098  ;;  %v5134_v60 = vpop.permute.xlu0 %5133  ;;  %v5162_v56 = vmul.f32 %v5153_v27, %v14920_v49 }
0x1330   :  { %v5100_v16 = vsel %vm71_vm3, %v5097_v19, %v5099_v47  ;;  %v5102_v57 = vsel %vm71_vm3, %v5099_v47, %v5095_v53 }
0x1331   :  { %v5157_v32 = vrot.slane %v5100_v16, %v7839_v6  ;;  %v5161_v62 = vrot.slane %v5102_v57, %v7839_v6 }
0x1333   :  { %v5136_v31 = vpop.permute.xlu1 %5135  ;;  %v5138_v10 = vpop.permute.xlu0 %5137  ;;  %v5163_v5 = vmul.f32 %v5157_v32, %v14920_v49  ;;  %v5164_v63 = vmul.f32 %v5161_v62, %v14920_v49  ;;  %v14927_v62 = vld [vmem:[#allocation10_spill] sm:$0xff] }
0x1334   :  { %v5141_v1 = vsel %vm270_vm1, %v5134_v60, %v5136_v31  ;;  %v5142_v19 = vsel %vm270_vm1, %v5136_v31, %v5138_v10 }
0x1335   :  { %v5147_v4 = vadd.f32 %v5141_v1, %v5118_v13  ;;  %v5148_v0 = vadd.f32 %v5142_v19, %v5119_v12 }
0x1337   :  { %v5165_v53 = vadd.f32 %v5162_v56, %v5147_v4  ;;  %v5166_v55 = vadd.f32 %v5163_v5, %v5148_v0  ;;  %v5140_v48 = vpop.permute.xlu1 %5139 }
0x1338   :  { %v5143_v29 = vsel %vm270_vm1, %v5138_v10, %v5140_v48 }
0x1339   :  { %v5168_v30 = vmul.f32 %v5165_v53, %v14921_v61  ;;  %v5169_v38 = vmul.f32 %v5166_v55, %v14922_v24  ;;  %v5149_v47 = vadd.f32 %v5143_v29, %v5120_v33  ;;  %v14928_v61 = vld [vmem:[#allocation17_spill] sm:$0xff] }
0x133b   :  { %v5173_v60 = vcombine.low %v5168_v30, %v5169_v38  ;;  %v5167_v21 = vadd.f32 %v5164_v63, %v5149_v47 }
0x133d   :  { %5175 = vst [vmem:[#allocation2 + $0x4] sm:$0xff] %v5173_v60  ;;  %v5170_v27 = vmul.f32 %v5167_v21, %v14923_v3 }
0x133f   :  { %5176 = vst [vmem:[#allocation2 + $0xc] sm:$0xf] %v5170_v27 }
0x1346   :  { %v5177_v16 = vld [vmem:[#allocation2] ss:$4 sm:$0xf]  ;;  %v5599_v36 = vld [vmem:[#allocation2 + $0x5] ss:$4 sm:$0x7] }
0x1347   :  { %v5186_v32 = vrot.slane %v5177_v16, %v14924_v23  ;;  %v5182_v7 = vrot.slane %v5177_v16, %v7839_v6  ;;  %v5194_v57 = vrot.slane %v5177_v16, %v14925_v43  ;;  %v5190_v31 = vrot.slane %v5177_v16, %v14926_v45  ;;  %v5292_v53 = vld [vmem:[#allocation2 + $0x4] ss:$4 sm:$0x7] }
0x1348   :  { %v12074_v48 = vrot.slane %v5292_v53, %v7839_v6  ;;  %v12080_v33 = vrot.slane %v5292_v53, %v14924_v23  ;;  %v12083_v29 = vrot.slane %v5292_v53, %v14926_v45  ;;  %v5369_v63 = vld [vmem:[#allocation2 + $0x4] ss:$4 sm:$0xf] }
0x1349   :  { %5197 = vrot.lane.b32.xlu1 %v5186_v32, %s7771_s16  ;;  %5195 = vrot.lane.b32.xlu0 %v5182_v7, %s7771_s16  ;;  %v5249_v5 = vmul.f32 %v5182_v7, %v14927_v62  ;;  %v5250_v4 = vmul.f32 %v5186_v32, %v14927_v62  ;;  %v5251_v0 = vmul.f32 %v5190_v31, %v14927_v62 }
0x134a   :  { %v5252_v55 = vmul.f32 %v5194_v57, %v14927_v62  ;;  %v5374_v30 = vrot.slane %v5369_v63, %v7839_v6  ;;  %v5378_v38 = vrot.slane %v5369_v63, %v14924_v23  ;;  %v5382_v47 = vrot.slane %v5369_v63, %v14926_v45 }
0x134b   :  { %v5386_v60 = vrot.slane %v5369_v63, %v14925_v43 }
0x134c   :  { %v5441_v49 = vmul.f32 %v5374_v30, %v14928_v61 }
0x134d   :  { %5201 = vrot.lane.b32.xlu1 %v5194_v57, %s7771_s16  ;;  %5199 = vrot.lane.b32.xlu0 %v5190_v31, %s7771_s16 }
0x13bb   :  { %v5198_v13 = vpop.permute.xlu1 %5197  ;;  %v5196_v12 = vpop.permute.xlu0 %5195 }
0x13bc   :  { %v5203_v10 = vsel %vm46_vm0, %v5196_v12, %v5198_v13 }
0x13bd   :  { %5209 = vrot.lane.b32.xlu0 %v5203_v10, %s7772_s19 }
0x13bf   :  { %v5202_v56 = vpop.permute.xlu1 %5201  ;;  %v5200_v1 = vpop.permute.xlu0 %5199 }
0x13c0   :  { %v5205_v19 = vsel %vm46_vm0, %v5200_v1, %v5202_v56  ;;  %v5204_v15 = vsel %vm46_vm0, %v5198_v13, %v5200_v1 }
0x13c1   :  { %5213 = vrot.lane.b32.xlu0 %v5205_v19, %s7772_s19  ;;  %5211 = vrot.lane.b32.xlu1 %v5204_v15, %s7772_s19 }
0x13c5   :  { %5220 = vrot.lane.b32.xlu0 %v5204_v15, %s7775_s20  ;;  %5218 = vrot.lane.b32.xlu1 %v5203_v10, %s7775_s20 }
0x13c9   :  { %5222 = vrot.lane.b32.xlu1 %v5205_v19, %s7775_s20  ;;  %5257 = vrot.lane.b32.xlu0 %v5249_v5, %s7771_s16 }
0x13cd   :  { %5259 = vrot.lane.b32.xlu1 %v5250_v4, %s7771_s16  ;;  %5261 = vrot.lane.b32.xlu0 %v5251_v0, %s7771_s16 }
0x13d1   :  { %5263 = vrot.lane.b32.xlu1 %v5252_v55, %s7771_s16  ;;  %5309 = vrot.lane.b32.xlu0 %v12074_v48, %s7772_s19 }
0x13d5   :  { %5311 = vrot.lane.b32.xlu1 %v12080_v33, %s7772_s19  ;;  %5313 = vrot.lane.b32.xlu0 %v12083_v29, %s7772_s19 }
0x13d9   :  { %5318 = vrot.lane.b32.xlu1 %v12074_v48, %s7775_s20  ;;  %5320 = vrot.lane.b32.xlu0 %v12080_v33, %s7775_s20 }
0x13dd   :  { %5322 = vrot.lane.b32.xlu1 %v12083_v29, %s7775_s20  ;;  %5387 = vrot.lane.b32.xlu0 %v5374_v30, %s7777_s23 }
0x13e1   :  { %5389 = vrot.lane.b32.xlu1 %v5378_v38, %s7777_s23  ;;  %5391 = vrot.lane.b32.xlu0 %v5382_v47, %s7777_s23 }
0x13e5   :  { %5393 = vrot.lane.b32.xlu1 %v5386_v60, %s7777_s23 }
0x142f   :  { %v12103_v21 = vpop.permute.xlu0 %5209 }
0x1433   :  { %v12105_v27 = vpop.permute.xlu1 %5211  ;;  %v12107_v16 = vpop.permute.xlu0 %5213 }
0x1437   :  { %v12109_v32 = vpop.permute.xlu1 %5218  ;;  %v12111_v7 = vpop.permute.xlu0 %5220 }
0x143b   :  { %v12113_v57 = vpop.permute.xlu1 %5222  ;;  %v12115_v31 = vpop.permute.xlu0 %5257 }
0x143f   :  { %v12117_v13 = vpop.permute.xlu1 %5259  ;;  %v12119_v12 = vpop.permute.xlu0 %5261 }
0x1443   :  { %v12121_v10 = vpop.permute.xlu1 %5263  ;;  %v12123_v56 = vpop.permute.xlu0 %5309 }
0x1447   :  { %v12125_v1 = vpop.permute.xlu1 %5311  ;;  %v12127_v19 = vpop.permute.xlu0 %5313 }
0x144b   :  { %v12129_v15 = vpop.permute.xlu1 %5318  ;;  %v12131_v5 = vpop.permute.xlu0 %5320 }
0x144f   :  { %v12133_v4 = vpop.permute.xlu1 %5322  ;;  %v5388_v0 = vpop.permute.xlu0 %5387 }
0x1453   :  { %v5390_v53 = vpop.permute.xlu1 %5389  ;;  %v5392_v55 = vpop.permute.xlu0 %5391 }
0x1454   :  { %v5395_v63 = vsel %vm270_vm1, %v5388_v0, %v5390_v53  ;;  %v5396_v62 = vsel %vm270_vm1, %v5390_v53, %v5392_v55  ;;  %v5442_v0 = vmul.f32 %v5378_v38, %v14928_v61  ;;  %v5443_v53 = vmul.f32 %v5382_v47, %v14928_v61 }
0x1455   :  { %5401 = vrot.lane.b32.xlu0 %v5395_v63, %s7772_s19  ;;  %5403 = vrot.lane.b32.xlu1 %v5396_v62, %s7772_s19 }
0x1457   :  { %v5394_v3 = vpop.permute.xlu1 %5393 }
0x1458   :  { %v5397_v24 = vsel %vm270_vm1, %v5392_v55, %v5394_v3  ;;  %v5444_v3 = vmul.f32 %v5386_v60, %v14928_v61  ;;  %v5484_v55 = vld [vmem:[#allocation2 + $0x1] ss:$4 sm:$0xf] }
0x1459   :  { %5405 = vrot.lane.b32.xlu0 %v5397_v24, %s7772_s19  ;;  %5410 = vrot.lane.b32.xlu1 %v5395_v63, %s7775_s20  ;;  %v5501_v30 = vrot.slane %v5484_v55, %v14925_v43 }
0x145d   :  { %5412 = vrot.lane.b32.xlu0 %v5396_v62, %s7775_s20  ;;  %5414 = vrot.lane.b32.xlu1 %v5397_v24, %s7775_s20  ;;  %v5489_v62 = vrot.slane %v5484_v55, %v7839_v6  ;;  %v5493_v24 = vrot.slane %v5484_v55, %v14924_v23 }
0x145f   :  { %v5556_v41 = vmul.f32 %v5489_v62, %v14929_v59 }
0x1461   :  { %5449 = vrot.lane.b32.xlu0 %v5441_v49, %s7777_s23  ;;  %5451 = vrot.lane.b32.xlu1 %v5442_v0, %s7777_s23  ;;  %v5497_v49 = vrot.slane %v5484_v55, %v14926_v45 }
0x1465   :  { %5453 = vrot.lane.b32.xlu0 %v5443_v53, %s7777_s23  ;;  %5455 = vrot.lane.b32.xlu1 %v5444_v3, %s7777_s23 }
0x1469   :  { %5502 = vrot.lane.b32.xlu0 %v5489_v62, %s7771_s16  ;;  %5504 = vrot.lane.b32.xlu1 %v5493_v24, %s7771_s16 }
0x146d   :  { %5506 = vrot.lane.b32.xlu0 %v5497_v49, %s7771_s16  ;;  %5508 = vrot.lane.b32.xlu1 %v5501_v30, %s7771_s16 }
0x14c7   :  { %v12160_v38 = vpop.permute.xlu1 %5403  ;;  %v12162_v47 = vpop.permute.xlu0 %5401 }
0x14cb   :  { %v12164_v60 = vpop.permute.xlu1 %5410  ;;  %v12166_v63 = vpop.permute.xlu0 %5405 }
0x14cf   :  { %v12168_v0 = vpop.permute.xlu1 %5414  ;;  %v12170_v53 = vpop.permute.xlu0 %5412 }
0x14d3   :  { %v12172_v3 = vpop.permute.xlu1 %5451  ;;  %v12174_v61 = vpop.permute.xlu0 %5449 }
0x14d7   :  { %v12176_v55 = vpop.permute.xlu1 %5455  ;;  %v12178_v8 = vpop.permute.xlu0 %5453 }
0x14db   :  { %v5505_v25 = vpop.permute.xlu1 %5504  ;;  %v5503_v11 = vpop.permute.xlu0 %5502 }
0x14dc   :  { %v5510_v37 = vsel %vm46_vm0, %v5503_v11, %v5505_v25  ;;  %v5558_v11 = vmul.f32 %v5497_v49, %v14929_v59 }
0x14dd   :  { %5516 = vrot.lane.b32.xlu0 %v5510_v37, %s7772_s19 }
0x14df   :  { %v5509_v44 = vpop.permute.xlu1 %5508  ;;  %v5507_v28 = vpop.permute.xlu0 %5506 }
0x14e0   :  { %v5512_v58 = vsel %vm46_vm0, %v5507_v28, %v5509_v44  ;;  %v5511_v14 = vsel %vm46_vm0, %v5505_v25, %v5507_v28  ;;  %v5557_v44 = vmul.f32 %v5493_v24, %v14929_v59  ;;  %v12196_v28 = vrot.slane %v5599_v36, %v7839_v6 }
0x14e1   :  { %5520 = vrot.lane.b32.xlu0 %v5512_v58, %s7772_s19  ;;  %5518 = vrot.lane.b32.xlu1 %v5511_v14, %s7772_s19 }
0x14e2   :  { %14930 = vst [vmem:[#allocation29_spill] sm:$0xff] %v12196_v28 }
0x14e5   :  { %5527 = vrot.lane.b32.xlu0 %v5511_v14, %s7775_s20  ;;  %5525 = vrot.lane.b32.xlu1 %v5510_v37, %s7775_s20  ;;  %v5559_v14 = vmul.f32 %v5501_v30, %v14929_v59  ;;  %v5676_v37 = vld [vmem:[#allocation2 + $0x5] ss:$4 sm:$0xf] }
0x14e6   :  { %v5681_v25 = vrot.slane %v5676_v37, %v7839_v6  ;;  %v5685_v62 = vrot.slane %v5676_v37, %v14924_v23  ;;  %v5693_v24 = vrot.slane %v5676_v37, %v14925_v43 }
0x14e9   :  { %5564 = vrot.lane.b32.xlu0 %v5556_v41, %s7771_s16  ;;  %5529 = vrot.lane.b32.xlu1 %v5512_v58, %s7775_s20  ;;  %v12203_v41 = vrot.slane %v5599_v36, %v14926_v45  ;;  %v12206_v58 = vrot.slane %v5599_v36, %v14924_v23  ;;  %v5689_v36 = vrot.slane %v5676_v37, %v14926_v45 }
0x14eb   :  { %14931 = vst [vmem:[#allocation8_spill] sm:$0xff] %v12203_v41  ;;  %14932 = vst [vmem:[#allocation40_spill] sm:$0xff] %v12206_v58 }
0x14ed   :  { %5568 = vrot.lane.b32.xlu0 %v5558_v11, %s7771_s16  ;;  %5566 = vrot.lane.b32.xlu1 %v5557_v44, %s7771_s16 }
0x14f1   :  { %5616 = vrot.lane.b32.xlu0 %v12196_v28, %s7772_s19  ;;  %5570 = vrot.lane.b32.xlu1 %v5559_v14, %s7771_s16 }
0x14f5   :  { %5620 = vrot.lane.b32.xlu0 %v12203_v41, %s7772_s19  ;;  %5618 = vrot.lane.b32.xlu1 %v12206_v58, %s7772_s19 }
0x14f9   :  { %5627 = vrot.lane.b32.xlu0 %v12206_v58, %s7775_s20  ;;  %5625 = vrot.lane.b32.xlu1 %v12196_v28, %s7775_s20 }
0x14fd   :  { %5694 = vrot.lane.b32.xlu0 %v5681_v25, %s7777_s23  ;;  %5629 = vrot.lane.b32.xlu1 %v12203_v41, %s7775_s20 }
0x1501   :  { %5698 = vrot.lane.b32.xlu0 %v5689_v36, %s7777_s23  ;;  %5696 = vrot.lane.b32.xlu1 %v5685_v62, %s7777_s23 }
0x1505   :  { %5700 = vrot.lane.b32.xlu1 %v5693_v24, %s7777_s23 }
0x154f   :  { %v12226_v49 = vpop.permute.xlu0 %5516 }
0x1553   :  { %v12228_v30 = vpop.permute.xlu1 %5518  ;;  %v12230_v11 = vpop.permute.xlu0 %5520 }
0x1557   :  { %v12232_v44 = vpop.permute.xlu1 %5525  ;;  %v12234_v14 = vpop.permute.xlu0 %5527 }
0x1558   :  { %14933 = vst [vmem:[#allocation7_spill] sm:$0xff] %v12232_v44  ;;  %14934 = vst [vmem:[#allocation48_spill] sm:$0xff] %v12234_v14 }
0x155b   :  { %v12236_v59 = vpop.permute.xlu1 %5529  ;;  %v12238_v50 = vpop.permute.xlu0 %5564 }
0x155c   :  { %14935 = vst [vmem:[#allocation61_spill] sm:$0xff] %v12236_v59  ;;  %14936 = vst [vmem:[#allocation60_spill] sm:$0xff] %v12238_v50 }
0x155f   :  { %v12240_v22 = vpop.permute.xlu1 %5566  ;;  %v12242_v42 = vpop.permute.xlu0 %5568 }
0x1560   :  { %14937 = vst [vmem:[#allocation56_spill] sm:$0xff] %v12240_v22  ;;  %14938 = vst [vmem:[#allocation12_spill] sm:$0xff] %v12242_v42 }
0x1563   :  { %v12244_v37 = vpop.permute.xlu1 %5570  ;;  %v12246_v40 = vpop.permute.xlu0 %5616 }
0x1564   :  { %14939 = vst [vmem:[#allocation11_spill] sm:$0xff] %v12244_v37  ;;  %14940 = vst [vmem:[#allocation14_spill] sm:$0xff] %v12246_v40 }
0x1567   :  { %v12248_v41 = vpop.permute.xlu1 %5618  ;;  %v12250_v34 = vpop.permute.xlu0 %5620 }
0x1568   :  { %14941 = vst [vmem:[#allocation13_spill] sm:$0xff] %v12248_v41  ;;  %14942 = vst [vmem:[#allocation15_spill] sm:$0xff] %v12250_v34 }
0x156b   :  { %v12252_v58 = vpop.permute.xlu1 %5625  ;;  %v12254_v28 = vpop.permute.xlu0 %5627 }
0x156c   :  { %14943 = vst [vmem:[#allocation16_spill] sm:$0xff] %v12252_v58  ;;  %14944 = vst [vmem:[#allocation18_spill] sm:$0xff] %v12254_v28 }
0x156f   :  { %v12256_v20 = vpop.permute.xlu1 %5629  ;;  %v5695_v26 = vpop.permute.xlu0 %5694 }
0x1570   :  { %14945 = vst [vmem:[#allocation21_spill] sm:$0xff] %v12256_v20  ;;  %v14946_v20 = vld [vmem:[#allocation38_spill] sm:$0xff] }
0x1571   :  { %v5748_v58 = vmul.f32 %v5681_v25, %v14946_v20 }
0x1573   :  { %v5697_v52 = vpop.permute.xlu1 %5696  ;;  %v5699_v50 = vpop.permute.xlu0 %5698 }
0x1574   :  { %v5702_v22 = vsel %vm270_vm1, %v5695_v26, %v5697_v52  ;;  %v5703_v42 = vsel %vm270_vm1, %v5697_v52, %v5699_v50  ;;  %v5749_v26 = vmul.f32 %v5685_v62, %v14946_v20  ;;  %v5750_v52 = vmul.f32 %v5689_v36, %v14946_v20 }
0x1575   :  { %5708 = vrot.lane.b32.xlu0 %v5702_v22, %s7772_s19  ;;  %5710 = vrot.lane.b32.xlu1 %v5703_v42, %s7772_s19 }
0x1577   :  { %v5701_v37 = vpop.permute.xlu1 %5700 }
0x1578   :  { %v5704_v41 = vsel %vm270_vm1, %v5699_v50, %v5701_v37  ;;  %v5751_v50 = vmul.f32 %v5693_v24, %v14946_v20  ;;  %v5791_v37 = vld [vmem:[#allocation2 + $0x2] ss:$4 sm:$0xf] }
0x1579   :  { %5712 = vrot.lane.b32.xlu0 %v5704_v41, %s7772_s19  ;;  %5717 = vrot.lane.b32.xlu1 %v5702_v22, %s7775_s20  ;;  %v5800_v22 = vrot.slane %v5791_v37, %v14924_v23 }
0x157d   :  { %5719 = vrot.lane.b32.xlu0 %v5703_v42, %s7775_s20  ;;  %5721 = vrot.lane.b32.xlu1 %v5704_v41, %s7775_s20  ;;  %v5796_v42 = vrot.slane %v5791_v37, %v7839_v6  ;;  %v5804_v41 = vrot.slane %v5791_v37, %v14926_v45 }
0x1581   :  { %5756 = vrot.lane.b32.xlu0 %v5748_v58, %s7777_s23  ;;  %5758 = vrot.lane.b32.xlu1 %v5749_v26, %s7777_s23  ;;  %v5808_v58 = vrot.slane %v5791_v37, %v14925_v43 }
0x1585   :  { %5760 = vrot.lane.b32.xlu0 %v5750_v52, %s7777_s23  ;;  %5762 = vrot.lane.b32.xlu1 %v5751_v50, %s7777_s23 }
0x1589   :  { %5809 = vrot.lane.b32.xlu0 %v5796_v42, %s7771_s16  ;;  %5811 = vrot.lane.b32.xlu1 %v5800_v22, %s7771_s16 }
0x158d   :  { %5813 = vrot.lane.b32.xlu0 %v5804_v41, %s7771_s16  ;;  %5815 = vrot.lane.b32.xlu1 %v5808_v58, %s7771_s16 }
0x15e7   :  { %v12283_v25 = vpop.permute.xlu1 %5710  ;;  %v12285_v36 = vpop.permute.xlu0 %5708 }
0x15e8   :  { %14947 = vst [vmem:[#allocation57_spill] sm:$0xff] %v12283_v25  ;;  %14948 = vst [vmem:[#allocation50_spill] sm:$0xff] %v12285_v36 }
0x15eb   :  { %v12287_v62 = vpop.permute.xlu1 %5717  ;;  %v12289_v24 = vpop.permute.xlu0 %5712 }
0x15ec   :  { %14949 = vst [vmem:[#allocation68_spill] sm:$0xff] %v12287_v62  ;;  %14950 = vst [vmem:[#allocation73_spill] sm:$0xff] %v12289_v24 }
0x15ef   :  { %v12291_v26 = vpop.permute.xlu1 %5721  ;;  %v12293_v52 = vpop.permute.xlu0 %5719 }
0x15f0   :  { %14951 = vst [vmem:[#allocation65_spill] sm:$0xff] %v12291_v26  ;;  %14952 = vst [vmem:[#allocation45_spill] sm:$0xff] %v12293_v52 }
0x15f3   :  { %v12295_v50 = vpop.permute.xlu1 %5758  ;;  %v12297_v20 = vpop.permute.xlu0 %5756 }
0x15f4   :  { %14953 = vst [vmem:[#allocation49_spill] sm:$0xff] %v12295_v50  ;;  %14954 = vst [vmem:[#allocation62_spill] sm:$0xff] %v12297_v20  ;;  %v5906_v20 = vld [vmem:[#allocation2 + $0x6] ss:$4 sm:$0x7] }
0x15f7   :  { %v12299_v37 = vpop.permute.xlu1 %5762  ;;  %v12301_v28 = vpop.permute.xlu0 %5760 }
0x15f8   :  { %14955 = vst [vmem:[#allocation77_spill] sm:$0xff] %v12299_v37  ;;  %14956 = vst [vmem:[#allocation67_spill] sm:$0xff] %v12301_v28  ;;  %v14957_v37 = vld [vmem:[#allocation51_spill] sm:$0xff] }
0x15f9   :  { %v5863_v28 = vmul.f32 %v5796_v42, %v14957_v37  ;;  %v12329_v42 = vrot.slane %v5906_v20, %v14924_v23 }
0x15fb   :  { %v5812_v59 = vpop.permute.xlu1 %5811  ;;  %v5810_v25 = vpop.permute.xlu0 %5809  ;;  %14960 = vst [vmem:[#allocation59_spill] sm:$0xff] %v12329_v42 }
0x15fc   :  { %v5817_v36 = vsel %vm46_vm0, %v5810_v25, %v5812_v59  ;;  %v5865_v25 = vmul.f32 %v5804_v41, %v14957_v37 }
0x15fd   :  { %5823 = vrot.lane.b32.xlu0 %v5817_v36, %s7772_s19 }
0x15ff   :  { %v5816_v62 = vpop.permute.xlu1 %5815  ;;  %v5814_v24 = vpop.permute.xlu0 %5813 }
0x1600   :  { %v5819_v26 = vsel %vm46_vm0, %v5814_v24, %v5816_v62  ;;  %v5818_v52 = vsel %vm46_vm0, %v5812_v59, %v5814_v24  ;;  %v5864_v62 = vmul.f32 %v5800_v22, %v14957_v37  ;;  %v12319_v59 = vrot.slane %v5906_v20, %v7839_v6  ;;  %v5983_v22 = vld [vmem:[#allocation2 + $0x6] ss:$4 sm:$0xf] }
0x1601   :  { %5827 = vrot.lane.b32.xlu0 %v5819_v26, %s7772_s19  ;;  %5825 = vrot.lane.b32.xlu1 %v5818_v52, %s7772_s19  ;;  %v5988_v41 = vrot.slane %v5983_v22, %v7839_v6  ;;  %v6000_v24 = vrot.slane %v5983_v22, %v14925_v43 }
0x1602   :  { %14958 = vst [vmem:[#allocation69_spill] sm:$0xff] %v12319_v59 }
0x1605   :  { %5834 = vrot.lane.b32.xlu0 %v5818_v52, %s7775_s20  ;;  %5832 = vrot.lane.b32.xlu1 %v5817_v36, %s7775_s20  ;;  %v5866_v36 = vmul.f32 %v5808_v58, %v14957_v37  ;;  %v5992_v58 = vrot.slane %v5983_v22, %v14924_v23 }
0x1609   :  { %5871 = vrot.lane.b32.xlu0 %v5863_v28, %s7771_s16  ;;  %5836 = vrot.lane.b32.xlu1 %v5819_v26, %s7775_s20  ;;  %v12326_v28 = vrot.slane %v5906_v20, %v14926_v45  ;;  %v5996_v20 = vrot.slane %v5983_v22, %v14926_v45 }
0x160b   :  { %14959 = vst [vmem:[#allocation80_spill] sm:$0xff] %v12326_v28 }
0x160d   :  { %5875 = vrot.lane.b32.xlu0 %v5865_v25, %s7771_s16  ;;  %5873 = vrot.lane.b32.xlu1 %v5864_v62, %s7771_s16 }
0x1611   :  { %5923 = vrot.lane.b32.xlu0 %v12319_v59, %s7772_s19  ;;  %5877 = vrot.lane.b32.xlu1 %v5866_v36, %s7771_s16 }
0x1615   :  { %5927 = vrot.lane.b32.xlu0 %v12326_v28, %s7772_s19  ;;  %5925 = vrot.lane.b32.xlu1 %v12329_v42, %s7772_s19 }
0x1619   :  { %5934 = vrot.lane.b32.xlu0 %v12329_v42, %s7775_s20  ;;  %5932 = vrot.lane.b32.xlu1 %v12319_v59, %s7775_s20 }
0x161d   :  { %6001 = vrot.lane.b32.xlu0 %v5988_v41, %s7777_s23  ;;  %5936 = vrot.lane.b32.xlu1 %v12326_v28, %s7775_s20 }
0x1621   :  { %6005 = vrot.lane.b32.xlu0 %v5996_v20, %s7777_s23  ;;  %6003 = vrot.lane.b32.xlu1 %v5992_v58, %s7777_s23 }
0x1625   :  { %6007 = vrot.lane.b32.xlu1 %v6000_v24, %s7777_s23 }
0x166f   :  { %v12349_v26 = vpop.permute.xlu0 %5823 }
0x1670   :  { %14961 = vst [vmem:[#allocation78_spill] sm:$0xff] %v12349_v26 }
0x1673   :  { %v12351_v52 = vpop.permute.xlu1 %5825  ;;  %v12353_v25 = vpop.permute.xlu0 %5827 }
0x1674   :  { %14962 = vst [vmem:[#allocation54_spill] sm:$0xff] %v12351_v52  ;;  %14963 = vst [vmem:[#allocation92_spill] sm:$0xff] %v12353_v25 }
0x1677   :  { %v12355_v62 = vpop.permute.xlu1 %5832  ;;  %v12357_v36 = vpop.permute.xlu0 %5834 }
0x1678   :  { %14964 = vst [vmem:[#allocation52_spill] sm:$0xff] %v12355_v62  ;;  %14965 = vst [vmem:[#allocation74_spill] sm:$0xff] %v12357_v36 }
0x167b   :  { %v12359_v37 = vpop.permute.xlu1 %5836  ;;  %v12361_v28 = vpop.permute.xlu0 %5871 }
0x167c   :  { %14966 = vst [vmem:[#allocation82_spill] sm:$0xff] %v12359_v37  ;;  %14967 = vst [vmem:[#allocation63_spill] sm:$0xff] %v12361_v28 }
0x167f   :  { %v12363_v42 = vpop.permute.xlu1 %5873  ;;  %v12365_v59 = vpop.permute.xlu0 %5875 }
0x1680   :  { %14968 = vst [vmem:[#allocation99_spill] sm:$0xff] %v12363_v42  ;;  %14969 = vst [vmem:[#allocation102_spill] sm:$0xff] %v12365_v59 }
0x1683   :  { %v12367_v22 = vpop.permute.xlu1 %5877  ;;  %v12369_v50 = vpop.permute.xlu0 %5923 }
0x1684   :  { %14970 = vst [vmem:[#allocation66_spill] sm:$0xff] %v12367_v22  ;;  %14971 = vst [vmem:[#allocation91_spill] sm:$0xff] %v12369_v50 }
0x1687   :  { %v12371_v26 = vpop.permute.xlu1 %5925  ;;  %v12373_v52 = vpop.permute.xlu0 %5927 }
0x1688   :  { %14972 = vst [vmem:[#allocation83_spill] sm:$0xff] %v12371_v26  ;;  %14973 = vst [vmem:[#allocation98_spill] sm:$0xff] %v12373_v52 }
0x168b   :  { %v12375_v25 = vpop.permute.xlu1 %5932  ;;  %v12377_v62 = vpop.permute.xlu0 %5934 }
0x168c   :  { %14974 = vst [vmem:[#allocation86_spill] sm:$0xff] %v12375_v25  ;;  %14975 = vst [vmem:[#allocation85_spill] sm:$0xff] %v12377_v62  ;;  %v6098_v25 = vld [vmem:[#allocation2 + $0x3] ss:$4 sm:$0xf] }
0x168f   :  { %v12379_v36 = vpop.permute.xlu1 %5936  ;;  %v6002_v37 = vpop.permute.xlu0 %6001 }
0x1690   :  { %14976 = vst [vmem:[#allocation90_spill] sm:$0xff] %v12379_v36  ;;  %v6111_v36 = vrot.slane %v6098_v25, %v14926_v45 }
0x1693   :  { %v6004_v28 = vpop.permute.xlu1 %6003  ;;  %v6006_v34 = vpop.permute.xlu0 %6005 }
0x1694   :  { %v6009_v42 = vsel %vm270_vm1, %v6002_v37, %v6004_v28  ;;  %v6010_v59 = vsel %vm270_vm1, %v6004_v28, %v6006_v34  ;;  %v6103_v37 = vrot.slane %v6098_v25, %v7839_v6  ;;  %v6107_v28 = vrot.slane %v6098_v25, %v14924_v23 }
0x1695   :  { %6015 = vrot.lane.b32.xlu0 %v6009_v42, %s7772_s19  ;;  %6017 = vrot.lane.b32.xlu1 %v6010_v59, %s7772_s19 }
0x1697   :  { %v6008_v22 = vpop.permute.xlu1 %6007 }
0x1698   :  { %v6011_v26 = vsel %vm270_vm1, %v6006_v34, %v6008_v22  ;;  %v6115_v34 = vrot.slane %v6098_v25, %v14925_v43  ;;  %v6290_v22 = vld [vmem:[#allocation2 + $0x7] ss:$4 sm:$0xf] }
0x1699   :  { %6019 = vrot.lane.b32.xlu0 %v6011_v26, %s7772_s19  ;;  %6024 = vrot.lane.b32.xlu1 %v6009_v42, %s7775_s20  ;;  %v14977_v42 = vld [vmem:[#allocation76_spill] sm:$0xff]  ;;  %v12403_v62 = vrot.slane %v6290_v22, %v7839_v6  ;;  %v12406_v52 = vrot.slane %v6290_v22, %v14924_v23 }
0x169a   :  { %v6057_v25 = vmul.f32 %v5996_v20, %v14977_v42 }
0x169d   :  { %6026 = vrot.lane.b32.xlu0 %v6010_v59, %s7775_s20  ;;  %6028 = vrot.lane.b32.xlu1 %v6011_v26, %s7775_s20  ;;  %v6055_v59 = vmul.f32 %v5988_v41, %v14977_v42  ;;  %v6056_v26 = vmul.f32 %v5992_v58, %v14977_v42  ;;  %v6303_v41 = vrot.slane %v6290_v22, %v14926_v45 }
0x169e   :  { %v12414_v58 = vrot.slane %v6290_v22, %v14925_v43 }
0x16a1   :  { %6116 = vrot.lane.b32.xlu0 %v6103_v37, %s7771_s16  ;;  %6118 = vrot.lane.b32.xlu1 %v6107_v28, %s7771_s16 }
0x16a5   :  { %6120 = vrot.lane.b32.xlu0 %v6111_v36, %s7771_s16  ;;  %6122 = vrot.lane.b32.xlu1 %v6115_v34, %s7771_s16 }
0x16a9   :  { %6063 = vrot.lane.b32.xlu0 %v6055_v59, %s7777_s23  ;;  %6065 = vrot.lane.b32.xlu1 %v6056_v26, %s7777_s23  ;;  %v6058_v59 = vmul.f32 %v6000_v24, %v14977_v42 }
0x16ad   :  { %6308 = vrot.lane.b32.xlu0 %v12403_v62, %s7777_s23  ;;  %6310 = vrot.lane.b32.xlu1 %v12406_v52, %s7777_s23 }
0x16b1   :  { %6312 = vrot.lane.b32.xlu0 %v6303_v41, %s7777_s23  ;;  %6314 = vrot.lane.b32.xlu1 %v12414_v58, %s7777_s23 }
0x16b5   :  { %6067 = vrot.lane.b32.xlu0 %v6057_v25, %s7777_s23  ;;  %6069 = vrot.lane.b32.xlu1 %v6058_v59, %s7777_s23 }
0x1707   :  { %v12423_v26 = vpop.permute.xlu1 %6017  ;;  %v12425_v50 = vpop.permute.xlu0 %6015 }
0x1708   :  { %14978 = vst [vmem:[#allocation93_spill] sm:$0xff] %v12423_v26 }
0x170b   :  { %v12427_v40 = vpop.permute.xlu1 %6024  ;;  %v12429_v22 = vpop.permute.xlu0 %6019 }
0x170c   :  { %14979 = vst [vmem:[#allocation97_spill] sm:$0xff] %v12427_v40  ;;  %v14982_v40 = vld [vmem:[#allocation87_spill] sm:$0xff] }
0x170f   :  { %v12431_v43 = vpop.permute.xlu1 %6028  ;;  %v12433_v44 = vpop.permute.xlu0 %6026 }
0x1710   :  { %14980 = vst [vmem:[#allocation103_spill] sm:$0xff] %v12431_v43  ;;  %14981 = vst [vmem:[#allocation88_spill] sm:$0xff] %v12433_v44  ;;  %v6170_v44 = vmul.f32 %v6103_v37, %v14982_v40  ;;  %v6213_v43 = vld [vmem:[#allocation2 + $0x7] ss:$4 sm:$0x7] }
0x1713   :  { %v6119_v14 = vpop.permute.xlu1 %6118  ;;  %v6117_v20 = vpop.permute.xlu0 %6116 }
0x1714   :  { %v6124_v24 = vsel %vm46_vm0, %v6117_v20, %v6119_v14  ;;  %v6172_v20 = vmul.f32 %v6111_v36, %v14982_v40  ;;  %v12465_v36 = vrot.slane %v6213_v43, %v14924_v23 }
0x1715   :  { %6130 = vrot.lane.b32.xlu0 %v6124_v24, %s7772_s19 }
0x1717   :  { %v6123_v25 = vpop.permute.xlu1 %6122  ;;  %v6121_v59 = vpop.permute.xlu0 %6120 }
0x1718   :  { %v6126_v42 = vsel %vm46_vm0, %v6121_v59, %v6123_v25  ;;  %v6125_v26 = vsel %vm46_vm0, %v6119_v14, %v6121_v59  ;;  %v6171_v25 = vmul.f32 %v6107_v28, %v14982_v40  ;;  %v12451_v14 = vrot.slane %v6213_v43, %v7839_v6 }
0x1719   :  { %6134 = vrot.lane.b32.xlu0 %v6126_v42, %s7772_s19  ;;  %6132 = vrot.lane.b32.xlu1 %v6125_v26, %s7772_s19 }
0x171b   :  { %v12456_v37 = vpop.permute.xlu0 %6063 }
0x171d   :  { %6141 = vrot.lane.b32.xlu0 %v6125_v26, %s7775_s20  ;;  %6139 = vrot.lane.b32.xlu1 %v6124_v24, %s7775_s20  ;;  %v6173_v26 = vmul.f32 %v6115_v34, %v14982_v40  ;;  %v12454_v24 = vpop.permute.xlu1 %6065 }
0x171f   :  { %v6309_v34 = vpop.permute.xlu0 %6308 }
0x1721   :  { %6178 = vrot.lane.b32.xlu0 %v6170_v44, %s7771_s16  ;;  %6143 = vrot.lane.b32.xlu1 %v6126_v42, %s7775_s20  ;;  %v12462_v44 = vrot.slane %v6213_v43, %v14926_v45  ;;  %v6311_v28 = vpop.permute.xlu1 %6310 }
0x1722   :  { %v6316_v42 = vsel %vm270_vm1, %v6309_v34, %v6311_v28 }
0x1725   :  { %6182 = vrot.lane.b32.xlu0 %v6172_v20, %s7771_s16  ;;  %6180 = vrot.lane.b32.xlu1 %v6171_v25, %s7771_s16  ;;  %v6315_v59 = vpop.permute.xlu1 %6314  ;;  %v6313_v20 = vpop.permute.xlu0 %6312 }
0x1726   :  { %v6318_v43 = vsel %vm270_vm1, %v6313_v20, %v6315_v59  ;;  %v6317_v25 = vsel %vm270_vm1, %v6311_v28, %v6313_v20 }
0x1729   :  { %6230 = vrot.lane.b32.xlu0 %v12451_v14, %s7772_s19  ;;  %6184 = vrot.lane.b32.xlu1 %v6173_v26, %s7771_s16  ;;  %v14983_v26 = vld [vmem:[#allocation108_spill] sm:$0xff] }
0x172a   :  { %v6362_v34 = vmul.f32 %v12403_v62, %v14983_v26  ;;  %v6364_v40 = vmul.f32 %v6303_v41, %v14983_v26  ;;  %v6363_v28 = vmul.f32 %v12406_v52, %v14983_v26  ;;  %v6365_v59 = vmul.f32 %v12414_v58, %v14983_v26 }
0x172b   :  { %v5217_v62 = vsel %vm61_vm2, %v12107_v16, %v12103_v21  ;;  %v5216_v41 = vsel %vm61_vm2, %v12103_v21, %v12105_v27  ;;  %v5225_v58 = vsel %vm71_vm3, %v12109_v32, %v12111_v7  ;;  %v5224_v21 = vsel %vm71_vm3, %v12111_v7, %v12113_v57 }
0x172c   :  { %v5230_v52 = vrot.slane %v5217_v62, %v7839_v6  ;;  %v5234_v20 = vrot.slane %v5216_v41, %v7839_v6  ;;  %v5316_v7 = vsel %vm61_vm2, %v12123_v56, %v12125_v1  ;;  %v5315_v62 = vsel %vm61_vm2, %v12125_v1, %v12127_v19 }
0x172d   :  { %6234 = vrot.lane.b32.xlu0 %v12462_v44, %s7772_s19  ;;  %6232 = vrot.lane.b32.xlu1 %v12465_v36, %s7772_s19 }
0x1731   :  { %6241 = vrot.lane.b32.xlu0 %v12465_v36, %s7775_s20  ;;  %6239 = vrot.lane.b32.xlu1 %v12451_v14, %s7775_s20 }
0x1735   :  { %6243 = vrot.lane.b32.xlu1 %v12462_v44, %s7775_s20  ;;  %6322 = vrot.lane.b32.xlu0 %v6316_v42, %s7772_s19 }
0x1739   :  { %6326 = vrot.lane.b32.xlu0 %v6318_v43, %s7772_s19  ;;  %6324 = vrot.lane.b32.xlu1 %v6317_v25, %s7772_s19 }
0x173d   :  { %6333 = vrot.lane.b32.xlu0 %v6317_v25, %s7775_s20  ;;  %6331 = vrot.lane.b32.xlu1 %v6316_v42, %s7775_s20  ;;  %v5317_v42 = vsel %vm61_vm2, %v12127_v19, %v12123_v56  ;;  %v5277_v25 = vrot.slane %v5225_v58, %v7839_v6 }
0x1741   :  { %6370 = vrot.lane.b32.xlu0 %v6362_v34, %s7777_s23  ;;  %6335 = vrot.lane.b32.xlu1 %v6318_v43, %s7775_s20  ;;  %v5226_v34 = vsel %vm71_vm3, %v12113_v57, %v12109_v32  ;;  %v5240_v32 = vmul.f32 %v5234_v20, %v14836_v2 }
0x1742   :  { %v5285_v57 = vrot.slane %v5226_v34, %v7839_v6 }
0x1745   :  { %6374 = vrot.lane.b32.xlu0 %v6364_v40, %s7777_s23  ;;  %6372 = vrot.lane.b32.xlu1 %v6363_v28, %s7777_s23  ;;  %v5215_v40 = vsel %vm61_vm2, %v12105_v27, %v12107_v16  ;;  %v5239_v27 = vmul.f32 %v5230_v52, %v14836_v2  ;;  %v5265_v16 = vsel %vm46_vm0, %v12115_v31, %v12117_v13 }
0x1746   :  { %v5238_v43 = vrot.slane %v5215_v40, %v7839_v6  ;;  %v5330_v28 = vrot.slane %v5317_v42, %v7839_v6  ;;  %v5266_v31 = vsel %vm46_vm0, %v12117_v13, %v12119_v12  ;;  %v5267_v52 = vsel %vm46_vm0, %v12119_v12, %v12121_v10 }
0x1747   :  { %v5271_v41 = vadd.f32 %v5265_v16, %v5239_v27  ;;  %v5334_v40 = vrot.slane %v5316_v7, %v7839_v6  ;;  %v5286_v13 = vmul.f32 %v5277_v25, %v14837_v39  ;;  %v5272_v58 = vadd.f32 %v5266_v31, %v5240_v32 }
0x1748   :  { %v5241_v56 = vmul.f32 %v5238_v43, %v14836_v2  ;;  %v5338_v42 = vrot.slane %v5315_v62, %v7839_v6  ;;  %v5339_v1 = vmul.f32 %v5330_v28, %v14838_v35  ;;  %v5325_v43 = vsel %vm71_vm3, %v12129_v15, %v12131_v5 }
0x1749   :  { %6376 = vrot.lane.b32.xlu1 %v6365_v59, %s7777_s23  ;;  %v5281_v59 = vrot.slane %v5224_v21, %v7839_v6  ;;  %v5289_v20 = vadd.f32 %v5286_v13, %v5271_v41  ;;  %v5324_v12 = vsel %vm71_vm3, %v12131_v5, %v12133_v4  ;;  %v5288_v10 = vmul.f32 %v5285_v57, %v14837_v39 }
0x174a   :  { %v5273_v21 = vadd.f32 %v5267_v52, %v5241_v56  ;;  %v5340_v27 = vmul.f32 %v5334_v40, %v14838_v35  ;;  %v5341_v25 = vmul.f32 %v5338_v42, %v14838_v35  ;;  %v5409_v7 = vsel %vm61_vm2, %v12166_v63, %v12162_v47 }
0x174b   :  { %v5287_v19 = vmul.f32 %v5281_v59, %v14837_v39  ;;  %v5342_v34 = vadd.f32 %v5339_v1, %v5289_v20  ;;  %v5354_v28 = vrot.slane %v5325_v43, %v7839_v6  ;;  %v5326_v5 = vsel %vm71_vm3, %v12133_v4, %v12129_v15 }
0x174c   :  { %v5358_v59 = vrot.slane %v5324_v12, %v7839_v6  ;;  %v5408_v31 = vsel %vm61_vm2, %v12162_v47, %v12160_v38  ;;  %v5291_v62 = vadd.f32 %v5288_v10, %v5273_v21  ;;  %v5407_v41 = vsel %vm61_vm2, %v12160_v38, %v12166_v63 }
0x174d   :  { %v5290_v16 = vadd.f32 %v5287_v19, %v5272_v58  ;;  %v5422_v57 = vrot.slane %v5409_v7, %v7839_v6  ;;  %v5345_v56 = vmul.f32 %v12074_v48, %v14839_v9  ;;  %v5346_v15 = vmul.f32 %v12080_v33, %v14839_v9 }
0x174e   :  { %v5344_v4 = vadd.f32 %v5341_v25, %v5291_v62  ;;  %v5362_v52 = vrot.slane %v5326_v5, %v7839_v6  ;;  %v5426_v47 = vrot.slane %v5408_v31, %v7839_v6  ;;  %v5363_v40 = vmul.f32 %v5354_v28, %v14840_v54 }
0x174f   :  { %v5343_v32 = vadd.f32 %v5340_v27, %v5290_v16  ;;  %v5364_v13 = vmul.f32 %v5358_v59, %v14840_v54  ;;  %v5430_v38 = vrot.slane %v5407_v41, %v7839_v6  ;;  %v5348_v63 = vadd.f32 %v5345_v56, %v5342_v34  ;;  %v14985_v56 = vld [vmem:[#allocation7_spill] sm:$0xff] }
0x1750   :  { %v5347_v58 = vmul.f32 %v12083_v29, %v14839_v9  ;;  %v5431_v48 = vmul.f32 %v5422_v57, %v14841_v17  ;;  %v5417_v33 = vsel %vm71_vm3, %v12164_v60, %v12170_v53  ;;  %v5365_v1 = vmul.f32 %v5362_v52, %v14840_v54  ;;  %v14984_v57 = vld [vmem:[#allocation48_spill] sm:$0xff] }
0x1751   :  { %v5349_v42 = vadd.f32 %v5346_v15, %v5343_v32  ;;  %v5432_v19 = vmul.f32 %v5426_v47, %v14841_v17  ;;  %v5524_v21 = vsel %vm61_vm2, %v12230_v11, %v12226_v49  ;;  %v5433_v29 = vmul.f32 %v5430_v38, %v14841_v17  ;;  %v14986_v47 = vld [vmem:[#allocation14_spill] sm:$0xff] }
0x1752   :  { %v5350_v20 = vadd.f32 %v5347_v58, %v5344_v4  ;;  %v5416_v43 = vsel %vm71_vm3, %v12170_v53, %v12168_v0  ;;  %v5366_v12 = vadd.f32 %v5363_v40, %v5348_v63  ;;  %v5418_v27 = vsel %vm71_vm3, %v12168_v0, %v12164_v60  ;;  %v14988_v63 = vld [vmem:[#allocation61_spill] sm:$0xff] }
0x1753   :  { %v5367_v10 = vadd.f32 %v5364_v13, %v5349_v42  ;;  %v5469_v16 = vrot.slane %v5417_v33, %v7839_v6  ;;  %v5457_v25 = vsel %vm270_vm1, %v12174_v61, %v12172_v3  ;;  %v5523_v34 = vsel %vm61_vm2, %v12226_v49, %v12228_v30 }
0x1754   :  { %v5434_v7 = vadd.f32 %v5431_v48, %v5366_v12  ;;  %v5458_v53 = vsel %vm270_vm1, %v12172_v3, %v12178_v8  ;;  %v5522_v60 = vsel %vm61_vm2, %v12228_v30, %v12230_v11  ;;  %v5537_v0 = vrot.slane %v5524_v21, %v7839_v6 }
0x1755   :  { %v5473_v28 = vrot.slane %v5416_v43, %v7839_v6  ;;  %v5368_v61 = vadd.f32 %v5365_v1, %v5350_v20  ;;  %v5435_v5 = vadd.f32 %v5432_v19, %v5367_v10  ;;  %v5477_v59 = vrot.slane %v5418_v27, %v7839_v6  ;;  %v14989_v1 = vld [vmem:[#allocation56_spill] sm:$0xff]  ;;  %v14991_v43 = vld [vmem:[#allocation13_spill] sm:$0xff] }
0x1756   :  { %v5463_v31 = vadd.f32 %v5457_v25, %v5434_v7  ;;  %v5459_v49 = vsel %vm270_vm1, %v12178_v8, %v12176_v55  ;;  %v5541_v3 = vrot.slane %v5523_v34, %v7839_v6  ;;  %v5545_v32 = vrot.slane %v5522_v60, %v7839_v6  ;;  %v14987_v8 = vld [vmem:[#allocation15_spill] sm:$0xff]  ;;  %v14990_v19 = vld [vmem:[#allocation60_spill] sm:$0xff] }
0x1757   :  { %v5436_v62 = vadd.f32 %v5433_v29, %v5368_v61  ;;  %v5464_v41 = vadd.f32 %v5458_v53, %v5435_v5  ;;  %v5478_v30 = vmul.f32 %v5469_v16, %v14842_v18  ;;  %v5546_v11 = vmul.f32 %v5537_v0, %v14843_v51  ;;  %v14992_v25 = vld [vmem:[#allocation12_spill] sm:$0xff]  ;;  %v14993_v61 = vld [vmem:[#allocation11_spill] sm:$0xff] }
0x1758   :  { %v5532_v15 = vsel %vm71_vm3, %v14985_v56, %v14984_v57  ;;  %v5479_v4 = vmul.f32 %v5473_v28, %v14842_v18  ;;  %v5624_v55 = vsel %vm61_vm2, %v14987_v8, %v14986_v47  ;;  %v5480_v40 = vmul.f32 %v5477_v59, %v14842_v18 }
0x1759   :  { %v5465_v52 = vadd.f32 %v5459_v49, %v5436_v62  ;;  %v5481_v13 = vadd.f32 %v5478_v30, %v5463_v31  ;;  %v5547_v38 = vmul.f32 %v5541_v3, %v14843_v51  ;;  %v5531_v58 = vsel %vm71_vm3, %v14984_v57, %v14988_v63  ;;  %v14994_v31 = vld [vmem:[#allocation20_spill] sm:$0xff] }
0x175a   :  { %v5482_v48 = vadd.f32 %v5479_v4, %v5464_v41  ;;  %v5548_v33 = vmul.f32 %v5545_v32, %v14843_v51  ;;  %v5584_v42 = vrot.slane %v5532_v15, %v7839_v6  ;;  %v5572_v20 = vsel %vm46_vm0, %v14990_v19, %v14989_v1  ;;  %v14995_v41 = vld [vmem:[#allocation33_spill] sm:$0xff]  ;;  %v14997_v15 = vld [vmem:[#allocation16_spill] sm:$0xff] }
0x175b   :  { %v5533_v21 = vsel %vm71_vm3, %v14988_v63, %v14985_v56  ;;  %v5549_v29 = vadd.f32 %v5546_v11, %v5481_v13  ;;  %v5623_v12 = vsel %vm61_vm2, %v14986_v47, %v14991_v43  ;;  %v5637_v10 = vrot.slane %v5624_v55, %v7839_v6  ;;  %v14996_v56 = vld [vmem:[#allocation18_spill] sm:$0xff]  ;;  %v15001_v19 = vld [vmem:[#allocation57_spill] sm:$0xff] }
0x175c   :  { %v5483_v27 = vadd.f32 %v5480_v40, %v5465_v52  ;;  %v5588_v16 = vrot.slane %v5531_v58, %v7839_v6  ;;  %v5573_v34 = vsel %vm46_vm0, %v14989_v1, %v14992_v25  ;;  %v5622_v7 = vsel %vm61_vm2, %v14991_v43, %v14987_v8  ;;  %v14998_v52 = vld [vmem:[#allocation21_spill] sm:$0xff]  ;;  %v14999_v63 = vld [vmem:[#allocation50_spill] sm:$0xff] }
0x175d   :  { %v5578_v53 = vadd.f32 %v5572_v20, %v5549_v29  ;;  %v5550_v60 = vadd.f32 %v5547_v38, %v5482_v48  ;;  %v5592_v0 = vrot.slane %v5533_v21, %v7839_v6  ;;  %v5574_v5 = vsel %vm46_vm0, %v14992_v25, %v14993_v61  ;;  %v15000_v58 = vld [vmem:[#allocation73_spill] sm:$0xff]  ;;  %v15004_v25 = vld [vmem:[#allocation40_spill] sm:$0xff] }
0x175e   :  { %v5551_v28 = vadd.f32 %v5548_v33, %v5483_v27  ;;  %v5641_v59 = vrot.slane %v5623_v12, %v7839_v6  ;;  %v5593_v49 = vmul.f32 %v5584_v42, %v14994_v31  ;;  %v5645_v62 = vrot.slane %v5622_v7, %v7839_v6  ;;  %v15003_v27 = vld [vmem:[#allocation29_spill] sm:$0xff] }
0x175f   :  { %v5579_v3 = vadd.f32 %v5573_v34, %v5550_v60  ;;  %v5646_v32 = vmul.f32 %v5637_v10, %v14995_v41  ;;  %v5594_v30 = vmul.f32 %v5588_v16, %v14994_v31  ;;  %v5632_v4 = vsel %vm71_vm3, %v14997_v15, %v14996_v56  ;;  %v15002_v10 = vld [vmem:[#allocation32_spill] sm:$0xff] }
0x1760   :  { %v5596_v11 = vadd.f32 %v5593_v49, %v5578_v53  ;;  %v5580_v57 = vadd.f32 %v5574_v5, %v5551_v28  ;;  %v5631_v47 = vsel %vm71_vm3, %v14996_v56, %v14998_v52  ;;  %v5595_v8 = vmul.f32 %v5592_v0, %v14994_v31  ;;  %v15005_v0 = vld [vmem:[#allocation34_spill] sm:$0xff]  ;;  %v15006_v49 = vld [vmem:[#allocation8_spill] sm:$0xff] }
0x1761   :  { %v5647_v55 = vmul.f32 %v5641_v59, %v14995_v41  ;;  %v5597_v40 = vadd.f32 %v5594_v30, %v5579_v3  ;;  %v5648_v13 = vmul.f32 %v5645_v62, %v14995_v41  ;;  %v5716_v48 = vsel %vm61_vm2, %v15000_v58, %v14999_v63  ;;  %v15007_v62 = vld [vmem:[#allocation42_spill] sm:$0xff]  ;;  %v15008_v30 = vld [vmem:[#allocation45_spill] sm:$0xff] }
0x1762   :  { %v5649_v38 = vadd.f32 %v5646_v32, %v5596_v11  ;;  %v5661_v33 = vrot.slane %v5632_v4, %v7839_v6  ;;  %v5633_v42 = vsel %vm71_vm3, %v14998_v52, %v14997_v15  ;;  %v5665_v1 = vrot.slane %v5631_v47, %v7839_v6  ;;  %v15009_v11 = vld [vmem:[#allocation68_spill] sm:$0xff]  ;;  %v15010_v47 = vld [vmem:[#allocation78_spill] sm:$0xff] }
0x1763   :  { %v5715_v20 = vsel %vm61_vm2, %v14999_v63, %v15001_v19  ;;  %v5598_v21 = vadd.f32 %v5595_v8, %v5580_v57  ;;  %v5714_v29 = vsel %vm61_vm2, %v15001_v19, %v15000_v58  ;;  %v5650_v43 = vadd.f32 %v5647_v55, %v5597_v40  ;;  %v15011_v8 = vld [vmem:[#allocation92_spill] sm:$0xff] }
0x1764   :  { %v5729_v12 = vrot.slane %v5716_v48, %v7839_v6  ;;  %v5652_v16 = vmul.f32 %v15003_v27, %v15002_v10  ;;  %v5653_v34 = vmul.f32 %v15004_v25, %v15002_v10  ;;  %v5669_v53 = vrot.slane %v5633_v42, %v7839_v6  ;;  %v15013_v42 = vld [vmem:[#allocation49_spill] sm:$0xff] }
0x1765   :  { %v5651_v7 = vadd.f32 %v5648_v13, %v5598_v21  ;;  %v5733_v60 = vrot.slane %v5715_v20, %v7839_v6  ;;  %v5670_v28 = vmul.f32 %v5661_v33, %v15005_v0  ;;  %v5671_v61 = vmul.f32 %v5665_v1, %v15005_v0  ;;  %v15012_v13 = vld [vmem:[#allocation65_spill] sm:$0xff]  ;;  %v15014_v1 = vld [vmem:[#allocation62_spill] sm:$0xff] }
0x1766   :  { %v5737_v5 = vrot.slane %v5714_v29, %v7839_v6  ;;  %v5655_v59 = vadd.f32 %v5652_v16, %v5649_v38  ;;  %v5654_v3 = vmul.f32 %v15006_v49, %v15002_v10  ;;  %v5738_v32 = vmul.f32 %v5729_v12, %v15007_v62  ;;  %v15015_v20 = vld [vmem:[#allocation54_spill] sm:$0xff] }
0x1767   :  { %v5724_v57 = vsel %vm71_vm3, %v15009_v11, %v15008_v30  ;;  %v5656_v56 = vadd.f32 %v5653_v34, %v5650_v43  ;;  %v5672_v15 = vmul.f32 %v5669_v53, %v15005_v0  ;;  %v5739_v4 = vmul.f32 %v5733_v60, %v15007_v62  ;;  %v15016_v43 = vld [vmem:[#allocation67_spill] sm:$0xff]  ;;  %v12767_v53 = vpop.permute.xlu0 %6067 }
0x1768   :  { %v5657_v52 = vadd.f32 %v5654_v3, %v5651_v7  ;;  %v5831_v55 = vsel %vm61_vm2, %v15011_v8, %v15010_v47  ;;  %v5740_v40 = vmul.f32 %v5737_v5, %v15007_v62  ;;  %v5723_v38 = vsel %vm71_vm3, %v15008_v30, %v15012_v13  ;;  %v15018_v30 = vld [vmem:[#allocation47_spill] sm:$0xff] }
0x1769   :  { %v5673_v63 = vadd.f32 %v5670_v28, %v5655_v59  ;;  %v5674_v58 = vadd.f32 %v5671_v61, %v5656_v56  ;;  %v5725_v48 = vsel %vm71_vm3, %v15012_v13, %v15009_v11  ;;  %v5776_v33 = vrot.slane %v5724_v57, %v7839_v6  ;;  %v15017_v61 = vld [vmem:[#allocation77_spill] sm:$0xff]  ;;  %v15019_v57 = vld [vmem:[#allocation58_spill] sm:$0xff] }
0x176a   :  { %v5764_v19 = vsel %vm270_vm1, %v15014_v1, %v15013_v42  ;;  %v5830_v21 = vsel %vm61_vm2, %v15010_v47, %v15015_v20  ;;  %v5765_v12 = vsel %vm270_vm1, %v15013_v42, %v15016_v43  ;;  %v5829_v27 = vsel %vm61_vm2, %v15015_v20, %v15011_v8  ;;  %v15023_v13 = vld [vmem:[#allocation98_spill] sm:$0xff] }
0x176b   :  { %v5741_v29 = vadd.f32 %v5738_v32, %v5673_v63  ;;  %v5844_v16 = vrot.slane %v5831_v55, %v7839_v6  ;;  %v5780_v25 = vrot.slane %v5723_v38, %v7839_v6  ;;  %v5675_v34 = vadd.f32 %v5672_v15, %v5657_v52  ;;  %v15020_v15 = vld [vmem:[#allocation74_spill] sm:$0xff]  ;;  %v15022_v55 = vld [vmem:[#allocation91_spill] sm:$0xff]  ;;  %v12786_v38 = vpop.permute.xlu1 %6069 }
0x176c   :  { %v5742_v7 = vadd.f32 %v5739_v4, %v5674_v58  ;;  %v5784_v60 = vrot.slane %v5725_v48, %v7839_v6  ;;  %v5766_v5 = vsel %vm270_vm1, %v15016_v43, %v15017_v61  ;;  %v5848_v59 = vrot.slane %v5830_v21, %v7839_v6  ;;  %v15021_v4 = vld [vmem:[#allocation52_spill] sm:$0xff]  ;;  %v15024_v42 = vld [vmem:[#allocation82_spill] sm:$0xff]  ;;  %v15026_v43 = vld [vmem:[#allocation63_spill] sm:$0xff] }
0x176d   :  { %v5770_v28 = vadd.f32 %v5764_v19, %v5741_v29  ;;  %v5743_v49 = vadd.f32 %v5740_v40, %v5675_v34  ;;  %v5852_v32 = vrot.slane %v5829_v27, %v7839_v6  ;;  %v5785_v11 = vmul.f32 %v5776_v33, %v15018_v30  ;;  %v15025_v29 = vld [vmem:[#allocation99_spill] sm:$0xff]  ;;  %v15028_v61 = vld [vmem:[#allocation102_spill] sm:$0xff] }
0x176e   :  { %v5771_v3 = vadd.f32 %v5765_v12, %v5742_v7  ;;  %v5853_v56 = vmul.f32 %v5844_v16, %v15019_v57  ;;  %v5839_v52 = vsel %vm71_vm3, %v15021_v4, %v15020_v15  ;;  %v5786_v47 = vmul.f32 %v5780_v25, %v15018_v30  ;;  %v15027_v25 = vld [vmem:[#allocation83_spill] sm:$0xff] }
0x176f   :  { %v5772_v8 = vadd.f32 %v5766_v5, %v5743_v49  ;;  %v5931_v40 = vsel %vm61_vm2, %v15023_v13, %v15022_v55  ;;  %v5787_v58 = vmul.f32 %v5784_v60, %v15018_v30  ;;  %v5788_v48 = vadd.f32 %v5785_v11, %v5770_v28 }
0x1770   :  { %v5854_v33 = vmul.f32 %v5848_v59, %v15019_v57  ;;  %v5838_v1 = vsel %vm71_vm3, %v15020_v15, %v15024_v42  ;;  %v5789_v19 = vadd.f32 %v5786_v47, %v5771_v3  ;;  %v5855_v20 = vmul.f32 %v5852_v32, %v15019_v57 }
0x1771   :  { %v5891_v21 = vrot.slane %v5839_v52, %v7839_v6  ;;  %v5879_v12 = vsel %vm46_vm0, %v15026_v43, %v15025_v29  ;;  %v5840_v27 = vsel %vm71_vm3, %v15024_v42, %v15021_v4  ;;  %v5856_v16 = vadd.f32 %v5853_v56, %v5788_v48  ;;  %v15029_v4 = vld [vmem:[#allocation66_spill] sm:$0xff] }
0x1772   :  { %v5930_v34 = vsel %vm61_vm2, %v15022_v55, %v15027_v25  ;;  %v5944_v7 = vrot.slane %v5931_v40, %v7839_v6  ;;  %v5790_v60 = vadd.f32 %v5787_v58, %v5772_v8  ;;  %v5895_v28 = vrot.slane %v5838_v1, %v7839_v6  ;;  %v15030_v8 = vld [vmem:[#allocation64_spill] sm:$0xff]  ;;  %v15031_v58 = vld [vmem:[#allocation70_spill] sm:$0xff] }
0x1773   :  { %v5880_v5 = vsel %vm46_vm0, %v15025_v29, %v15028_v61  ;;  %v5929_v59 = vsel %vm61_vm2, %v15027_v25, %v15023_v13  ;;  %v5885_v32 = vadd.f32 %v5879_v12, %v5856_v16  ;;  %v5857_v11 = vadd.f32 %v5854_v33, %v5789_v19  ;;  %v15032_v29 = vld [vmem:[#allocation85_spill] sm:$0xff]  ;;  %v15033_v43 = vld [vmem:[#allocation86_spill] sm:$0xff] }
0x1774   :  { %v5899_v56 = vrot.slane %v5840_v27, %v7839_v6  ;;  %v5858_v15 = vadd.f32 %v5855_v20, %v5790_v60  ;;  %v5881_v52 = vsel %vm46_vm0, %v15028_v61, %v15029_v4  ;;  %v5948_v47 = vrot.slane %v5930_v34, %v7839_v6  ;;  %v15034_v27 = vld [vmem:[#allocation90_spill] sm:$0xff] }
0x1775   :  { %v5900_v55 = vmul.f32 %v5891_v21, %v15030_v8  ;;  %v5886_v40 = vadd.f32 %v5880_v5, %v5857_v11  ;;  %v5952_v13 = vrot.slane %v5929_v59, %v7839_v6  ;;  %v5953_v48 = vmul.f32 %v5944_v7, %v15031_v58 }
0x1776   :  { %v5901_v42 = vmul.f32 %v5895_v28, %v15030_v8  ;;  %v5887_v20 = vadd.f32 %v5881_v52, %v5858_v15  ;;  %v5939_v12 = vsel %vm71_vm3, %v15033_v43, %v15032_v29  ;;  %v5938_v21 = vsel %vm71_vm3, %v15032_v29, %v15034_v27 }
0x1777   :  { %v5903_v19 = vadd.f32 %v5900_v55, %v5885_v32  ;;  %v5902_v16 = vmul.f32 %v5899_v56, %v15030_v8  ;;  %v5954_v25 = vmul.f32 %v5948_v47, %v15031_v58  ;;  %v5955_v7 = vmul.f32 %v5952_v13, %v15031_v58  ;;  %v15035_v32 = vld [vmem:[#allocation93_spill] sm:$0xff] }
0x1778   :  { %v5904_v34 = vadd.f32 %v5901_v42, %v5886_v40  ;;  %v6023_v28 = vsel %vm61_vm2, %v12429_v22, %v12425_v50  ;;  %v5968_v61 = vrot.slane %v5939_v12, %v7839_v6  ;;  %v5940_v5 = vsel %vm71_vm3, %v15034_v27, %v15033_v43  ;;  %v15036_v40 = vld [vmem:[#allocation71_spill] sm:$0xff]  ;;  %v15037_v13 = vld [vmem:[#allocation69_spill] sm:$0xff] }
0x1779   :  { %v5956_v60 = vadd.f32 %v5953_v48, %v5903_v19  ;;  %v5972_v59 = vrot.slane %v5938_v21, %v7839_v6  ;;  %v6022_v11 = vsel %vm61_vm2, %v12425_v50, %v15035_v32  ;;  %v5905_v4 = vadd.f32 %v5902_v16, %v5887_v20  ;;  %v15038_v42 = vld [vmem:[#allocation59_spill] sm:$0xff]  ;;  %v15039_v20 = vld [vmem:[#allocation72_spill] sm:$0xff] }
0x177a   :  { %v6021_v52 = vsel %vm61_vm2, %v15035_v32, %v12429_v22  ;;  %v5957_v47 = vadd.f32 %v5954_v25, %v5904_v34  ;;  %v6036_v55 = vrot.slane %v6023_v28, %v7839_v6  ;;  %v5959_v48 = vmul.f32 %v15037_v13, %v15036_v40  ;;  %v15040_v34 = vld [vmem:[#allocation80_spill] sm:$0xff]  ;;  %v15041_v32 = vld [vmem:[#allocation79_spill] sm:$0xff] }
0x177b   :  { %v5960_v19 = vmul.f32 %v15038_v42, %v15036_v40  ;;  %v5958_v50 = vadd.f32 %v5955_v7, %v5905_v4  ;;  %v5976_v29 = vrot.slane %v5940_v5, %v7839_v6  ;;  %v6040_v43 = vrot.slane %v6022_v11, %v7839_v6  ;;  %v15042_v7 = vld [vmem:[#allocation103_spill] sm:$0xff]  ;;  %v15043_v4 = vld [vmem:[#allocation88_spill] sm:$0xff] }
0x177c   :  { %v5977_v12 = vmul.f32 %v5968_v61, %v15039_v20  ;;  %v5978_v27 = vmul.f32 %v5972_v59, %v15039_v20  ;;  %v6044_v22 = vrot.slane %v6021_v52, %v7839_v6  ;;  %v5962_v21 = vadd.f32 %v5959_v48, %v5956_v60  ;;  %v15044_v61 = vld [vmem:[#allocation97_spill] sm:$0xff] }
0x177d   :  { %v5961_v28 = vmul.f32 %v15040_v34, %v15036_v40  ;;  %v6045_v13 = vmul.f32 %v6036_v55, %v15041_v32  ;;  %v6030_v5 = vsel %vm71_vm3, %v15043_v4, %v15042_v7  ;;  %v6031_v59 = vsel %vm71_vm3, %v15044_v61, %v15043_v4 }
0x177e   :  { %v5963_v11 = vadd.f32 %v5960_v19, %v5957_v47  ;;  %v5979_v60 = vmul.f32 %v5976_v29, %v15039_v20  ;;  %v6046_v52 = vmul.f32 %v6040_v43, %v15041_v32  ;;  %v6047_v42 = vmul.f32 %v6044_v22, %v15041_v32  ;;  %v15059_v20 = vld [vmem:[#allocation19_spill] sm:$0xff] }
0x177f   :  { %v5964_v48 = vadd.f32 %v5961_v28, %v5958_v50  ;;  %v5980_v34 = vadd.f32 %v5977_v12, %v5962_v21  ;;  %v6032_v50 = vsel %vm71_vm3, %v15042_v7, %v15044_v61  ;;  %v6083_v29 = vrot.slane %v6031_v59, %v7839_v6 }
0x1780   :  { %v5981_v40 = vadd.f32 %v5978_v27, %v5963_v11  ;;  %v6087_v43 = vrot.slane %v6030_v5, %v7839_v6  ;;  %v6071_v12 = vsel %vm270_vm1, %v12456_v37, %v12454_v24  ;;  %v6091_v61 = vrot.slane %v6032_v50, %v7839_v6 }
0x1781   :  { %v6048_v27 = vadd.f32 %v6045_v13, %v5980_v34  ;;  %v5982_v28 = vadd.f32 %v5979_v60, %v5964_v48  ;;  %v6073_v37 = vsel %vm270_vm1, %v12767_v53, %v12786_v38 }
0x1782   :  { %v6049_v7 = vadd.f32 %v6046_v52, %v5981_v40  ;;  %v15046_v40 = vld [vmem:[#allocation94_spill] sm:$0xff] }
0x1783   :  { %v6077_v59 = vadd.f32 %v6071_v12, %v6048_v27  ;;  %v6050_v11 = vadd.f32 %v6047_v42, %v5982_v28 }
0x1785   :  { %v6079_v48 = vadd.f32 %v6073_v37, %v6050_v11 }
0x1787   :  { %v12788_v63 = vpop.permute.xlu0 %6130 }
0x178b   :  { %v12818_v49 = vpop.permute.xlu1 %6132  ;;  %v12820_v3 = vpop.permute.xlu0 %6134 }
0x178c   :  { %v6138_v55 = vsel %vm61_vm2, %v12820_v3, %v12788_v63  ;;  %v6137_v4 = vsel %vm61_vm2, %v12788_v63, %v12818_v49  ;;  %v6072_v63 = vsel %vm270_vm1, %v12454_v24, %v12767_v53  ;;  %v6136_v22 = vsel %vm61_vm2, %v12818_v49, %v12820_v3  ;;  %v15045_v49 = vld [vmem:[#allocation84_spill] sm:$0xff] }
0x178d   :  { %v6151_v21 = vrot.slane %v6138_v55, %v7839_v6  ;;  %v6155_v5 = vrot.slane %v6137_v4, %v7839_v6  ;;  %v6078_v34 = vadd.f32 %v6072_v63, %v6049_v7  ;;  %v6159_v32 = vrot.slane %v6136_v22, %v7839_v6 }
0x178e   :  { %v6092_v3 = vmul.f32 %v6083_v29, %v15045_v49  ;;  %v6093_v60 = vmul.f32 %v6087_v43, %v15045_v49  ;;  %v6094_v42 = vmul.f32 %v6091_v61, %v15045_v49 }
0x178f   :  { %v12831_v1 = vpop.permute.xlu1 %6139  ;;  %v12833_v33 = vpop.permute.xlu0 %6141  ;;  %v6160_v52 = vmul.f32 %v6151_v21, %v15046_v40  ;;  %v6161_v55 = vmul.f32 %v6155_v5, %v15046_v40  ;;  %v6162_v27 = vmul.f32 %v6159_v32, %v15046_v40 }
0x1790   :  { %v6146_v53 = vsel %vm71_vm3, %v12831_v1, %v12833_v33  ;;  %v6095_v4 = vadd.f32 %v6092_v3, %v6077_v59  ;;  %v6096_v12 = vadd.f32 %v6093_v60, %v6078_v34  ;;  %v15047_v60 = vld [vmem:[#allocation100_spill] sm:$0xff] }
0x1791   :  { %v6198_v21 = vrot.slane %v6146_v53, %v7839_v6 }
0x1792   :  { %v6163_v28 = vadd.f32 %v6160_v52, %v6095_v4 }
0x1793   :  { %v12860_v56 = vpop.permute.xlu1 %6143  ;;  %v12862_v15 = vpop.permute.xlu0 %6178  ;;  %v6207_v52 = vmul.f32 %v6198_v21, %v15047_v60 }
0x1794   :  { %v6145_v50 = vsel %vm71_vm3, %v12833_v33, %v12860_v56  ;;  %v6097_v33 = vadd.f32 %v6094_v42, %v6079_v48  ;;  %v6147_v32 = vsel %vm71_vm3, %v12860_v56, %v12831_v1  ;;  %v15048_v56 = vld [vmem:[#allocation104_spill] sm:$0xff] }
0x1795   :  { %v6202_v61 = vrot.slane %v6145_v50, %v7839_v6  ;;  %v6206_v48 = vrot.slane %v6147_v32, %v7839_v6 }
0x1796   :  { %v6165_v3 = vadd.f32 %v6162_v27, %v6097_v33  ;;  %v15049_v33 = vld [vmem:[#allocation105_spill] sm:$0xff] }
0x1797   :  { %v6181_v16 = vpop.permute.xlu1 %6180  ;;  %v12878_v25 = vpop.permute.xlu0 %6182  ;;  %v6266_v32 = vmul.f32 %v12451_v14, %v15049_v33 }
0x1798   :  { %v6186_v63 = vsel %vm46_vm0, %v12862_v15, %v6181_v16  ;;  %v6187_v7 = vsel %vm46_vm0, %v6181_v16, %v12878_v25  ;;  %v6164_v15 = vadd.f32 %v6161_v55, %v6096_v12  ;;  %v6208_v55 = vmul.f32 %v6202_v61, %v15047_v60 }
0x1799   :  { %v6192_v59 = vadd.f32 %v6186_v63, %v6163_v28 }
0x179a   :  { %v6193_v16 = vadd.f32 %v6187_v7, %v6164_v15  ;;  %v6209_v7 = vmul.f32 %v6206_v48, %v15047_v60 }
0x179b   :  { %v6185_v47 = vpop.permute.xlu1 %6184  ;;  %v6231_v19 = vpop.permute.xlu0 %6230  ;;  %v6210_v42 = vadd.f32 %v6207_v52, %v6192_v59 }
0x179c   :  { %v6188_v1 = vsel %vm46_vm0, %v12878_v25, %v6185_v47  ;;  %v6211_v27 = vadd.f32 %v6208_v55, %v6193_v16  ;;  %v15051_v55 = vld [vmem:[#allocation23_spill] sm:$0xff] }
0x179d   :  { %v6194_v63 = vadd.f32 %v6188_v1, %v6165_v3  ;;  %v15050_v3 = vld [vmem:[#allocation106_spill] sm:$0xff] }
0x179f   :  { %v6233_v13 = vpop.permute.xlu1 %6232  ;;  %v6235_v24 = vpop.permute.xlu0 %6234 }
0x17a0   :  { %v6238_v38 = vsel %vm61_vm2, %v6235_v24, %v6231_v19  ;;  %v6237_v22 = vsel %vm61_vm2, %v6231_v19, %v6233_v13  ;;  %v6236_v37 = vsel %vm61_vm2, %v6233_v13, %v6235_v24 }
0x17a1   :  { %v6251_v5 = vrot.slane %v6238_v38, %v7839_v6  ;;  %v6255_v19 = vrot.slane %v6237_v22, %v7839_v6  ;;  %v6259_v38 = vrot.slane %v6236_v37, %v7839_v6 }
0x17a3   :  { %v6240_v29 = vpop.permute.xlu1 %6239  ;;  %v6242_v43 = vpop.permute.xlu0 %6241  ;;  %v6260_v53 = vmul.f32 %v6251_v5, %v15048_v56  ;;  %v6261_v4 = vmul.f32 %v6255_v19, %v15048_v56  ;;  %v6262_v5 = vmul.f32 %v6259_v38, %v15048_v56 }
0x17a4   :  { %v6246_v13 = vsel %vm71_vm3, %v6240_v29, %v6242_v43 }
0x17a5   :  { %v6263_v22 = vadd.f32 %v6260_v53, %v6210_v42  ;;  %v6275_v21 = vrot.slane %v6246_v13, %v7839_v6  ;;  %v6264_v61 = vadd.f32 %v6261_v4, %v6211_v27 }
0x17a7   :  { %v6244_v11 = vpop.permute.xlu1 %6243  ;;  %v6323_v34 = vpop.permute.xlu0 %6322  ;;  %v6284_v52 = vmul.f32 %v6275_v21, %v15050_v3  ;;  %v6269_v1 = vadd.f32 %v6266_v32, %v6263_v22 }
0x17a8   :  { %v6245_v24 = vsel %vm71_vm3, %v6242_v43, %v6244_v11  ;;  %v6247_v28 = vsel %vm71_vm3, %v6244_v11, %v6240_v29  ;;  %v6212_v29 = vadd.f32 %v6209_v7, %v6194_v63  ;;  %v6268_v63 = vmul.f32 %v12462_v44, %v15049_v33 }
0x17a9   :  { %v6279_v43 = vrot.slane %v6245_v24, %v7839_v6  ;;  %v6283_v11 = vrot.slane %v6247_v28, %v7839_v6 }
0x17aa   :  { %v6265_v53 = vadd.f32 %v6262_v5, %v6212_v29 }
0x17ab   :  { %v6325_v50 = vpop.permute.xlu1 %6324  ;;  %v6327_v12 = vpop.permute.xlu0 %6326  ;;  %v6285_v14 = vmul.f32 %v6279_v43, %v15050_v3 }
0x17ac   :  { %v6329_v25 = vsel %vm61_vm2, %v6323_v34, %v6325_v50  ;;  %v6330_v47 = vsel %vm61_vm2, %v6327_v12, %v6323_v34  ;;  %v6267_v34 = vmul.f32 %v12465_v36, %v15049_v33  ;;  %v6328_v16 = vsel %vm61_vm2, %v6325_v50, %v6327_v12 }
0x17ad   :  { %v6347_v15 = vrot.slane %v6329_v25, %v7839_v6  ;;  %v6343_v59 = vrot.slane %v6330_v47, %v7839_v6  ;;  %v6351_v13 = vrot.slane %v6328_v16, %v7839_v6  ;;  %v6286_v50 = vmul.f32 %v6283_v11, %v15050_v3 }
0x17ae   :  { %v6270_v4 = vadd.f32 %v6267_v34, %v6264_v61  ;;  %v6287_v47 = vadd.f32 %v6284_v52, %v6269_v1  ;;  %v6271_v28 = vadd.f32 %v6268_v63, %v6265_v53 }
0x17af   :  { %v6332_v19 = vpop.permute.xlu1 %6331  ;;  %v6334_v37 = vpop.permute.xlu0 %6333  ;;  %v6353_v38 = vmul.f32 %v6347_v15, %v15051_v55  ;;  %v6352_v36 = vmul.f32 %v6343_v59, %v15051_v55  ;;  %v6354_v43 = vmul.f32 %v6351_v13, %v15051_v55  ;;  %v15052_v15 = vld [vmem:[#allocation22_spill] sm:$0xff]  ;;  %v15053_v13 = vld [vmem:[#allocation25_spill] sm:$0xff] }
0x17b0   :  { %v6338_v48 = vsel %vm71_vm3, %v6332_v19, %v6334_v37  ;;  %v6288_v22 = vadd.f32 %v6285_v14, %v6270_v4  ;;  %v6289_v34 = vadd.f32 %v6286_v50, %v6271_v28 }
0x17b1   :  { %v6390_v12 = vrot.slane %v6338_v48, %v7839_v6  ;;  %v6355_v5 = vadd.f32 %v6352_v36, %v6287_v47 }
0x17b2   :  { %v6356_v32 = vadd.f32 %v6353_v38, %v6288_v22  ;;  %v6357_v1 = vadd.f32 %v6354_v43, %v6289_v34  ;;  %v15057_v34 = vld [vmem:[#allocation10_spill] sm:$0xff] }
0x17b3   :  { %v6336_v24 = vpop.permute.xlu1 %6335  ;;  %v6371_v42 = vpop.permute.xlu0 %6370  ;;  %v6399_v59 = vmul.f32 %v6390_v12, %v15052_v15 }
0x17b4   :  { %v6337_v27 = vsel %vm71_vm3, %v6334_v37, %v6336_v24  ;;  %v6339_v21 = vsel %vm71_vm3, %v6336_v24, %v6332_v19  ;;  %v15054_v24 = vld [vmem:[#allocation27_spill] sm:$0xff] }
0x17b5   :  { %v6394_v25 = vrot.slane %v6337_v27, %v7839_v6  ;;  %v6398_v29 = vrot.slane %v6339_v21, %v7839_v6  ;;  %v15055_v27 = vld [vmem:[#allocation26_spill] sm:$0xff] }
0x17b6   :  { %v15056_v21 = vld [vmem:[#allocation6_spill] sm:$0xff] }
0x17b7   :  { %v6373_v7 = vpop.permute.xlu1 %6372  ;;  %v6375_v61 = vpop.permute.xlu0 %6374  ;;  %v6400_v11 = vmul.f32 %v6394_v25, %v15052_v15  ;;  %v6401_v38 = vmul.f32 %v6398_v29, %v15052_v15 }
0x17b8   :  { %v6378_v37 = vsel %vm270_vm1, %v6371_v42, %v6373_v7  ;;  %v6379_v44 = vsel %vm270_vm1, %v6373_v7, %v6375_v61 }
0x17b9   :  { %v6384_v16 = vadd.f32 %v6378_v37, %v6355_v5  ;;  %v6385_v19 = vadd.f32 %v6379_v44, %v6356_v32 }
0x17bb   :  { %v6402_v52 = vadd.f32 %v6399_v59, %v6384_v16  ;;  %v6403_v14 = vadd.f32 %v6400_v11, %v6385_v19  ;;  %v6377_v48 = vpop.permute.xlu1 %6376 }
0x17bc   :  { %v6380_v53 = vsel %vm270_vm1, %v6375_v61, %v6377_v48 }
0x17bd   :  { %v6405_v36 = vmul.f32 %v6402_v52, %v15053_v13  ;;  %v6406_v42 = vmul.f32 %v6403_v14, %v15054_v24  ;;  %v6386_v4 = vadd.f32 %v6380_v53, %v6357_v1 }
0x17bf   :  { %v6410_v50 = vcombine.low %v6405_v36, %v6406_v42  ;;  %v6404_v12 = vadd.f32 %v6401_v38, %v6386_v4 }
0x17c1   :  { %6412 = vst [vmem:[#allocation3 + $0x4] sm:$0xff] %v6410_v50  ;;  %v6407_v63 = vmul.f32 %v6404_v12, %v15055_v27 }
0x17c3   :  { %6413 = vst [vmem:[#allocation3 + $0xc] sm:$0xf] %v6407_v63 }
0x17ca   :  { %v6414_v25 = vld [vmem:[#allocation3] ss:$4 sm:$0xf]  ;;  %v6836_v8 = vld [vmem:[#allocation3 + $0x5] ss:$4 sm:$0x7] }
0x17cb   :  { %v6423_v47 = vrot.slane %v6414_v25, %v14924_v23  ;;  %v6419_v22 = vrot.slane %v6414_v25, %v7839_v6  ;;  %v6431_v28 = vrot.slane %v6414_v25, %v15056_v21  ;;  %v6427_v43 = vrot.slane %v6414_v25, %v14926_v45  ;;  %v6529_v19 = vld [vmem:[#allocation3 + $0x4] ss:$4 sm:$0x7]  ;;  %v7335_v30 = vld [vmem:[#allocation3 + $0x3] ss:$4 sm:$0xf] }
0x17cc   :  { %v13040_v14 = vrot.slane %v6529_v19, %v7839_v6  ;;  %v13046_v48 = vrot.slane %v6529_v19, %v14924_v23  ;;  %v13049_v1 = vrot.slane %v6529_v19, %v14926_v45  ;;  %v6606_v53 = vld [vmem:[#allocation3 + $0x4] ss:$4 sm:$0xf]  ;;  %v13240_v26 = vrot.slane %v7335_v30, %v7839_v6 }
0x17cd   :  { %6434 = vrot.lane.b32.xlu1 %v6423_v47, %s7771_s16  ;;  %6432 = vrot.lane.b32.xlu0 %v6419_v22, %s7771_s16  ;;  %v6486_v29 = vmul.f32 %v6419_v22, %v15057_v34  ;;  %v6487_v11 = vmul.f32 %v6423_v47, %v15057_v34  ;;  %v6488_v16 = vmul.f32 %v6427_v43, %v15057_v34 }
0x17ce   :  { %v6489_v52 = vmul.f32 %v6431_v28, %v15057_v34  ;;  %v6611_v38 = vrot.slane %v6606_v53, %v7839_v6  ;;  %v6615_v13 = vrot.slane %v6606_v53, %v14924_v23  ;;  %v6619_v36 = vrot.slane %v6606_v53, %v14926_v45  ;;  %15066 = vst [vmem:[#allocation110_spill] sm:$0xff] %v13240_v26 }
0x17cf   :  { %v6623_v24 = vrot.slane %v6606_v53, %v15056_v21 }
0x17d1   :  { %6438 = vrot.lane.b32.xlu1 %v6431_v28, %s7771_s16  ;;  %6436 = vrot.lane.b32.xlu0 %v6427_v43, %s7771_s16 }
0x183f   :  { %v6435_v7 = vpop.permute.xlu1 %6434  ;;  %v6433_v5 = vpop.permute.xlu0 %6432 }
0x1840   :  { %v6440_v32 = vsel %vm46_vm0, %v6433_v5, %v6435_v7 }
0x1841   :  { %6446 = vrot.lane.b32.xlu0 %v6440_v32, %s7772_s19 }
0x1843   :  { %v6439_v61 = vpop.permute.xlu1 %6438  ;;  %v6437_v59 = vpop.permute.xlu0 %6436 }
0x1844   :  { %v6442_v37 = vsel %vm46_vm0, %v6437_v59, %v6439_v61  ;;  %v6441_v44 = vsel %vm46_vm0, %v6435_v7, %v6437_v59 }
0x1845   :  { %6450 = vrot.lane.b32.xlu0 %v6442_v37, %s7772_s19  ;;  %6448 = vrot.lane.b32.xlu1 %v6441_v44, %s7772_s19 }
0x1849   :  { %6457 = vrot.lane.b32.xlu0 %v6441_v44, %s7775_s20  ;;  %6455 = vrot.lane.b32.xlu1 %v6440_v32, %s7775_s20 }
0x184d   :  { %6459 = vrot.lane.b32.xlu1 %v6442_v37, %s7775_s20  ;;  %6494 = vrot.lane.b32.xlu0 %v6486_v29, %s7771_s16 }
0x1851   :  { %6496 = vrot.lane.b32.xlu1 %v6487_v11, %s7771_s16  ;;  %6498 = vrot.lane.b32.xlu0 %v6488_v16, %s7771_s16 }
0x1855   :  { %6500 = vrot.lane.b32.xlu1 %v6489_v52, %s7771_s16  ;;  %6546 = vrot.lane.b32.xlu0 %v13040_v14, %s7772_s19  ;;  %v15058_v52 = vld [vmem:[#allocation17_spill] sm:$0xff] }
0x1856   :  { %v6678_v53 = vmul.f32 %v6611_v38, %v15058_v52 }
0x1859   :  { %6548 = vrot.lane.b32.xlu1 %v13046_v48, %s7772_s19  ;;  %6550 = vrot.lane.b32.xlu0 %v13049_v1, %s7772_s19 }
0x185d   :  { %6555 = vrot.lane.b32.xlu1 %v13040_v14, %s7775_s20  ;;  %6557 = vrot.lane.b32.xlu0 %v13046_v48, %s7775_s20 }
0x1861   :  { %6559 = vrot.lane.b32.xlu1 %v13049_v1, %s7775_s20  ;;  %6624 = vrot.lane.b32.xlu0 %v6611_v38, %s7777_s23 }
0x1865   :  { %6626 = vrot.lane.b32.xlu1 %v6615_v13, %s7777_s23  ;;  %6628 = vrot.lane.b32.xlu0 %v6619_v36, %s7777_s23 }
0x1869   :  { %6630 = vrot.lane.b32.xlu1 %v6623_v24, %s7777_s23 }
0x18b3   :  { %v13069_v42 = vpop.permute.xlu0 %6446 }
0x18b7   :  { %v13071_v4 = vpop.permute.xlu1 %6448  ;;  %v13073_v50 = vpop.permute.xlu0 %6450 }
0x18bb   :  { %v13075_v12 = vpop.permute.xlu1 %6455  ;;  %v13077_v27 = vpop.permute.xlu0 %6457 }
0x18bf   :  { %v13079_v63 = vpop.permute.xlu1 %6459  ;;  %v13081_v25 = vpop.permute.xlu0 %6494 }
0x18c3   :  { %v13083_v47 = vpop.permute.xlu1 %6496  ;;  %v13085_v22 = vpop.permute.xlu0 %6498 }
0x18c7   :  { %v13087_v28 = vpop.permute.xlu1 %6500  ;;  %v13089_v43 = vpop.permute.xlu0 %6546 }
0x18cb   :  { %v13091_v7 = vpop.permute.xlu1 %6548  ;;  %v13093_v5 = vpop.permute.xlu0 %6550 }
0x18cf   :  { %v13095_v32 = vpop.permute.xlu1 %6555  ;;  %v13097_v61 = vpop.permute.xlu0 %6557 }
0x18d3   :  { %v13099_v59 = vpop.permute.xlu1 %6559  ;;  %v6625_v37 = vpop.permute.xlu0 %6624 }
0x18d7   :  { %v6627_v44 = vpop.permute.xlu1 %6626  ;;  %v6629_v34 = vpop.permute.xlu0 %6628 }
0x18d8   :  { %v6632_v29 = vsel %vm270_vm1, %v6625_v37, %v6627_v44  ;;  %v6633_v11 = vsel %vm270_vm1, %v6627_v44, %v6629_v34  ;;  %v6679_v37 = vmul.f32 %v6615_v13, %v15058_v52  ;;  %v6680_v44 = vmul.f32 %v6619_v36, %v15058_v52 }
0x18d9   :  { %6638 = vrot.lane.b32.xlu0 %v6632_v29, %s7772_s19  ;;  %6640 = vrot.lane.b32.xlu1 %v6633_v11, %s7772_s19 }
0x18db   :  { %v6631_v16 = vpop.permute.xlu1 %6630 }
0x18dc   :  { %v6634_v19 = vsel %vm270_vm1, %v6629_v34, %v6631_v16  ;;  %v6681_v34 = vmul.f32 %v6623_v24, %v15058_v52  ;;  %v6721_v16 = vld [vmem:[#allocation3 + $0x1] ss:$4 sm:$0xf] }
0x18dd   :  { %6642 = vrot.lane.b32.xlu0 %v6634_v19, %s7772_s19  ;;  %6647 = vrot.lane.b32.xlu1 %v6632_v29, %s7775_s20  ;;  %v6726_v29 = vrot.slane %v6721_v16, %v7839_v6  ;;  %v6734_v38 = vrot.slane %v6721_v16, %v14926_v45  ;;  %v6738_v13 = vrot.slane %v6721_v16, %v15056_v21 }
0x18df   :  { %v6793_v58 = vmul.f32 %v6726_v29, %v15059_v20 }
0x18e1   :  { %6649 = vrot.lane.b32.xlu0 %v6633_v11, %s7775_s20  ;;  %6651 = vrot.lane.b32.xlu1 %v6634_v19, %s7775_s20  ;;  %v6730_v11 = vrot.slane %v6721_v16, %v14924_v23 }
0x18e5   :  { %6686 = vrot.lane.b32.xlu0 %v6678_v53, %s7777_s23  ;;  %6688 = vrot.lane.b32.xlu1 %v6679_v37, %s7777_s23 }
0x18e9   :  { %6690 = vrot.lane.b32.xlu0 %v6680_v44, %s7777_s23  ;;  %6692 = vrot.lane.b32.xlu1 %v6681_v34, %s7777_s23 }
0x18ed   :  { %6739 = vrot.lane.b32.xlu0 %v6726_v29, %s7771_s16  ;;  %6741 = vrot.lane.b32.xlu1 %v6730_v11, %s7771_s16 }
0x18f1   :  { %6743 = vrot.lane.b32.xlu0 %v6734_v38, %s7771_s16  ;;  %6745 = vrot.lane.b32.xlu1 %v6738_v13, %s7771_s16 }
0x194b   :  { %v13126_v36 = vpop.permute.xlu1 %6640  ;;  %v13128_v24 = vpop.permute.xlu0 %6638 }
0x194f   :  { %v13130_v19 = vpop.permute.xlu1 %6647  ;;  %v13132_v52 = vpop.permute.xlu0 %6642 }
0x1953   :  { %v13134_v53 = vpop.permute.xlu1 %6651  ;;  %v13136_v37 = vpop.permute.xlu0 %6649 }
0x1957   :  { %v13138_v44 = vpop.permute.xlu1 %6688  ;;  %v13140_v34 = vpop.permute.xlu0 %6686 }
0x195b   :  { %v13142_v16 = vpop.permute.xlu1 %6692  ;;  %v13144_v15 = vpop.permute.xlu0 %6690 }
0x195f   :  { %v6742_v55 = vpop.permute.xlu1 %6741  ;;  %v6740_v3 = vpop.permute.xlu0 %6739 }
0x1960   :  { %v6747_v33 = vsel %vm46_vm0, %v6740_v3, %v6742_v55  ;;  %v6795_v3 = vmul.f32 %v6734_v38, %v15059_v20 }
0x1961   :  { %6753 = vrot.lane.b32.xlu0 %v6747_v33, %s7772_s19 }
0x1963   :  { %v6746_v56 = vpop.permute.xlu1 %6745  ;;  %v6744_v60 = vpop.permute.xlu0 %6743 }
0x1964   :  { %v6749_v40 = vsel %vm46_vm0, %v6744_v60, %v6746_v56  ;;  %v6748_v49 = vsel %vm46_vm0, %v6742_v55, %v6744_v60  ;;  %v6794_v56 = vmul.f32 %v6730_v11, %v15059_v20  ;;  %v13162_v60 = vrot.slane %v6836_v8, %v7839_v6  ;;  %v7028_v11 = vld [vmem:[#allocation3 + $0x2] ss:$4 sm:$0xf] }
0x1965   :  { %6757 = vrot.lane.b32.xlu0 %v6749_v40, %s7772_s19  ;;  %6755 = vrot.lane.b32.xlu1 %v6748_v49, %s7772_s19  ;;  %v13203_v38 = vrot.slane %v7028_v11, %v14924_v23 }
0x1969   :  { %6764 = vrot.lane.b32.xlu0 %v6748_v49, %s7775_s20  ;;  %6762 = vrot.lane.b32.xlu1 %v6747_v33, %s7775_s20  ;;  %v6796_v49 = vmul.f32 %v6738_v13, %v15059_v20  ;;  %v6913_v33 = vld [vmem:[#allocation3 + $0x5] ss:$4 sm:$0xf]  ;;  %v13206_v13 = vrot.slane %v7028_v11, %v7839_v6 }
0x196a   :  { %v13183_v20 = vrot.slane %v6913_v33, %v14924_v23  ;;  %v13186_v55 = vrot.slane %v6913_v33, %v7839_v6  ;;  %v13196_v29 = vrot.slane %v6913_v33, %v14926_v45 }
0x196b   :  { %15060 = vst [vmem:[#allocation109_spill] sm:$0xff] %v13206_v13 }
0x196d   :  { %6801 = vrot.lane.b32.xlu0 %v6793_v58, %s7771_s16  ;;  %6766 = vrot.lane.b32.xlu1 %v6749_v40, %s7775_s20  ;;  %v13169_v58 = vrot.slane %v6836_v8, %v14926_v45  ;;  %v13172_v40 = vrot.slane %v6836_v8, %v14924_v23  ;;  %v13193_v8 = vrot.slane %v6913_v33, %v15056_v21 }
0x1971   :  { %6805 = vrot.lane.b32.xlu0 %v6795_v3, %s7771_s16  ;;  %6803 = vrot.lane.b32.xlu1 %v6794_v56, %s7771_s16  ;;  %v13213_v3 = vrot.slane %v7028_v11, %v15056_v21  ;;  %v13216_v56 = vrot.slane %v7028_v11, %v14926_v45 }
0x1973   :  { %15061 = vst [vmem:[#allocation53_spill] sm:$0xff] %v13213_v3  ;;  %15062 = vst [vmem:[#allocation75_spill] sm:$0xff] %v13216_v56 }
0x1975   :  { %6853 = vrot.lane.b32.xlu0 %v13162_v60, %s7772_s19  ;;  %6807 = vrot.lane.b32.xlu1 %v6796_v49, %s7771_s16  ;;  %v7220_v49 = vld [vmem:[#allocation3 + $0x6] ss:$4 sm:$0xf] }
0x1976   :  { %v13223_v33 = vrot.slane %v7220_v49, %v7839_v6  ;;  %v13230_v57 = vrot.slane %v7220_v49, %v14926_v45  ;;  %v13233_v11 = vrot.slane %v7220_v49, %v14924_v23  ;;  %v13243_v62 = vrot.slane %v7220_v49, %v15056_v21 }
0x1977   :  { %v13260_v49 = vrot.slane %v7335_v30, %v15056_v21 }
0x1978   :  { %15063 = vst [vmem:[#allocation81_spill] sm:$0xff] %v13223_v33  ;;  %15064 = vst [vmem:[#allocation89_spill] sm:$0xff] %v13230_v57 }
0x1979   :  { %6857 = vrot.lane.b32.xlu0 %v13169_v58, %s7772_s19  ;;  %6855 = vrot.lane.b32.xlu1 %v13172_v40, %s7772_s19  ;;  %15065 = vst [vmem:[#allocation35_spill] sm:$0xff] %v13233_v11  ;;  %15067 = vst [vmem:[#allocation107_spill] sm:$0xff] %v13243_v62 }
0x197a   :  { %15070 = vst [vmem:[#allocation37_spill] sm:$0xff] %v13260_v49 }
0x197d   :  { %6864 = vrot.lane.b32.xlu0 %v13172_v40, %s7775_s20  ;;  %6862 = vrot.lane.b32.xlu1 %v13162_v60, %s7775_s20 }
0x1981   :  { %6933 = vrot.lane.b32.xlu0 %v13183_v20, %s7777_s23  ;;  %6931 = vrot.lane.b32.xlu1 %v13186_v55, %s7777_s23 }
0x1985   :  { %6937 = vrot.lane.b32.xlu0 %v13193_v8, %s7777_s23  ;;  %6935 = vrot.lane.b32.xlu1 %v13196_v29, %s7777_s23 }
0x1989   :  { %7048 = vrot.lane.b32.xlu0 %v13203_v38, %s7771_s16  ;;  %7046 = vrot.lane.b32.xlu1 %v13206_v13, %s7771_s16 }
0x198d   :  { %7052 = vrot.lane.b32.xlu0 %v13213_v3, %s7771_s16  ;;  %7050 = vrot.lane.b32.xlu1 %v13216_v56, %s7771_s16  ;;  %v6461_v3 = vsel %vm71_vm3, %v13077_v27, %v13079_v63 }
0x1991   :  { %7238 = vrot.lane.b32.xlu0 %v13223_v33, %s7777_s23  ;;  %6866 = vrot.lane.b32.xlu1 %v13169_v58, %s7775_s20  ;;  %v13250_v33 = vrot.slane %v7335_v30, %v14926_v45 }
0x1993   :  { %15068 = vst [vmem:[#allocation101_spill] sm:$0xff] %v13250_v33 }
0x1995   :  { %7242 = vrot.lane.b32.xlu0 %v13230_v57, %s7777_s23  ;;  %7240 = vrot.lane.b32.xlu1 %v13233_v11, %s7777_s23  ;;  %v13253_v57 = vrot.slane %v7335_v30, %v14924_v23  ;;  %v13262_v11 = vld [vmem:[#allocation3 + $0x7] ss:$4 sm:$0xf]  ;;  %v6453_v30 = vsel %vm61_vm2, %v13069_v42, %v13071_v4 }
0x1997   :  { %15069 = vst [vmem:[#allocation95_spill] sm:$0xff] %v13253_v57 }
0x1999   :  { %7353 = vrot.lane.b32.xlu0 %v13240_v26, %s7771_s16  ;;  %7244 = vrot.lane.b32.xlu1 %v13243_v62, %s7777_s23  ;;  %v13268_v26 = vrot.slane %v13262_v11, %v7839_v6  ;;  %v6452_v62 = vsel %vm61_vm2, %v13071_v4, %v13073_v50  ;;  %v6554_v4 = vsel %vm61_vm2, %v13093_v5, %v13089_v43 }
0x199b   :  { %15071 = vst [vmem:[#allocation30_spill] sm:$0xff] %v13268_v26 }
0x199d   :  { %7357 = vrot.lane.b32.xlu0 %v13250_v33, %s7771_s16  ;;  %7355 = vrot.lane.b32.xlu1 %v13253_v57, %s7771_s16  ;;  %v13274_v33 = vrot.slane %v13262_v11, %v14926_v45  ;;  %v6471_v57 = vrot.slane %v6453_v30, %v7839_v6  ;;  %v6502_v45 = vsel %vm46_vm0, %v13081_v25, %v13083_v47 }
0x199e   :  { %v6504_v25 = vsel %vm46_vm0, %v13085_v22, %v13087_v28 }
0x199f   :  { %15072 = vst [vmem:[#allocation43_spill] sm:$0xff] %v13274_v33  ;;  %v6477_v30 = vmul.f32 %v6471_v57, %v14836_v2  ;;  %v6552_v57 = vsel %vm61_vm2, %v13091_v7, %v13093_v5 }
0x19a1   :  { %7359 = vrot.lane.b32.xlu1 %v13260_v49, %s7771_s16  ;;  %v6454_v49 = vsel %vm61_vm2, %v13073_v50, %v13069_v42  ;;  %v6553_v42 = vsel %vm61_vm2, %v13089_v43, %v13091_v7  ;;  %v6475_v50 = vrot.slane %v6452_v62, %v7839_v6  ;;  %v6503_v43 = vsel %vm46_vm0, %v13083_v47, %v13085_v22 }
0x19a2   :  { %v6518_v62 = vrot.slane %v6461_v3, %v7839_v6  ;;  %v6509_v13 = vadd.f32 %v6503_v43, %v6477_v30  ;;  %v6561_v7 = vsel %vm71_vm3, %v13097_v61, %v13099_v59  ;;  %v6562_v22 = vsel %vm71_vm3, %v13095_v32, %v13097_v61 }
0x19a3   :  { %v6478_v3 = vmul.f32 %v6475_v50, %v14836_v2  ;;  %v6595_v30 = vrot.slane %v6561_v7, %v7839_v6  ;;  %v6591_v43 = vrot.slane %v6562_v22, %v7839_v6  ;;  %v6563_v61 = vsel %vm71_vm3, %v13099_v59, %v13095_v32 }
0x19a4   :  { %v6524_v5 = vmul.f32 %v6518_v62, %v14837_v39  ;;  %v6646_v62 = vsel %vm61_vm2, %v13132_v52, %v13128_v24  ;;  %v6599_v32 = vrot.slane %v6563_v61, %v7839_v6 }
0x19a5   :  { %7545 = vrot.lane.b32.xlu1 %v13268_v26, %s7777_s23  ;;  %v6467_v26 = vrot.slane %v6454_v49, %v7839_v6  ;;  %v6510_v28 = vadd.f32 %v6504_v25, %v6478_v3  ;;  %v6601_v59 = vmul.f32 %v6595_v30, %v14840_v54  ;;  %v6655_v30 = vsel %vm71_vm3, %v13134_v53, %v13130_v19 }
0x19a7   :  { %v6476_v49 = vmul.f32 %v6467_v26, %v14836_v2  ;;  %v6571_v26 = vrot.slane %v6553_v42, %v7839_v6  ;;  %v6575_v42 = vrot.slane %v6552_v57, %v7839_v6  ;;  %v6645_v2 = vsel %vm61_vm2, %v13128_v24, %v13126_v36 }
0x19a8   :  { %v6583_v57 = vmul.f32 %v13046_v48, %v14839_v9  ;;  %v6582_v24 = vmul.f32 %v13040_v14, %v14839_v9  ;;  %v6654_v14 = vsel %vm71_vm3, %v13130_v19, %v13136_v37 }
0x19a9   :  { %7549 = vrot.lane.b32.xlu1 %v13274_v33, %s7777_s23  ;;  %v6462_v33 = vsel %vm71_vm3, %v13075_v12, %v13077_v27  ;;  %v6463_v27 = vsel %vm71_vm3, %v13079_v63, %v13075_v12  ;;  %v6508_v63 = vadd.f32 %v6502_v45, %v6476_v49  ;;  %v6577_v45 = vmul.f32 %v6571_v26, %v14838_v35 }
0x19aa   :  { %v6514_v56 = vrot.slane %v6462_v33, %v7839_v6  ;;  %v6567_v33 = vrot.slane %v6554_v4, %v7839_v6  ;;  %v6522_v12 = vrot.slane %v6463_v27, %v7839_v6  ;;  %v6527_v49 = vadd.f32 %v6524_v5, %v6509_v13 }
0x19ab   :  { %v6578_v27 = vmul.f32 %v6575_v42, %v14838_v35  ;;  %v6663_v13 = vrot.slane %v6645_v2, %v7839_v6 }
0x19ac   :  { %v6523_v47 = vmul.f32 %v6514_v56, %v14837_v39  ;;  %v6576_v4 = vmul.f32 %v6567_v33, %v14838_v35  ;;  %v6525_v56 = vmul.f32 %v6522_v12, %v14837_v39  ;;  %v6580_v26 = vadd.f32 %v6577_v45, %v6527_v49 }
0x19ad   :  { %v6644_v33 = vsel %vm61_vm2, %v13126_v36, %v13132_v52  ;;  %v6659_v12 = vrot.slane %v6646_v62, %v7839_v6  ;;  %v6669_v48 = vmul.f32 %v6663_v13, %v14841_v17  ;;  %v6584_v36 = vmul.f32 %v13049_v1, %v14839_v9 }
0x19ae   :  { %v6526_v50 = vadd.f32 %v6523_v47, %v6508_v63  ;;  %v6528_v35 = vadd.f32 %v6525_v56, %v6510_v28  ;;  %v6600_v47 = vmul.f32 %v6591_v43, %v14840_v54  ;;  %v6667_v3 = vrot.slane %v6644_v33, %v7839_v6 }
0x19af   :  { %v6586_v7 = vadd.f32 %v6583_v57, %v6580_v26  ;;  %v6602_v52 = vmul.f32 %v6599_v32, %v14840_v54  ;;  %v6668_v5 = vmul.f32 %v6659_v12, %v14841_v17  ;;  %v6653_v28 = vsel %vm71_vm3, %v13136_v37, %v13134_v53 }
0x19b0   :  { %v6579_v39 = vadd.f32 %v6576_v4, %v6526_v50  ;;  %v6581_v25 = vadd.f32 %v6578_v27, %v6528_v35  ;;  %v6670_v2 = vmul.f32 %v6667_v3, %v14841_v17  ;;  %v6706_v37 = vrot.slane %v6654_v14, %v7839_v6 }
0x19b1   :  { %v6604_v45 = vadd.f32 %v6601_v59, %v6586_v7  ;;  %v6694_v27 = vsel %vm270_vm1, %v13140_v34, %v13138_v44  ;;  %v6695_v43 = vsel %vm270_vm1, %v13138_v44, %v13144_v15  ;;  %v6710_v17 = vrot.slane %v6653_v28, %v7839_v6 }
0x19b2   :  { %v6585_v42 = vadd.f32 %v6582_v24, %v6579_v39  ;;  %v6587_v50 = vadd.f32 %v6584_v36, %v6581_v25  ;;  %v6696_v34 = vsel %vm270_vm1, %v13144_v15, %v13142_v16  ;;  %v6714_v44 = vrot.slane %v6655_v30, %v7839_v6 }
0x19b3   :  { %v6672_v49 = vadd.f32 %v6669_v48, %v6604_v45  ;;  %v6715_v33 = vmul.f32 %v6706_v37, %v14842_v18  ;;  %v6716_v59 = vmul.f32 %v6710_v17, %v14842_v18 }
0x19b4   :  { %v6603_v56 = vadd.f32 %v6600_v47, %v6585_v42  ;;  %v6605_v19 = vadd.f32 %v6602_v52, %v6587_v50  ;;  %v6717_v52 = vmul.f32 %v6714_v44, %v14842_v18 }
0x19b5   :  { %v6701_v35 = vadd.f32 %v6695_v43, %v6672_v49 }
0x19b6   :  { %v6671_v61 = vadd.f32 %v6668_v5, %v6603_v56  ;;  %v6673_v32 = vadd.f32 %v6670_v2, %v6605_v19 }
0x19b7   :  { %v6719_v7 = vadd.f32 %v6716_v59, %v6701_v35 }
0x19b8   :  { %v6700_v57 = vadd.f32 %v6694_v27, %v6671_v61  ;;  %v6702_v48 = vadd.f32 %v6696_v34, %v6673_v32 }
0x19ba   :  { %v6718_v42 = vadd.f32 %v6715_v33, %v6700_v57  ;;  %v6720_v28 = vadd.f32 %v6717_v52, %v6702_v48 }
0x19d3   :  { %v6754_v63 = vpop.permute.xlu0 %6753 }
0x19d7   :  { %v6756_v4 = vpop.permute.xlu1 %6755  ;;  %v6758_v22 = vpop.permute.xlu0 %6757 }
0x19d8   :  { %v6760_v9 = vsel %vm61_vm2, %v6754_v63, %v6756_v4  ;;  %v6759_v54 = vsel %vm61_vm2, %v6756_v4, %v6758_v22  ;;  %v6761_v1 = vsel %vm61_vm2, %v6758_v22, %v6754_v63 }
0x19d9   :  { %v6778_v62 = vrot.slane %v6760_v9, %v7839_v6  ;;  %v6774_v26 = vrot.slane %v6761_v1, %v7839_v6  ;;  %v6782_v24 = vrot.slane %v6759_v54, %v7839_v6 }
0x19db   :  { %v6763_v39 = vpop.permute.xlu1 %6762  ;;  %v6765_v13 = vpop.permute.xlu0 %6764  ;;  %v6784_v12 = vmul.f32 %v6778_v62, %v14843_v51  ;;  %v6783_v63 = vmul.f32 %v6774_v26, %v14843_v51  ;;  %v6785_v5 = vmul.f32 %v6782_v24, %v14843_v51  ;;  %v6889_v24 = vmul.f32 %v13162_v60, %v15002_v10 }
0x19dc   :  { %v6769_v53 = vsel %vm71_vm3, %v6763_v39, %v6765_v13  ;;  %v13461_v60 = vrot.slane %v13262_v11, %v14924_v23 }
0x19dd   :  { %v6821_v3 = vrot.slane %v6769_v53, %v7839_v6  ;;  %v6786_v45 = vadd.f32 %v6783_v63, %v6718_v42  ;;  %v6787_v4 = vadd.f32 %v6784_v12, %v6719_v7  ;;  %v6788_v37 = vadd.f32 %v6785_v5, %v6720_v28 }
0x19df   :  { %v6767_v25 = vpop.permute.xlu1 %6766  ;;  %v6802_v47 = vpop.permute.xlu0 %6801  ;;  %v6830_v9 = vmul.f32 %v6821_v3, %v14994_v31 }
0x19e0   :  { %v6768_v15 = vsel %vm71_vm3, %v6765_v13, %v6767_v25  ;;  %v6770_v16 = vsel %vm71_vm3, %v6767_v25, %v6763_v39 }
0x19e1   :  { %v6825_v36 = vrot.slane %v6768_v15, %v7839_v6  ;;  %v6829_v2 = vrot.slane %v6770_v16, %v7839_v6 }
0x19e3   :  { %v6804_v14 = vpop.permute.xlu1 %6803  ;;  %v6806_v22 = vpop.permute.xlu0 %6805  ;;  %v6831_v56 = vmul.f32 %v6825_v36, %v14994_v31  ;;  %v6832_v17 = vmul.f32 %v6829_v2, %v14994_v31 }
0x19e4   :  { %v6809_v54 = vsel %vm46_vm0, %v6802_v47, %v6804_v14  ;;  %v6810_v1 = vsel %vm46_vm0, %v6804_v14, %v6806_v22  ;;  %v13469_v14 = vrot.slane %v13262_v11, %v15056_v21 }
0x19e5   :  { %v6815_v50 = vadd.f32 %v6809_v54, %v6786_v45  ;;  %v6816_v49 = vadd.f32 %v6810_v1, %v6787_v4  ;;  %v6890_v1 = vmul.f32 %v13172_v40, %v15002_v10 }
0x19e7   :  { %v6833_v18 = vadd.f32 %v6830_v9, %v6815_v50  ;;  %v6834_v30 = vadd.f32 %v6831_v56, %v6816_v49  ;;  %v6808_v51 = vpop.permute.xlu1 %6807  ;;  %v6854_v27 = vpop.permute.xlu0 %6853  ;;  %v15073_v9 = vld [vmem:[#allocation38_spill] sm:$0xff] }
0x19e8   :  { %v6811_v43 = vsel %vm46_vm0, %v6806_v22, %v6808_v51  ;;  %v6986_v54 = vmul.f32 %v13183_v20, %v15073_v9  ;;  %v6891_v20 = vmul.f32 %v13169_v58, %v15002_v10  ;;  %v6988_v50 = vmul.f32 %v13193_v8, %v15073_v9 }
0x19e9   :  { %v6817_v61 = vadd.f32 %v6811_v43, %v6788_v37  ;;  %v6985_v49 = vmul.f32 %v13186_v55, %v15073_v9  ;;  %v6987_v58 = vmul.f32 %v13196_v29, %v15073_v9  ;;  %v15074_v29 = vld [vmem:[#allocation51_spill] sm:$0xff] }
0x19ea   :  { %v15084_v9 = vld [vmem:[#allocation87_spill] sm:$0xff] }
0x19eb   :  { %v6835_v62 = vadd.f32 %v6832_v17, %v6817_v61  ;;  %v6856_v26 = vpop.permute.xlu1 %6855  ;;  %v6858_v39 = vpop.permute.xlu0 %6857  ;;  %v7101_v17 = vmul.f32 %v13203_v38, %v15074_v29  ;;  %v7143_v61 = vld [vmem:[#allocation3 + $0x6] ss:$4 sm:$0x7] }
0x19ec   :  { %v6860_v13 = vsel %vm61_vm2, %v6854_v27, %v6856_v26  ;;  %v6859_v19 = vsel %vm61_vm2, %v6856_v26, %v6858_v39  ;;  %v6861_v53 = vsel %vm61_vm2, %v6858_v39, %v6854_v27  ;;  %v15075_v26 = vld [vmem:[#allocation109_spill] sm:$0xff]  ;;  %v15077_v38 = vld [vmem:[#allocation75_spill] sm:$0xff] }
0x19ed   :  { %v6878_v57 = vrot.slane %v6860_v13, %v7839_v6  ;;  %v6874_v34 = vrot.slane %v6861_v53, %v7839_v6  ;;  %v6882_v35 = vrot.slane %v6859_v19, %v7839_v6  ;;  %v7100_v39 = vmul.f32 %v15075_v26, %v15074_v29  ;;  %v15076_v13 = vld [vmem:[#allocation4_spill] sm:$0xff] }
0x19ee   :  { %v13527_v19 = vrot.slane %v7143_v61, %v15076_v13  ;;  %v7102_v53 = vmul.f32 %v15077_v38, %v15074_v29 }
0x19ef   :  { %v6884_v31 = vmul.f32 %v6878_v57, %v14995_v41  ;;  %v6883_v44 = vmul.f32 %v6874_v34, %v14995_v41  ;;  %v6885_v33 = vmul.f32 %v6882_v35, %v14995_v41  ;;  %v6863_v32 = vpop.permute.xlu1 %6862  ;;  %v6865_v59 = vpop.permute.xlu0 %6864  ;;  %v13535_v34 = vrot.slane %v7143_v61, %v14924_v23  ;;  %v15078_v35 = vld [vmem:[#allocation53_spill] sm:$0xff] }
0x19f0   :  { %v6869_v12 = vsel %vm71_vm3, %v6863_v32, %v6865_v59 }
0x19f1   :  { %v6887_v63 = vadd.f32 %v6884_v31, %v6834_v30  ;;  %v6886_v25 = vadd.f32 %v6883_v44, %v6833_v18  ;;  %v6888_v47 = vadd.f32 %v6885_v33, %v6835_v62  ;;  %v6898_v48 = vrot.slane %v6869_v12, %v7839_v6 }
0x19f2   :  { %v13519_v62 = vrot.slane %v7143_v61, %v7839_v6  ;;  %v7103_v31 = vmul.f32 %v15078_v35, %v15074_v29 }
0x19f3   :  { %v6907_v3 = vmul.f32 %v6898_v48, %v15005_v0  ;;  %v6932_v15 = vpop.permute.xlu1 %6931  ;;  %v6934_v16 = vpop.permute.xlu0 %6933  ;;  %v6892_v42 = vadd.f32 %v6889_v24, %v6886_v25  ;;  %v6893_v30 = vadd.f32 %v6890_v1, %v6887_v63  ;;  %v6894_v51 = vadd.f32 %v6891_v20, %v6888_v47  ;;  %v15079_v25 = vld [vmem:[#allocation76_spill] sm:$0xff]  ;;  %v15080_v47 = vld [vmem:[#allocation35_spill] sm:$0xff] }
0x19f4   :  { %v6939_v41 = vsel %vm270_vm1, %v6932_v15, %v6934_v16  ;;  %v7293_v48 = vmul.f32 %v15080_v47, %v15079_v25  ;;  %v15081_v15 = vld [vmem:[#allocation81_spill] sm:$0xff]  ;;  %v15091_v47 = vld [vmem:[#allocation30_spill] sm:$0xff] }
0x19f5   :  { %6945 = vrot.lane.b32.xlu0 %v6939_v41, %s7772_s19  ;;  %v13457_v7 = vadd.f32 %v6907_v3, %v6892_v42 }
0x19f7   :  { %v6936_v36 = vpop.permute.xlu1 %6935  ;;  %v6938_v45 = vpop.permute.xlu0 %6937 }
0x19f8   :  { %v6940_v52 = vsel %vm270_vm1, %v6934_v16, %v6936_v36  ;;  %v6941_v22 = vsel %vm270_vm1, %v6936_v36, %v6938_v45  ;;  %v7292_v16 = vmul.f32 %v15081_v15, %v15079_v25 }
0x19f9   :  { %6947 = vrot.lane.b32.xlu1 %v6940_v52, %s7772_s19  ;;  %7547 = vrot.lane.b32.xlu0 %v13461_v60, %s7777_s23 }
0x19fb   :  { %v7047_v5 = vpop.permute.xlu1 %7046  ;;  %v7049_v10 = vpop.permute.xlu0 %7048 }
0x19fd   :  { %6954 = vrot.lane.b32.xlu1 %v6939_v41, %s7775_s20  ;;  %7551 = vrot.lane.b32.xlu0 %v13469_v14, %s7777_s23 }
0x19ff   :  { %v7051_v4 = vpop.permute.xlu1 %7050  ;;  %v7053_v8 = vpop.permute.xlu0 %7052 }
0x1a00   :  { %v7055_v55 = vsel %vm46_vm0, %v7049_v10, %v7051_v4  ;;  %v7056_v43 = vsel %vm46_vm0, %v7051_v4, %v7053_v8 }
0x1a01   :  { %6958 = vrot.lane.b32.xlu1 %v6941_v22, %s7775_s20  ;;  %6949 = vrot.lane.b32.xlu0 %v6941_v22, %s7772_s19  ;;  %v15083_v22 = vld [vmem:[#allocation107_spill] sm:$0xff] }
0x1a03   :  { %v6867_v28 = vpop.permute.xlu1 %6866  ;;  %v7239_v57 = vpop.permute.xlu0 %7238 }
0x1a04   :  { %v6868_v21 = vsel %vm71_vm3, %v6865_v59, %v6867_v28  ;;  %v6870_v11 = vsel %vm71_vm3, %v6867_v28, %v6863_v32  ;;  %v7295_v28 = vmul.f32 %v15083_v22, %v15079_v25 }
0x1a05   :  { %v6902_v2 = vrot.slane %v6868_v21, %v7839_v6  ;;  %v6906_v56 = vrot.slane %v6870_v11, %v7839_v6  ;;  %6995 = vrot.lane.b32.xlu1 %v6986_v54, %s7777_s23  ;;  %6956 = vrot.lane.b32.xlu0 %v6940_v52, %s7775_s20  ;;  %v15082_v52 = vld [vmem:[#allocation89_spill] sm:$0xff]  ;;  %v15085_v54 = vld [vmem:[#allocation95_spill] sm:$0xff] }
0x1a06   :  { %v7408_v21 = vmul.f32 %v15085_v54, %v15084_v9  ;;  %v7450_v11 = vld [vmem:[#allocation3 + $0x7] ss:$4 sm:$0x7] }
0x1a07   :  { %v6908_v18 = vmul.f32 %v6902_v2, %v15005_v0  ;;  %v6909_v40 = vmul.f32 %v6906_v56, %v15005_v0  ;;  %v7054_v0 = vsel %vm46_vm0, %v7047_v5, %v7049_v10  ;;  %v7241_v44 = vpop.permute.xlu1 %7240  ;;  %v7243_v33 = vpop.permute.xlu0 %7242  ;;  %v7294_v5 = vmul.f32 %v15082_v52, %v15079_v25  ;;  %v15086_v2 = vld [vmem:[#allocation110_spill] sm:$0xff] }
0x1a08   :  { %v7247_v32 = vsel %vm270_vm1, %v7241_v44, %v7243_v33  ;;  %v7246_v59 = vsel %vm270_vm1, %v7239_v57, %v7241_v44  ;;  %v13582_v1 = vrot.slane %v7450_v11, %v7839_v6  ;;  %v7407_v56 = vmul.f32 %v15086_v2, %v15084_v9 }
0x1a09   :  { %6999 = vrot.lane.b32.xlu1 %v6988_v50, %s7777_s23  ;;  %6993 = vrot.lane.b32.xlu0 %v6985_v49, %s7777_s23  ;;  %v13499_v37 = vadd.f32 %v6908_v18, %v6893_v30  ;;  %v13501_v27 = vadd.f32 %v6909_v40, %v6894_v51  ;;  %v13590_v20 = vrot.slane %v7450_v11, %v15076_v13  ;;  %v15087_v50 = vld [vmem:[#allocation101_spill] sm:$0xff] }
0x1a0a   :  { %v7409_v49 = vmul.f32 %v15087_v50, %v15084_v9  ;;  %v13598_v18 = vrot.slane %v7450_v11, %v14924_v23  ;;  %v15088_v40 = vld [vmem:[#allocation37_spill] sm:$0xff] }
0x1a0b   :  { %v7245_v12 = vpop.permute.xlu1 %7244  ;;  %v7354_v3 = vpop.permute.xlu0 %7353  ;;  %v7410_v30 = vmul.f32 %v15088_v40, %v15084_v9  ;;  %v15093_v9 = vld [vmem:[#allocation47_spill] sm:$0xff] }
0x1a0c   :  { %v7248_v24 = vsel %vm270_vm1, %v7243_v33, %v7245_v12 }
0x1a0d   :  { %6997 = vrot.lane.b32.xlu0 %v6987_v58, %s7777_s23  ;;  %7062 = vrot.lane.b32.xlu1 %v7055_v55, %s7772_s19 }
0x1a0f   :  { %v7356_v63 = vpop.permute.xlu1 %7355  ;;  %v7358_v36 = vpop.permute.xlu0 %7357 }
0x1a10   :  { %v7361_v42 = vsel %vm46_vm0, %v7354_v3, %v7356_v63  ;;  %v7362_v4 = vsel %vm46_vm0, %v7356_v63, %v7358_v36  ;;  %v15090_v63 = vld [vmem:[#allocation108_spill] sm:$0xff] }
0x1a11   :  { %7069 = vrot.lane.b32.xlu1 %v7054_v0, %s7775_s20  ;;  %7060 = vrot.lane.b32.xlu0 %v7054_v0, %s7772_s19  ;;  %v7600_v25 = vmul.f32 %v13461_v60, %v15090_v63  ;;  %v7602_v52 = vmul.f32 %v13469_v14, %v15090_v63 }
0x1a13   :  { %v7360_v41 = vpop.permute.xlu1 %7359 }
0x1a14   :  { %v7363_v45 = vsel %vm46_vm0, %v7358_v36, %v7360_v41 }
0x1a15   :  { %7073 = vrot.lane.b32.xlu1 %v7056_v43, %s7775_s20  ;;  %7064 = vrot.lane.b32.xlu0 %v7056_v43, %s7772_s19 }
0x1a17   :  { %v7546_v51 = vpop.permute.xlu1 %7545 }
0x1a19   :  { %7110 = vrot.lane.b32.xlu1 %v7101_v17, %s7771_s16  ;;  %7071 = vrot.lane.b32.xlu0 %v7055_v55, %s7775_s20  ;;  %v15089_v17 = vld [vmem:[#allocation42_spill] sm:$0xff] }
0x1a1b   :  { %v7550_v23 = vpop.permute.xlu1 %7549 }
0x1a1d   :  { %7160 = vrot.lane.b32.xlu1 %v13519_v62, %s7772_s19  ;;  %7108 = vrot.lane.b32.xlu0 %v7100_v39, %s7771_s16 }
0x1a21   :  { %7164 = vrot.lane.b32.xlu1 %v13527_v19, %s7772_s19  ;;  %7112 = vrot.lane.b32.xlu0 %v7102_v53, %s7771_s16 }
0x1a25   :  { %7169 = vrot.lane.b32.xlu1 %v13519_v62, %s7775_s20  ;;  %7162 = vrot.lane.b32.xlu0 %v13535_v34, %s7772_s19 }
0x1a29   :  { %7173 = vrot.lane.b32.xlu1 %v13527_v19, %s7775_s20  ;;  %7114 = vrot.lane.b32.xlu0 %v7103_v31, %s7771_s16 }
0x1a2d   :  { %7171 = vrot.lane.b32.xlu0 %v13535_v34, %s7775_s20  ;;  %7254 = vrot.lane.b32.xlu1 %v7247_v32, %s7772_s19 }
0x1a31   :  { %7252 = vrot.lane.b32.xlu0 %v7246_v59, %s7772_s19  ;;  %7261 = vrot.lane.b32.xlu1 %v7246_v59, %s7775_s20 }
0x1a35   :  { %7256 = vrot.lane.b32.xlu0 %v7248_v24, %s7772_s19  ;;  %7265 = vrot.lane.b32.xlu1 %v7248_v24, %s7775_s20 }
0x1a39   :  { %7263 = vrot.lane.b32.xlu0 %v7247_v32, %s7775_s20  ;;  %7302 = vrot.lane.b32.xlu1 %v7293_v48, %s7777_s23  ;;  %v7599_v48 = vmul.f32 %v15091_v47, %v15090_v63 }
0x1a3d   :  { %7300 = vrot.lane.b32.xlu0 %v7292_v16, %s7777_s23  ;;  %7367 = vrot.lane.b32.xlu1 %v7361_v42, %s7772_s19 }
0x1a41   :  { %7304 = vrot.lane.b32.xlu0 %v7294_v5, %s7777_s23  ;;  %7371 = vrot.lane.b32.xlu1 %v7363_v45, %s7772_s19  ;;  %v15092_v5 = vld [vmem:[#allocation43_spill] sm:$0xff] }
0x1a45   :  { %7376 = vrot.lane.b32.xlu1 %v7361_v42, %s7775_s20  ;;  %7369 = vrot.lane.b32.xlu0 %v7362_v4, %s7772_s19 }
0x1a49   :  { %7380 = vrot.lane.b32.xlu1 %v7363_v45, %s7775_s20  ;;  %7306 = vrot.lane.b32.xlu0 %v7295_v28, %s7777_s23  ;;  %v7601_v45 = vmul.f32 %v15092_v5, %v15090_v63 }
0x1a4d   :  { %7417 = vrot.lane.b32.xlu1 %v7408_v21, %s7771_s16  ;;  %7378 = vrot.lane.b32.xlu0 %v7362_v4, %s7775_s20 }
0x1a51   :  { %7467 = vrot.lane.b32.xlu1 %v13582_v1, %s7772_s19  ;;  %7415 = vrot.lane.b32.xlu0 %v7407_v56, %s7771_s16 }
0x1a55   :  { %7471 = vrot.lane.b32.xlu1 %v13590_v20, %s7772_s19  ;;  %7419 = vrot.lane.b32.xlu0 %v7409_v49, %s7771_s16 }
0x1a59   :  { %7476 = vrot.lane.b32.xlu1 %v13582_v1, %s7775_s20  ;;  %7469 = vrot.lane.b32.xlu0 %v13598_v18, %s7772_s19 }
0x1a5d   :  { %7480 = vrot.lane.b32.xlu1 %v13590_v20, %s7775_s20  ;;  %7421 = vrot.lane.b32.xlu0 %v7410_v30, %s7771_s16 }
0x1a61   :  { %7478 = vrot.lane.b32.xlu0 %v13598_v18, %s7775_s20 }
0x1a67   :  { %v6946_v10 = vpop.permute.xlu0 %6945 }
0x1a6b   :  { %v6948_v58 = vpop.permute.xlu1 %6947  ;;  %v7548_v55 = vpop.permute.xlu0 %7547 }
0x1a6c   :  { %v6952_v0 = vsel %vm61_vm2, %v6946_v10, %v6948_v58  ;;  %v7553_v8 = vsel %vm270_vm1, %v7546_v51, %v7548_v55  ;;  %v7554_v43 = vsel %vm270_vm1, %v7548_v55, %v7550_v23 }
0x1a6d   :  { %v6970_v29 = vrot.slane %v6952_v0, %v7839_v6  ;;  %7561 = vrot.lane.b32.xlu1 %v7554_v43, %s7772_s19  ;;  %7559 = vrot.lane.b32.xlu0 %v7553_v8, %s7772_s19  ;;  %v15094_v0 = vld [vmem:[#allocation58_spill] sm:$0xff] }
0x1a6f   :  { %v6976_v61 = vmul.f32 %v6970_v29, %v15089_v17  ;;  %v6955_v26 = vpop.permute.xlu1 %6954  ;;  %v7552_v39 = vpop.permute.xlu0 %7551 }
0x1a70   :  { %v7555_v13 = vsel %vm270_vm1, %v7550_v23, %v7552_v39 }
0x1a71   :  { %7568 = vrot.lane.b32.xlu1 %v7553_v8, %s7775_s20  ;;  %7563 = vrot.lane.b32.xlu0 %v7555_v13, %s7772_s19  ;;  %v6979_v38 = vadd.f32 %v6976_v61, %v13499_v37 }
0x1a73   :  { %v6959_v53 = vpop.permute.xlu1 %6958  ;;  %v6950_v57 = vpop.permute.xlu0 %6949 }
0x1a74   :  { %v6962_v35 = vsel %vm71_vm3, %v6959_v53, %v6955_v26  ;;  %v6951_v31 = vsel %vm61_vm2, %v6948_v58, %v6950_v57  ;;  %v6953_v44 = vsel %vm61_vm2, %v6950_v57, %v6946_v10 }
0x1a75   :  { %v6966_v33 = vrot.slane %v6953_v44, %v7839_v6  ;;  %v6974_v32 = vrot.slane %v6951_v31, %v7839_v6  ;;  %7572 = vrot.lane.b32.xlu1 %v7555_v13, %s7775_s20  ;;  %7570 = vrot.lane.b32.xlu0 %v7554_v43, %s7775_s20  ;;  %v7021_v4 = vrot.slane %v6962_v35, %v7839_v6 }
0x1a77   :  { %v6975_v37 = vmul.f32 %v6966_v33, %v15089_v17  ;;  %v6977_v59 = vmul.f32 %v6974_v32, %v15089_v17  ;;  %v6996_v12 = vpop.permute.xlu1 %6995  ;;  %v6957_v24 = vpop.permute.xlu0 %6956  ;;  %v7024_v56 = vmul.f32 %v7021_v4, %v15093_v9 }
0x1a78   :  { %v6960_v3 = vsel %vm71_vm3, %v6957_v24, %v6959_v53  ;;  %v6961_v15 = vsel %vm71_vm3, %v6955_v26, %v6957_v24  ;;  %v15095_v24 = vld [vmem:[#allocation64_spill] sm:$0xff] }
0x1a79   :  { %v7013_v16 = vrot.slane %v6961_v15, %v7839_v6  ;;  %7609 = vrot.lane.b32.xlu1 %v7600_v25, %s7777_s23  ;;  %7607 = vrot.lane.b32.xlu0 %v7599_v48, %s7777_s23  ;;  %v6978_v42 = vadd.f32 %v6975_v37, %v13457_v7  ;;  %v6980_v41 = vadd.f32 %v6977_v59, %v13501_v27 }
0x1a7a   :  { %v7017_v28 = vrot.slane %v6960_v3, %v7839_v6 }
0x1a7b   :  { %v7000_v60 = vpop.permute.xlu1 %6999  ;;  %v6994_v36 = vpop.permute.xlu0 %6993  ;;  %v7022_v54 = vmul.f32 %v7013_v16, %v15093_v9 }
0x1a7c   :  { %v7001_v22 = vsel %vm270_vm1, %v6994_v36, %v6996_v12  ;;  %v7023_v50 = vmul.f32 %v7017_v28, %v15093_v9 }
0x1a7d   :  { %v7007_v21 = vadd.f32 %v7001_v22, %v6978_v42  ;;  %7613 = vrot.lane.b32.xlu1 %v7602_v52, %s7777_s23  ;;  %7611 = vrot.lane.b32.xlu0 %v7601_v45, %s7777_s23 }
0x1a7f   :  { %v7025_v7 = vadd.f32 %v7022_v54, %v7007_v21  ;;  %v7063_v27 = vpop.permute.xlu1 %7062  ;;  %v6998_v11 = vpop.permute.xlu0 %6997 }
0x1a80   :  { %v7002_v14 = vsel %vm270_vm1, %v6996_v12, %v6998_v11  ;;  %v7003_v2 = vsel %vm270_vm1, %v6998_v11, %v7000_v60 }
0x1a81   :  { %v7008_v49 = vadd.f32 %v7002_v14, %v6979_v38  ;;  %v7009_v40 = vadd.f32 %v7003_v2, %v6980_v41 }
0x1a83   :  { %v7026_v30 = vadd.f32 %v7023_v50, %v7008_v49  ;;  %v7027_v51 = vadd.f32 %v7024_v56, %v7009_v40  ;;  %v7070_v23 = vpop.permute.xlu1 %7069  ;;  %v7061_v10 = vpop.permute.xlu0 %7060 }
0x1a84   :  { %v7067_v58 = vsel %vm61_vm2, %v7061_v10, %v7063_v27 }
0x1a85   :  { %v7085_v55 = vrot.slane %v7067_v58, %v7839_v6 }
0x1a87   :  { %v7091_v8 = vmul.f32 %v7085_v55, %v15094_v0  ;;  %v7074_v43 = vpop.permute.xlu1 %7073  ;;  %v7065_v29 = vpop.permute.xlu0 %7064 }
0x1a88   :  { %v7066_v17 = vsel %vm61_vm2, %v7063_v27, %v7065_v29  ;;  %v7068_v61 = vsel %vm61_vm2, %v7065_v29, %v7061_v10  ;;  %v7077_v15 = vsel %vm71_vm3, %v7074_v43, %v7070_v23 }
0x1a89   :  { %v7081_v26 = vrot.slane %v7068_v61, %v7839_v6  ;;  %v7089_v39 = vrot.slane %v7066_v17, %v7839_v6  ;;  %v7094_v13 = vadd.f32 %v7091_v8, %v7026_v30  ;;  %v7136_v41 = vrot.slane %v7077_v15, %v7839_v6 }
0x1a8b   :  { %v7090_v38 = vmul.f32 %v7081_v26, %v15094_v0  ;;  %v7092_v53 = vmul.f32 %v7089_v39, %v15094_v0  ;;  %v7111_v57 = vpop.permute.xlu1 %7110  ;;  %v7072_v35 = vpop.permute.xlu0 %7071  ;;  %v7139_v5 = vmul.f32 %v7136_v41, %v15095_v24 }
0x1a8c   :  { %v7076_v31 = vsel %vm71_vm3, %v7070_v23, %v7072_v35  ;;  %v7075_v55 = vsel %vm71_vm3, %v7072_v35, %v7074_v43 }
0x1a8d   :  { %v7128_v44 = vrot.slane %v7076_v31, %v7839_v6  ;;  %v7093_v33 = vadd.f32 %v7090_v38, %v7025_v7  ;;  %v7095_v32 = vadd.f32 %v7092_v53, %v7027_v51  ;;  %v7132_v61 = vrot.slane %v7075_v55, %v7839_v6  ;;  %v15096_v31 = vld [vmem:[#allocation70_spill] sm:$0xff] }
0x1a8f   :  { %v7161_v37 = vpop.permute.xlu1 %7160  ;;  %v7109_v59 = vpop.permute.xlu0 %7108  ;;  %v7137_v63 = vmul.f32 %v7128_v44, %v15095_v24 }
0x1a90   :  { %v7116_v12 = vsel %vm46_vm0, %v7109_v59, %v7111_v57 }
0x1a91   :  { %v7122_v25 = vadd.f32 %v7116_v12, %v7093_v33 }
0x1a93   :  { %v7140_v47 = vadd.f32 %v7137_v63, %v7122_v25  ;;  %v7165_v48 = vpop.permute.xlu1 %7164  ;;  %v7113_v3 = vpop.permute.xlu0 %7112  ;;  %v15097_v25 = vld [vmem:[#allocation71_spill] sm:$0xff] }
0x1a94   :  { %v7168_v10 = vsel %vm61_vm2, %v7165_v48, %v7161_v37  ;;  %v7117_v17 = vsel %vm46_vm0, %v7111_v57, %v7113_v3 }
0x1a95   :  { %v7181_v29 = vrot.slane %v7168_v10, %v7839_v6  ;;  %v7123_v53 = vadd.f32 %v7117_v17, %v7094_v13 }
0x1a97   :  { %v7170_v16 = vpop.permute.xlu1 %7169  ;;  %v7163_v42 = vpop.permute.xlu0 %7162  ;;  %v7190_v44 = vmul.f32 %v7181_v29, %v15096_v31 }
0x1a98   :  { %v7166_v23 = vsel %vm61_vm2, %v7163_v42, %v7165_v48  ;;  %v7167_v0 = vsel %vm61_vm2, %v7161_v37, %v7163_v42  ;;  %v7198_v48 = vmul.f32 %v13527_v19, %v15097_v25  ;;  %v15098_v19 = vld [vmem:[#allocation72_spill] sm:$0xff] }
0x1a99   :  { %v7189_v8 = vrot.slane %v7166_v23, %v7839_v6  ;;  %v7185_v26 = vrot.slane %v7167_v0, %v7839_v6 }
0x1a9b   :  { %v7174_v60 = vpop.permute.xlu1 %7173  ;;  %v7115_v36 = vpop.permute.xlu0 %7114  ;;  %v7192_v43 = vmul.f32 %v7189_v8, %v15096_v31  ;;  %v7191_v37 = vmul.f32 %v7185_v26, %v15096_v31 }
0x1a9c   :  { %v7118_v52 = vsel %vm46_vm0, %v7113_v3, %v7115_v36  ;;  %v7177_v33 = vsel %vm71_vm3, %v7174_v60, %v7170_v16 }
0x1a9d   :  { %v7124_v45 = vadd.f32 %v7118_v52, %v7095_v32  ;;  %v7138_v32 = vmul.f32 %v7132_v61, %v15095_v24  ;;  %v7213_v15 = vrot.slane %v7177_v33, %v7839_v6 }
0x1a9f   :  { %v7142_v4 = vadd.f32 %v7139_v5, %v7124_v45  ;;  %v7255_v22 = vpop.permute.xlu1 %7254  ;;  %v7172_v28 = vpop.permute.xlu0 %7171  ;;  %v7141_v3 = vadd.f32 %v7138_v32, %v7123_v53 }
0x1aa0   :  { %v7176_v35 = vsel %vm71_vm3, %v7170_v16, %v7172_v28  ;;  %v7175_v13 = vsel %vm71_vm3, %v7172_v28, %v7174_v60  ;;  %v7193_v60 = vadd.f32 %v7190_v44, %v7140_v47  ;;  %v7197_v47 = vmul.f32 %v13535_v34, %v15097_v25 }
0x1aa1   :  { %v7195_v59 = vadd.f32 %v7192_v43, %v7142_v4  ;;  %v7205_v12 = vrot.slane %v7176_v35, %v7839_v6  ;;  %v7209_v36 = vrot.slane %v7175_v13, %v7839_v6  ;;  %v7194_v52 = vadd.f32 %v7191_v37, %v7141_v3 }
0x1aa3   :  { %v13684_v9 = vpop.permute.xlu1 %7261  ;;  %v7253_v54 = vpop.permute.xlu0 %7252  ;;  %v7201_v45 = vadd.f32 %v7198_v48, %v7195_v59  ;;  %v7214_v4 = vmul.f32 %v7205_v12, %v15098_v19  ;;  %v7215_v10 = vmul.f32 %v7209_v36, %v15098_v19  ;;  %v7200_v29 = vadd.f32 %v7197_v47, %v7194_v52 }
0x1aa4   :  { %v7259_v24 = vsel %vm61_vm2, %v7253_v54, %v7255_v22 }
0x1aa5   :  { %v7277_v28 = vrot.slane %v7259_v24, %v7839_v6 }
0x1aa7   :  { %v13686_v21 = vpop.permute.xlu1 %7265  ;;  %v7257_v7 = vpop.permute.xlu0 %7256 }
0x1aa8   :  { %v7258_v57 = vsel %vm61_vm2, %v7255_v22, %v7257_v7  ;;  %v7260_v63 = vsel %vm61_vm2, %v7257_v7, %v7253_v54  ;;  %v7196_v22 = vmul.f32 %v13519_v62, %v15097_v25  ;;  %v7216_v54 = vmul.f32 %v7213_v15, %v15098_v19  ;;  %v15099_v7 = vld [vmem:[#allocation79_spill] sm:$0xff] }
0x1aa9   :  { %v7281_v16 = vrot.slane %v7258_v57, %v7839_v6  ;;  %v7273_v5 = vrot.slane %v7260_v63, %v7839_v6  ;;  %v7269_v55 = vsel %vm71_vm3, %v13686_v21, %v13684_v9  ;;  %v7283_v26 = vmul.f32 %v7277_v28, %v15099_v7  ;;  %v15100_v63 = vld [vmem:[#allocation84_spill] sm:$0xff] }
0x1aaa   :  { %v7199_v0 = vadd.f32 %v7196_v22, %v7193_v60  ;;  %v7219_v17 = vadd.f32 %v7216_v54, %v7201_v45  ;;  %v7328_v43 = vrot.slane %v7269_v55, %v7839_v6  ;;  %v7218_v57 = vadd.f32 %v7215_v10, %v7200_v29 }
0x1aab   :  { %v13688_v27 = vpop.permute.xlu1 %7302  ;;  %v13690_v11 = vpop.permute.xlu0 %7263  ;;  %v7284_v23 = vmul.f32 %v7281_v16, %v15099_v7  ;;  %v7282_v8 = vmul.f32 %v7273_v5, %v15099_v7 }
0x1aac   :  { %v7268_v34 = vsel %vm71_vm3, %v13684_v9, %v13690_v11  ;;  %v7217_v53 = vadd.f32 %v7214_v4, %v7199_v0  ;;  %v7267_v35 = vsel %vm71_vm3, %v13690_v11, %v13686_v21  ;;  %v7286_v12 = vadd.f32 %v7283_v26, %v7218_v57 }
0x1aad   :  { %v7287_v33 = vadd.f32 %v7284_v23, %v7219_v17  ;;  %v7320_v11 = vrot.slane %v7268_v34, %v7839_v6 }
0x1aae   :  { %v7285_v32 = vadd.f32 %v7282_v8, %v7217_v53  ;;  %v15102_v53 = vld [vmem:[#allocation100_spill] sm:$0xff] }
0x1aaf   :  { %v13692_v14 = vpop.permute.xlu1 %7367  ;;  %v13694_v2 = vpop.permute.xlu0 %7300  ;;  %v7329_v24 = vmul.f32 %v7320_v11, %v15100_v63 }
0x1ab0   :  { %v7308_v9 = vsel %vm270_vm1, %v13694_v2, %v13688_v27  ;;  %v7324_v2 = vrot.slane %v7267_v35, %v7839_v6 }
0x1ab1   :  { %v7314_v25 = vadd.f32 %v7308_v9, %v7285_v32 }
0x1ab3   :  { %v13696_v56 = vpop.permute.xlu1 %7371  ;;  %v13698_v50 = vpop.permute.xlu0 %7304  ;;  %v7332_v52 = vadd.f32 %v7329_v24, %v7314_v25  ;;  %v15104_v24 = vld [vmem:[#allocation105_spill] sm:$0xff] }
0x1ab4   :  { %v7375_v44 = vsel %vm61_vm2, %v13696_v56, %v13692_v14  ;;  %v7309_v37 = vsel %vm270_vm1, %v13688_v27, %v13698_v50  ;;  %v7330_v27 = vmul.f32 %v7324_v2, %v15100_v63 }
0x1ab5   :  { %v7388_v13 = vrot.slane %v7375_v44, %v7839_v6  ;;  %v7315_v15 = vadd.f32 %v7309_v37, %v7286_v12 }
0x1ab7   :  { %v13700_v49 = vpop.permute.xlu1 %7376  ;;  %v13702_v40 = vpop.permute.xlu0 %7369  ;;  %v7333_v4 = vadd.f32 %v7330_v27, %v7315_v15  ;;  %v7505_v27 = vmul.f32 %v13590_v20, %v15104_v24 }
0x1ab8   :  { %v7374_v21 = vsel %vm61_vm2, %v13692_v14, %v13702_v40 }
0x1ab9   :  { %v7392_v48 = vrot.slane %v7374_v21, %v7839_v6 }
0x1abb   :  { %v7307_v30 = vpop.permute.xlu0 %7306  ;;  %v13704_v51 = vpop.permute.xlu1 %7380 }
0x1abc   :  { %v7310_v31 = vsel %vm270_vm1, %v13698_v50, %v7307_v30  ;;  %v7373_v30 = vsel %vm61_vm2, %v13702_v40, %v13696_v56  ;;  %v7331_v56 = vmul.f32 %v7328_v43, %v15100_v63  ;;  %v15101_v50 = vld [vmem:[#allocation94_spill] sm:$0xff]  ;;  %v7384_v36 = vsel %vm71_vm3, %v13704_v51, %v13700_v49 }
0x1abd   :  { %v7316_v59 = vadd.f32 %v7310_v31, %v7287_v33  ;;  %v7396_v14 = vrot.slane %v7373_v30, %v7839_v6  ;;  %v7397_v60 = vmul.f32 %v7388_v13, %v15101_v50  ;;  %v7398_v5 = vmul.f32 %v7392_v48, %v15101_v50 }
0x1abe   :  { %v7443_v7 = vrot.slane %v7384_v36, %v7839_v6 }
0x1abf   :  { %v13710_v58 = vpop.permute.xlu0 %7378  ;;  %v13721_v39 = vpop.permute.xlu1 %7417  ;;  %v7334_v16 = vadd.f32 %v7331_v56, %v7316_v59  ;;  %v7399_v45 = vmul.f32 %v7396_v14, %v15101_v50  ;;  %v7400_v55 = vadd.f32 %v7397_v60, %v7332_v52  ;;  %v7401_v17 = vadd.f32 %v7398_v5, %v7333_v4  ;;  %v15105_v60 = vld [vmem:[#allocation106_spill] sm:$0xff] }
0x1ac0   :  { %v7383_v19 = vsel %vm71_vm3, %v13700_v49, %v13710_v58  ;;  %v7382_v28 = vsel %vm71_vm3, %v13710_v58, %v13704_v51  ;;  %v7446_v31 = vmul.f32 %v7443_v7, %v15102_v53 }
0x1ac1   :  { %v7402_v10 = vadd.f32 %v7399_v45, %v7334_v16  ;;  %v7435_v58 = vrot.slane %v7383_v19, %v7839_v6  ;;  %v7439_v29 = vrot.slane %v7382_v28, %v7839_v6  ;;  %v7503_v16 = vmul.f32 %v13582_v1, %v15104_v24 }
0x1ac2   :  { %v7504_v28 = vmul.f32 %v13598_v18, %v15104_v24 }
0x1ac3   :  { %v13723_v38 = vpop.permute.xlu0 %7415  ;;  %v13746_v42 = vpop.permute.xlu1 %7467 }
0x1ac4   :  { %v7423_v23 = vsel %vm46_vm0, %v13723_v38, %v13721_v39 }
0x1ac7   :  { %v13748_v41 = vpop.permute.xlu0 %7419  ;;  %v7472_v62 = vpop.permute.xlu1 %7471 }
0x1ac8   :  { %v7475_v22 = vsel %vm61_vm2, %v7472_v62, %v13746_v42  ;;  %v7424_v0 = vsel %vm46_vm0, %v13721_v39, %v13748_v41  ;;  %v7444_v39 = vmul.f32 %v7435_v58, %v15102_v53 }
0x1ac9   :  { %v7488_v38 = vrot.slane %v7475_v22, %v7839_v6  ;;  %v7430_v43 = vadd.f32 %v7424_v0, %v7401_v17  ;;  %v15106_v22 = vld [vmem:[#allocation23_spill] sm:$0xff] }
0x1acb   :  { %v7470_v61 = vpop.permute.xlu0 %7469  ;;  %v7477_v40 = vpop.permute.xlu1 %7476 }
0x1acc   :  { %v7474_v49 = vsel %vm61_vm2, %v13746_v42, %v7470_v61  ;;  %v7473_v8 = vsel %vm61_vm2, %v7470_v61, %v7472_v62  ;;  %v7429_v42 = vadd.f32 %v7423_v23, %v7400_v55  ;;  %v7445_v62 = vmul.f32 %v7439_v29, %v15102_v53  ;;  %v15103_v61 = vld [vmem:[#allocation104_spill] sm:$0xff] }
0x1acd   :  { %v7492_v34 = vrot.slane %v7474_v49, %v7839_v6  ;;  %v7496_v35 = vrot.slane %v7473_v8, %v7839_v6  ;;  %v7497_v9 = vmul.f32 %v7488_v38, %v15103_v61 }
0x1ace   :  { %v7447_v21 = vadd.f32 %v7444_v39, %v7429_v42  ;;  %v7448_v32 = vadd.f32 %v7445_v62, %v7430_v43 }
0x1acf   :  { %v7422_v3 = vpop.permute.xlu0 %7421  ;;  %v7481_v47 = vpop.permute.xlu1 %7480  ;;  %v7498_v11 = vmul.f32 %v7492_v34, %v15103_v61  ;;  %v7499_v37 = vmul.f32 %v7496_v35, %v15103_v61 }
0x1ad0   :  { %v7425_v54 = vsel %vm46_vm0, %v13748_v41, %v7422_v3  ;;  %v7484_v59 = vsel %vm71_vm3, %v7481_v47, %v7477_v40  ;;  %v7500_v14 = vadd.f32 %v7497_v9, %v7447_v21 }
0x1ad1   :  { %v7431_v26 = vadd.f32 %v7425_v54, %v7402_v10  ;;  %v7520_v50 = vrot.slane %v7484_v59, %v7839_v6 }
0x1ad2   :  { %v7506_v54 = vadd.f32 %v7503_v16, %v7500_v14 }
0x1ad3   :  { %v7479_v51 = vpop.permute.xlu0 %7478  ;;  %v7449_v57 = vadd.f32 %v7446_v31, %v7431_v26  ;;  %v7523_v10 = vmul.f32 %v7520_v50, %v15105_v60 }
0x1ad4   :  { %v7483_v41 = vsel %vm71_vm3, %v7477_v40, %v7479_v51  ;;  %v7482_v30 = vsel %vm71_vm3, %v7479_v51, %v7481_v47  ;;  %v7501_v40 = vadd.f32 %v7498_v11, %v7448_v32 }
0x1ad5   :  { %v7512_v2 = vrot.slane %v7483_v41, %v7839_v6  ;;  %v7516_v63 = vrot.slane %v7482_v30, %v7839_v6  ;;  %v7502_v3 = vadd.f32 %v7499_v37, %v7449_v57 }
0x1ad6   :  { %v7507_v47 = vadd.f32 %v7504_v28, %v7501_v40 }
0x1ad7   :  { %v7521_v36 = vmul.f32 %v7512_v2, %v15105_v60  ;;  %v7522_v4 = vmul.f32 %v7516_v63, %v15105_v60  ;;  %v7508_v7 = vadd.f32 %v7505_v27, %v7502_v3 }
0x1ad9   :  { %v7524_v55 = vadd.f32 %v7521_v36, %v7506_v54  ;;  %v7525_v38 = vadd.f32 %v7522_v4, %v7507_v47  ;;  %v7526_v42 = vadd.f32 %v7523_v10, %v7508_v7 }
0x1adf   :  { %v7562_v44 = vpop.permute.xlu1 %7561  ;;  %v7560_v33 = vpop.permute.xlu0 %7559 }
0x1ae0   :  { %v7566_v56 = vsel %vm61_vm2, %v7560_v33, %v7562_v44 }
0x1ae1   :  { %v7584_v52 = vrot.slane %v7566_v56, %v7839_v6 }
0x1ae3   :  { %v7569_v13 = vpop.permute.xlu1 %7568  ;;  %v7564_v12 = vpop.permute.xlu0 %7563  ;;  %v7590_v51 = vmul.f32 %v7584_v52, %v15106_v22 }
0x1ae4   :  { %v7565_v25 = vsel %vm61_vm2, %v7562_v44, %v7564_v12  ;;  %v7567_v48 = vsel %vm61_vm2, %v7564_v12, %v7560_v33  ;;  %v15107_v44 = vld [vmem:[#allocation22_spill] sm:$0xff] }
0x1ae5   :  { %v7580_v15 = vrot.slane %v7567_v48, %v7839_v6  ;;  %v7588_v5 = vrot.slane %v7565_v25, %v7839_v6  ;;  %v7593_v31 = vadd.f32 %v7590_v51, %v7525_v38 }
0x1ae7   :  { %v7573_v45 = vpop.permute.xlu1 %7572  ;;  %v7571_v19 = vpop.permute.xlu0 %7570  ;;  %v7589_v1 = vmul.f32 %v7580_v15, %v15106_v22  ;;  %v7591_v18 = vmul.f32 %v7588_v5, %v15106_v22 }
0x1ae8   :  { %v7576_v20 = vsel %vm71_vm3, %v7573_v45, %v7569_v13  ;;  %v7574_v23 = vsel %vm71_vm3, %v7571_v19, %v7573_v45  ;;  %v7575_v49 = vsel %vm71_vm3, %v7569_v13, %v7571_v19 }
0x1ae9   :  { %v7635_v8 = vrot.slane %v7576_v20, %v7839_v6  ;;  %v7627_v17 = vrot.slane %v7575_v49, %v7839_v6  ;;  %v7631_v46 = vrot.slane %v7574_v23, %v7839_v6  ;;  %v7592_v26 = vadd.f32 %v7589_v1, %v7524_v55 }
0x1aea   :  { %v7594_v43 = vadd.f32 %v7591_v18, %v7526_v42 }
0x1aeb   :  { %v7610_v58 = vpop.permute.xlu1 %7609  ;;  %v7608_v0 = vpop.permute.xlu0 %7607  ;;  %v7638_v33 = vmul.f32 %v7635_v8, %v15107_v44  ;;  %v7636_v62 = vmul.f32 %v7627_v17, %v15107_v44  ;;  %v7637_v61 = vmul.f32 %v7631_v46, %v15107_v44 }
0x1aec   :  { %v7615_v29 = vsel %vm270_vm1, %v7608_v0, %v7610_v58 }
0x1aed   :  { %v7621_v34 = vadd.f32 %v7615_v29, %v7592_v26 }
0x1aef   :  { %v7614_v53 = vpop.permute.xlu1 %7613  ;;  %v7612_v35 = vpop.permute.xlu0 %7611  ;;  %v7639_v6 = vadd.f32 %v7636_v62, %v7621_v34 }
0x1af0   :  { %v7616_v39 = vsel %vm270_vm1, %v7610_v58, %v7612_v35  ;;  %v7617_v41 = vsel %vm270_vm1, %v7612_v35, %v7614_v53 }
0x1af1   :  { %v7622_v9 = vadd.f32 %v7616_v39, %v7593_v31  ;;  %v7623_v57 = vadd.f32 %v7617_v41, %v7594_v43 }
0x1af3   :  { %v7640_v30 = vadd.f32 %v7637_v61, %v7622_v9  ;;  %v7641_v21 = vadd.f32 %v7638_v33, %v7623_v57 }
0x1af5   :  { %v7644_v11 = vcombine.low %v7639_v6, %v7640_v30  ;;  %7688 = vst [vmem:[%s13901_s3 + $0x14] sm:$0xf] %v7641_v21 }
0x1af7   :  { %7687 = vst [vmem:[%s13901_s3 + $0xc] sm:$0xff] %v7644_v11 }

</bundles_post_ra>
